<compile_context>
chip_gen: v5e
topology: v5e:2x2
jax: 0.10.0
libtpu: 0.0.40
codegen_flags: <defaults>
</compile_context>

<pallas_src>
import functools

import jax
import jax.numpy as jnp
from jax import lax
from jax.experimental import pallas as pl
from jax.experimental.pallas import tpu as pltpu

BN_EPS = 1e-5
OUT_SUBLANES = 8    # pad logits rows so the output block is (8, 128)-aligned
OUT_LANES = 128     # lane-dense logits block; sliced to num_classes in the wrapper
HID_PAD = 128       # padded hidden width of the MLP head


def _round8(n):
    return ((n + 7) // 8) * 8


# ----------------------------------------------------------------------------
# Fused kernel: all conv/BN/LeakyReLU blocks + avgpool + MLP head.
# One sample per grid step (grid over batch, "parallel" for megacore).
# Activations live as values in flat (S = H*W, C_pad) layout; spatial 3x3 taps
# are static circular shifts along the flattened spatial axis + a border mask.
# ----------------------------------------------------------------------------
def _make_fused_vgg_kernel(num_blocks, H, W):
    S = H * W

    def kernel(*refs):
        x_ref = refs[0]                                    # (S, cin0_pad)  f32
        blk_refs = refs[1:1 + 2 * num_blocks]              # per block: w (bf16), bias (f32)
        w1_ref, b1_ref, w2_ref, b2_ref = refs[1 + 2 * num_blocks:5 + 2 * num_blocks]
        o_ref = refs[5 + 2 * num_blocks]                   # (OUT_SUBLANES, OUT_LANES)

        # Border masks per 3x3 tap, shared by every block (shape (S, 1)).
        sidx = lax.broadcasted_iota(jnp.int32, (S, 1), 0)   # flat spatial index
        col = sidx % W                                      # column within a row

        def tap_mask(oy, ox):
            conds = []
            if oy < 0:
                conds.append(sidx >= W)            # row >= 1
            if oy > 0:
                conds.append(sidx < S - W)         # row <= H-2
            if ox < 0:
                conds.append(col >= 1)
            if ox > 0:
                conds.append(col < W - 1)
            if not conds:
                return None
            m = conds[0]
            for c in conds[1:]:
                m = jnp.logical_and(m, c)
            return m

        masks = [tap_mask(k // 3 - 1, k % 3 - 1) for k in range(9)]

        act = x_ref[...]                                    # (S, cin_pad) f32
        for i in range(num_blocks):
            w_ref = blk_refs[2 * i]        # (9, cin_pad, cout_pad) bf16 (BN scale folded in)
            b_ref = blk_refs[2 * i + 1]    # (1, cout_pad) f32 (conv bias + BN shift folded)

            acc = None
            for k in range(9):
                oy, ox = k // 3 - 1, k % 3 - 1
                d = oy * W + ox
                if d == 0:
                    v = act
                else:
                    # Static circular shift along the flattened spatial axis.
                    v = jnp.concatenate([act[d:], act[:d]], axis=0)
                if masks[k] is not None:
                    v = jnp.where(masks[k], v, 0.0)          # zero out-of-image taps
                part = jnp.dot(v.astype(jnp.bfloat16), w_ref[k],
                               preferred_element_type=jnp.float32)  # (S, cout_pad)
                acc = part if acc is None else acc + part

            y = acc + b_ref[...]                             # folded bias/BN affine
            act = jnp.maximum(y, 0.2 * y)                    # LeakyReLU(0.2)

        # Head: global average pool over H*W, then Linear -> ReLU -> Linear (f32).
        pooled = jnp.mean(act, axis=0, keepdims=True)        # (1, c_last_pad)
        h = jnp.dot(pooled, w1_ref[...],
                    preferred_element_type=jnp.float32) + b1_ref[...]
        h = jnp.maximum(h, 0.0)
        logits = jnp.dot(h, w2_ref[...],
                         preferred_element_type=jnp.float32) + b2_ref[...]
        o_ref[...] = jnp.broadcast_to(logits, (OUT_SUBLANES, OUT_LANES))

    return kernel


# ----------------------------------------------------------------------------
# Wrapper: fold conv-bias + eval-BN into the weights, pad channels to multiples
# of 8, single pallas_call over the batch.
# ----------------------------------------------------------------------------
@functools.partial(jax.jit, static_argnames=("num_classes",))
def vgg_forward_pallas(x_nchw, params, *, num_classes):
    N, cin0, H, W = x_nchw.shape
    S = H * W
    num_blocks = len(params["blocks"])
    assert num_blocks >= 1

    # Per-stage channel sizes and their (multiple-of-8) paddings.
    chans = [cin0] + [bp["w"].shape[0] for bp in params["blocks"]]
    pads = [_round8(c) for c in chans]

    # NCHW -> flat (N, S, C) with channels zero-padded to pads[0].
    x = jnp.transpose(x_nchw, (0, 2, 3, 1)).astype(jnp.float32).reshape(N, S, cin0)
    x = jnp.pad(x, ((0, 0), (0, 0), (0, pads[0] - cin0)))

    inputs = [x]
    in_specs = [pl.BlockSpec((None, S, pads[0]), lambda b: (b, 0, 0))]

    for i, bp in enumerate(params["blocks"]):
        cout, cin = bp["w"].shape[0], bp["w"].shape[1]
        cin_p, cout_p = pads[i], pads[i + 1]
        # Fold conv bias + eval-mode BatchNorm into the weights / a per-channel shift.
        inv_std = 1.0 / jnp.sqrt(bp["rvar"] + BN_EPS)
        scale = bp["gamma"] * inv_std                                    # (cout,)
        bias = bp["beta"] + scale * (bp["b"] - bp["rmean"])              # (cout,)
        # OIHW -> tap-major (9, cin, cout), BN scale folded, padded, bf16.
        w_taps = jnp.transpose(bp["w"], (2, 3, 1, 0)).reshape(9, cin, cout)
        w_taps = w_taps * scale[None, None, :]
        w_pad = (jnp.zeros((9, cin_p, cout_p), jnp.float32)
                 .at[:, :cin, :cout].set(w_taps).astype(jnp.bfloat16))
        b_pad = jnp.zeros((1, cout_p), jnp.float32).at[0, :cout].set(bias)
        inputs += [w_pad, b_pad]
        in_specs += [pl.BlockSpec((9, cin_p, cout_p), lambda b: (0, 0, 0)),
                     pl.BlockSpec((1, cout_p), lambda b: (0, 0))]

    fc = params["fc"]
    c_last, hidden = fc["w1"].shape
    c_last_p = pads[-1]
    inputs += [
        jnp.zeros((c_last_p, HID_PAD), jnp.float32).at[:c_last, :hidden].set(fc["w1"]),
        jnp.zeros((1, HID_PAD), jnp.float32).at[0, :hidden].set(fc["b1"]),
        jnp.zeros((HID_PAD, OUT_LANES), jnp.float32)
            .at[:hidden, :num_classes].set(fc["w2"]),
        jnp.zeros((1, OUT_LANES), jnp.float32).at[0, :num_classes].set(fc["b2"]),
    ]
    in_specs += [pl.BlockSpec((c_last_p, HID_PAD), lambda b: (0, 0)),
                 pl.BlockSpec((1, HID_PAD), lambda b: (0, 0)),
                 pl.BlockSpec((HID_PAD, OUT_LANES), lambda b: (0, 0)),
                 pl.BlockSpec((1, OUT_LANES), lambda b: (0, 0))]

    out = pl.pallas_call(
        _make_fused_vgg_kernel(num_blocks, H, W),
        out_shape=jax.ShapeDtypeStruct((N, OUT_SUBLANES, OUT_LANES), jnp.float32),
        grid_spec=pltpu.PrefetchScalarGridSpec(
            num_scalar_prefetch=0,
            grid=(N,),
            in_specs=in_specs,
            out_specs=pl.BlockSpec((None, OUT_SUBLANES, OUT_LANES),
                                   lambda b: (b, 0, 0)),
            scratch_shapes=[]),
        compiler_params=pltpu.CompilerParams(
            dimension_semantics=("parallel",),          # batch across TCs (v7x)
            vmem_limit_bytes=32 * 1024 * 1024),         # fits v7x's 64 MiB VMEM
    )(*inputs)
    return out[:, 0, :num_classes]


# ----------------------------------------------------------------------------
# Deterministic parameter construction + plain-JAX reference (eval mode).
# ----------------------------------------------------------------------------
def init_params(key, channels, num_classes):
    params = {"blocks": []}
    for i in range(len(channels) - 1):
        cin, cout = channels[i], channels[i + 1]
        key, kw, kb, kg, kbe, km, kv = jax.random.split(key, 7)
        params["blocks"].append({
            "w": jax.random.normal(kw, (cout, cin, 3, 3), jnp.float32) * 0.1,   # OIHW
            "b": jax.random.normal(kb, (cout,), jnp.float32) * 0.05,
            "gamma": 1.0 + 0.1 * jax.random.normal(kg, (cout,), jnp.float32),
            "beta": 0.1 * jax.random.normal(kbe, (cout,), jnp.float32),
            "rmean": 0.05 * jax.random.normal(km, (cout,), jnp.float32),
            "rvar": 1.0 + 0.1 * jnp.abs(jax.random.normal(kv, (cout,), jnp.float32)),
        })
    c_last = channels[-1]
    hidden = (c_last + num_classes) // 2
    key, k1, k2, k3, k4 = jax.random.split(key, 5)
    params["fc"] = {
        "w1": jax.random.normal(k1, (c_last, hidden), jnp.float32) * 0.1,
        "b1": 0.05 * jax.random.normal(k2, (hidden,), jnp.float32),
        "w2": jax.random.normal(k3, (hidden, num_classes), jnp.float32) * 0.1,
        "b2": 0.05 * jax.random.normal(k4, (num_classes,), jnp.float32),
    }
    return params


def vgg_forward_reference(x_nchw, params):
    """Plain-JAX f32 reference mirroring the PyTorch (eval-mode) forward."""
    x = x_nchw.astype(jnp.float32)
    for bp in params["blocks"]:
        x = lax.conv_general_dilated(
            x, bp["w"], window_strides=(1, 1), padding=((1, 1), (1, 1)),
            dimension_numbers=("NCHW", "OIHW", "NCHW"))
        x = x + bp["b"][None, :, None, None]
        x = (x - bp["rmean"][None, :, None, None]) / jnp.sqrt(
            bp["rvar"] + BN_EPS)[None, :, None, None]
        x = x * bp["gamma"][None, :, None, None] + bp["beta"][None, :, None, None]
        x = jnp.where(x >= 0, x, 0.2 * x)
    pooled = jnp.mean(x, axis=(2, 3))
    fc = params["fc"]
    h = jnp.maximum(pooled @ fc["w1"] + fc["b1"], 0.0)
    return h @ fc["w2"] + fc["b2"]


if __name__ == "__main__":
    channels = (3, 8, 16, 32)     # small-config VGG stack (same block structure)
    num_classes = 10
    N, H, W = 2, 16, 16

    key = jax.random.PRNGKey(0)
    key, kx = jax.random.split(key)
    x = jax.random.normal(kx, (N, channels[0], H, W), jnp.float32)   # NCHW input
    params = init_params(key, channels, num_classes)

    out = vgg_forward_pallas(x, params, num_classes=num_classes)
    out = jax.block_until_ready(out)

    ref = vgg_forward_reference(x, params)
    assert out.shape == (N, num_classes)
    # Tolerance relaxed vs f32 reference because conv GEMM operands are bf16
    # (MXU-native); BN-affine / LeakyReLU / head stay f32.
    assert jnp.allclose(out, ref, rtol=2e-2, atol=2e-2), (out, ref)

    print("KERNEL_OK")
</pallas_src>

<mosaic_0001>
module attributes {stable_mosaic.version = 11 : i64} {
  func.func @kernel(%arg0: i32, %arg1: memref<1x256x8xf32, #tpu.memory_space<vmem>>, %arg2: memref<9x8x8xbf16, #tpu.memory_space<vmem>>, %arg3: memref<1x8xf32, #tpu.memory_space<vmem>>, %arg4: memref<9x8x16xbf16, #tpu.memory_space<vmem>>, %arg5: memref<1x16xf32, #tpu.memory_space<vmem>>, %arg6: memref<9x16x32xbf16, #tpu.memory_space<vmem>>, %arg7: memref<1x32xf32, #tpu.memory_space<vmem>>, %arg8: memref<32x128xf32, #tpu.memory_space<vmem>>, %arg9: memref<1x128xf32, #tpu.memory_space<vmem>>, %arg10: memref<128x128xf32, #tpu.memory_space<vmem>>, %arg11: memref<1x128xf32, #tpu.memory_space<vmem>>, %arg12: memref<1x8x128xf32, #tpu.memory_space<vmem>>) attributes {dimension_semantics = [#tpu.dimension_semantics<parallel>], iteration_bounds = array<i64: 2>, scalar_prefetch = 0 : i64, scratch_operands = 0 : i64, tpu.core_type = #tpu.core_type<tc>, window_params = [{transform_indices = @transform_0, window_bounds = array<i64: 1, 256, 8>}, {pipeline_mode = #tpu.pipeline_mode<synchronous>, transform_indices = @transform_1, window_bounds = array<i64: 9, 8, 8>}, {pipeline_mode = #tpu.pipeline_mode<synchronous>, transform_indices = @transform_2, window_bounds = array<i64: 1, 8>}, {pipeline_mode = #tpu.pipeline_mode<synchronous>, transform_indices = @transform_3, window_bounds = array<i64: 9, 8, 16>}, {pipeline_mode = #tpu.pipeline_mode<synchronous>, transform_indices = @transform_4, window_bounds = array<i64: 1, 16>}, {pipeline_mode = #tpu.pipeline_mode<synchronous>, transform_indices = @transform_5, window_bounds = array<i64: 9, 16, 32>}, {pipeline_mode = #tpu.pipeline_mode<synchronous>, transform_indices = @transform_6, window_bounds = array<i64: 1, 32>}, {pipeline_mode = #tpu.pipeline_mode<synchronous>, transform_indices = @transform_7, window_bounds = array<i64: 32, 128>}, {pipeline_mode = #tpu.pipeline_mode<synchronous>, transform_indices = @transform_8, window_bounds = array<i64: 1, 128>}, {pipeline_mode = #tpu.pipeline_mode<synchronous>, transform_indices = @transform_9, window_bounds = array<i64: 128, 128>}, {pipeline_mode = #tpu.pipeline_mode<synchronous>, transform_indices = @transform_10, window_bounds = array<i64: 1, 128>}, {transform_indices = @transform_11, window_bounds = array<i64: 1, 8, 128>}]} {
    %0 = tpu.iota {dimensions = array<i32: 0>} : vector<256x1xi32>
    %c16_i32 = arith.constant 16 : i32
    %c0_i32 = arith.constant 0 : i32
    %1 = arith.cmpi eq, %c16_i32, %c0_i32 : i32
    %c1_i32 = arith.constant 1 : i32
    %2 = arith.select %1, %c1_i32, %c16_i32 : i32
    %3 = vector.broadcast %2 : i32 to vector<256x1xi32>
    %4 = arith.remsi %0, %3 : vector<256x1xi32>
    %c0_i32_0 = arith.constant 0 : i32
    %5 = vector.broadcast %c0_i32_0 : i32 to vector<256x1xi32>
    %6 = arith.cmpi ne, %4, %5 : vector<256x1xi32>
    %c0_i32_1 = arith.constant 0 : i32
    %7 = vector.broadcast %c0_i32_1 : i32 to vector<256x1xi32>
    %8 = arith.cmpi slt, %4, %7 : vector<256x1xi32>
    %c0_i32_2 = arith.constant 0 : i32
    %9 = arith.cmpi slt, %2, %c0_i32_2 : i32
    %10 = vector.broadcast %9 : i1 to vector<256x1xi1>
    %11 = vector.broadcast %10 : vector<256x1xi1> to vector<256x1xi1>
    %12 = arith.xori %8, %11 : vector<256x1xi1>
    %13 = arith.andi %12, %6 : vector<256x1xi1>
    %14 = vector.broadcast %2 : i32 to vector<256x1xi32>
    %15 = arith.addi %4, %14 : vector<256x1xi32>
    %16 = arith.select %13, %15, %4 : vector<256x1xi1>, vector<256x1xi32>
    %c16_i32_3 = arith.constant 16 : i32
    %17 = vector.broadcast %c16_i32_3 : i32 to vector<256x1xi32>
    %18 = arith.cmpi sge, %0, %17 : vector<256x1xi32>
    %c1_i32_4 = arith.constant 1 : i32
    %19 = vector.broadcast %c1_i32_4 : i32 to vector<256x1xi32>
    %20 = arith.cmpi sge, %16, %19 : vector<256x1xi32>
    %21 = arith.andi %18, %20 : vector<256x1xi1>
    %c16_i32_5 = arith.constant 16 : i32
    %22 = vector.broadcast %c16_i32_5 : i32 to vector<256x1xi32>
    %23 = arith.cmpi sge, %0, %22 : vector<256x1xi32>
    %c16_i32_6 = arith.constant 16 : i32
    %24 = vector.broadcast %c16_i32_6 : i32 to vector<256x1xi32>
    %25 = arith.cmpi sge, %0, %24 : vector<256x1xi32>
    %c15_i32 = arith.constant 15 : i32
    %26 = vector.broadcast %c15_i32 : i32 to vector<256x1xi32>
    %27 = arith.cmpi slt, %16, %26 : vector<256x1xi32>
    %28 = arith.andi %25, %27 : vector<256x1xi1>
    %c1_i32_7 = arith.constant 1 : i32
    %29 = vector.broadcast %c1_i32_7 : i32 to vector<256x1xi32>
    %30 = arith.cmpi sge, %16, %29 : vector<256x1xi32>
    %c15_i32_8 = arith.constant 15 : i32
    %31 = vector.broadcast %c15_i32_8 : i32 to vector<256x1xi32>
    %32 = arith.cmpi slt, %16, %31 : vector<256x1xi32>
    %c240_i32 = arith.constant 240 : i32
    %33 = vector.broadcast %c240_i32 : i32 to vector<256x1xi32>
    %34 = arith.cmpi slt, %0, %33 : vector<256x1xi32>
    %c1_i32_9 = arith.constant 1 : i32
    %35 = vector.broadcast %c1_i32_9 : i32 to vector<256x1xi32>
    %36 = arith.cmpi sge, %16, %35 : vector<256x1xi32>
    %37 = arith.andi %34, %36 : vector<256x1xi1>
    %c240_i32_10 = arith.constant 240 : i32
    %38 = vector.broadcast %c240_i32_10 : i32 to vector<256x1xi32>
    %39 = arith.cmpi slt, %0, %38 : vector<256x1xi32>
    %c240_i32_11 = arith.constant 240 : i32
    %40 = vector.broadcast %c240_i32_11 : i32 to vector<256x1xi32>
    %41 = arith.cmpi slt, %0, %40 : vector<256x1xi32>
    %c15_i32_12 = arith.constant 15 : i32
    %42 = vector.broadcast %c15_i32_12 : i32 to vector<256x1xi32>
    %43 = arith.cmpi slt, %16, %42 : vector<256x1xi32>
    %44 = arith.andi %41, %43 : vector<256x1xi1>
    %c0 = arith.constant 0 : index
    %c0_13 = arith.constant 0 : index
    %c0_14 = arith.constant 0 : index
    %45 = vector.load %arg1[%c0, %c0_13, %c0_14] : memref<1x256x8xf32, #tpu.memory_space<vmem>>, vector<1x256x8xf32>
    %46 = vector.shape_cast %45 : vector<1x256x8xf32> to vector<256x8xf32>
    %47 = vector.extract_strided_slice %46 {offsets = [239, 0], sizes = [17, 8], strides = [1, 1]} : vector<256x8xf32> to vector<17x8xf32>
    %48 = vector.extract_strided_slice %46 {offsets = [0, 0], sizes = [239, 8], strides = [1, 1]} : vector<256x8xf32> to vector<239x8xf32>
    %49 = tpu.concatenate %47, %48 in 0 : vector<17x8xf32>, vector<239x8xf32> -> vector<256x8xf32>
    %cst = arith.constant 0.000000e+00 : f32
    %50 = vector.shape_cast %21 : vector<256x1xi1> to vector<256x1xi1>
    %51 = vector.broadcast %50 : vector<256x1xi1> to vector<256x8xi1>
    %52 = vector.broadcast %cst : f32 to vector<256x8xf32>
    %53 = arith.select %51, %49, %52 : vector<256x8xi1>, vector<256x8xf32>
    %54 = arith.truncf %53 : vector<256x8xf32> to vector<256x8xbf16>
    %c0_15 = arith.constant 0 : index
    %c0_16 = arith.constant 0 : index
    %c0_17 = arith.constant 0 : index
    %55 = vector.load %arg2[%c0_15, %c0_16, %c0_17] : memref<9x8x8xbf16, #tpu.memory_space<vmem>>, vector<1x8x8xbf16>
    %56 = vector.shape_cast %55 : vector<1x8x8xbf16> to vector<8x8xbf16>
    %cst_18 = arith.constant dense<0.000000e+00> : vector<256x8xf32>
    %57 = tpu.matmul %54, %56, %cst_18 {dimension_numbers = #tpu.dot_dimension_numbers<[1], [0], [0], [1], [0, 0, 1, 1], [], []>} : vector<256x8xbf16>, vector<8x8xbf16>, vector<256x8xf32> -> vector<256x8xf32>
    %58 = vector.extract_strided_slice %46 {offsets = [240, 0], sizes = [16, 8], strides = [1, 1]} : vector<256x8xf32> to vector<16x8xf32>
    %59 = vector.extract_strided_slice %46 {offsets = [0, 0], sizes = [240, 8], strides = [1, 1]} : vector<256x8xf32> to vector<240x8xf32>
    %60 = tpu.concatenate %58, %59 in 0 : vector<16x8xf32>, vector<240x8xf32> -> vector<256x8xf32>
    %cst_19 = arith.constant 0.000000e+00 : f32
    %61 = vector.shape_cast %23 : vector<256x1xi1> to vector<256x1xi1>
    %62 = vector.broadcast %61 : vector<256x1xi1> to vector<256x8xi1>
    %63 = vector.broadcast %cst_19 : f32 to vector<256x8xf32>
    %64 = arith.select %62, %60, %63 : vector<256x8xi1>, vector<256x8xf32>
    %65 = arith.truncf %64 : vector<256x8xf32> to vector<256x8xbf16>
    %c1 = arith.constant 1 : index
    %c0_20 = arith.constant 0 : index
    %c0_21 = arith.constant 0 : index
    %66 = vector.load %arg2[%c1, %c0_20, %c0_21] : memref<9x8x8xbf16, #tpu.memory_space<vmem>>, vector<1x8x8xbf16>
    %67 = vector.shape_cast %66 : vector<1x8x8xbf16> to vector<8x8xbf16>
    %cst_22 = arith.constant dense<0.000000e+00> : vector<256x8xf32>
    %68 = tpu.matmul %65, %67, %cst_22 {dimension_numbers = #tpu.dot_dimension_numbers<[1], [0], [0], [1], [0, 0, 1, 1], [], []>} : vector<256x8xbf16>, vector<8x8xbf16>, vector<256x8xf32> -> vector<256x8xf32>
    %69 = arith.addf %57, %68 : vector<256x8xf32>
    %70 = vector.extract_strided_slice %46 {offsets = [241, 0], sizes = [15, 8], strides = [1, 1]} : vector<256x8xf32> to vector<15x8xf32>
    %71 = vector.extract_strided_slice %46 {offsets = [0, 0], sizes = [241, 8], strides = [1, 1]} : vector<256x8xf32> to vector<241x8xf32>
    %72 = tpu.concatenate %70, %71 in 0 : vector<15x8xf32>, vector<241x8xf32> -> vector<256x8xf32>
    %cst_23 = arith.constant 0.000000e+00 : f32
    %73 = vector.shape_cast %28 : vector<256x1xi1> to vector<256x1xi1>
    %74 = vector.broadcast %73 : vector<256x1xi1> to vector<256x8xi1>
    %75 = vector.broadcast %cst_23 : f32 to vector<256x8xf32>
    %76 = arith.select %74, %72, %75 : vector<256x8xi1>, vector<256x8xf32>
    %77 = arith.truncf %76 : vector<256x8xf32> to vector<256x8xbf16>
    %c2 = arith.constant 2 : index
    %c0_24 = arith.constant 0 : index
    %c0_25 = arith.constant 0 : index
    %78 = vector.load %arg2[%c2, %c0_24, %c0_25] : memref<9x8x8xbf16, #tpu.memory_space<vmem>>, vector<1x8x8xbf16>
    %79 = vector.shape_cast %78 : vector<1x8x8xbf16> to vector<8x8xbf16>
    %cst_26 = arith.constant dense<0.000000e+00> : vector<256x8xf32>
    %80 = tpu.matmul %77, %79, %cst_26 {dimension_numbers = #tpu.dot_dimension_numbers<[1], [0], [0], [1], [0, 0, 1, 1], [], []>} : vector<256x8xbf16>, vector<8x8xbf16>, vector<256x8xf32> -> vector<256x8xf32>
    %81 = arith.addf %69, %80 : vector<256x8xf32>
    %82 = vector.extract_strided_slice %46 {offsets = [255, 0], sizes = [1, 8], strides = [1, 1]} : vector<256x8xf32> to vector<1x8xf32>
    %83 = vector.extract_strided_slice %46 {offsets = [0, 0], sizes = [255, 8], strides = [1, 1]} : vector<256x8xf32> to vector<255x8xf32>
    %84 = tpu.concatenate %82, %83 in 0 : vector<1x8xf32>, vector<255x8xf32> -> vector<256x8xf32>
    %cst_27 = arith.constant 0.000000e+00 : f32
    %85 = vector.shape_cast %30 : vector<256x1xi1> to vector<256x1xi1>
    %86 = vector.broadcast %85 : vector<256x1xi1> to vector<256x8xi1>
    %87 = vector.broadcast %cst_27 : f32 to vector<256x8xf32>
    %88 = arith.select %86, %84, %87 : vector<256x8xi1>, vector<256x8xf32>
    %89 = arith.truncf %88 : vector<256x8xf32> to vector<256x8xbf16>
    %c3 = arith.constant 3 : index
    %c0_28 = arith.constant 0 : index
    %c0_29 = arith.constant 0 : index
    %90 = vector.load %arg2[%c3, %c0_28, %c0_29] : memref<9x8x8xbf16, #tpu.memory_space<vmem>>, vector<1x8x8xbf16>
    %91 = vector.shape_cast %90 : vector<1x8x8xbf16> to vector<8x8xbf16>
    %cst_30 = arith.constant dense<0.000000e+00> : vector<256x8xf32>
    %92 = tpu.matmul %89, %91, %cst_30 {dimension_numbers = #tpu.dot_dimension_numbers<[1], [0], [0], [1], [0, 0, 1, 1], [], []>} : vector<256x8xbf16>, vector<8x8xbf16>, vector<256x8xf32> -> vector<256x8xf32>
    %93 = arith.addf %81, %92 : vector<256x8xf32>
    %94 = arith.truncf %46 : vector<256x8xf32> to vector<256x8xbf16>
    %c4 = arith.constant 4 : index
    %c0_31 = arith.constant 0 : index
    %c0_32 = arith.constant 0 : index
    %95 = vector.load %arg2[%c4, %c0_31, %c0_32] : memref<9x8x8xbf16, #tpu.memory_space<vmem>>, vector<1x8x8xbf16>
    %96 = vector.shape_cast %95 : vector<1x8x8xbf16> to vector<8x8xbf16>
    %cst_33 = arith.constant dense<0.000000e+00> : vector<256x8xf32>
    %97 = tpu.matmul %94, %96, %cst_33 {dimension_numbers = #tpu.dot_dimension_numbers<[1], [0], [0], [1], [0, 0, 1, 1], [], []>} : vector<256x8xbf16>, vector<8x8xbf16>, vector<256x8xf32> -> vector<256x8xf32>
    %98 = arith.addf %93, %97 : vector<256x8xf32>
    %99 = vector.extract_strided_slice %46 {offsets = [1, 0], sizes = [255, 8], strides = [1, 1]} : vector<256x8xf32> to vector<255x8xf32>
    %100 = vector.extract_strided_slice %46 {offsets = [0, 0], sizes = [1, 8], strides = [1, 1]} : vector<256x8xf32> to vector<1x8xf32>
    %101 = tpu.concatenate %99, %100 in 0 : vector<255x8xf32>, vector<1x8xf32> -> vector<256x8xf32>
    %cst_34 = arith.constant 0.000000e+00 : f32
    %102 = vector.shape_cast %32 : vector<256x1xi1> to vector<256x1xi1>
    %103 = vector.broadcast %102 : vector<256x1xi1> to vector<256x8xi1>
    %104 = vector.broadcast %cst_34 : f32 to vector<256x8xf32>
    %105 = arith.select %103, %101, %104 : vector<256x8xi1>, vector<256x8xf32>
    %106 = arith.truncf %105 : vector<256x8xf32> to vector<256x8xbf16>
    %c5 = arith.constant 5 : index
    %c0_35 = arith.constant 0 : index
    %c0_36 = arith.constant 0 : index
    %107 = vector.load %arg2[%c5, %c0_35, %c0_36] : memref<9x8x8xbf16, #tpu.memory_space<vmem>>, vector<1x8x8xbf16>
    %108 = vector.shape_cast %107 : vector<1x8x8xbf16> to vector<8x8xbf16>
    %cst_37 = arith.constant dense<0.000000e+00> : vector<256x8xf32>
    %109 = tpu.matmul %106, %108, %cst_37 {dimension_numbers = #tpu.dot_dimension_numbers<[1], [0], [0], [1], [0, 0, 1, 1], [], []>} : vector<256x8xbf16>, vector<8x8xbf16>, vector<256x8xf32> -> vector<256x8xf32>
    %110 = arith.addf %98, %109 : vector<256x8xf32>
    %111 = vector.extract_strided_slice %46 {offsets = [15, 0], sizes = [241, 8], strides = [1, 1]} : vector<256x8xf32> to vector<241x8xf32>
    %112 = vector.extract_strided_slice %46 {offsets = [0, 0], sizes = [15, 8], strides = [1, 1]} : vector<256x8xf32> to vector<15x8xf32>
    %113 = tpu.concatenate %111, %112 in 0 : vector<241x8xf32>, vector<15x8xf32> -> vector<256x8xf32>
    %cst_38 = arith.constant 0.000000e+00 : f32
    %114 = vector.shape_cast %37 : vector<256x1xi1> to vector<256x1xi1>
    %115 = vector.broadcast %114 : vector<256x1xi1> to vector<256x8xi1>
    %116 = vector.broadcast %cst_38 : f32 to vector<256x8xf32>
    %117 = arith.select %115, %113, %116 : vector<256x8xi1>, vector<256x8xf32>
    %118 = arith.truncf %117 : vector<256x8xf32> to vector<256x8xbf16>
    %c6 = arith.constant 6 : index
    %c0_39 = arith.constant 0 : index
    %c0_40 = arith.constant 0 : index
    %119 = vector.load %arg2[%c6, %c0_39, %c0_40] : memref<9x8x8xbf16, #tpu.memory_space<vmem>>, vector<1x8x8xbf16>
    %120 = vector.shape_cast %119 : vector<1x8x8xbf16> to vector<8x8xbf16>
    %cst_41 = arith.constant dense<0.000000e+00> : vector<256x8xf32>
    %121 = tpu.matmul %118, %120, %cst_41 {dimension_numbers = #tpu.dot_dimension_numbers<[1], [0], [0], [1], [0, 0, 1, 1], [], []>} : vector<256x8xbf16>, vector<8x8xbf16>, vector<256x8xf32> -> vector<256x8xf32>
    %122 = arith.addf %110, %121 : vector<256x8xf32>
    %123 = vector.extract_strided_slice %46 {offsets = [16, 0], sizes = [240, 8], strides = [1, 1]} : vector<256x8xf32> to vector<240x8xf32>
    %124 = vector.extract_strided_slice %46 {offsets = [0, 0], sizes = [16, 8], strides = [1, 1]} : vector<256x8xf32> to vector<16x8xf32>
    %125 = tpu.concatenate %123, %124 in 0 : vector<240x8xf32>, vector<16x8xf32> -> vector<256x8xf32>
    %cst_42 = arith.constant 0.000000e+00 : f32
    %126 = vector.shape_cast %39 : vector<256x1xi1> to vector<256x1xi1>
    %127 = vector.broadcast %126 : vector<256x1xi1> to vector<256x8xi1>
    %128 = vector.broadcast %cst_42 : f32 to vector<256x8xf32>
    %129 = arith.select %127, %125, %128 : vector<256x8xi1>, vector<256x8xf32>
    %130 = arith.truncf %129 : vector<256x8xf32> to vector<256x8xbf16>
    %c7 = arith.constant 7 : index
    %c0_43 = arith.constant 0 : index
    %c0_44 = arith.constant 0 : index
    %131 = vector.load %arg2[%c7, %c0_43, %c0_44] : memref<9x8x8xbf16, #tpu.memory_space<vmem>>, vector<1x8x8xbf16>
    %132 = vector.shape_cast %131 : vector<1x8x8xbf16> to vector<8x8xbf16>
    %cst_45 = arith.constant dense<0.000000e+00> : vector<256x8xf32>
    %133 = tpu.matmul %130, %132, %cst_45 {dimension_numbers = #tpu.dot_dimension_numbers<[1], [0], [0], [1], [0, 0, 1, 1], [], []>} : vector<256x8xbf16>, vector<8x8xbf16>, vector<256x8xf32> -> vector<256x8xf32>
    %134 = arith.addf %122, %133 : vector<256x8xf32>
    %135 = vector.extract_strided_slice %46 {offsets = [17, 0], sizes = [239, 8], strides = [1, 1]} : vector<256x8xf32> to vector<239x8xf32>
    %136 = vector.extract_strided_slice %46 {offsets = [0, 0], sizes = [17, 8], strides = [1, 1]} : vector<256x8xf32> to vector<17x8xf32>
    %137 = tpu.concatenate %135, %136 in 0 : vector<239x8xf32>, vector<17x8xf32> -> vector<256x8xf32>
    %cst_46 = arith.constant 0.000000e+00 : f32
    %138 = vector.shape_cast %44 : vector<256x1xi1> to vector<256x1xi1>
    %139 = vector.broadcast %138 : vector<256x1xi1> to vector<256x8xi1>
    %140 = vector.broadcast %cst_46 : f32 to vector<256x8xf32>
    %141 = arith.select %139, %137, %140 : vector<256x8xi1>, vector<256x8xf32>
    %142 = arith.truncf %141 : vector<256x8xf32> to vector<256x8xbf16>
    %c8 = arith.constant 8 : index
    %c0_47 = arith.constant 0 : index
    %c0_48 = arith.constant 0 : index
    %143 = vector.load %arg2[%c8, %c0_47, %c0_48] : memref<9x8x8xbf16, #tpu.memory_space<vmem>>, vector<1x8x8xbf16>
    %144 = vector.shape_cast %143 : vector<1x8x8xbf16> to vector<8x8xbf16>
    %cst_49 = arith.constant dense<0.000000e+00> : vector<256x8xf32>
    %145 = tpu.matmul %142, %144, %cst_49 {dimension_numbers = #tpu.dot_dimension_numbers<[1], [0], [0], [1], [0, 0, 1, 1], [], []>} : vector<256x8xbf16>, vector<8x8xbf16>, vector<256x8xf32> -> vector<256x8xf32>
    %146 = arith.addf %134, %145 : vector<256x8xf32>
    %c0_50 = arith.constant 0 : index
    %c0_51 = arith.constant 0 : index
    %147 = vector.load %arg3[%c0_50, %c0_51] : memref<1x8xf32, #tpu.memory_space<vmem>>, vector<1x8xf32>
    %148 = vector.broadcast %147 : vector<1x8xf32> to vector<256x8xf32>
    %149 = arith.addf %146, %148 : vector<256x8xf32>
    %cst_52 = arith.constant 2.000000e-01 : f32
    %150 = vector.broadcast %cst_52 : f32 to vector<256x8xf32>
    %151 = arith.mulf %150, %149 : vector<256x8xf32>
    %152 = arith.maximumf %149, %151 : vector<256x8xf32>
    %153 = vector.extract_strided_slice %152 {offsets = [239, 0], sizes = [17, 8], strides = [1, 1]} : vector<256x8xf32> to vector<17x8xf32>
    %154 = vector.extract_strided_slice %152 {offsets = [0, 0], sizes = [239, 8], strides = [1, 1]} : vector<256x8xf32> to vector<239x8xf32>
    %155 = tpu.concatenate %153, %154 in 0 : vector<17x8xf32>, vector<239x8xf32> -> vector<256x8xf32>
    %cst_53 = arith.constant 0.000000e+00 : f32
    %156 = vector.shape_cast %21 : vector<256x1xi1> to vector<256x1xi1>
    %157 = vector.broadcast %156 : vector<256x1xi1> to vector<256x8xi1>
    %158 = vector.broadcast %cst_53 : f32 to vector<256x8xf32>
    %159 = arith.select %157, %155, %158 : vector<256x8xi1>, vector<256x8xf32>
    %160 = arith.truncf %159 : vector<256x8xf32> to vector<256x8xbf16>
    %c0_54 = arith.constant 0 : index
    %c0_55 = arith.constant 0 : index
    %c0_56 = arith.constant 0 : index
    %161 = vector.load %arg4[%c0_54, %c0_55, %c0_56] : memref<9x8x16xbf16, #tpu.memory_space<vmem>>, vector<1x8x16xbf16>
    %162 = vector.shape_cast %161 : vector<1x8x16xbf16> to vector<8x16xbf16>
    %cst_57 = arith.constant dense<0.000000e+00> : vector<256x16xf32>
    %163 = tpu.matmul %160, %162, %cst_57 {dimension_numbers = #tpu.dot_dimension_numbers<[1], [0], [0], [1], [0, 0, 1, 1], [], []>} : vector<256x8xbf16>, vector<8x16xbf16>, vector<256x16xf32> -> vector<256x16xf32>
    %164 = vector.extract_strided_slice %152 {offsets = [240, 0], sizes = [16, 8], strides = [1, 1]} : vector<256x8xf32> to vector<16x8xf32>
    %165 = vector.extract_strided_slice %152 {offsets = [0, 0], sizes = [240, 8], strides = [1, 1]} : vector<256x8xf32> to vector<240x8xf32>
    %166 = tpu.concatenate %164, %165 in 0 : vector<16x8xf32>, vector<240x8xf32> -> vector<256x8xf32>
    %cst_58 = arith.constant 0.000000e+00 : f32
    %167 = vector.shape_cast %23 : vector<256x1xi1> to vector<256x1xi1>
    %168 = vector.broadcast %167 : vector<256x1xi1> to vector<256x8xi1>
    %169 = vector.broadcast %cst_58 : f32 to vector<256x8xf32>
    %170 = arith.select %168, %166, %169 : vector<256x8xi1>, vector<256x8xf32>
    %171 = arith.truncf %170 : vector<256x8xf32> to vector<256x8xbf16>
    %c1_59 = arith.constant 1 : index
    %c0_60 = arith.constant 0 : index
    %c0_61 = arith.constant 0 : index
    %172 = vector.load %arg4[%c1_59, %c0_60, %c0_61] : memref<9x8x16xbf16, #tpu.memory_space<vmem>>, vector<1x8x16xbf16>
    %173 = vector.shape_cast %172 : vector<1x8x16xbf16> to vector<8x16xbf16>
    %cst_62 = arith.constant dense<0.000000e+00> : vector<256x16xf32>
    %174 = tpu.matmul %171, %173, %cst_62 {dimension_numbers = #tpu.dot_dimension_numbers<[1], [0], [0], [1], [0, 0, 1, 1], [], []>} : vector<256x8xbf16>, vector<8x16xbf16>, vector<256x16xf32> -> vector<256x16xf32>
    %175 = arith.addf %163, %174 : vector<256x16xf32>
    %176 = vector.extract_strided_slice %152 {offsets = [241, 0], sizes = [15, 8], strides = [1, 1]} : vector<256x8xf32> to vector<15x8xf32>
    %177 = vector.extract_strided_slice %152 {offsets = [0, 0], sizes = [241, 8], strides = [1, 1]} : vector<256x8xf32> to vector<241x8xf32>
    %178 = tpu.concatenate %176, %177 in 0 : vector<15x8xf32>, vector<241x8xf32> -> vector<256x8xf32>
    %cst_63 = arith.constant 0.000000e+00 : f32
    %179 = vector.shape_cast %28 : vector<256x1xi1> to vector<256x1xi1>
    %180 = vector.broadcast %179 : vector<256x1xi1> to vector<256x8xi1>
    %181 = vector.broadcast %cst_63 : f32 to vector<256x8xf32>
    %182 = arith.select %180, %178, %181 : vector<256x8xi1>, vector<256x8xf32>
    %183 = arith.truncf %182 : vector<256x8xf32> to vector<256x8xbf16>
    %c2_64 = arith.constant 2 : index
    %c0_65 = arith.constant 0 : index
    %c0_66 = arith.constant 0 : index
    %184 = vector.load %arg4[%c2_64, %c0_65, %c0_66] : memref<9x8x16xbf16, #tpu.memory_space<vmem>>, vector<1x8x16xbf16>
    %185 = vector.shape_cast %184 : vector<1x8x16xbf16> to vector<8x16xbf16>
    %cst_67 = arith.constant dense<0.000000e+00> : vector<256x16xf32>
    %186 = tpu.matmul %183, %185, %cst_67 {dimension_numbers = #tpu.dot_dimension_numbers<[1], [0], [0], [1], [0, 0, 1, 1], [], []>} : vector<256x8xbf16>, vector<8x16xbf16>, vector<256x16xf32> -> vector<256x16xf32>
    %187 = arith.addf %175, %186 : vector<256x16xf32>
    %188 = vector.extract_strided_slice %152 {offsets = [255, 0], sizes = [1, 8], strides = [1, 1]} : vector<256x8xf32> to vector<1x8xf32>
    %189 = vector.extract_strided_slice %152 {offsets = [0, 0], sizes = [255, 8], strides = [1, 1]} : vector<256x8xf32> to vector<255x8xf32>
    %190 = tpu.concatenate %188, %189 in 0 : vector<1x8xf32>, vector<255x8xf32> -> vector<256x8xf32>
    %cst_68 = arith.constant 0.000000e+00 : f32
    %191 = vector.shape_cast %30 : vector<256x1xi1> to vector<256x1xi1>
    %192 = vector.broadcast %191 : vector<256x1xi1> to vector<256x8xi1>
    %193 = vector.broadcast %cst_68 : f32 to vector<256x8xf32>
    %194 = arith.select %192, %190, %193 : vector<256x8xi1>, vector<256x8xf32>
    %195 = arith.truncf %194 : vector<256x8xf32> to vector<256x8xbf16>
    %c3_69 = arith.constant 3 : index
    %c0_70 = arith.constant 0 : index
    %c0_71 = arith.constant 0 : index
    %196 = vector.load %arg4[%c3_69, %c0_70, %c0_71] : memref<9x8x16xbf16, #tpu.memory_space<vmem>>, vector<1x8x16xbf16>
    %197 = vector.shape_cast %196 : vector<1x8x16xbf16> to vector<8x16xbf16>
    %cst_72 = arith.constant dense<0.000000e+00> : vector<256x16xf32>
    %198 = tpu.matmul %195, %197, %cst_72 {dimension_numbers = #tpu.dot_dimension_numbers<[1], [0], [0], [1], [0, 0, 1, 1], [], []>} : vector<256x8xbf16>, vector<8x16xbf16>, vector<256x16xf32> -> vector<256x16xf32>
    %199 = arith.addf %187, %198 : vector<256x16xf32>
    %200 = arith.truncf %152 : vector<256x8xf32> to vector<256x8xbf16>
    %c4_73 = arith.constant 4 : index
    %c0_74 = arith.constant 0 : index
    %c0_75 = arith.constant 0 : index
    %201 = vector.load %arg4[%c4_73, %c0_74, %c0_75] : memref<9x8x16xbf16, #tpu.memory_space<vmem>>, vector<1x8x16xbf16>
    %202 = vector.shape_cast %201 : vector<1x8x16xbf16> to vector<8x16xbf16>
    %cst_76 = arith.constant dense<0.000000e+00> : vector<256x16xf32>
    %203 = tpu.matmul %200, %202, %cst_76 {dimension_numbers = #tpu.dot_dimension_numbers<[1], [0], [0], [1], [0, 0, 1, 1], [], []>} : vector<256x8xbf16>, vector<8x16xbf16>, vector<256x16xf32> -> vector<256x16xf32>
    %204 = arith.addf %199, %203 : vector<256x16xf32>
    %205 = vector.extract_strided_slice %152 {offsets = [1, 0], sizes = [255, 8], strides = [1, 1]} : vector<256x8xf32> to vector<255x8xf32>
    %206 = vector.extract_strided_slice %152 {offsets = [0, 0], sizes = [1, 8], strides = [1, 1]} : vector<256x8xf32> to vector<1x8xf32>
    %207 = tpu.concatenate %205, %206 in 0 : vector<255x8xf32>, vector<1x8xf32> -> vector<256x8xf32>
    %cst_77 = arith.constant 0.000000e+00 : f32
    %208 = vector.shape_cast %32 : vector<256x1xi1> to vector<256x1xi1>
    %209 = vector.broadcast %208 : vector<256x1xi1> to vector<256x8xi1>
    %210 = vector.broadcast %cst_77 : f32 to vector<256x8xf32>
    %211 = arith.select %209, %207, %210 : vector<256x8xi1>, vector<256x8xf32>
    %212 = arith.truncf %211 : vector<256x8xf32> to vector<256x8xbf16>
    %c5_78 = arith.constant 5 : index
    %c0_79 = arith.constant 0 : index
    %c0_80 = arith.constant 0 : index
    %213 = vector.load %arg4[%c5_78, %c0_79, %c0_80] : memref<9x8x16xbf16, #tpu.memory_space<vmem>>, vector<1x8x16xbf16>
    %214 = vector.shape_cast %213 : vector<1x8x16xbf16> to vector<8x16xbf16>
    %cst_81 = arith.constant dense<0.000000e+00> : vector<256x16xf32>
    %215 = tpu.matmul %212, %214, %cst_81 {dimension_numbers = #tpu.dot_dimension_numbers<[1], [0], [0], [1], [0, 0, 1, 1], [], []>} : vector<256x8xbf16>, vector<8x16xbf16>, vector<256x16xf32> -> vector<256x16xf32>
    %216 = arith.addf %204, %215 : vector<256x16xf32>
    %217 = vector.extract_strided_slice %152 {offsets = [15, 0], sizes = [241, 8], strides = [1, 1]} : vector<256x8xf32> to vector<241x8xf32>
    %218 = vector.extract_strided_slice %152 {offsets = [0, 0], sizes = [15, 8], strides = [1, 1]} : vector<256x8xf32> to vector<15x8xf32>
    %219 = tpu.concatenate %217, %218 in 0 : vector<241x8xf32>, vector<15x8xf32> -> vector<256x8xf32>
    %cst_82 = arith.constant 0.000000e+00 : f32
    %220 = vector.shape_cast %37 : vector<256x1xi1> to vector<256x1xi1>
    %221 = vector.broadcast %220 : vector<256x1xi1> to vector<256x8xi1>
    %222 = vector.broadcast %cst_82 : f32 to vector<256x8xf32>
    %223 = arith.select %221, %219, %222 : vector<256x8xi1>, vector<256x8xf32>
    %224 = arith.truncf %223 : vector<256x8xf32> to vector<256x8xbf16>
    %c6_83 = arith.constant 6 : index
    %c0_84 = arith.constant 0 : index
    %c0_85 = arith.constant 0 : index
    %225 = vector.load %arg4[%c6_83, %c0_84, %c0_85] : memref<9x8x16xbf16, #tpu.memory_space<vmem>>, vector<1x8x16xbf16>
    %226 = vector.shape_cast %225 : vector<1x8x16xbf16> to vector<8x16xbf16>
    %cst_86 = arith.constant dense<0.000000e+00> : vector<256x16xf32>
    %227 = tpu.matmul %224, %226, %cst_86 {dimension_numbers = #tpu.dot_dimension_numbers<[1], [0], [0], [1], [0, 0, 1, 1], [], []>} : vector<256x8xbf16>, vector<8x16xbf16>, vector<256x16xf32> -> vector<256x16xf32>
    %228 = arith.addf %216, %227 : vector<256x16xf32>
    %229 = vector.extract_strided_slice %152 {offsets = [16, 0], sizes = [240, 8], strides = [1, 1]} : vector<256x8xf32> to vector<240x8xf32>
    %230 = vector.extract_strided_slice %152 {offsets = [0, 0], sizes = [16, 8], strides = [1, 1]} : vector<256x8xf32> to vector<16x8xf32>
    %231 = tpu.concatenate %229, %230 in 0 : vector<240x8xf32>, vector<16x8xf32> -> vector<256x8xf32>
    %cst_87 = arith.constant 0.000000e+00 : f32
    %232 = vector.shape_cast %39 : vector<256x1xi1> to vector<256x1xi1>
    %233 = vector.broadcast %232 : vector<256x1xi1> to vector<256x8xi1>
    %234 = vector.broadcast %cst_87 : f32 to vector<256x8xf32>
    %235 = arith.select %233, %231, %234 : vector<256x8xi1>, vector<256x8xf32>
    %236 = arith.truncf %235 : vector<256x8xf32> to vector<256x8xbf16>
    %c7_88 = arith.constant 7 : index
    %c0_89 = arith.constant 0 : index
    %c0_90 = arith.constant 0 : index
    %237 = vector.load %arg4[%c7_88, %c0_89, %c0_90] : memref<9x8x16xbf16, #tpu.memory_space<vmem>>, vector<1x8x16xbf16>
    %238 = vector.shape_cast %237 : vector<1x8x16xbf16> to vector<8x16xbf16>
    %cst_91 = arith.constant dense<0.000000e+00> : vector<256x16xf32>
    %239 = tpu.matmul %236, %238, %cst_91 {dimension_numbers = #tpu.dot_dimension_numbers<[1], [0], [0], [1], [0, 0, 1, 1], [], []>} : vector<256x8xbf16>, vector<8x16xbf16>, vector<256x16xf32> -> vector<256x16xf32>
    %240 = arith.addf %228, %239 : vector<256x16xf32>
    %241 = vector.extract_strided_slice %152 {offsets = [17, 0], sizes = [239, 8], strides = [1, 1]} : vector<256x8xf32> to vector<239x8xf32>
    %242 = vector.extract_strided_slice %152 {offsets = [0, 0], sizes = [17, 8], strides = [1, 1]} : vector<256x8xf32> to vector<17x8xf32>
    %243 = tpu.concatenate %241, %242 in 0 : vector<239x8xf32>, vector<17x8xf32> -> vector<256x8xf32>
    %cst_92 = arith.constant 0.000000e+00 : f32
    %244 = vector.shape_cast %44 : vector<256x1xi1> to vector<256x1xi1>
    %245 = vector.broadcast %244 : vector<256x1xi1> to vector<256x8xi1>
    %246 = vector.broadcast %cst_92 : f32 to vector<256x8xf32>
    %247 = arith.select %245, %243, %246 : vector<256x8xi1>, vector<256x8xf32>
    %248 = arith.truncf %247 : vector<256x8xf32> to vector<256x8xbf16>
    %c8_93 = arith.constant 8 : index
    %c0_94 = arith.constant 0 : index
    %c0_95 = arith.constant 0 : index
    %249 = vector.load %arg4[%c8_93, %c0_94, %c0_95] : memref<9x8x16xbf16, #tpu.memory_space<vmem>>, vector<1x8x16xbf16>
    %250 = vector.shape_cast %249 : vector<1x8x16xbf16> to vector<8x16xbf16>
    %cst_96 = arith.constant dense<0.000000e+00> : vector<256x16xf32>
    %251 = tpu.matmul %248, %250, %cst_96 {dimension_numbers = #tpu.dot_dimension_numbers<[1], [0], [0], [1], [0, 0, 1, 1], [], []>} : vector<256x8xbf16>, vector<8x16xbf16>, vector<256x16xf32> -> vector<256x16xf32>
    %252 = arith.addf %240, %251 : vector<256x16xf32>
    %c0_97 = arith.constant 0 : index
    %c0_98 = arith.constant 0 : index
    %253 = vector.load %arg5[%c0_97, %c0_98] : memref<1x16xf32, #tpu.memory_space<vmem>>, vector<1x16xf32>
    %254 = vector.broadcast %253 : vector<1x16xf32> to vector<256x16xf32>
    %255 = arith.addf %252, %254 : vector<256x16xf32>
    %cst_99 = arith.constant 2.000000e-01 : f32
    %256 = vector.broadcast %cst_99 : f32 to vector<256x16xf32>
    %257 = arith.mulf %256, %255 : vector<256x16xf32>
    %258 = arith.maximumf %255, %257 : vector<256x16xf32>
    %259 = vector.extract_strided_slice %258 {offsets = [239, 0], sizes = [17, 16], strides = [1, 1]} : vector<256x16xf32> to vector<17x16xf32>
    %260 = vector.extract_strided_slice %258 {offsets = [0, 0], sizes = [239, 16], strides = [1, 1]} : vector<256x16xf32> to vector<239x16xf32>
    %261 = tpu.concatenate %259, %260 in 0 : vector<17x16xf32>, vector<239x16xf32> -> vector<256x16xf32>
    %cst_100 = arith.constant 0.000000e+00 : f32
    %262 = vector.shape_cast %21 : vector<256x1xi1> to vector<256x1xi1>
    %263 = vector.broadcast %262 : vector<256x1xi1> to vector<256x16xi1>
    %264 = vector.broadcast %cst_100 : f32 to vector<256x16xf32>
    %265 = arith.select %263, %261, %264 : vector<256x16xi1>, vector<256x16xf32>
    %266 = arith.truncf %265 : vector<256x16xf32> to vector<256x16xbf16>
    %c0_101 = arith.constant 0 : index
    %c0_102 = arith.constant 0 : index
    %c0_103 = arith.constant 0 : index
    %267 = vector.load %arg6[%c0_101, %c0_102, %c0_103] : memref<9x16x32xbf16, #tpu.memory_space<vmem>>, vector<1x16x32xbf16>
    %268 = vector.shape_cast %267 : vector<1x16x32xbf16> to vector<16x32xbf16>
    %cst_104 = arith.constant dense<0.000000e+00> : vector<256x32xf32>
    %269 = tpu.matmul %266, %268, %cst_104 {dimension_numbers = #tpu.dot_dimension_numbers<[1], [0], [0], [1], [0, 0, 1, 1], [], []>} : vector<256x16xbf16>, vector<16x32xbf16>, vector<256x32xf32> -> vector<256x32xf32>
    %270 = vector.extract_strided_slice %258 {offsets = [240, 0], sizes = [16, 16], strides = [1, 1]} : vector<256x16xf32> to vector<16x16xf32>
    %271 = vector.extract_strided_slice %258 {offsets = [0, 0], sizes = [240, 16], strides = [1, 1]} : vector<256x16xf32> to vector<240x16xf32>
    %272 = tpu.concatenate %270, %271 in 0 : vector<16x16xf32>, vector<240x16xf32> -> vector<256x16xf32>
    %cst_105 = arith.constant 0.000000e+00 : f32
    %273 = vector.shape_cast %23 : vector<256x1xi1> to vector<256x1xi1>
    %274 = vector.broadcast %273 : vector<256x1xi1> to vector<256x16xi1>
    %275 = vector.broadcast %cst_105 : f32 to vector<256x16xf32>
    %276 = arith.select %274, %272, %275 : vector<256x16xi1>, vector<256x16xf32>
    %277 = arith.truncf %276 : vector<256x16xf32> to vector<256x16xbf16>
    %c1_106 = arith.constant 1 : index
    %c0_107 = arith.constant 0 : index
    %c0_108 = arith.constant 0 : index
    %278 = vector.load %arg6[%c1_106, %c0_107, %c0_108] : memref<9x16x32xbf16, #tpu.memory_space<vmem>>, vector<1x16x32xbf16>
    %279 = vector.shape_cast %278 : vector<1x16x32xbf16> to vector<16x32xbf16>
    %cst_109 = arith.constant dense<0.000000e+00> : vector<256x32xf32>
    %280 = tpu.matmul %277, %279, %cst_109 {dimension_numbers = #tpu.dot_dimension_numbers<[1], [0], [0], [1], [0, 0, 1, 1], [], []>} : vector<256x16xbf16>, vector<16x32xbf16>, vector<256x32xf32> -> vector<256x32xf32>
    %281 = arith.addf %269, %280 : vector<256x32xf32>
    %282 = vector.extract_strided_slice %258 {offsets = [241, 0], sizes = [15, 16], strides = [1, 1]} : vector<256x16xf32> to vector<15x16xf32>
    %283 = vector.extract_strided_slice %258 {offsets = [0, 0], sizes = [241, 16], strides = [1, 1]} : vector<256x16xf32> to vector<241x16xf32>
    %284 = tpu.concatenate %282, %283 in 0 : vector<15x16xf32>, vector<241x16xf32> -> vector<256x16xf32>
    %cst_110 = arith.constant 0.000000e+00 : f32
    %285 = vector.shape_cast %28 : vector<256x1xi1> to vector<256x1xi1>
    %286 = vector.broadcast %285 : vector<256x1xi1> to vector<256x16xi1>
    %287 = vector.broadcast %cst_110 : f32 to vector<256x16xf32>
    %288 = arith.select %286, %284, %287 : vector<256x16xi1>, vector<256x16xf32>
    %289 = arith.truncf %288 : vector<256x16xf32> to vector<256x16xbf16>
    %c2_111 = arith.constant 2 : index
    %c0_112 = arith.constant 0 : index
    %c0_113 = arith.constant 0 : index
    %290 = vector.load %arg6[%c2_111, %c0_112, %c0_113] : memref<9x16x32xbf16, #tpu.memory_space<vmem>>, vector<1x16x32xbf16>
    %291 = vector.shape_cast %290 : vector<1x16x32xbf16> to vector<16x32xbf16>
    %cst_114 = arith.constant dense<0.000000e+00> : vector<256x32xf32>
    %292 = tpu.matmul %289, %291, %cst_114 {dimension_numbers = #tpu.dot_dimension_numbers<[1], [0], [0], [1], [0, 0, 1, 1], [], []>} : vector<256x16xbf16>, vector<16x32xbf16>, vector<256x32xf32> -> vector<256x32xf32>
    %293 = arith.addf %281, %292 : vector<256x32xf32>
    %294 = vector.extract_strided_slice %258 {offsets = [255, 0], sizes = [1, 16], strides = [1, 1]} : vector<256x16xf32> to vector<1x16xf32>
    %295 = vector.extract_strided_slice %258 {offsets = [0, 0], sizes = [255, 16], strides = [1, 1]} : vector<256x16xf32> to vector<255x16xf32>
    %296 = tpu.concatenate %294, %295 in 0 : vector<1x16xf32>, vector<255x16xf32> -> vector<256x16xf32>
    %cst_115 = arith.constant 0.000000e+00 : f32
    %297 = vector.shape_cast %30 : vector<256x1xi1> to vector<256x1xi1>
    %298 = vector.broadcast %297 : vector<256x1xi1> to vector<256x16xi1>
    %299 = vector.broadcast %cst_115 : f32 to vector<256x16xf32>
    %300 = arith.select %298, %296, %299 : vector<256x16xi1>, vector<256x16xf32>
    %301 = arith.truncf %300 : vector<256x16xf32> to vector<256x16xbf16>
    %c3_116 = arith.constant 3 : index
    %c0_117 = arith.constant 0 : index
    %c0_118 = arith.constant 0 : index
    %302 = vector.load %arg6[%c3_116, %c0_117, %c0_118] : memref<9x16x32xbf16, #tpu.memory_space<vmem>>, vector<1x16x32xbf16>
    %303 = vector.shape_cast %302 : vector<1x16x32xbf16> to vector<16x32xbf16>
    %cst_119 = arith.constant dense<0.000000e+00> : vector<256x32xf32>
    %304 = tpu.matmul %301, %303, %cst_119 {dimension_numbers = #tpu.dot_dimension_numbers<[1], [0], [0], [1], [0, 0, 1, 1], [], []>} : vector<256x16xbf16>, vector<16x32xbf16>, vector<256x32xf32> -> vector<256x32xf32>
    %305 = arith.addf %293, %304 : vector<256x32xf32>
    %306 = arith.truncf %258 : vector<256x16xf32> to vector<256x16xbf16>
    %c4_120 = arith.constant 4 : index
    %c0_121 = arith.constant 0 : index
    %c0_122 = arith.constant 0 : index
    %307 = vector.load %arg6[%c4_120, %c0_121, %c0_122] : memref<9x16x32xbf16, #tpu.memory_space<vmem>>, vector<1x16x32xbf16>
    %308 = vector.shape_cast %307 : vector<1x16x32xbf16> to vector<16x32xbf16>
    %cst_123 = arith.constant dense<0.000000e+00> : vector<256x32xf32>
    %309 = tpu.matmul %306, %308, %cst_123 {dimension_numbers = #tpu.dot_dimension_numbers<[1], [0], [0], [1], [0, 0, 1, 1], [], []>} : vector<256x16xbf16>, vector<16x32xbf16>, vector<256x32xf32> -> vector<256x32xf32>
    %310 = arith.addf %305, %309 : vector<256x32xf32>
    %311 = vector.extract_strided_slice %258 {offsets = [1, 0], sizes = [255, 16], strides = [1, 1]} : vector<256x16xf32> to vector<255x16xf32>
    %312 = vector.extract_strided_slice %258 {offsets = [0, 0], sizes = [1, 16], strides = [1, 1]} : vector<256x16xf32> to vector<1x16xf32>
    %313 = tpu.concatenate %311, %312 in 0 : vector<255x16xf32>, vector<1x16xf32> -> vector<256x16xf32>
    %cst_124 = arith.constant 0.000000e+00 : f32
    %314 = vector.shape_cast %32 : vector<256x1xi1> to vector<256x1xi1>
    %315 = vector.broadcast %314 : vector<256x1xi1> to vector<256x16xi1>
    %316 = vector.broadcast %cst_124 : f32 to vector<256x16xf32>
    %317 = arith.select %315, %313, %316 : vector<256x16xi1>, vector<256x16xf32>
    %318 = arith.truncf %317 : vector<256x16xf32> to vector<256x16xbf16>
    %c5_125 = arith.constant 5 : index
    %c0_126 = arith.constant 0 : index
    %c0_127 = arith.constant 0 : index
    %319 = vector.load %arg6[%c5_125, %c0_126, %c0_127] : memref<9x16x32xbf16, #tpu.memory_space<vmem>>, vector<1x16x32xbf16>
    %320 = vector.shape_cast %319 : vector<1x16x32xbf16> to vector<16x32xbf16>
    %cst_128 = arith.constant dense<0.000000e+00> : vector<256x32xf32>
    %321 = tpu.matmul %318, %320, %cst_128 {dimension_numbers = #tpu.dot_dimension_numbers<[1], [0], [0], [1], [0, 0, 1, 1], [], []>} : vector<256x16xbf16>, vector<16x32xbf16>, vector<256x32xf32> -> vector<256x32xf32>
    %322 = arith.addf %310, %321 : vector<256x32xf32>
    %323 = vector.extract_strided_slice %258 {offsets = [15, 0], sizes = [241, 16], strides = [1, 1]} : vector<256x16xf32> to vector<241x16xf32>
    %324 = vector.extract_strided_slice %258 {offsets = [0, 0], sizes = [15, 16], strides = [1, 1]} : vector<256x16xf32> to vector<15x16xf32>
    %325 = tpu.concatenate %323, %324 in 0 : vector<241x16xf32>, vector<15x16xf32> -> vector<256x16xf32>
    %cst_129 = arith.constant 0.000000e+00 : f32
    %326 = vector.shape_cast %37 : vector<256x1xi1> to vector<256x1xi1>
    %327 = vector.broadcast %326 : vector<256x1xi1> to vector<256x16xi1>
    %328 = vector.broadcast %cst_129 : f32 to vector<256x16xf32>
    %329 = arith.select %327, %325, %328 : vector<256x16xi1>, vector<256x16xf32>
    %330 = arith.truncf %329 : vector<256x16xf32> to vector<256x16xbf16>
    %c6_130 = arith.constant 6 : index
    %c0_131 = arith.constant 0 : index
    %c0_132 = arith.constant 0 : index
    %331 = vector.load %arg6[%c6_130, %c0_131, %c0_132] : memref<9x16x32xbf16, #tpu.memory_space<vmem>>, vector<1x16x32xbf16>
    %332 = vector.shape_cast %331 : vector<1x16x32xbf16> to vector<16x32xbf16>
    %cst_133 = arith.constant dense<0.000000e+00> : vector<256x32xf32>
    %333 = tpu.matmul %330, %332, %cst_133 {dimension_numbers = #tpu.dot_dimension_numbers<[1], [0], [0], [1], [0, 0, 1, 1], [], []>} : vector<256x16xbf16>, vector<16x32xbf16>, vector<256x32xf32> -> vector<256x32xf32>
    %334 = arith.addf %322, %333 : vector<256x32xf32>
    %335 = vector.extract_strided_slice %258 {offsets = [16, 0], sizes = [240, 16], strides = [1, 1]} : vector<256x16xf32> to vector<240x16xf32>
    %336 = vector.extract_strided_slice %258 {offsets = [0, 0], sizes = [16, 16], strides = [1, 1]} : vector<256x16xf32> to vector<16x16xf32>
    %337 = tpu.concatenate %335, %336 in 0 : vector<240x16xf32>, vector<16x16xf32> -> vector<256x16xf32>
    %cst_134 = arith.constant 0.000000e+00 : f32
    %338 = vector.shape_cast %39 : vector<256x1xi1> to vector<256x1xi1>
    %339 = vector.broadcast %338 : vector<256x1xi1> to vector<256x16xi1>
    %340 = vector.broadcast %cst_134 : f32 to vector<256x16xf32>
    %341 = arith.select %339, %337, %340 : vector<256x16xi1>, vector<256x16xf32>
    %342 = arith.truncf %341 : vector<256x16xf32> to vector<256x16xbf16>
    %c7_135 = arith.constant 7 : index
    %c0_136 = arith.constant 0 : index
    %c0_137 = arith.constant 0 : index
    %343 = vector.load %arg6[%c7_135, %c0_136, %c0_137] : memref<9x16x32xbf16, #tpu.memory_space<vmem>>, vector<1x16x32xbf16>
    %344 = vector.shape_cast %343 : vector<1x16x32xbf16> to vector<16x32xbf16>
    %cst_138 = arith.constant dense<0.000000e+00> : vector<256x32xf32>
    %345 = tpu.matmul %342, %344, %cst_138 {dimension_numbers = #tpu.dot_dimension_numbers<[1], [0], [0], [1], [0, 0, 1, 1], [], []>} : vector<256x16xbf16>, vector<16x32xbf16>, vector<256x32xf32> -> vector<256x32xf32>
    %346 = arith.addf %334, %345 : vector<256x32xf32>
    %347 = vector.extract_strided_slice %258 {offsets = [17, 0], sizes = [239, 16], strides = [1, 1]} : vector<256x16xf32> to vector<239x16xf32>
    %348 = vector.extract_strided_slice %258 {offsets = [0, 0], sizes = [17, 16], strides = [1, 1]} : vector<256x16xf32> to vector<17x16xf32>
    %349 = tpu.concatenate %347, %348 in 0 : vector<239x16xf32>, vector<17x16xf32> -> vector<256x16xf32>
    %cst_139 = arith.constant 0.000000e+00 : f32
    %350 = vector.shape_cast %44 : vector<256x1xi1> to vector<256x1xi1>
    %351 = vector.broadcast %350 : vector<256x1xi1> to vector<256x16xi1>
    %352 = vector.broadcast %cst_139 : f32 to vector<256x16xf32>
    %353 = arith.select %351, %349, %352 : vector<256x16xi1>, vector<256x16xf32>
    %354 = arith.truncf %353 : vector<256x16xf32> to vector<256x16xbf16>
    %c8_140 = arith.constant 8 : index
    %c0_141 = arith.constant 0 : index
    %c0_142 = arith.constant 0 : index
    %355 = vector.load %arg6[%c8_140, %c0_141, %c0_142] : memref<9x16x32xbf16, #tpu.memory_space<vmem>>, vector<1x16x32xbf16>
    %356 = vector.shape_cast %355 : vector<1x16x32xbf16> to vector<16x32xbf16>
    %cst_143 = arith.constant dense<0.000000e+00> : vector<256x32xf32>
    %357 = tpu.matmul %354, %356, %cst_143 {dimension_numbers = #tpu.dot_dimension_numbers<[1], [0], [0], [1], [0, 0, 1, 1], [], []>} : vector<256x16xbf16>, vector<16x32xbf16>, vector<256x32xf32> -> vector<256x32xf32>
    %358 = arith.addf %346, %357 : vector<256x32xf32>
    %c0_144 = arith.constant 0 : index
    %c0_145 = arith.constant 0 : index
    %359 = vector.load %arg7[%c0_144, %c0_145] : memref<1x32xf32, #tpu.memory_space<vmem>>, vector<1x32xf32>
    %360 = vector.broadcast %359 : vector<1x32xf32> to vector<256x32xf32>
    %361 = arith.addf %358, %360 : vector<256x32xf32>
    %cst_146 = arith.constant 2.000000e-01 : f32
    %362 = vector.broadcast %cst_146 : f32 to vector<256x32xf32>
    %363 = arith.mulf %362, %361 : vector<256x32xf32>
    %364 = arith.maximumf %361, %363 : vector<256x32xf32>
    %cst_147 = arith.constant dense<0.000000e+00> : vector<32xf32>
    %365 = vector.multi_reduction <add>, %364, %cst_147 [0] : vector<256x32xf32> to vector<32xf32>
    %366 = vector.shape_cast %365 : vector<32xf32> to vector<1x32xf32>
    %cst_148 = arith.constant 2.560000e+02 : f32
    %367 = vector.broadcast %cst_148 : f32 to vector<1x32xf32>
    %368 = arith.divf %366, %367 : vector<1x32xf32>
    %c0_149 = arith.constant 0 : index
    %c0_150 = arith.constant 0 : index
    %369 = vector.load %arg8[%c0_149, %c0_150] : memref<32x128xf32, #tpu.memory_space<vmem>>, vector<32x128xf32>
    %cst_151 = arith.constant dense<0.000000e+00> : vector<1x128xf32>
    %370 = tpu.matmul %368, %369, %cst_151 {dimension_numbers = #tpu.dot_dimension_numbers<[1], [0], [0], [1], [0, 0, 1, 1], [], []>} : vector<1x32xf32>, vector<32x128xf32>, vector<1x128xf32> -> vector<1x128xf32>
    %c0_152 = arith.constant 0 : index
    %c0_153 = arith.constant 0 : index
    %371 = vector.load %arg9[%c0_152, %c0_153] : memref<1x128xf32, #tpu.memory_space<vmem>>, vector<1x128xf32>
    %372 = arith.addf %370, %371 : vector<1x128xf32>
    %cst_154 = arith.constant 0.000000e+00 : f32
    %373 = vector.broadcast %cst_154 : f32 to vector<1x128xf32>
    %374 = arith.maximumf %372, %373 : vector<1x128xf32>
    %c0_155 = arith.constant 0 : index
    %c0_156 = arith.constant 0 : index
    %375 = vector.load %arg10[%c0_155, %c0_156] : memref<128x128xf32, #tpu.memory_space<vmem>>, vector<128x128xf32>
    %cst_157 = arith.constant dense<0.000000e+00> : vector<1x128xf32>
    %376 = tpu.matmul %374, %375, %cst_157 {dimension_numbers = #tpu.dot_dimension_numbers<[1], [0], [0], [1], [0, 0, 1, 1], [], []>} : vector<1x128xf32>, vector<128x128xf32>, vector<1x128xf32> -> vector<1x128xf32>
    %c0_158 = arith.constant 0 : index
    %c0_159 = arith.constant 0 : index
    %377 = vector.load %arg11[%c0_158, %c0_159] : memref<1x128xf32, #tpu.memory_space<vmem>>, vector<1x128xf32>
    %378 = arith.addf %376, %377 : vector<1x128xf32>
    %379 = vector.shape_cast %378 : vector<1x128xf32> to vector<1x128xf32>
    %380 = vector.broadcast %379 : vector<1x128xf32> to vector<8x128xf32>
    %c0_160 = arith.constant 0 : index
    %c0_161 = arith.constant 0 : index
    %c0_162 = arith.constant 0 : index
    %381 = vector.load %arg12[%c0_160, %c0_161, %c0_162] : memref<1x8x128xf32, #tpu.memory_space<vmem>>, vector<1x8x128xf32>
    %382 = vector.shape_cast %381 : vector<1x8x128xf32> to vector<8x128xf32>
    %383 = vector.shape_cast %380 : vector<8x128xf32> to vector<1x8x128xf32>
    tpu.vector_store %arg12[%c0_160, %c0_161, %c0_162], %383 {strides = array<i32>} : memref<1x8x128xf32, #tpu.memory_space<vmem>>, vector<1x8x128xf32>,
    return
  }
  func.func @transform_0(%arg0: i32) -> (i32, i32, i32) {
    %c0_i32 = arith.constant 0 : i32
    %c0_i32_0 = arith.constant 0 : i32
    %c0_i32_1 = arith.constant 0 : i32
    return %arg0, %c0_i32, %c0_i32_0 : i32, i32, i32
  }
  func.func @transform_1(%arg0: i32) -> (i32, i32, i32) {
    %c0_i32 = arith.constant 0 : i32
    %c0_i32_0 = arith.constant 0 : i32
    %c0_i32_1 = arith.constant 0 : i32
    %c0_i32_2 = arith.constant 0 : i32
    return %c0_i32, %c0_i32_0, %c0_i32_1 : i32, i32, i32
  }
  func.func @transform_2(%arg0: i32) -> (i32, i32) {
    %c0_i32 = arith.constant 0 : i32
    %c0_i32_0 = arith.constant 0 : i32
    %c0_i32_1 = arith.constant 0 : i32
    return %c0_i32, %c0_i32_0 : i32, i32
  }
  func.func @transform_3(%arg0: i32) -> (i32, i32, i32) {
    %c0_i32 = arith.constant 0 : i32
    %c0_i32_0 = arith.constant 0 : i32
    %c0_i32_1 = arith.constant 0 : i32
    %c0_i32_2 = arith.constant 0 : i32
    return %c0_i32, %c0_i32_0, %c0_i32_1 : i32, i32, i32
  }
  func.func @transform_4(%arg0: i32) -> (i32, i32) {
    %c0_i32 = arith.constant 0 : i32
    %c0_i32_0 = arith.constant 0 : i32
    %c0_i32_1 = arith.constant 0 : i32
    return %c0_i32, %c0_i32_0 : i32, i32
  }
  func.func @transform_5(%arg0: i32) -> (i32, i32, i32) {
    %c0_i32 = arith.constant 0 : i32
    %c0_i32_0 = arith.constant 0 : i32
    %c0_i32_1 = arith.constant 0 : i32
    %c0_i32_2 = arith.constant 0 : i32
    return %c0_i32, %c0_i32_0, %c0_i32_1 : i32, i32, i32
  }
  func.func @transform_6(%arg0: i32) -> (i32, i32) {
    %c0_i32 = arith.constant 0 : i32
    %c0_i32_0 = arith.constant 0 : i32
    %c0_i32_1 = arith.constant 0 : i32
    return %c0_i32, %c0_i32_0 : i32, i32
  }
  func.func @transform_7(%arg0: i32) -> (i32, i32) {
    %c0_i32 = arith.constant 0 : i32
    %c0_i32_0 = arith.constant 0 : i32
    %c0_i32_1 = arith.constant 0 : i32
    return %c0_i32, %c0_i32_0 : i32, i32
  }
  func.func @transform_8(%arg0: i32) -> (i32, i32) {
    %c0_i32 = arith.constant 0 : i32
    %c0_i32_0 = arith.constant 0 : i32
    %c0_i32_1 = arith.constant 0 : i32
    return %c0_i32, %c0_i32_0 : i32, i32
  }
  func.func @transform_9(%arg0: i32) -> (i32, i32) {
    %c0_i32 = arith.constant 0 : i32
    %c0_i32_0 = arith.constant 0 : i32
    %c0_i32_1 = arith.constant 0 : i32
    return %c0_i32, %c0_i32_0 : i32, i32
  }
  func.func @transform_10(%arg0: i32) -> (i32, i32) {
    %c0_i32 = arith.constant 0 : i32
    %c0_i32_0 = arith.constant 0 : i32
    %c0_i32_1 = arith.constant 0 : i32
    return %c0_i32, %c0_i32_0 : i32, i32
  }
  func.func @transform_11(%arg0: i32) -> (i32, i32, i32) {
    %c0_i32 = arith.constant 0 : i32
    %c0_i32_0 = arith.constant 0 : i32
    %c0_i32_1 = arith.constant 0 : i32
    return %arg0, %c0_i32, %c0_i32_0 : i32, i32, i32
  }
}

</mosaic_0001>

<bundles_post_ra>
// kernel: vgg_forward_pallas.1
= control target key start
LH: loop header
LB: loop body
LE: loop exit
PB: predicated region body
PF: predicated region fallthrough
CT: control target
= control target key end

     0   :  { %s9119_s17 = smov 0   ;;  %s13346_s0 = inlined_call_operand.vmem [shape: f32[2,256,8], index: 0, kind: input, shape index: {}]   ;;  %s13347_s1 = inlined_call_operand.vmem [shape: bf16[9,8,8], index: 1, kind: input, shape index: {}]   ;;  %s13348_s2 = inlined_call_operand.vmem [shape: f32[1,8], index: 2, kind: input, shape index: {}]   ;;  %s13349_s3 = inlined_call_operand.vmem [shape: bf16[9,8,16], index: 3, kind: input, shape index: {}]   ;;  %s13350_s4 = inlined_call_operand.vmem [shape: f32[1,16], index: 4, kind: input, shape index: {}]   ;;  %s13351_s5 = inlined_call_operand.vmem [shape: bf16[9,16,32], index: 5, kind: input, shape index: {}]   ;;  %s13352_s6 = inlined_call_operand.vmem [shape: f32[1,32], index: 6, kind: input, shape index: {}]   ;;  %s13353_s7 = inlined_call_operand.vmem [shape: f32[32,128], index: 7, kind: input, shape index: {}]   ;;  %s13354_s8 = inlined_call_operand.vmem [shape: f32[1,128], index: 8, kind: input, shape index: {}]   ;;  %s13355_s9 = inlined_call_operand.vmem [shape: f32[128,128], index: 9, kind: input, shape index: {}]   ;;  %s13356_s10 = inlined_call_operand.vmem [shape: f32[1,128], index: 10, kind: input, shape index: {}]   ;;  %s13357_s11 = inlined_call_operand.vmem [shape: f32[2,8,128], index: 11, kind: output, shape index: {}]  }
   0x1 LB: > { %s8524_s18 = sadd.s32 4294967295, %s9055_s17   ;;  %p8528_p0 = scmp.ge.s32.totalorder %s9055_s17, 1  ;;  %s9055_s17 = sphi %s9119_s17, %s21_s17  }
   0x2   : > { %p337_p1 = scmp.lt.s32.totalorder %s9055_s17, 3 }
   0x4   : > { %p338_p2 = pnand %p8528_p0, %p337_p1 }
   0x6   : > { %341 = sbr.rel (%p338_p2) target bundleno = 2554 (0x9fa), region = 64 }
   0xb   : > { %v8532_v0 = vld [vmem:[%s13347_s1 + $0x4] sm:$0xf]  ;;  %vm13370_vm0 = vcmask 1043456   ;;  %v1333_v1 = vld [vmem:[%s13347_s1] sm:$0xf]  ;;  %v386_v2 = vlaneseq  ;;  %p376_p3 = scmp.lt.s32.totalorder %s8524_s18, 1 }
   0xc   : > { %v1499_v3 = vsel %vm13370_vm0, %v8532_v0, 0  ;;  %v1639_v4 = vsel %vm13370_vm0, %v1333_v1, 0  ;;  %v8563_v5 = vld [vmem:[%s13347_s1 + $0x8] sm:$0xf]  ;;  %v8596_v6 = vld [vmem:[%s13347_s1 + $0x10] sm:$0xf] }
   0xd   : > { %1508 = vmatpush.bf16.msra.mxu0 %v1499_v3  ;;  %1648 = vmatpush.bf16.msra.mxu1 %v1639_v4  ;;  %v1991_v7 = vsel %vm13370_vm0, %v8563_v5, 0  ;;  %v2467_v8 = vsel %vm13370_vm0, %v8596_v6, 0  ;;  %v9143_v9 = vshrl.u32 %v386_v2, 7  ;;  %s14906_s18 = smov (!%p376_p3, %s8524_s18), 1  ;;  %v13358_v10 = vmov 0.0|0.0  }
   0xe   : > { %2000 = vmatpush.bf16.msra.mxu2 %v1991_v7  ;;  %9027 = vmatpush.bf16.msra.mxu3 %v1499_v3  ;;  %s9017_s27 = sshll.u32 %s14906_s18, 8  ;;  %vm13378_vm1 = vcmask 64512   ;;  %v13704_v26 = vmov 0  ;;  %vm13392_vm3 = vcmask 1040384   ;;  %v13707_v30 = vmov 0  ;;  %s8531_s29 = sshll.u32 %s14906_s18, 3 }
   0xf   : > { %v389_v11 = vadd.s32 16, %v9143_v9  ;;  %v388_v12 = vadd.s32 8, %v9143_v9  ;;  %v390_v13 = vadd.s32 24, %v9143_v9  ;;  %v423_v14 = vand.u32 15, %v9143_v9  ;;  %s9158_s30 = scalar_lea.vmem %s13346_s0, %s9017_s27  ;;  %s384_s13 = scalar_lea.vmem %s13357_s11, %s8531_s29 }
  0x10   : > { %1509 = vmatmul.bf16.vlgmr.msra.gmra.mxu0 %v13358_v10  ;;  %1649 = vmatmul.bf16.vlgmr.msra.gmra.mxu1 %v13358_v10  ;;  %v9161_v16 = vld [vmem:[%s9158_s30 + $0xc0] sm:$0xff]  ;;  %v9164_v17 = vld [vmem:[%s9158_s30 + $0xc8] sm:$0xff]  ;;  %v9175_v21 = vld [vmem:[%s9158_s30 + $0xf8] sm:$0xff]  ;;  %vm13373_vm5 = vcmask 1046528   ;;  %v13710_v34 = vmov 0  ;;  %v13713_v35 = vmov 0 }
  0x11   : > { %2476 = vmatpush.bf16.msrb.mxu0 %v2467_v8  ;;  %2001 = vmatmul.bf16.vlgmr.msra.gmra.mxu2 %v13358_v10  ;;  %v437_v15 = vand.u32 15, %v389_v11  ;;  %v9167_v18 = vld [vmem:[%s9158_s30] sm:$0xff]  ;;  %v9171_v19 = vpack.c.bf16 %v9164_v17, %v9161_v16  ;;  %v1060_v20 = vld [vmem:[%s9158_s30 + $0x8] sm:$0xff]  ;;  %13703 = vst [vmem:[#allocation4_spill] sm:$0xff] %v9175_v21  ;;  %v430_v22 = vand.u32 15, %v388_v12  ;;  %v444_v23 = vand.u32 15, %v390_v13 }
  0x12   : > { %9028 = vmatpush.bf16.msrb.mxu3 %v1639_v4  ;;  %13701 = vst [vmem:[#allocation2_spill] sm:$0xff] %v9167_v18  ;;  %v1132_v24 = vrot.slane %v9167_v18, 7  ;;  %v1133_v25 = vrot.slane %v1060_v20, 7  ;;  %vm9178_vm2 = vcmp.ge.s32.totalorder %v423_v14, 1  ;;  %v1061_v27 = vld [vmem:[%s9158_s30 + $0x10] sm:$0xff]  ;;  %v13360_v28 = vrot.slane %v9167_v18, 1 }
  0x13   : > { %13702 = vst [vmem:[#allocation3_spill] sm:$0xff] %v9171_v19  ;;  %v13705_v26 = vsel %vm9178_vm2, 4294967295, %v13704_v26  ;;  %8545 = vmatmul.msk.bf16.vlgmr.msra.gmra.mxu3 %vm13378_vm1, %v9171_v19  ;;  %v1737_v29 = vrot.slane %v1060_v20, 1  ;;  %vm9186_vm4 = vcmp.ge.s32.totalorder %v437_v15, 1  ;;  %v13361_v31 = vrot.slane %v9175_v21, 7  ;;  %v9209_v40 = vld [vmem:[%s9158_s30 + $0xd0] sm:$0xff] }
  0x14   : > { %13706 = vst [vmem:[#allocation5_spill] sm:$0xff] %v13705_v26  ;;  %v13708_v30 = vsel %vm9186_vm4, 4294967295, %v13707_v30  ;;  %v13363_v32 = vrot.slane %v9164_v17, 1  ;;  %vm9195_vm6 = vcmp.lt.s32.totalorder %v430_v22, 15  ;;  %vm9199_vm7 = vcmp.lt.s32.totalorder %v444_v23, 15  ;;  %v9236_v53 = vld [vmem:[%s9158_s30 + $0xd8] sm:$0xff] }
  0x15   : > { %13709 = vst [vmem:[#allocation6_spill] sm:$0xff] %v13708_v30  ;;  %v1220_v33 = vsel %vm13392_vm3, %v13361_v31, %v1132_v24  ;;  %v13711_v34 = vsel %vm9195_vm6, 4294967295, %v13710_v34  ;;  %v13714_v35 = vsel %vm9199_vm7, 4294967295, %v13713_v35  ;;  %v1739_v36 = vrot.slane %v1061_v27, 1  ;;  %v1062_v55 = vld [vmem:[%s9158_s30 + $0x18] sm:$0xff]  ;;  %v1063_v56 = vld [vmem:[%s9158_s30 + $0x20] sm:$0xff] }
  0x16   : > { %9029 = vmatpush.bf16.msra.mxu3 %v1991_v7  ;;  %13712 = vst [vmem:[#allocation7_spill] sm:$0xff] %v13711_v34  ;;  %v1134_v37 = vsel %vm13392_vm3, %v1132_v24, %v1133_v25  ;;  %v1287_v38 = vsel %vm9186_vm4, %v1220_v33, 0.0  ;;  %v2178_v39 = vsel %vm9178_vm2, %v1220_v33, 0.0  ;;  %v1738_v42 = vsel %vm13373_vm5, %v13360_v28, %v1737_v29  ;;  %v9283_v14 = vld [vmem:[%s9158_s30 + $0xe0] sm:$0xff]  ;;  %v9286_v15 = vld [vmem:[%s9158_s30 + $0xe8] sm:$0xff]  ;;  %v1065_v23 = vld [vmem:[%s9158_s30 + $0x30] sm:$0xff] }
  0x17   : > { %13715 = vst [vmem:[#allocation8_spill] sm:$0xff] %v13714_v35  ;;  %v9211_v41 = vpack.c.bf16 %v1134_v37, %v2178_v39  ;;  %v1740_v43 = vsel %vm13373_vm5, %v1737_v29, %v1739_v36  ;;  %v13364_v44 = vrot.slane %v9209_v40, 1  ;;  %v9223_v47 = vpack.c.bf16 %v1060_v20, %v9167_v18  ;;  %v1064_v22 = vld [vmem:[%s9158_s30 + $0x28] sm:$0xff]  ;;  %v9301_v39 = vld [vmem:[%s9158_s30 + $0xb8] sm:$0xff] }
  0x18   : > { %v1895_v45 = vsel %vm9199_vm7, %v1740_v43, 0.0  ;;  %v2655_v46 = vsel %vm9195_vm6, %v1740_v43, 0.0  ;;  %v1318_v48 = vpack.c.bf16 %v1134_v37, %v1287_v38  ;;  %v391_v52 = vadd.s32 32, %v9143_v9  ;;  %13724 = vst [vmem:[#allocation13_spill] sm:$0xff] %v9286_v15 }
  0x19   : > { %v9225_v49 = vpack.c.bf16 %v2655_v46, %v1738_v42  ;;  %v9232_v50 = vsel %vm13373_vm5, %v13363_v32, %v13364_v44  ;;  %v1925_v51 = vpack.c.bf16 %v1895_v45, %v1738_v42  ;;  %v392_v54 = vadd.s32 40, %v9143_v9 }
  0x1a   : > { %13716 = vst [vmem:[#allocation9_spill] sm:$0xff] %v9232_v50  ;;  %v9247_v57 = vpack.c.bf16 %v9236_v53, %v9209_v40  ;;  %v451_v58 = vand.u32 15, %v391_v52  ;;  %v1135_v59 = vrot.slane %v1061_v27, 7  ;;  %v1741_v60 = vrot.slane %v1062_v55, 1 }
  0x1b   : > { %v458_v61 = vand.u32 15, %v392_v54  ;;  %v1743_v62 = vrot.slane %v1063_v56, 1  ;;  %v1137_v63 = vrot.slane %v1062_v55, 7  ;;  %v13718_v0 = vmov 0 }
  0x1c   : > { %13717 = vst [vmem:[#allocation10_spill] sm:$0xff] %v9247_v57  ;;  %vm9251_vm8 = vcmp.ge.s32.totalorder %v451_v58, 1  ;;  %v9256_v1 = vsel %vm13392_vm3, %v1133_v25, %v1135_v59  ;;  %v13721_v2 = vmov 0  ;;  %v9272_v6 = vsel %vm13373_vm5, %v1739_v36, %v1741_v60 }
  0x1d   : > { %v13719_v0 = vsel %vm9251_vm8, 4294967295, %v13718_v0  ;;  %vm9258_vm9 = vcmp.lt.s32.totalorder %v458_v61, 15  ;;  %v9263_v3 = vsel %vm13373_vm5, %v1741_v60, %v1743_v62  ;;  %v9266_v4 = vsel %vm13392_vm3, %v1135_v59, %v1137_v63 }
  0x1e   : > { %13720 = vst [vmem:[#allocation11_spill] sm:$0xff] %v13719_v0  ;;  %v13722_v2 = vsel %vm9258_vm9, 4294967295, %v13721_v2  ;;  %v1289_v5 = vsel %vm9251_vm8, %v9256_v1, 0.0  ;;  %v1897_v7 = vsel %vm9258_vm9, %v9263_v3, 0.0  ;;  %v9277_v8 = vpack.c.bf16 %v1062_v55, %v1061_v27 }
  0x1f   : > { %13723 = vst [vmem:[#allocation12_spill] sm:$0xff] %v13722_v2  ;;  %v1319_v11 = vpack.c.bf16 %v9266_v4, %v1289_v5  ;;  %v1926_v12 = vpack.c.bf16 %v1897_v7, %v9272_v6  ;;  %v393_v13 = vadd.s32 48, %v9143_v9  ;;  %v394_v20 = vadd.s32 56, %v9143_v9 }
  0x20   : > { %8533 = vmatmul.msk.bf16.gmra.mxu0 %vm13378_vm1, %v9223_v47  ;;  %8548 = vmatmul.msk.bf16.gmra.mxu1 %vm13378_vm1, %v1318_v48  ;;  %v9297_v24 = vpack.c.bf16 %v9286_v15, %v9283_v14  ;;  %v1139_v27 = vrot.slane %v1063_v56, 7  ;;  %v1745_v29 = vrot.slane %v1064_v22, 1  ;;  %v1747_v36 = vrot.slane %v1065_v23, 1 }
  0x21   : > { %8564 = vmatmul.msk.bf16.gmra.mxu2 %vm13378_vm1, %v1925_v51  ;;  %v465_v25 = vand.u32 15, %v393_v13  ;;  %v472_v33 = vand.u32 15, %v394_v20  ;;  %v413_v37 = vadd.s32 208, %v9143_v9  ;;  %v1141_v38 = vrot.slane %v1064_v22, 7  ;;  %v1066_v20 = vld [vmem:[%s9158_s30 + $0x38] sm:$0xff] }
  0x22   : > { %13725 = vst [vmem:[#allocation14_spill] sm:$0xff] %v9297_v24  ;;  %v13726_v42 = vmov 0  ;;  %v9310_v43 = vsel %vm13392_vm3, %v1137_v63, %v1139_v27  ;;  %v13729_v45 = vmov 0  ;;  %v9317_v46 = vsel %vm13373_vm5, %v1745_v29, %v1747_v36 }
  0x23   : > { %8546 = vmatmul.msk.bf16.gmra.mxu3 %vm13378_vm1, %v9247_v57  ;;  %vm9305_vm10 = vcmp.ge.s32.totalorder %v465_v25, 1  ;;  %vm9312_vm11 = vcmp.lt.s32.totalorder %v472_v33, 15  ;;  %v1179_v48 = vrot.slane %v9161_v16, 7  ;;  %v605_v51 = vand.u32 15, %v413_v37 }
  0x24   : > { %v13727_v42 = vsel %vm9305_vm10, 4294967295, %v13726_v42  ;;  %v13730_v45 = vsel %vm9312_vm11, 4294967295, %v13729_v45  ;;  %v13362_v52 = vrot.slane %v9301_v39, 7  ;;  %v9322_v54 = vsel %vm13392_vm3, %v1139_v27, %v1141_v38 }
  0x25   : > { %13728 = vst [vmem:[#allocation15_spill] sm:$0xff] %v13727_v42  ;;  %v1291_v55 = vsel %vm9305_vm10, %v9310_v43, 0.0  ;;  %v9328_v58 = vsel %vm13373_vm5, %v1743_v62, %v1745_v29  ;;  %v1899_v59 = vsel %vm9312_vm11, %v9317_v46, 0.0  ;;  %v1181_v60 = vrot.slane %v9164_v17, 7 }
  0x26   : > { %13731 = vst [vmem:[#allocation16_spill] sm:$0xff] %v13730_v45  ;;  %v9334_v61 = vpack.c.bf16 %v1064_v22, %v1063_v56  ;;  %v1320_v63 = vpack.c.bf16 %v9322_v54, %v1291_v55  ;;  %vm9337_vm12 = vcmp.ge.s32.totalorder %v605_v51, 1  ;;  %v13732_v5 = vmov 0  ;;  %v1067_v22 = vld [vmem:[%s9158_s30 + $0x40] sm:$0xff] }
  0x27   : > { %v13733_v5 = vsel %vm9337_vm12, 4294967295, %v13732_v5  ;;  %v9344_v7 = vsel %vm13392_vm3, %v13362_v52, %v1179_v48  ;;  %v1927_v62 = vpack.c.bf16 %v1899_v59, %v9328_v58  ;;  %v396_v13 = vadd.s32 72, %v9143_v9 }
  0x28   : > { %13734 = vst [vmem:[#allocation17_spill] sm:$0xff] %v13733_v5  ;;  %v1311_v56 = vsel %vm9337_vm12, %v9344_v7, 0.0  ;;  %v1143_v29 = vrot.slane %v1065_v23, 7  ;;  %v1749_v33 = vrot.slane %v1066_v20, 1  ;;  %v415_v51 = vadd.s32 224, %v9143_v9 }
  0x29   : > { %13735 = vst [vmem:[#allocation18_spill] sm:$0xff] %v9344_v7  ;;  %v486_v37 = vand.u32 15, %v396_v13  ;;  %v1145_v55 = vrot.slane %v1066_v20, 7  ;;  %v13737_v59 = vmov 0  ;;  %v9392_v28 = vpack.c.bf16 %v1066_v20, %v1065_v23 }
  0x2a   : > { %v619_v13 = vand.u32 15, %v415_v51  ;;  %v13745_v51 = vmov 0  ;;  %v398_v20 = vadd.s32 88, %v9143_v9  ;;  %v417_v18 = vadd.s32 240, %v9143_v9 }
  0x2b   : > { %vm9371_vm14 = vcmp.lt.s32.totalorder %v486_v37, 15  ;;  %v9380_v10 = vsel %vm13392_vm3, %v1143_v29, %v1145_v55  ;;  %v1185_v37 = vrot.slane %v9236_v53, 7  ;;  %v13750_v57 = vmov 0 }
  0x2c   : > { %vm9395_vm15 = vcmp.ge.s32.totalorder %v619_v13, 1  ;;  %v1069_v13 = vld [vmem:[%s9158_s30 + $0x50] sm:$0xff]  ;;  %v500_v44 = vand.u32 15, %v398_v20  ;;  %vm13756_vm6 = vcmask 1046528   ;;  %v633_v20 = vand.u32 15, %v417_v18 }
  0x2d   : > { %v13746_v51 = vsel %vm9395_vm15, 4294967295, %v13745_v51  ;;  %v1755_v34 = vrot.slane %v1069_v13, 1  ;;  %v399_v5 = vadd.s32 96, %v9143_v9 }
  0x2e   : > { %13747 = vst [vmem:[#allocation24_spill] sm:$0xff] %v13746_v51 }
  0x30   : > { %8534 = vmatmul.msk.bf16.gmra.mxu0 %vm13378_vm1, %v9277_v8  ;;  %8549 = vmatmul.msk.bf16.gmra.mxu1 %vm13378_vm1, %v1319_v11  ;;  %v395_v11 = vadd.s32 64, %v9143_v9 }
  0x31   : > { %8565 = vmatmul.msk.bf16.gmra.mxu2 %vm13378_vm1, %v1926_v12  ;;  %v9349_v12 = vsel %vm13392_vm3, %v1179_v48, %v1181_v60  ;;  %v1751_v48 = vrot.slane %v1067_v22, 1 }
  0x32   : > { %13736 = vst [vmem:[#allocation19_spill] sm:$0xff] %v9349_v12  ;;  %v1330_v25 = vpack.c.bf16 %v9349_v12, %v1311_v56  ;;  %v479_v27 = vand.u32 15, %v395_v11  ;;  %v1183_v56 = vrot.slane %v9209_v40, 7 }
  0x33   : > { %8547 = vmatmul.msk.bf16.gmra.mxu3 %vm13378_vm1, %v9297_v24  ;;  %v9376_v11 = vsel %vm13373_vm5, %v1749_v33, %v1751_v48 }
  0x34   : > { %vm9364_vm13 = vcmp.ge.s32.totalorder %v479_v27, 1  ;;  %13743 = vst [vmem:[#allocation22_spill] sm:$0xff] %v9376_v11  ;;  %v1901_v27 = vsel %vm9371_vm14, %v9376_v11, 0.0  ;;  %v9400_v31 = vsel %vm13392_vm3, %v1181_v60, %v1183_v56  ;;  %v9405_v52 = vsel %vm13392_vm3, %v1183_v56, %v1185_v37  ;;  %v1068_v60 = vld [vmem:[%s9158_s30 + $0x48] sm:$0xff] }
  0x35   : > { %v13738_v59 = vsel %vm9364_vm13, 4294967295, %v13737_v59  ;;  %13748 = vst [vmem:[#allocation25_spill] sm:$0xff] %v9400_v31  ;;  %v1313_v23 = vsel %vm9395_vm15, %v9400_v31, 0.0  ;;  %v1147_v56 = vrot.slane %v1067_v22, 7  ;;  %v1753_v32 = vrot.slane %v1068_v60, 1 }
  0x36   : > { %13739 = vst [vmem:[#allocation20_spill] sm:$0xff] %v13738_v59  ;;  %v1149_v24 = vrot.slane %v1068_v60, 7  ;;  %v9448_v21 = vpack.c.bf16 %v1068_v60, %v1067_v22 }
  0x37   : > { %13749 = vst [vmem:[#allocation26_spill] sm:$0xff] %v9405_v52 }
  0x38   : > { %v9436_v19 = vsel %vm13392_vm3, %v1147_v56, %v1149_v24  ;;  %13760 = vst [vmem:[#allocation31_spill] sm:$0xff] %v9448_v21 }
  0x40   : > { %8535 = vmatmul.msk.bf16.gmra.mxu0 %vm13378_vm1, %v9334_v61  ;;  %8550 = vmatmul.msk.bf16.gmra.mxu1 %vm13378_vm1, %v1320_v63  ;;  %v9369_v63 = vsel %vm13392_vm3, %v1141_v38, %v1143_v29  ;;  %v9386_v38 = vsel %vm13373_vm5, %v1747_v36, %v1749_v33  ;;  %v397_v33 = vadd.s32 80, %v9143_v9  ;;  %vm9427_vm5 = vcmp.lt.s32.totalorder %v500_v44, 15 }
  0x41   : > { %8566 = vmatmul.msk.bf16.gmra.mxu2 %vm13378_vm1, %v1927_v62  ;;  %v13740_v62 = vmov 0  ;;  %13744 = vst [vmem:[#allocation23_spill] sm:$0xff] %v9386_v38  ;;  %v1928_v36 = vpack.c.bf16 %v1901_v27, %v9386_v38 }
  0x42   : > { %v13741_v62 = vsel %vm9371_vm14, 4294967295, %v13740_v62  ;;  %v493_v27 = vand.u32 15, %v397_v33  ;;  %v9432_v33 = vsel %vm13756_vm6, %v1753_v32, %v1755_v34 }
  0x43   : > { %8560 = vmatmul.msk.bf16.vlgmr.msrb.gmra.mxu3 %vm13378_vm1, %v1330_v25  ;;  %13742 = vst [vmem:[#allocation21_spill] sm:$0xff] %v13741_v62  ;;  %v1293_v25 = vsel %vm9364_vm13, %v9369_v63, 0.0  ;;  %v1903_v44 = vsel %vm9427_vm5, %v9432_v33, 0.0 }
  0x44   : > { %v1321_v29 = vpack.c.bf16 %v9380_v10, %v1293_v25  ;;  %v1331_v25 = vpack.c.bf16 %v9405_v52, %v1313_v23  ;;  %vm9420_vm0 = vcmp.ge.s32.totalorder %v493_v27, 1  ;;  %13757 = vst [vmem:[#allocation29_spill] sm:$0xff] %v9432_v33  ;;  %v1187_v23 = vrot.slane %v9283_v14, 7 }
  0x45   : > { %v13751_v57 = vsel %vm9420_vm0, 4294967295, %v13750_v57  ;;  %v13393_v27 = vrot.slane %v9286_v15, 7  ;;  %v13845_v33 = vmov 0 }
  0x46   : > { %13752 = vst [vmem:[#allocation27_spill] sm:$0xff] %v13751_v57  ;;  %v9456_v51 = vsel %vm13392_vm3, %v1185_v37, %v1187_v23  ;;  %v400_v37 = vadd.s32 104, %v9143_v9 }
  0x47   : > { %13764 = vst [vmem:[#allocation33_spill] sm:$0xff] %v9456_v51  ;;  %v9465_v22 = vsel %vm13392_vm3, %v1187_v23, %v13393_v27  ;;  %v507_v27 = vand.u32 15, %v399_v5 }
  0x48   : > { %13765 = vst [vmem:[#allocation34_spill] sm:$0xff] %v9465_v22  ;;  %v514_v31 = vand.u32 15, %v400_v37 }
  0x50   : > { %8536 = vmatmul.msk.bf16.gmra.mxu0 %vm13378_vm1, %v9392_v28  ;;  %8551 = vmatmul.msk.bf16.gmra.mxu1 %vm13378_vm1, %v1321_v29  ;;  %v9425_v29 = vsel %vm13392_vm3, %v1145_v55, %v1147_v56  ;;  %v13761_v56 = vmov 0 }
  0x51   : > { %8567 = vmatmul.msk.bf16.gmra.mxu2 %vm13378_vm1, %v1928_v36  ;;  %v13753_v36 = vmov 0 }
  0x52   : > { %v13754_v36 = vsel %vm9427_vm5, 4294967295, %v13753_v36  ;;  %vm13770_vm5 = vcmask 1046528  }
  0x53   : > { %8561 = vmatmul.msk.bf16.gmra.mxu3 %vm13378_vm1, %v1331_v25  ;;  %13755 = vst [vmem:[#allocation28_spill] sm:$0xff] %v13754_v36  ;;  %v1295_v25 = vsel %vm9420_vm0, %v9425_v29, 0.0  ;;  %vm13758_vm1 = vmmov %vm13756_vm6  ;;  %vm9451_vm6 = vcmp.ge.s32.totalorder %v633_v20, 1  ;;  %v13769_v20 = vrot.slane %v9209_v40, 1  ;;  %v13775_v40 = vmov 0 }
  0x54   : > { %v9442_v55 = vsel %vm13758_vm1, %v1751_v48, %v1753_v32  ;;  %v1322_v18 = vpack.c.bf16 %v9436_v19, %v1295_v25  ;;  %v13762_v56 = vsel %vm9451_vm6, 4294967295, %v13761_v56  ;;  %v1789_v32 = vrot.slane %v9236_v53, 1  ;;  %v1070_v53 = vld [vmem:[%s9158_s30 + $0x58] sm:$0xff]  ;;  %vm13772_vm3 = vmmov %vm13770_vm5 }
  0x55   : > { %13759 = vst [vmem:[#allocation30_spill] sm:$0xff] %v9442_v55  ;;  %v1791_v48 = vrot.slane %v9283_v14, 1  ;;  %v1929_v52 = vpack.c.bf16 %v1903_v44, %v9442_v55  ;;  %v1315_v60 = vsel %vm9451_vm6, %v9456_v51, 0.0  ;;  %vm13766_vm1 = vcmask 64512   ;;  %v1071_v14 = vld [vmem:[%s9158_s30 + $0x60] sm:$0xff] }
  0x56   : > { %13763 = vst [vmem:[#allocation32_spill] sm:$0xff] %v13762_v56  ;;  %vm13767_vm15 = vmmov %vm13766_vm1  ;;  %v9480_v23 = vsel %vm13770_vm5, %v13769_v20, %v1789_v32  ;;  %v1332_v44 = vpack.c.bf16 %v9465_v22, %v1315_v60  ;;  %v1151_v56 = vrot.slane %v1069_v13, 7  ;;  %v1757_v51 = vrot.slane %v1070_v53, 1 }
  0x57   : > { %vm13768_vm12 = vmmov %vm13766_vm1  ;;  %13771 = vst [vmem:[#allocation35_spill] sm:$0xff] %v9480_v23  ;;  %v9483_v25 = vsel %vm13772_vm3, %v1789_v32, %v1791_v48  ;;  %v1759_v12 = vrot.slane %v1071_v14, 1  ;;  %v1153_v7 = vrot.slane %v1070_v53, 7  ;;  %vm13778_vm5 = vcmask 1040384  }
  0x58   : > { %13773 = vst [vmem:[#allocation36_spill] sm:$0xff] %v9483_v25  ;;  %vm9495_vm3 = vcmp.lt.s32.totalorder %v514_v31, 15  ;;  %v13779_v32 = vmov 0  ;;  %vm13784_vm6 = vmmov %vm13778_vm5  ;;  %v13412_v20 = vrot.slane %v9161_v16, 1  ;;  %v401_v36 = vadd.s32 112, %v9143_v9 }
  0x59   : > { %v13780_v32 = vsel %vm9495_vm3, 4294967295, %v13779_v32  ;;  %v9503_v37 = vsel %vm13784_vm6, %v1151_v56, %v1153_v7 }
  0x5a   : > { %13781 = vst [vmem:[#allocation38_spill] sm:$0xff] %v13780_v32 }
  0x60   : > { %8537 = vmatmul.msk.bf16.gmra.mxu0 %vm13766_vm1, %v9448_v21  ;;  %8552 = vmatmul.msk.bf16.gmra.mxu1 %vm13767_vm15, %v1322_v18  ;;  %v414_v18 = vadd.s32 216, %v9143_v9  ;;  %vm13774_vm15 = vmmov %vm13766_vm1  ;;  %vm13782_vm1 = vcmask 1046528   ;;  %v9605_v21 = vld [vmem:[%s9158_s30 + $0xf0] sm:$0xff] }
  0x61   : > { %8568 = vmatmul.msk.bf16.gmra.mxu2 %vm13768_vm12, %v1929_v52  ;;  %vm9488_vm12 = vcmp.ge.s32.totalorder %v507_v27, 1  ;;  %v9493_v52 = vsel %vm13778_vm5, %v1149_v24, %v1151_v56  ;;  %v9500_v5 = vsel %vm13782_vm1, %v1757_v51, %v1759_v12  ;;  %vm13792_vm5 = vmmov %vm13782_vm1  ;;  %13819 = vst [vmem:[#allocation51_spill] sm:$0xff] %v9605_v21  ;;  %v13974_v45 = vld [vmem:[#allocation38_spill] sm:$0xff] }
  0x62   : > { %v13776_v40 = vsel %vm9488_vm12, 4294967295, %v13775_v40  ;;  %13783 = vst [vmem:[#allocation39_spill] sm:$0xff] %v9500_v5  ;;  %v612_v60 = vand.u32 15, %v414_v18  ;;  %v1297_v27 = vsel %vm9488_vm12, %v9493_v52, 0.0  ;;  %v1905_v31 = vsel %vm9495_vm3, %v9500_v5, 0.0  ;;  %vm13806_vm14 = vmmov %vm13792_vm5 }
  0x63   : > { %8562 = vmatmul.msk.bf16.gmra.mxu3 %vm13774_vm15, %v1332_v44  ;;  %13777 = vst [vmem:[#allocation37_spill] sm:$0xff] %v13776_v40  ;;  %vm13785_vm15 = vmmov %vm13782_vm1  ;;  %v9515_v44 = vpack.c.bf16 %v1070_v53, %v1069_v13  ;;  %v1323_v56 = vpack.c.bf16 %v9503_v37, %v1297_v27  ;;  %v13788_v18 = vmov 0  ;;  %vm13794_vm1 = vcmask 64512   ;;  %v1072_v27 = vld [vmem:[%s9158_s30 + $0x68] sm:$0xff] }
  0x64   : > { %v9509_v24 = vsel %vm13785_vm15, %v1755_v34, %v1757_v51  ;;  %vm9518_vm6 = vcmp.lt.s32.totalorder %v612_v60, 15  ;;  %v13791_v34 = vrot.slane %v9164_v17, 1  ;;  %v402_v60 = vadd.s32 120, %v9143_v9  ;;  %vm13795_vm15 = vmmov %vm13794_vm1  ;;  %v1073_v17 = vld [vmem:[%s9158_s30 + $0x70] sm:$0xff] }
  0x65   : > { %13786 = vst [vmem:[#allocation40_spill] sm:$0xff] %v9509_v24  ;;  %v13789_v18 = vsel %vm9518_vm6, 4294967295, %v13788_v18  ;;  %v1930_v22 = vpack.c.bf16 %v1905_v31, %v9509_v24  ;;  %v1919_v53 = vsel %vm9518_vm6, %v9232_v50, 0.0  ;;  %vm13796_vm3 = vmmov %vm13794_vm1  ;;  %v1761_v13 = vrot.slane %v1072_v27, 1 }
  0x66   : > { %13787 = vst [vmem:[#allocation41_spill] sm:$0xff] %v9515_v44  ;;  %v9529_v51 = vsel %vm13792_vm5, %v13412_v20, %v13791_v34  ;;  %v521_v34 = vand.u32 15, %v401_v36  ;;  %v1155_v20 = vrot.slane %v1071_v14, 7  ;;  %v528_v32 = vand.u32 15, %v402_v60 }
  0x67   : > { %13790 = vst [vmem:[#allocation42_spill] sm:$0xff] %v13789_v18  ;;  %v1937_v31 = vpack.c.bf16 %v1919_v53, %v9529_v51  ;;  %v1763_v24 = vrot.slane %v1073_v17, 1  ;;  %v13797_v18 = vrot.slane %v9286_v15, 1  ;;  %v1157_v5 = vrot.slane %v1072_v27, 7 }
  0x68   : > { %13793 = vst [vmem:[#allocation43_spill] sm:$0xff] %v9529_v51  ;;  %vm9557_vm6 = vcmp.lt.s32.totalorder %v528_v32, 15  ;;  %v403_v51 = vadd.s32 128, %v9143_v9 }
  0x69   : > { %v9546_v50 = vsel %vm13792_vm5, %v1791_v48, %v13797_v18  ;;  %v9562_v48 = vsel %vm13806_vm14, %v1761_v13, %v1763_v24 }
  0x6a   : > { %13798 = vst [vmem:[#allocation44_spill] sm:$0xff] %v9546_v50  ;;  %v1907_v32 = vsel %vm9557_vm6, %v9562_v48, 0.0 }
  0x6b   : > { %13807 = vst [vmem:[#allocation47_spill] sm:$0xff] %v9562_v48 }
  0x70   : > { %8538 = vmatmul.msk.bf16.gmra.mxu0 %vm13794_vm1, %v9515_v44  ;;  %8553 = vmatmul.msk.bf16.gmra.mxu1 %vm13795_vm15, %v1323_v56  ;;  %v416_v44 = vadd.s32 232, %v9143_v9  ;;  %vm9550_vm15 = vcmp.ge.s32.totalorder %v521_v34, 1  ;;  %v13799_v56 = vmov 0 }
  0x71   : > { %8569 = vmatmul.msk.bf16.gmra.mxu2 %vm13796_vm3, %v1930_v22  ;;  %v13800_v56 = vsel %vm9550_vm15, 4294967295, %v13799_v56  ;;  %vm13802_vm3 = vcmask 1040384   ;;  %v13803_v22 = vmov 0 }
  0x72   : > { %13801 = vst [vmem:[#allocation45_spill] sm:$0xff] %v13800_v56  ;;  %v9555_v36 = vsel %vm13802_vm3, %v1153_v7, %v1155_v20  ;;  %v13804_v22 = vsel %vm9557_vm6, 4294967295, %v13803_v22  ;;  %v626_v18 = vand.u32 15, %v416_v44  ;;  %vm13808_vm5 = vmmov %vm13802_vm3  ;;  %v13812_v44 = vmov 0 }
  0x73   : > { %8576 = vmatmul.msk.bf16.vlgmr.msra.gmra.mxu3 %vm13794_vm1, %v1937_v31  ;;  %13805 = vst [vmem:[#allocation46_spill] sm:$0xff] %v13804_v22  ;;  %v9565_v53 = vsel %vm13808_vm5, %v1155_v20, %v1157_v5  ;;  %v1299_v60 = vsel %vm9550_vm15, %v9555_v36, 0.0  ;;  %vm13809_vm1 = vmmov %vm13806_vm14  ;;  %v9576_v31 = vpack.c.bf16 %v1072_v27, %v1071_v14  ;;  %vm13815_vm3 = vcmask 64512   ;;  %v1074_v14 = vld [vmem:[%s9158_s30 + $0x78] sm:$0xff]  ;;  %v9594_v27 = vld [vmem:[%s9158_s30 + $0x80] sm:$0xff] }
  0x74   : > { %v9571_v7 = vsel %vm13809_vm1, %v1759_v12, %v1761_v13  ;;  %v1324_v34 = vpack.c.bf16 %v9565_v53, %v1299_v60  ;;  %vm9579_vm14 = vcmp.lt.s32.totalorder %v626_v18, 15  ;;  %v404_v13 = vadd.s32 136, %v9143_v9  ;;  %vm13816_vm5 = vmmov %vm13815_vm3  ;;  %v8579_v18 = vld [vmem:[%s13347_s1 + $0xc] sm:$0xf] }
  0x75   : > { %13810 = vst [vmem:[#allocation48_spill] sm:$0xff] %v9571_v7  ;;  %v13813_v44 = vsel %vm9579_vm14, 4294967295, %v13812_v44  ;;  %v1931_v20 = vpack.c.bf16 %v1907_v32, %v9571_v7  ;;  %v1921_v12 = vsel %vm9579_vm14, %v9483_v25, 0.0  ;;  %vm13817_vm1 = vmmov %vm13815_vm3  ;;  %v535_v32 = vand.u32 15, %v403_v51 }
  0x76   : > { %13811 = vst [vmem:[#allocation49_spill] sm:$0xff] %v9576_v31  ;;  %v1938_v60 = vpack.c.bf16 %v1921_v12, %v9480_v23  ;;  %vm13818_vm14 = vcmask 1043456   ;;  %v1765_v22 = vrot.slane %v1074_v14, 1  ;;  %v1767_v7 = vrot.slane %v9594_v27, 1 }
  0x77   : > { %13814 = vst [vmem:[#allocation50_spill] sm:$0xff] %v13813_v44  ;;  %v1159_v44 = vrot.slane %v1073_v17, 7  ;;  %v2277_v25 = vsel %vm13818_vm14, %v8579_v18, 0  ;;  %v1161_v48 = vrot.slane %v1074_v14, 7  ;;  %v13825_v12 = vmov 0 }
  0x78   : > { %2286 = vmatpush.bf16.msrb.mxu3 %v2277_v25  ;;  %vm13828_vm6 = vcmask 1046528   ;;  %v13461_v18 = vrot.slane %v9605_v21, 1 }
  0x79   : > { %v9620_v25 = vsel %vm13828_vm6, %v1765_v22, %v1767_v7 }
  0x7a   : > { %13829 = vst [vmem:[#allocation54_spill] sm:$0xff] %v9620_v25 }
  0x80   : > { %8539 = vmatmul.msk.bf16.gmra.mxu0 %vm13815_vm3, %v9576_v31  ;;  %8554 = vmatmul.msk.bf16.gmra.mxu1 %vm13816_vm5, %v1324_v34  ;;  %v542_v31 = vand.u32 15, %v404_v13  ;;  %v418_v34 = vadd.s32 248, %v9143_v9  ;;  %vm13820_vm3 = vmmov %vm13817_vm1  ;;  %vm9608_vm5 = vcmp.ge.s32.totalorder %v535_v32, 1  ;;  %v9635_v32 = vpack.c.bf16 %v1074_v14, %v1073_v17 }
  0x81   : > { %8570 = vmatmul.msk.bf16.gmra.mxu2 %vm13817_vm1, %v1931_v20  ;;  %v13821_v20 = vmov 0  ;;  %vm13824_vm1 = vcmask 1040384   ;;  %v405_v17 = vadd.s32 144, %v9143_v9 }
  0x82   : > { %v13822_v20 = vsel %vm9608_vm5, 4294967295, %v13821_v20  ;;  %v9613_v51 = vsel %vm13824_vm1, %v1157_v5, %v1159_v44  ;;  %vm9615_vm14 = vcmp.lt.s32.totalorder %v542_v31, 15  ;;  %v640_v13 = vand.u32 15, %v418_v34  ;;  %vm13830_vm15 = vmmov %vm13824_vm1  ;;  %13834 = vst [vmem:[#allocation57_spill] sm:$0xff] %v9635_v32 }
  0x83   : > { %8577 = vmatmul.msk.bf16.gmra.mxu3 %vm13820_vm3, %v1938_v60  ;;  %13823 = vst [vmem:[#allocation52_spill] sm:$0xff] %v13822_v20  ;;  %v13826_v12 = vsel %vm9615_vm14, 4294967295, %v13825_v12  ;;  %v9624_v23 = vsel %vm13830_vm15, %v1159_v44, %v1161_v48  ;;  %v1301_v60 = vsel %vm9608_vm5, %v9613_v51, 0.0  ;;  %vm13832_vm3 = vmmov %vm13828_vm6  ;;  %v1909_v31 = vsel %vm9615_vm14, %v9620_v25, 0.0 }
  0x84   : > { %13827 = vst [vmem:[#allocation53_spill] sm:$0xff] %v13826_v12  ;;  %v9630_v5 = vsel %vm13832_vm3, %v1763_v24, %v1765_v22  ;;  %v1325_v34 = vpack.c.bf16 %v9624_v23, %v1301_v60  ;;  %vm9638_vm6 = vcmp.lt.s32.totalorder %v640_v13, 15  ;;  %v13835_v44 = vmov 0  ;;  %vm13839_vm15 = vmmov %vm13832_vm3  ;;  %v1077_v60 = vld [vmem:[%s9158_s30 + $0x90] sm:$0xff] }
  0x85   : > { %13831 = vst [vmem:[#allocation55_spill] sm:$0xff] %v9624_v23  ;;  %v13836_v44 = vsel %vm9638_vm6, 4294967295, %v13835_v44  ;;  %v13838_v20 = vrot.slane %v9286_v15, 1  ;;  %v1932_v12 = vpack.c.bf16 %v1909_v31, %v9630_v5  ;;  %v406_v13 = vadd.s32 152, %v9143_v9 }
  0x86   : > { %13833 = vst [vmem:[#allocation56_spill] sm:$0xff] %v9630_v5  ;;  %vm13841_vm1 = vcmask 64512   ;;  %vm13853_vm14 = vcmask 1046528  }
  0x87   : > { %13837 = vst [vmem:[#allocation58_spill] sm:$0xff] %v13836_v44  ;;  %v9647_v24 = vsel %vm13839_vm15, %v13838_v20, %v13461_v18  ;;  %vm13842_vm3 = vmmov %vm13841_vm1  ;;  %v1076_v20 = vld [vmem:[%s9158_s30 + $0x88] sm:$0xff]  ;;  %v556_v15 = vand.u32 15, %v406_v13  ;;  %v1771_v44 = vrot.slane %v1077_v60, 1 }
  0x88   : > { %13840 = vst [vmem:[#allocation59_spill] sm:$0xff] %v9647_v24  ;;  %v1923_v14 = vsel %vm9638_vm6, %v9647_v24, 0.0  ;;  %vm13843_vm15 = vmmov %vm13841_vm1  ;;  %v1769_v18 = vrot.slane %v1076_v20, 1  ;;  %v9695_v13 = vpack.c.bf16 %v1076_v20, %v9594_v27 }
  0x89   : > { %v1939_v31 = vpack.c.bf16 %v1923_v14, %v9546_v50  ;;  %vm9673_vm6 = vcmp.lt.s32.totalorder %v556_v15, 15 }
  0x8a   : > { %13859 = vst [vmem:[#allocation67_spill] sm:$0xff] %v9695_v13  ;;  %v13951_v26 = vld [vmem:[#allocation52_spill] sm:$0xff] }
  0x8d   : > { %v1510_v22 = vpop.f32.mrf.mxu0  ;;  %v1650_v55 = vpop.f32.mrf.mxu1 }
  0x8e   : > { %v1651_v25 = vadd.f32 %v1650_v55, %v1510_v22  ;;  %v549_v55 = vand.u32 15, %v405_v17  ;;  %v1163_v22 = vrot.slane %v9594_v27, 7  ;;  %v13850_v17 = vmov 0  ;;  %v1078_v27 = vld [vmem:[%s9158_s30 + $0x98] sm:$0xff] }
  0x8f   : > { %v13851_v17 = vsel %vm9673_vm6, 4294967295, %v13850_v17 }
  0x90   : > { %8540 = vmatmul.msk.bf16.gmra.mxu0 %vm13841_vm1, %v9635_v32  ;;  %8555 = vmatmul.msk.bf16.gmra.mxu1 %vm13842_vm3, %v1325_v34  ;;  %v1165_v32 = vrot.slane %v1076_v20, 7  ;;  %vm9666_vm3 = vcmp.ge.s32.totalorder %v549_v55, 1  ;;  %13852 = vst [vmem:[#allocation63_spill] sm:$0xff] %v13851_v17  ;;  %v9708_v20 = vld [vmem:[%s9158_s30 + $0xa0] sm:$0xff] }
  0x91   : > { %8571 = vmatmul.msk.bf16.gmra.mxu2 %vm13843_vm15, %v1932_v12  ;;  %v13846_v33 = vsel %vm9666_vm3, 4294967295, %v13845_v33  ;;  %vm13848_vm15 = vcmask 1040384  }
  0x92   : > { %13847 = vst [vmem:[#allocation61_spill] sm:$0xff] %v13846_v33  ;;  %v9671_v12 = vsel %vm13848_vm15, %v1161_v48, %v1163_v22  ;;  %vm13855_vm5 = vmmov %vm13848_vm15 }
  0x93   : > { %8578 = vmatmul.msk.bf16.gmra.mxu3 %vm13841_vm1, %v1939_v31  ;;  %13849 = vst [vmem:[#allocation62_spill] sm:$0xff] %v9671_v12  ;;  %v9683_v14 = vsel %vm13855_vm5, %v1163_v22, %v1165_v32  ;;  %vm13857_vm1 = vmmov %vm13853_vm14  ;;  %vm13861_vm5 = vcmask 64512  }
  0x94   : > { %v2002_v24 = vpop.f32.mrf.mxu2  ;;  %13856 = vst [vmem:[#allocation65_spill] sm:$0xff] %v9683_v14  ;;  %v9689_v48 = vsel %vm13857_vm1, %v1767_v7, %v1769_v18  ;;  %v407_v7 = vadd.s32 160, %v9143_v9  ;;  %vm13863_vm15 = vmmov %vm13861_vm5 }
  0x95   : > { %v9663_v21 = vadd.f32 %v2002_v24, %v1651_v25  ;;  %v1512_v5 = vpop.f32.mrf.mxu0  ;;  %v1652_v62 = vpop.f32.mrf.mxu1  ;;  %v9678_v25 = vsel %vm13853_vm14, %v1769_v18, %v1771_v44  ;;  %13858 = vst [vmem:[#allocation66_spill] sm:$0xff] %v9689_v48  ;;  %v408_v18 = vadd.s32 168, %v9143_v9  ;;  %vm13862_vm14 = vmmov %vm13861_vm5 }
  0x96   : > { %v1653_v34 = vadd.f32 %v1652_v62, %v1512_v5  ;;  %13854 = vst [vmem:[#allocation64_spill] sm:$0xff] %v9678_v25  ;;  %v9680_v24 = vpop.f32.mrf.mxu3  ;;  %v1303_v62 = vsel %vm9666_vm3, %v9671_v12, 0.0  ;;  %v1911_v15 = vsel %vm9673_vm6, %v9678_v25, 0.0  ;;  %vm13865_vm1 = vmmov %vm13861_vm5  ;;  %vm13874_vm6 = vcmask 1046528  }
  0x97   : > { %13844 = vst [vmem:[#allocation60_spill] sm:$0xff] %v9663_v21  ;;  %v1326_v31 = vpack.c.bf16 %v9683_v14, %v1303_v62  ;;  %v1933_v33 = vpack.c.bf16 %v1911_v15, %v9689_v48  ;;  %v1773_v15 = vrot.slane %v1078_v27, 1  ;;  %v13866_v14 = vmov 0 }
  0x9a   : > { %v13950_v30 = vld [vmem:[#allocation62_spill] sm:$0xff] }
  0x9c   : > { %v2004_v5 = vpop.f32.mrf.mxu2 }
  0x9d   : > { %v9698_v55 = vadd.f32 %v2004_v5, %v1653_v34  ;;  %v1515_v22 = vpop.f32.mrf.mxu0  ;;  %v1655_v50 = vpop.f32.mrf.mxu1  ;;  %v563_v34 = vand.u32 15, %v407_v7  ;;  %v1167_v5 = vrot.slane %v1077_v60, 7  ;;  %v13871_v7 = vmov 0 }
  0x9e   : > { %v1656_v21 = vadd.f32 %v1655_v50, %v1515_v22  ;;  %v9710_v62 = vpop.f32.mrf.mxu3  ;;  %v570_v50 = vand.u32 15, %v408_v18  ;;  %v1775_v22 = vrot.slane %v9708_v20, 1 }
  0x9f   : > { %13860 = vst [vmem:[#allocation68_spill] sm:$0xff] %v9698_v55  ;;  %v1169_v55 = vrot.slane %v1078_v27, 7 }
  0xa0   : > { %8541 = vmatmul.msk.bf16.gmra.mxu0 %vm13861_vm5, %v9695_v13  ;;  %8556 = vmatmul.msk.bf16.gmra.mxu1 %vm13862_vm14, %v1326_v31  ;;  %vm9718_vm5 = vcmp.ge.s32.totalorder %v563_v34, 1  ;;  %vm13869_vm14 = vcmask 1040384   ;;  %v9746_v34 = vpack.c.bf16 %v1078_v27, %v1077_v60  ;;  %v9761_v60 = vld [vmem:[%s9158_s30 + $0xa8] sm:$0xff]  ;;  %v9764_v27 = vld [vmem:[%s9158_s30 + $0xb0] sm:$0xff] }
  0xa1   : > { %8572 = vmatmul.msk.bf16.gmra.mxu2 %vm13863_vm15, %v1933_v33  ;;  %v13867_v14 = vsel %vm9718_vm5, 4294967295, %v13866_v14  ;;  %v9723_v33 = vsel %vm13869_vm14, %v1165_v32, %v1167_v5  ;;  %vm9725_vm15 = vcmp.lt.s32.totalorder %v570_v50, 15  ;;  %vm13876_vm3 = vmmov %vm13869_vm14 }
  0xa2   : > { %13868 = vst [vmem:[#allocation70_spill] sm:$0xff] %v13867_v14  ;;  %v13872_v7 = vsel %vm9725_vm15, 4294967295, %v13871_v7  ;;  %v9735_v18 = vsel %vm13876_vm3, %v1167_v5, %v1169_v55 }
  0xa3   : > { %8580 = vmatmul.msk.bf16.vlgmr.msrb.gmra.mxu3 %vm13865_vm1, %v9211_v41  ;;  %13870 = vst [vmem:[#allocation71_spill] sm:$0xff] %v9723_v33  ;;  %v1305_v41 = vsel %vm9718_vm5, %v9723_v33, 0.0  ;;  %vm13878_vm1 = vmmov %vm13874_vm6 }
  0xa4   : > { %v2007_v17 = vpop.f32.mrf.mxu2  ;;  %13873 = vst [vmem:[#allocation72_spill] sm:$0xff] %v13872_v7  ;;  %v9741_v32 = vsel %vm13878_vm1, %v1771_v44, %v1773_v15  ;;  %v1327_v50 = vpack.c.bf16 %v9735_v18, %v1305_v41  ;;  %v409_v44 = vadd.s32 176, %v9143_v9  ;;  %v410_v7 = vadd.s32 184, %v9143_v9 }
  0xa5   : > { %v9714_v48 = vadd.f32 %v2007_v17, %v1656_v21  ;;  %v1517_v25 = vpop.f32.mrf.mxu0  ;;  %v1657_v13 = vpop.f32.mrf.mxu1  ;;  %v9730_v21 = vsel %vm13874_vm6, %v1773_v15, %v1775_v22  ;;  %13877 = vst [vmem:[#allocation74_spill] sm:$0xff] %v9735_v18  ;;  %v2180_v15 = vsel %vm9186_vm4, %v9256_v1, 0.0  ;;  %vm13882_vm6 = vcmask 64512  }
  0xa6   : > { %v1658_v31 = vadd.f32 %v1657_v13, %v1517_v25  ;;  %13875 = vst [vmem:[#allocation73_spill] sm:$0xff] %v9730_v21  ;;  %v9732_v17 = vpop.f32.mrf.mxu3  ;;  %v1913_v25 = vsel %vm9725_vm15, %v9730_v21, 0.0  ;;  %vm13883_vm3 = vmmov %vm13882_vm6  ;;  %v1171_v41 = vrot.slane %v9708_v20, 7  ;;  %v1173_v18 = vrot.slane %v9761_v60, 7 }
  0xa7   : > { %13864 = vst [vmem:[#allocation69_spill] sm:$0xff] %v9714_v48  ;;  %v1934_v14 = vpack.c.bf16 %v1913_v25, %v9741_v32  ;;  %vm13884_vm14 = vmmov %vm13883_vm3  ;;  %v1777_v25 = vrot.slane %v9761_v60, 1  ;;  %vm13895_vm15 = vcmask 1046528  }
  0xa8   : > { %13879 = vst [vmem:[#allocation75_spill] sm:$0xff] %v9741_v32  ;;  %vm13886_vm1 = vmmov %vm13883_vm3 }
  0xa9   : > { %13880 = vst [vmem:[#allocation76_spill] sm:$0xff] %v9746_v34 }
  0xac   : > { %v2009_v13 = vpop.f32.mrf.mxu2 }
  0xad   : > { %v9749_v5 = vadd.f32 %v2009_v13, %v1658_v31  ;;  %v1520_v48 = vpop.f32.mrf.mxu0  ;;  %v1660_v12 = vpop.f32.mrf.mxu1  ;;  %v584_v13 = vand.u32 15, %v410_v7  ;;  %v13892_v7 = vmov 0 }
  0xae   : > { %v1661_v33 = vadd.f32 %v1660_v12, %v1520_v48  ;;  %v9766_v31 = vpop.f32.mrf.mxu3  ;;  %v2211_v12 = vpack.c.bf16 %v9266_v4, %v2180_v15  ;;  %v577_v48 = vand.u32 15, %v409_v44  ;;  %v13887_v15 = vmov 0 }
  0xaf   : > { %13881 = vst [vmem:[#allocation77_spill] sm:$0xff] %v9749_v5 }
  0xb0   : > { %8542 = vmatmul.msk.bf16.gmra.mxu0 %vm13882_vm6, %v9746_v34  ;;  %8557 = vmatmul.msk.bf16.gmra.mxu1 %vm13883_vm3, %v1327_v50  ;;  %v13519_v34 = vrot.slane %v9764_v27, 1  ;;  %vm9777_vm6 = vcmp.ge.s32.totalorder %v577_v48, 1  ;;  %vm13890_vm3 = vcmask 1040384   ;;  %v8646_v48 = vld [vmem:[%s13347_s1 + $0x1c] sm:$0xf] }
  0xb1   : > { %8573 = vmatmul.msk.bf16.gmra.mxu2 %vm13884_vm14, %v1934_v14  ;;  %v13888_v15 = vsel %vm9777_vm6, 4294967295, %v13887_v15  ;;  %v9782_v44 = vsel %vm13890_vm3, %v1169_v55, %v1171_v41  ;;  %vm9784_vm14 = vcmp.lt.s32.totalorder %v584_v13, 15 }
  0xb2   : > { %13889 = vst [vmem:[#allocation79_spill] sm:$0xff] %v13888_v15  ;;  %v13893_v7 = vsel %vm9784_vm14, 4294967295, %v13892_v7 }
  0xb3   : > { %8581 = vmatmul.msk.bf16.gmra.mxu3 %vm13886_vm1, %v2211_v12  ;;  %13891 = vst [vmem:[#allocation80_spill] sm:$0xff] %v9782_v44  ;;  %vm13897_vm1 = vmmov %vm13890_vm3 }
  0xb4   : > { %v2012_v32 = vpop.f32.mrf.mxu2  ;;  %13894 = vst [vmem:[#allocation81_spill] sm:$0xff] %v13893_v7  ;;  %vm13898_vm3 = vmmov %vm13895_vm15 }
  0xb5   : > { %v9773_v50 = vadd.f32 %v2012_v32, %v1661_v33  ;;  %v1522_v21 = vpop.f32.mrf.mxu0  ;;  %v1662_v5 = vpop.f32.mrf.mxu1  ;;  %v9791_v33 = vsel %vm13895_vm15, %v1777_v25, %v13519_v34  ;;  %v9802_v55 = vsel %vm13898_vm3, %v1775_v22, %v1777_v25  ;;  %vm13900_vm15 = vcmask 1043456  }
  0xb6   : > { %v1663_v14 = vadd.f32 %v1662_v5, %v1522_v21  ;;  %13896 = vst [vmem:[#allocation82_spill] sm:$0xff] %v9791_v33  ;;  %v9793_v32 = vpop.f32.mrf.mxu3  ;;  %v9796_v21 = vsel %vm13897_vm1, %v1171_v41, %v1173_v18  ;;  %v1307_v5 = vsel %vm9777_vm6, %v9782_v44, 0.0  ;;  %v1915_v12 = vsel %vm9784_vm14, %v9791_v33, 0.0  ;;  %v8630_v33 = vld [vmem:[%s13347_s1 + $0x18] sm:$0xf]  ;;  %vm13902_vm1 = vmmov %vm13900_vm15 }
  0xb7   : > { %13885 = vst [vmem:[#allocation78_spill] sm:$0xff] %v9773_v50  ;;  %v3325_v13 = vsel %vm13900_vm15, %v8646_v48, 0  ;;  %v9813_v41 = vpack.c.bf16 %v9761_v60, %v9708_v20  ;;  %v1328_v15 = vpack.c.bf16 %v9796_v21, %v1307_v5  ;;  %v1935_v7 = vpack.c.bf16 %v1915_v12, %v9802_v55  ;;  %v8613_v60 = vld [vmem:[%s13347_s1 + $0x14] sm:$0xf]  ;;  %vm13905_vm14 = vmmov %vm13902_vm1  ;;  %v8662_v5 = vld [vmem:[%s13347_s1 + $0x20] sm:$0xf] }
  0xb8   : > { %13899 = vst [vmem:[#allocation83_spill] sm:$0xff] %v9802_v55  ;;  %3334 = vmatpush.bf16.msra.mxu3 %v3325_v13  ;;  %v411_v48 = vadd.s32 192, %v9143_v9  ;;  %v3039_v23 = vsel %vm13902_vm1, %v8630_v33, 0  ;;  %v2182_v20 = vsel %vm9251_vm8, %v9310_v43, 0.0  ;;  %vm13903_vm3 = vcmask 64512  }
  0xb9   : > { %13901 = vst [vmem:[#allocation84_spill] sm:$0xff] %v9813_v41  ;;  %3048 = vmatpush.bf16.msrb.mxu2 %v3039_v23  ;;  %vm13904_vm15 = vmmov %vm13903_vm3  ;;  %v2212_v33 = vpack.c.bf16 %v9322_v54, %v2182_v20  ;;  %v1175_v23 = vrot.slane %v9764_v27, 7  ;;  %v1781_v13 = vrot.slane %v9301_v39, 1  ;;  %v13909_v20 = vmov 0 }
  0xba   : > { %vm13906_vm1 = vmmov %vm13903_vm3 }
  0xbc   : > { %v2014_v34 = vpop.f32.mrf.mxu2 }
  0xbd   : > { %v9816_v22 = vadd.f32 %v2014_v34, %v1663_v14  ;;  %v1525_v25 = vpop.f32.mrf.mxu0  ;;  %v1665_v50 = vpop.f32.mrf.mxu1  ;;  %v412_v34 = vadd.s32 200, %v9143_v9  ;;  %v591_v9 = vand.u32 15, %v411_v48 }
  0xbe   : > { %v1666_v44 = vadd.f32 %v1665_v50, %v1525_v25  ;;  %v2753_v50 = vsel %vm13905_vm14, %v8613_v60, 0  ;;  %v9835_v14 = vpop.f32.mrf.mxu3  ;;  %v13988_v2 = vld [vmem:[#allocation78_spill] sm:$0xff] }
  0xbf   : > { %2762 = vmatpush.bf16.msrb.mxu1 %v2753_v50  ;;  %v598_v12 = vand.u32 15, %v412_v34  ;;  %v13913_v34 = vmov 0 }
  0xc0   : > { %8543 = vmatmul.msk.bf16.gmra.mxu0 %vm13903_vm3, %v9813_v41  ;;  %8558 = vmatmul.msk.bf16.gmra.mxu1 %vm13904_vm15, %v1328_v15  ;;  %vm13907_vm3 = vmmov %vm13905_vm14  ;;  %vm9848_vm15 = vcmp.ge.s32.totalorder %v591_v9, 1 }
  0xc1   : > { %8574 = vmatmul.msk.bf16.gmra.mxu2 %vm13906_vm1, %v1935_v7  ;;  %v3611_v15 = vsel %vm13907_vm3, %v8662_v5, 0  ;;  %vm13908_vm14 = vmmov %vm13906_vm1  ;;  %v13910_v20 = vsel %vm9848_vm15, 4294967295, %v13909_v20  ;;  %vm13912_vm1 = vcmask 1040384   ;;  %vm9855_vm6 = vcmp.lt.s32.totalorder %v598_v12, 15 }
  0xc2   : > { %3620 = vmatpush.bf16.msra.mxu0 %v3611_v15  ;;  %13911 = vst [vmem:[#allocation85_spill] sm:$0xff] %v13910_v20  ;;  %v9853_v41 = vsel %vm13912_vm1, %v1173_v18, %v1175_v23  ;;  %v13914_v34 = vsel %vm9855_vm6, 4294967295, %v13913_v34  ;;  %v13916_v5 = vrot.slane %v9161_v16, 1  ;;  %vm13917_vm3 = vcmask 1046528  }
  0xc3   : > { %8582 = vmatmul.msk.bf16.gmra.mxu3 %vm13908_vm14, %v2212_v33  ;;  %13915 = vst [vmem:[#allocation86_spill] sm:$0xff] %v13914_v34  ;;  %v13919_v33 = vrot.slane %v9301_v39, 7  ;;  %vm13920_vm14 = vmmov %vm13912_vm1  ;;  %v1309_v18 = vsel %vm9848_vm15, %v9853_v41, 0.0 }
  0xc4   : > { %v2017_v25 = vpop.f32.mrf.mxu2  ;;  %vm13922_vm1 = vmmov %vm13917_vm3 }
  0xc5   : > { %v9845_v60 = vadd.f32 %v2017_v25, %v1666_v44  ;;  %v1527_v7 = vpop.f32.mrf.mxu0  ;;  %v1667_v50 = vpop.f32.mrf.mxu1  ;;  %v9862_v44 = vsel %vm13917_vm3, %v1781_v13, %v13916_v5  ;;  %v9867_v9 = vsel %vm13920_vm14, %v1175_v23, %v13919_v33  ;;  %v13921_v25 = vrot.slane %v9764_v27, 1 }
  0xc6   : > { %v1668_v48 = vadd.f32 %v1667_v50, %v1527_v7  ;;  %13918 = vst [vmem:[#allocation87_spill] sm:$0xff] %v9862_v44  ;;  %v1715_v15 = vpop.f32.mrf.mxu3  ;;  %v1917_v7 = vsel %vm9855_vm6, %v9862_v44, 0.0  ;;  %v9885_v23 = vpack.c.bf16 %v9301_v39, %v9764_v27  ;;  %v1329_v5 = vpack.c.bf16 %v9867_v9, %v1309_v18 }
  0xc7   : > { %v9873_v12 = vadd.f32 %v1715_v15, %v9680_v24  ;;  %v9878_v16 = vsel %vm13922_vm1, %v13921_v25, %v1781_v13  ;;  %v2184_v13 = vsel %vm9305_vm10, %v9369_v63, 0.0  ;;  %vm13923_vm3 = vcmask 64512  }
  0xc8   : > { %v1936_v55 = vpack.c.bf16 %v1917_v7, %v9878_v16  ;;  %vm13924_vm14 = vmmov %vm13923_vm3 }
  0xc9   : > { %vm13925_vm1 = vmmov %vm13923_vm3 }
  0xca   : > { %vm13926_vm6 = vmmov %vm13925_vm1 }
  0xcc   : > { %v2019_v50 = vpop.f32.mrf.mxu2 }
  0xcd   : > { %v9888_v33 = vadd.f32 %v2019_v50, %v1668_v48  ;;  %v1530_v24 = vpop.f32.mrf.mxu0  ;;  %v1670_v15 = vpop.f32.mrf.mxu1  ;;  %v2213_v48 = vpack.c.bf16 %v9380_v10, %v2184_v13 }
  0xce   : > { %v1671_v20 = vadd.f32 %v1670_v15, %v1530_v24  ;;  %v1717_v39 = vpop.f32.mrf.mxu3 }
  0xcf   : > { %v9899_v27 = vadd.f32 %v1717_v39, %v9710_v62 }
  0xd0   : > { %8544 = vmatmul.msk.bf16.gmra.mxu0 %vm13923_vm3, %v9885_v23  ;;  %8559 = vmatmul.msk.bf16.gmra.mxu1 %vm13924_vm14, %v1329_v5  ;;  %v2940_v5 = vsel %vm9178_vm2, %v9256_v1, 0.0  ;;  %vm13928_vm3 = vmmov %vm13925_vm1 }
  0xd1   : > { %8575 = vmatmul.msk.bf16.gmra.mxu2 %vm13925_vm1, %v1936_v55  ;;  %v2972_v39 = vpack.c.bf16 %v9266_v4, %v2940_v5  ;;  %vm13929_vm14 = vmmov %vm13925_vm1 }
  0xd3   : > { %8583 = vmatmul.msk.bf16.gmra.mxu3 %vm13926_vm6, %v2213_v48  ;;  %v2186_v48 = vsel %vm9364_vm13, %v9425_v29, 0.0  ;;  %vm13927_vm6 = vmmov %vm13925_vm1 }
  0xd4   : > { %v2022_v18 = vpop.f32.mrf.mxu2 }
  0xd5   : > { %v9902_v25 = vadd.f32 %v2022_v18, %v1671_v20  ;;  %v1532_v7 = vpop.f32.mrf.mxu0  ;;  %v1672_v50 = vpop.f32.mrf.mxu1 }
  0xd6   : > { %v1673_v24 = vadd.f32 %v1672_v50, %v1532_v7  ;;  %v1720_v15 = vpop.f32.mrf.mxu3 }
  0xd7   : > { %v9909_v55 = vadd.f32 %v1720_v15, %v9732_v17  ;;  %v2214_v17 = vpack.c.bf16 %v9436_v19, %v2186_v48 }
  0xdc   : > { %v2024_v62 = vpop.f32.mrf.mxu2 }
  0xdd   : > { %v9912_v13 = vadd.f32 %v2024_v62, %v1673_v24  ;;  %v1535_v20 = vpop.f32.mrf.mxu0  ;;  %v1675_v18 = vpop.f32.mrf.mxu1 }
  0xde   : > { %v1676_v34 = vadd.f32 %v1675_v18, %v1535_v20  ;;  %v1722_v1 = vpop.f32.mrf.mxu3 }
  0xdf   : > { %v9923_v4 = vadd.f32 %v1722_v1, %v9766_v31  ;;  %v2942_v31 = vsel %vm9186_vm4, %v9310_v43, 0.0  ;;  %vm13958_vm4 = vmmov %vm13925_vm1 }
  0xe0   : > { %8597 = vmatmul.msk.bf16.vlgmr.msrb.gmra.mxu0 %vm13927_vm6, %v9223_v47  ;;  %8614 = vmatmul.msk.bf16.vlgmr.msrb.gmra.mxu1 %vm13928_vm3, %v9225_v49  ;;  %v2657_v49 = vsel %vm9199_vm7, %v9263_v3, 0.0  ;;  %v2973_v1 = vpack.c.bf16 %v9322_v54, %v2942_v31  ;;  %vm13930_vm6 = vmmov %vm13925_vm1 }
  0xe1   : > { %8631 = vmatmul.msk.bf16.vlgmr.msrb.gmra.mxu2 %vm13929_vm14, %v2972_v39  ;;  %vm13931_vm3 = vmmov %vm13925_vm1 }
  0xe2   : > { %vm13932_vm14 = vmmov %vm13925_vm1 }
  0xe3   : > { %8584 = vmatmul.msk.bf16.gmra.mxu3 %vm13925_vm1, %v2214_v17 }
  0xe4   : > { %v2027_v7 = vpop.f32.mrf.mxu2 }
  0xe5   : > { %v9926_v50 = vadd.f32 %v2027_v7, %v1676_v34  ;;  %v1537_v24 = vpop.f32.mrf.mxu0  ;;  %v1677_v15 = vpop.f32.mrf.mxu1  ;;  %v2687_v34 = vpack.c.bf16 %v2657_v49, %v9272_v6  ;;  %v2188_v7 = vsel %vm9420_vm0, %v9493_v52, 0.0 }
  0xe6   : > { %v1678_v5 = vadd.f32 %v1677_v15, %v1537_v24  ;;  %v1725_v47 = vpop.f32.mrf.mxu3  ;;  %v2215_v24 = vpack.c.bf16 %v9503_v37, %v2188_v7 }
  0xe7   : > { %v9933_v62 = vadd.f32 %v1725_v47, %v9793_v32 }
  0xec   : > { %v2029_v39 = vpop.f32.mrf.mxu2 }
  0xed   : > { %v9939_v20 = vadd.f32 %v2029_v39, %v1678_v5  ;;  %v1540_v18 = vpop.f32.mrf.mxu0  ;;  %v1680_v48 = vpop.f32.mrf.mxu1  ;;  %v2659_v39 = vsel %vm9258_vm9, %v9317_v46, 0.0 }
  0xee   : > { %v1681_v17 = vadd.f32 %v1680_v48, %v1540_v18  ;;  %v1727_v43 = vpop.f32.mrf.mxu3  ;;  %v2688_v48 = vpack.c.bf16 %v2659_v39, %v9328_v58 }
  0xef   : > { %v9950_v32 = vadd.f32 %v1727_v43, %v9835_v14  ;;  %v2944_v14 = vsel %vm9251_vm8, %v9369_v63, 0.0 }
  0xf0   : > { %8598 = vmatmul.msk.bf16.gmra.mxu0 %vm13930_vm6, %v9277_v8  ;;  %8615 = vmatmul.msk.bf16.gmra.mxu1 %vm13931_vm3, %v2687_v34  ;;  %v2974_v43 = vpack.c.bf16 %v9380_v10, %v2944_v14  ;;  %vm13934_vm6 = vmmov %vm13925_vm1 }
  0xf1   : > { %8632 = vmatmul.msk.bf16.gmra.mxu2 %vm13932_vm14, %v2973_v1  ;;  %vm13935_vm3 = vmmov %vm13925_vm1 }
  0xf2   : > { %vm13936_vm14 = vmmov %vm13925_vm1 }
  0xf3   : > { %8585 = vmatmul.msk.bf16.gmra.mxu3 %vm13925_vm1, %v2215_v24 }
  0xf4   : > { %v2032_v15 = vpop.f32.mrf.mxu2 }
  0xf5   : > { %v9953_v54 = vadd.f32 %v2032_v15, %v1681_v17  ;;  %v1542_v5 = vpop.f32.mrf.mxu0  ;;  %v1682_v47 = vpop.f32.mrf.mxu1  ;;  %v2190_v15 = vsel %vm9488_vm12, %v9555_v36, 0.0 }
  0xf6   : > { %v1683_v49 = vadd.f32 %v1682_v47, %v1542_v5  ;;  %v2067_v31 = vpop.f32.mrf.mxu3  ;;  %v2216_v5 = vpack.c.bf16 %v9565_v53, %v2190_v15 }
  0xf7   : > { %v9960_v34 = vadd.f32 %v2067_v31, %v9873_v12 }
  0xf9   : > { %13933 = vst [vmem:[#allocation88_spill] sm:$0xff] %v9960_v34  ;;  %v13986_v34 = vld [vmem:[#allocation46_spill] sm:$0xff] }
  0xfc   : > { %v2034_v18 = vpop.f32.mrf.mxu2 }
  0xfd   : > { %v9966_v1 = vadd.f32 %v2034_v18, %v1683_v49  ;;  %v1545_v17 = vpop.f32.mrf.mxu0  ;;  %v1685_v7 = vpop.f32.mrf.mxu1  ;;  %v2661_v18 = vsel %vm9312_vm11, %v9376_v11, 0.0 }
  0xfe   : > { %v1686_v24 = vadd.f32 %v1685_v7, %v1545_v17  ;;  %v2069_v63 = vpop.f32.mrf.mxu3  ;;  %v2689_v7 = vpack.c.bf16 %v2661_v18, %v9386_v38  ;;  %v13978_v38 = vld [vmem:[#allocation80_spill] sm:$0xff] }
  0xff   : > { %v9977_v12 = vadd.f32 %v2069_v63, %v9899_v27  ;;  %v2946_v27 = vsel %vm9305_vm10, %v9425_v29, 0.0  ;;  %vm13944_vm10 = vmmov %vm13925_vm1 }
 0x100   : > { %8599 = vmatmul.msk.bf16.gmra.mxu0 %vm13934_vm6, %v9334_v61  ;;  %8616 = vmatmul.msk.bf16.gmra.mxu1 %vm13935_vm3, %v2688_v48  ;;  %v2975_v63 = vpack.c.bf16 %v9436_v19, %v2946_v27  ;;  %vm13939_vm6 = vnez %v13800_v56  ;;  %vm13940_vm3 = vmmov %vm13925_vm1  ;;  %v13996_v56 = vld [vmem:[#allocation64_spill] sm:$0xff] }
 0x101   : > { %8633 = vmatmul.msk.bf16.gmra.mxu2 %vm13936_vm14, %v2974_v43  ;;  %13937 = vst [vmem:[#allocation89_spill] sm:$0xff] %v9977_v12  ;;  %vm13941_vm14 = vmmov %vm13925_vm1 }
 0x103   : > { %8586 = vmatmul.msk.bf16.gmra.mxu3 %vm13925_vm1, %v2216_v5 }
 0x104   : > { %v2037_v47 = vpop.f32.mrf.mxu2 }
 0x105   : > { %v9980_v10 = vadd.f32 %v2037_v47, %v1686_v24  ;;  %v1547_v49 = vpop.f32.mrf.mxu0  ;;  %v1687_v31 = vpop.f32.mrf.mxu1  ;;  %v2192_v47 = vsel %vm13939_vm6, %v9613_v51, 0.0 }
 0x106   : > { %v1688_v39 = vadd.f32 %v1687_v31, %v1547_v49  ;;  %v2072_v14 = vpop.f32.mrf.mxu3  ;;  %v13943_v49 = vld [vmem:[#allocation55_spill] sm:$0xff] }
 0x107   : > { %v9987_v48 = vadd.f32 %v2072_v14, %v9909_v55  ;;  %v2217_v31 = vpack.c.bf16 %v13943_v49, %v2192_v47 }
 0x109   : > { %13938 = vst [vmem:[#allocation90_spill] sm:$0xff] %v9987_v48  ;;  %v13973_v48 = vld [vmem:[#allocation47_spill] sm:$0xff] }
 0x10c   : > { %v2039_v17 = vpop.f32.mrf.mxu2 }
 0x10d   : > { %v9993_v43 = vadd.f32 %v2039_v17, %v1688_v39  ;;  %v1550_v24 = vpop.f32.mrf.mxu0  ;;  %v1690_v15 = vpop.f32.mrf.mxu1 }
 0x10e   : > { %v1691_v5 = vadd.f32 %v1690_v15, %v1550_v24  ;;  %v2074_v29 = vpop.f32.mrf.mxu3  ;;  %v13945_v24 = vld [vmem:[#allocation29_spill] sm:$0xff] }
 0x10f   : > { %v10004_v55 = vadd.f32 %v2074_v29, %v9923_v4  ;;  %v13946_v15 = vld [vmem:[#allocation21_spill] sm:$0xff]  ;;  %v2948_v4 = vsel %vm9364_vm13, %v9493_v52, 0.0  ;;  %vm13955_vm13 = vmmov %vm13925_vm1 }
 0x110   : > { %8600 = vmatmul.msk.bf16.gmra.mxu0 %vm13940_vm3, %v9392_v28  ;;  %8617 = vmatmul.msk.bf16.gmra.mxu1 %vm13941_vm14, %v2689_v7  ;;  %vm13947_vm3 = vnez %v13946_v15  ;;  %vm13954_vm14 = vmmov %vm13925_vm1  ;;  %v13960_v15 = vld [vmem:[#allocation28_spill] sm:$0xff] }
 0x111   : > { %8634 = vmatmul.msk.bf16.gmra.mxu2 %vm13925_vm1, %v2975_v63  ;;  %13942 = vst [vmem:[#allocation91_spill] sm:$0xff] %v10004_v55  ;;  %v2663_v7 = vsel %vm13947_vm3, %v13945_v24, 0.0  ;;  %v13962_v55 = vld [vmem:[#allocation60_spill] sm:$0xff]  ;;  %v13976_v24 = vld [vmem:[#allocation69_spill] sm:$0xff] }
 0x113   : > { %8587 = vmatmul.msk.bf16.gmra.mxu3 %vm13944_vm10, %v2217_v31  ;;  %vm13952_vm10 = vnez %v13951_v26 }
 0x114   : > { %v2042_v39 = vpop.f32.mrf.mxu2  ;;  %v2194_v0 = vsel %vm13952_vm10, %v13950_v30, 0.0 }
 0x115   : > { %v10007_v19 = vadd.f32 %v2042_v39, %v1691_v5  ;;  %v1552_v14 = vpop.f32.mrf.mxu0  ;;  %v1692_v18 = vpop.f32.mrf.mxu1  ;;  %v13949_v5 = vld [vmem:[#allocation30_spill] sm:$0xff] }
 0x116   : > { %v1693_v27 = vadd.f32 %v1692_v18, %v1552_v14  ;;  %v2077_v17 = vpop.f32.mrf.mxu3  ;;  %v2690_v29 = vpack.c.bf16 %v2663_v7, %v13949_v5  ;;  %v2976_v14 = vpack.c.bf16 %v9503_v37, %v2948_v4  ;;  %v13964_v5 = vld [vmem:[#allocation71_spill] sm:$0xff] }
 0x117   : > { %v10014_v63 = vadd.f32 %v2077_v17, %v9933_v62  ;;  %v13953_v62 = vld [vmem:[#allocation31_spill] sm:$0xff]  ;;  %v13957_v17 = vld [vmem:[#allocation65_spill] sm:$0xff] }
 0x118   : > { %v2218_v7 = vpack.c.bf16 %v13957_v17, %v2194_v0  ;;  %v2950_v0 = vsel %vm9420_vm0, %v9555_v36, 0.0  ;;  %vm13969_vm0 = vmmov %vm13925_vm1 }
 0x119   : > { %13948 = vst [vmem:[#allocation55_spill] sm:$0xff] %v10014_v63  ;;  %v13959_v63 = vld [vmem:[#allocation39_spill] sm:$0xff]  ;;  %vm13972_vm2 = vmmov %vm13969_vm0 }
 0x11c   : > { %v2044_v47 = vpop.f32.mrf.mxu2 }
 0x11d   : > { %v10020_v39 = vadd.f32 %v2044_v47, %v1693_v27  ;;  %v1555_v42 = vpop.f32.mrf.mxu0  ;;  %v1695_v31 = vpop.f32.mrf.mxu1 }
 0x11e   : > { %v1696_v18 = vadd.f32 %v1695_v31, %v1555_v42  ;;  %v2079_v52 = vpop.f32.mrf.mxu3 }
 0x11f   : > { %v10031_v27 = vadd.f32 %v2079_v52, %v9950_v32 }
 0x120   : > { %8601 = vmatmul.msk.bf16.gmra.mxu0 %vm13954_vm14, %v13953_v62  ;;  %8618 = vmatmul.msk.bf16.gmra.mxu1 %vm13925_vm1, %v2690_v29  ;;  %vm13961_vm14 = vnez %v13960_v15  ;;  %v13965_v15 = vld [vmem:[#allocation61_spill] sm:$0xff] }
 0x121   : > { %8635 = vmatmul.msk.bf16.gmra.mxu2 %vm13955_vm13, %v2976_v14  ;;  %13956 = vst [vmem:[#allocation62_spill] sm:$0xff] %v10031_v27  ;;  %v2665_v29 = vsel %vm13961_vm14, %v13959_v63, 0.0  ;;  %vm13968_vm13 = vmmov %vm13925_vm1 }
 0x123   : > { %8588 = vmatmul.msk.bf16.gmra.mxu3 %vm13958_vm4, %v2218_v7  ;;  %vm13966_vm4 = vnez %v13965_v15 }
 0x124   : > { %v2047_v47 = vpop.f32.mrf.mxu2  ;;  %v2196_v63 = vsel %vm13966_vm4, %v13964_v5, 0.0 }
 0x125   : > { %v10034_v37 = vadd.f32 %v2047_v47, %v1696_v18  ;;  %v1557_v42 = vpop.f32.mrf.mxu0  ;;  %v1697_v4 = vpop.f32.mrf.mxu1  ;;  %v13963_v18 = vld [vmem:[#allocation40_spill] sm:$0xff] }
 0x126   : > { %v1698_v31 = vadd.f32 %v1697_v4, %v1557_v42  ;;  %v2288_v59 = vpop.f32.mrf.mxu3  ;;  %v2691_v52 = vpack.c.bf16 %v2665_v29, %v13963_v18  ;;  %v2977_v42 = vpack.c.bf16 %v9565_v53, %v2950_v0  ;;  %v13971_v29 = vld [vmem:[#allocation74_spill] sm:$0xff] }
 0x127   : > { %v10041_v14 = vadd.f32 %v2288_v59, %v13962_v55  ;;  %v13967_v59 = vld [vmem:[#allocation41_spill] sm:$0xff]  ;;  %v13970_v55 = vld [vmem:[#allocation68_spill] sm:$0xff] }
 0x12c   : > { %v2049_v32 = vpop.f32.mrf.mxu2 }
 0x12d   : > { %v10047_v47 = vadd.f32 %v2049_v32, %v1698_v31  ;;  %v1560_v27 = vpop.f32.mrf.mxu0  ;;  %v1700_v7 = vpop.f32.mrf.mxu1  ;;  %v2219_v32 = vpack.c.bf16 %v13971_v29, %v2196_v63  ;;  %v2952_v63 = vsel %vm9488_vm12, %v9613_v51, 0.0  ;;  %vm13984_vm12 = vmmov %vm13969_vm0 }
 0x12e   : > { %v1701_v4 = vadd.f32 %v1700_v7, %v1560_v27  ;;  %v2290_v36 = vpop.f32.mrf.mxu3 }
 0x12f   : > { %v10058_v31 = vadd.f32 %v2290_v36, %v13970_v55 }
 0x130   : > { %8602 = vmatmul.msk.bf16.gmra.mxu0 %vm13968_vm13, %v13967_v59  ;;  %8619 = vmatmul.msk.bf16.gmra.mxu1 %vm13925_vm1, %v2691_v52  ;;  %vm13975_vm13 = vnez %v13974_v45  ;;  %vm13982_vm1 = vmmov %vm13969_vm0  ;;  %v14036_v45 = vld [vmem:[#allocation51_spill] sm:$0xff] }
 0x131   : > { %8636 = vmatmul.msk.bf16.gmra.mxu2 %vm13969_vm0, %v2977_v42  ;;  %v2667_v52 = vsel %vm13975_vm13, %v13973_v48, 0.0  ;;  %v2198_v48 = vsel %vm9718_vm5, %v13978_v38, 0.0  ;;  %vm13995_vm8 = vmmov %vm13982_vm1 }
 0x133   : > { %8589 = vmatmul.msk.bf16.gmra.mxu3 %vm13972_vm2, %v2219_v32  ;;  %vm13981_vm2 = vmmov %vm13969_vm0 }
 0x134   : > { %v2052_v57 = vpop.f32.mrf.mxu2 }
 0x135   : > { %v10061_v53 = vadd.f32 %v2052_v57, %v1701_v4  ;;  %v1562_v27 = vpop.f32.mrf.mxu0  ;;  %v1702_v0 = vpop.f32.mrf.mxu1  ;;  %v13977_v57 = vld [vmem:[#allocation48_spill] sm:$0xff] }
 0x136   : > { %v1703_v7 = vadd.f32 %v1702_v0, %v1562_v27  ;;  %v2293_v18 = vpop.f32.mrf.mxu3  ;;  %v2692_v4 = vpack.c.bf16 %v2667_v52, %v13977_v57  ;;  %v2978_v27 = vpack.c.bf16 %v13943_v49, %v2952_v63  ;;  %v2220_v52 = vpack.c.bf16 %v9796_v21, %v2198_v48  ;;  %v13985_v57 = vld [vmem:[#allocation54_spill] sm:$0xff] }
 0x137   : > { %v10068_v42 = vadd.f32 %v2293_v18, %v13976_v24  ;;  %v13980_v24 = vld [vmem:[#allocation49_spill] sm:$0xff]  ;;  %v2954_v48 = vsel %vm13939_vm6, %v13950_v30, 0.0  ;;  %vm13994_vm6 = vmmov %vm13982_vm1 }
 0x138   : > { %v13983_v18 = vld [vmem:[#allocation77_spill] sm:$0xff] }
 0x13c   : > { %v2054_v36 = vpop.f32.mrf.mxu2 }
 0x13d   : > { %v10074_v55 = vadd.f32 %v2054_v36, %v1703_v7  ;;  %v1565_v12 = vpop.f32.mrf.mxu0  ;;  %v1705_v32 = vpop.f32.mrf.mxu1 }
 0x13e   : > { %v1706_v0 = vadd.f32 %v1705_v32, %v1565_v12  ;;  %v2295_v51 = vpop.f32.mrf.mxu3 }
 0x13f   : > { %v10085_v7 = vadd.f32 %v2295_v51, %v13983_v18 }
 0x140   : > { %8603 = vmatmul.msk.bf16.gmra.mxu0 %vm13969_vm0, %v13980_v24  ;;  %8620 = vmatmul.msk.bf16.gmra.mxu1 %vm13981_vm2, %v2692_v4  ;;  %vm13987_vm0 = vnez %v13986_v34  ;;  %v13990_v34 = vld [vmem:[#allocation79_spill] sm:$0xff]  ;;  %vm13993_vm2 = vmmov %vm13982_vm1 }
 0x141   : > { %8637 = vmatmul.msk.bf16.gmra.mxu2 %vm13982_vm1, %v2978_v27  ;;  %v2669_v4 = vsel %vm13987_vm0, %v13985_v57, 0.0  ;;  %v14002_v24 = vld [vmem:[#allocation67_spill] sm:$0xff] }
 0x143   : > { %8590 = vmatmul.msk.bf16.gmra.mxu3 %vm13984_vm12, %v2220_v52  ;;  %vm13991_vm12 = vnez %v13990_v34 }
 0x144   : > { %v2057_v36 = vpop.f32.mrf.mxu2  ;;  %v2200_v57 = vsel %vm13991_vm12, %v9853_v41, 0.0 }
 0x145   : > { %v10088_v49 = vadd.f32 %v2057_v36, %v1706_v0  ;;  %v1567_v12 = vpop.f32.mrf.mxu0  ;;  %v1707_v63 = vpop.f32.mrf.mxu1  ;;  %v13989_v0 = vld [vmem:[#allocation56_spill] sm:$0xff] }
 0x146   : > { %v1708_v32 = vadd.f32 %v1707_v63, %v1567_v12  ;;  %v2298_v40 = vpop.f32.mrf.mxu3  ;;  %v2693_v18 = vpack.c.bf16 %v2669_v4, %v13989_v0  ;;  %v2979_v12 = vpack.c.bf16 %v13957_v17, %v2954_v48  ;;  %v13997_v0 = vld [vmem:[#allocation53_spill] sm:$0xff] }
 0x147   : > { %v10095_v27 = vadd.f32 %v2298_v40, %v13988_v2  ;;  %v13992_v2 = vld [vmem:[#allocation57_spill] sm:$0xff] }
 0x14c   : > { %v2059_v51 = vpop.f32.mrf.mxu2 }
 0x14d   : > { %v10101_v36 = vadd.f32 %v2059_v51, %v1708_v32  ;;  %v1570_v11 = vpop.f32.mrf.mxu0  ;;  %v1710_v52 = vpop.f32.mrf.mxu1  ;;  %v2221_v32 = vpack.c.bf16 %v9867_v9, %v2200_v57 }
 0x14e   : > { %v1711_v63 = vadd.f32 %v1710_v52, %v1570_v11  ;;  %v2300_v30 = vpop.f32.mrf.mxu3 }
 0x14f   : > { %v10112_v40 = vadd.f32 %v2300_v30, %v9816_v22  ;;  %v2956_v22 = vsel %vm13952_vm10, %v13964_v5, 0.0  ;;  %vm14007_vm10 = vmmov %vm13982_vm1 }
 0x150   : > { %8604 = vmatmul.msk.bf16.gmra.mxu0 %vm13993_vm2, %v13992_v2  ;;  %8621 = vmatmul.msk.bf16.gmra.mxu1 %vm13982_vm1, %v2693_v18  ;;  %vm13998_vm2 = vnez %v13997_v0  ;;  %v14000_v0 = vld [vmem:[#allocation18_spill] sm:$0xff] }
 0x151   : > { %8638 = vmatmul.msk.bf16.gmra.mxu2 %vm13994_vm6, %v2979_v12  ;;  %v2671_v18 = vsel %vm13998_vm2, %v13996_v56, 0.0  ;;  %vm14004_vm6 = vmmov %vm13982_vm1 }
 0x153   : > { %8591 = vmatmul.msk.bf16.gmra.mxu3 %vm13995_vm8, %v2221_v32  ;;  %vm14003_vm8 = vmmov %vm13982_vm1 }
 0x154   : > { %v2062_v4 = vpop.f32.mrf.mxu2 }
 0x155   : > { %v10115_v17 = vadd.f32 %v2062_v4, %v1711_v63  ;;  %v1572_v11 = vpop.f32.mrf.mxu0  ;;  %v1712_v48 = vpop.f32.mrf.mxu1  ;;  %v13999_v63 = vld [vmem:[#allocation66_spill] sm:$0xff] }
 0x156   : > { %v1713_v51 = vadd.f32 %v1712_v48, %v1572_v11  ;;  %v2303_v52 = vpop.f32.mrf.mxu3  ;;  %v2694_v30 = vpack.c.bf16 %v2671_v18, %v13999_v63  ;;  %v2980_v11 = vpack.c.bf16 %v13971_v29, %v2956_v22  ;;  %v14005_v18 = vld [vmem:[#allocation19_spill] sm:$0xff] }
 0x157   : > { %v10122_v12 = vadd.f32 %v2303_v52, %v9845_v60  ;;  %v2202_v60 = vsel %vm9848_vm15, %v14000_v0, 0.0  ;;  %v14009_v63 = vld [vmem:[#allocation63_spill] sm:$0xff] }
 0x158   : > { %v2222_v29 = vpack.c.bf16 %v14005_v18, %v2202_v60  ;;  %v2958_v60 = vsel %vm13966_vm4, %v13978_v38, 0.0  ;;  %vm14018_vm4 = vmmov %vm13982_vm1 }
 0x15c   : > { %v2064_v57 = vpop.f32.mrf.mxu2 }
 0x15d   : > { %v10128_v4 = vadd.f32 %v2064_v57, %v1713_v51  ;;  %v2478_v2 = vpop.f32.mrf.mxu0  ;;  %v2764_v32 = vpop.f32.mrf.mxu1 }
 0x15e   : > { %v2558_v48 = vadd.f32 %v2478_v2, %v10041_v14  ;;  %v2305_v5 = vpop.f32.mrf.mxu3 }
 0x15f   : > { %v10140_v51 = vadd.f32 %v2305_v5, %v9888_v33  ;;  %v14011_v5 = vld [vmem:[#allocation75_spill] sm:$0xff] }
 0x160   : > { %v2844_v52 = vadd.f32 %v2764_v32, %v2558_v48  ;;  %8605 = vmatmul.msk.bf16.gmra.mxu0 %vm14003_vm8, %v14002_v24  ;;  %8622 = vmatmul.msk.bf16.gmra.mxu1 %vm14004_vm6, %v2694_v30  ;;  %v14008_v30 = vld [vmem:[#allocation73_spill] sm:$0xff]  ;;  %vm14010_vm8 = vnez %v14009_v63  ;;  %vm14017_vm6 = vmmov %vm13982_vm1 }
 0x161   : > { %8639 = vmatmul.msk.bf16.gmra.mxu2 %vm13982_vm1, %v2980_v11  ;;  %v2673_v11 = vsel %vm14010_vm8, %v14008_v30, 0.0  ;;  %v14014_v63 = vld [vmem:[#allocation17_spill] sm:$0xff]  ;;  %v14016_v30 = vld [vmem:[#allocation76_spill] sm:$0xff]  ;;  %vm14021_vm8 = vmmov %vm13982_vm1 }
 0x163   : > { %8592 = vmatmul.msk.bf16.gmra.mxu3 %vm14007_vm10, %v2222_v29  ;;  %vm14015_vm10 = vnez %v14014_v63  ;;  %v14072_v63 = vld [vmem:[#allocation14_spill] sm:$0xff] }
 0x164   : > { %v3050_v22 = vpop.f32.mrf.mxu2 }
 0x165   : > { %v10143_v14 = vadd.f32 %v3050_v22, %v2844_v52  ;;  %v2480_v2 = vpop.f32.mrf.mxu0  ;;  %v2766_v57 = vpop.f32.mrf.mxu1  ;;  %v2695_v22 = vpack.c.bf16 %v2673_v11, %v14011_v5  ;;  %v14019_v11 = vld [vmem:[#allocation26_spill] sm:$0xff] }
 0x166   : > { %v2559_v32 = vadd.f32 %v2480_v2, %v10058_v31  ;;  %v2308_v26 = vpop.f32.mrf.mxu3  ;;  %v2981_v2 = vpack.c.bf16 %v9796_v21, %v2958_v60 }
 0x167   : > { %14006 = vst [vmem:[#allocation31_spill] sm:$0xff] %v10143_v14  ;;  %v10151_v33 = vadd.f32 %v2308_v26, %v9902_v25 }
 0x168   : > { %v2845_v48 = vadd.f32 %v2766_v57, %v2559_v32  ;;  %v14013_v32 = vld [vmem:[#allocation25_spill] sm:$0xff] }
 0x169   : > { %v2204_v26 = vsel %vm14015_vm10, %v14013_v32, 0.0 }
 0x16a   : > { %v2223_v21 = vpack.c.bf16 %v14019_v11, %v2204_v26  ;;  %v2960_v26 = vsel %vm9718_vm5, %v9853_v41, 0.0  ;;  %vm14032_vm5 = vmmov %vm13982_vm1 }
 0x16c   : > { %v3052_v52 = vpop.f32.mrf.mxu2 }
 0x16d   : > { %v10157_v14 = vadd.f32 %v3052_v52, %v2845_v48  ;;  %v2483_v29 = vpop.f32.mrf.mxu0  ;;  %v2769_v31 = vpop.f32.mrf.mxu1 }
 0x16e   : > { %v2560_v57 = vadd.f32 %v2483_v29, %v10068_v42  ;;  %v2310_v38 = vpop.f32.mrf.mxu3 }
 0x16f   : > { %14012 = vst [vmem:[#allocation65_spill] sm:$0xff] %v10157_v14  ;;  %v10169_v48 = vadd.f32 %v2310_v38, %v9912_v13  ;;  %v14023_v14 = vld [vmem:[#allocation72_spill] sm:$0xff]  ;;  %v14025_v38 = vld [vmem:[#allocation83_spill] sm:$0xff] }
 0x170   : > { %v2846_v25 = vadd.f32 %v2769_v31, %v2560_v57  ;;  %8606 = vmatmul.msk.bf16.gmra.mxu0 %vm14017_vm6, %v14016_v30  ;;  %8623 = vmatmul.msk.bf16.gmra.mxu1 %vm13982_vm1, %v2695_v22  ;;  %v14022_v22 = vld [vmem:[#allocation82_spill] sm:$0xff]  ;;  %vm14024_vm6 = vnez %v14023_v14  ;;  %v14028_v14 = vld [vmem:[#allocation24_spill] sm:$0xff] }
 0x171   : > { %8640 = vmatmul.msk.bf16.gmra.mxu2 %vm14018_vm4, %v2981_v2  ;;  %v2675_v2 = vsel %vm14024_vm6, %v14022_v22, 0.0  ;;  %vm14029_vm4 = vnez %v14028_v14  ;;  %v14030_v22 = vld [vmem:[#allocation84_spill] sm:$0xff]  ;;  %vm14035_vm6 = vmmov %vm13982_vm1 }
 0x173   : > { %8593 = vmatmul.msk.bf16.gmra.mxu3 %vm14021_vm8, %v2223_v21  ;;  %vm14031_vm8 = vmmov %vm13982_vm1 }
 0x174   : > { %v3055_v60 = vpop.f32.mrf.mxu2 }
 0x175   : > { %v10172_v42 = vadd.f32 %v3055_v60, %v2846_v25  ;;  %v2485_v52 = vpop.f32.mrf.mxu0  ;;  %v2771_v29 = vpop.f32.mrf.mxu1  ;;  %v2696_v60 = vpack.c.bf16 %v2675_v2, %v14025_v38  ;;  %v14033_v2 = vld [vmem:[#allocation34_spill] sm:$0xff] }
 0x176   : > { %v2561_v31 = vadd.f32 %v2485_v52, %v10085_v7  ;;  %v2313_v15 = vpop.f32.mrf.mxu3  ;;  %v2982_v52 = vpack.c.bf16 %v9867_v9, %v2960_v26 }
 0x177   : > { %14020 = vst [vmem:[#allocation60_spill] sm:$0xff] %v10172_v42  ;;  %v10180_v13 = vadd.f32 %v2313_v15, %v9926_v50 }
 0x178   : > { %v2847_v57 = vadd.f32 %v2771_v29, %v2561_v31  ;;  %v14027_v31 = vld [vmem:[#allocation33_spill] sm:$0xff] }
 0x179   : > { %v2206_v50 = vsel %vm14029_vm4, %v14027_v31, 0.0 }
 0x17a   : > { %v2224_v9 = vpack.c.bf16 %v14033_v2, %v2206_v50  ;;  %v2962_v50 = vsel %vm13991_vm12, %v14000_v0, 0.0 }
 0x17c   : > { %v3057_v25 = vpop.f32.mrf.mxu2 }
 0x17d   : > { %v10186_v42 = vadd.f32 %v3057_v25, %v2847_v57  ;;  %v2488_v21 = vpop.f32.mrf.mxu0  ;;  %v2774_v7 = vpop.f32.mrf.mxu1 }
 0x17e   : > { %v2562_v29 = vadd.f32 %v2488_v21, %v10095_v27  ;;  %v2315_v41 = vpop.f32.mrf.mxu3 }
 0x17f   : > { %14026 = vst [vmem:[#allocation71_spill] sm:$0xff] %v10186_v42  ;;  %v10198_v57 = vadd.f32 %v2315_v41, %v9939_v20 }
 0x180   : > { %v2848_v15 = vadd.f32 %v2774_v7, %v2562_v29  ;;  %8607 = vmatmul.msk.bf16.gmra.mxu0 %vm14031_vm8, %v14030_v22  ;;  %8624 = vmatmul.msk.bf16.gmra.mxu1 %vm13982_vm1, %v2696_v60  ;;  %v1096_v60 = vrot.slane %v14036_v45, 7 }
 0x181   : > { %8641 = vmatmul.msk.bf16.gmra.mxu2 %vm14032_vm5, %v2982_v52  ;;  %v14037_v52 = vld [vmem:[#allocation81_spill] sm:$0xff] }
 0x182   : > { %vm14038_vm5 = vnez %v14037_v52 }
 0x183   : > { %8594 = vmatmul.msk.bf16.gmra.mxu3 %vm14035_vm6, %v2224_v9  ;;  %v2677_v20 = vsel %vm14038_vm5, %v9862_v44, 0.0  ;;  %vm14041_vm6 = vcmask 1040384  }
 0x184   : > { %v3060_v26 = vpop.f32.mrf.mxu2  ;;  %v2697_v9 = vpack.c.bf16 %v2677_v20, %v9878_v16  ;;  %vm14044_vm8 = vmmov %vm14041_vm6  ;;  %v14045_v20 = vld [vmem:[#allocation32_spill] sm:$0xff] }
 0x185   : > { %v10201_v27 = vadd.f32 %v3060_v26, %v2848_v15  ;;  %v2490_v25 = vpop.f32.mrf.mxu0  ;;  %v2776_v21 = vpop.f32.mrf.mxu1  ;;  %v14039_v26 = vld [vmem:[#allocation13_spill] sm:$0xff]  ;;  %vm14046_vm1 = vnez %v14045_v20  ;;  %v14055_v20 = vld [vmem:[#allocation3_spill] sm:$0xff] }
 0x186   : > { %v2563_v7 = vadd.f32 %v2490_v25, %v10112_v40  ;;  %v2318_v42 = vpop.f32.mrf.mxu3  ;;  %v14040_v40 = vrot.slane %v14039_v26, 7 }
 0x187   : > { %14034 = vst [vmem:[#allocation41_spill] sm:$0xff] %v10201_v27  ;;  %v10210_v41 = vadd.f32 %v2318_v42, %v9953_v54  ;;  %v2983_v27 = vpack.c.bf16 %v14005_v18, %v2962_v50  ;;  %v14042_v42 = vld [vmem:[#allocation4_spill] sm:$0xff] }
 0x188   : > { %v2849_v29 = vadd.f32 %v2776_v21, %v2563_v7  ;;  %v10219_v25 = vsel %vm14041_vm6, %v14040_v40, %v1096_v60  ;;  %v14043_v44 = vrot.slane %v14042_v42, 7  ;;  %vm14047_vm6 = vcmask 64512  }
 0x189   : > { %v2208_v26 = vsel %vm14046_vm1, %v10219_v25, 0.0  ;;  %vm14048_vm12 = vmmov %vm14047_vm6 }
 0x18a   : > { %v10228_v0 = vsel %vm14044_vm8, %v1096_v60, %v14043_v44  ;;  %vm14049_vm5 = vmmov %vm14047_vm6 }
 0x18b   : > { %v2225_v18 = vpack.c.bf16 %v10228_v0, %v2208_v26  ;;  %vm14050_vm8 = vmmov %vm14049_vm5  ;;  %v14054_v26 = vld [vmem:[#allocation43_spill] sm:$0xff] }
 0x18c   : > { %v3062_v15 = vpop.f32.mrf.mxu2  ;;  %vm14058_vm1 = vmmov %vm14049_vm5 }
 0x18d   : > { %v10221_v21 = vadd.f32 %v3062_v15, %v2849_v29  ;;  %v2493_v7 = vpop.f32.mrf.mxu0  ;;  %v2779_v52 = vpop.f32.mrf.mxu1 }
 0x18e   : > { %v2564_v54 = vadd.f32 %v2493_v7, %v10122_v12  ;;  %v2320_v29 = vpop.f32.mrf.mxu3 }
 0x18f   : > { %v10238_v12 = vadd.f32 %v2320_v29, %v9966_v1 }
 0x190   : > { %v2850_v34 = vadd.f32 %v2779_v52, %v2564_v54  ;;  %8608 = vmatmul.msk.bf16.gmra.mxu0 %vm14047_vm6, %v9885_v23  ;;  %8625 = vmatmul.msk.bf16.gmra.mxu1 %vm14048_vm12, %v2697_v9  ;;  %v14051_v9 = vld [vmem:[#allocation9_spill] sm:$0xff]  ;;  %v14052_v54 = vld [vmem:[#allocation86_spill] sm:$0xff]  ;;  %vm14056_vm6 = vmmov %vm14049_vm5 }
 0x191   : > { %8642 = vmatmul.msk.bf16.gmra.mxu2 %vm14049_vm5, %v2983_v27  ;;  %vm14053_vm12 = vnez %v14052_v54 }
 0x192   : > { %v2679_v27 = vsel %vm14053_vm12, %v14051_v9, 0.0 }
 0x193   : > { %8595 = vmatmul.msk.bf16.gmra.mxu3 %vm14050_vm8, %v2225_v18  ;;  %v2698_v29 = vpack.c.bf16 %v2679_v27, %v14054_v26  ;;  %vm14057_vm8 = vmmov %vm14049_vm5 }
 0x194   : > { %v3065_v44 = vpop.f32.mrf.mxu2 }
 0x195   : > { %v10241_v60 = vadd.f32 %v3065_v44, %v2850_v34  ;;  %v2495_v50 = vpop.f32.mrf.mxu0  ;;  %v2781_v15 = vpop.f32.mrf.mxu1  ;;  %v2964_v34 = vsel %vm9848_vm15, %v14013_v32, 0.0  ;;  %vm14166_vm15 = vcmask 1040384  }
 0x196   : > { %v2565_v52 = vadd.f32 %v2495_v50, %v10140_v51  ;;  %v2323_v7 = vpop.f32.mrf.mxu3  ;;  %v2984_v50 = vpack.c.bf16 %v14019_v11, %v2964_v34 }
 0x197   : > { %v10249_v1 = vadd.f32 %v2323_v7, %v9980_v10 }
 0x198   : > { %v2851_v40 = vadd.f32 %v2781_v15, %v2565_v52 }
 0x19c   : > { %v3067_v42 = vpop.f32.mrf.mxu2 }
 0x19d   : > { %v10255_v44 = vadd.f32 %v3067_v42, %v2851_v40  ;;  %v2498_v18 = vpop.f32.mrf.mxu0  ;;  %v2784_v51 = vpop.f32.mrf.mxu1 }
 0x19e   : > { %v2566_v15 = vadd.f32 %v2498_v18, %v10151_v33  ;;  %v2325_v10 = vpop.f32.mrf.mxu3  ;;  %v14060_v18 = vld [vmem:[#allocation42_spill] sm:$0xff] }
 0x19f   : > { %v10264_v32 = vadd.f32 %v2325_v10, %v9993_v43 }
 0x1a0   : > { %v2852_v52 = vadd.f32 %v2784_v51, %v2566_v15  ;;  %8609 = vmatmul.msk.bf16.gmra.mxu0 %vm14049_vm5, %v14055_v20  ;;  %8626 = vmatmul.msk.bf16.gmra.mxu1 %vm14056_vm6, %v2698_v29  ;;  %v14059_v29 = vld [vmem:[#allocation36_spill] sm:$0xff]  ;;  %vm14061_vm5 = vnez %v14060_v18  ;;  %v14062_v15 = vld [vmem:[#allocation35_spill] sm:$0xff]  ;;  %vm14064_vm6 = vmmov %vm14058_vm1 }
 0x1a1   : > { %8643 = vmatmul.msk.bf16.gmra.mxu2 %vm14057_vm8, %v2984_v50  ;;  %v2681_v51 = vsel %vm14061_vm5, %v14059_v29, 0.0  ;;  %v2966_v50 = vsel %vm14015_vm10, %v14027_v31, 0.0  ;;  %vm14065_vm8 = vmmov %vm14058_vm1 }
 0x1a2   : > { %vm14066_vm10 = vmmov %vm14058_vm1 }
 0x1a3   : > { %8647 = vmatmul.msk.bf16.vlgmr.msra.gmra.mxu3 %vm14058_vm1, %v9277_v8 }
 0x1a4   : > { %v3070_v40 = vpop.f32.mrf.mxu2 }
 0x1a5   : > { %v10266_v7 = vadd.f32 %v3070_v40, %v2852_v52  ;;  %v2500_v27 = vpop.f32.mrf.mxu0  ;;  %v2786_v42 = vpop.f32.mrf.mxu1  ;;  %v2699_v52 = vpack.c.bf16 %v2681_v51, %v14062_v15 }
 0x1a6   : > { %v2567_v33 = vadd.f32 %v2500_v27, %v10169_v48  ;;  %v2328_v34 = vpop.f32.mrf.mxu3  ;;  %v2985_v48 = vpack.c.bf16 %v14033_v2, %v2966_v50  ;;  %v8678_v2 = vld [vmem:[%s13349_s3 + $0x4] sm:$0xf] }
 0x1a7   : > { %v10277_v43 = vadd.f32 %v2328_v34, %v10007_v19 }
 0x1a8   : > { %v10271_v11 = vadd.f32 %v2786_v42, %v2567_v33  ;;  %v14063_v42 = vld [vmem:[#allocation10_spill] sm:$0xff] }
 0x1ad   : > { %v2503_v10 = vpop.f32.mrf.mxu0  ;;  %v2789_v8 = vpop.f32.mrf.mxu1 }
 0x1ae   : > { %v2568_v40 = vadd.f32 %v2503_v10, %v10180_v13  ;;  %v2330_v19 = vpop.f32.mrf.mxu3 }
 0x1af   : > { %v10292_v31 = vadd.f32 %v2330_v19, %v10020_v39  ;;  %v14068_v39 = vld [vmem:[#allocation59_spill] sm:$0xff] }
 0x1b0   : > { %v10285_v27 = vadd.f32 %v2789_v8, %v2568_v40  ;;  %8610 = vmatmul.msk.bf16.gmra.mxu0 %vm14058_vm1, %v14063_v42  ;;  %8627 = vmatmul.msk.bf16.gmra.mxu1 %vm14064_vm6, %v2699_v52  ;;  %vm14067_vm1 = vcmask 1043456   ;;  %v14069_v52 = vld [vmem:[#allocation50_spill] sm:$0xff] }
 0x1b1   : > { %8644 = vmatmul.msk.bf16.gmra.mxu2 %vm14065_vm8, %v2985_v48  ;;  %v4111_v51 = vsel %vm14067_vm1, %v8678_v2, 0  ;;  %vm14070_vm6 = vnez %v14069_v52  ;;  %vm14074_vm1 = vmmov %vm14065_vm8 }
 0x1b2   : > { %4120 = vmatpush.bf16.msra.mxu1 %v4111_v51  ;;  %v2683_v10 = vsel %vm14070_vm6, %v14068_v39, 0.0 }
 0x1b3   : > { %8648 = vmatmul.msk.bf16.gmra.mxu3 %vm14066_vm10, %v9334_v61  ;;  %v2968_v61 = vsel %vm14029_vm4, %v10219_v25, 0.0  ;;  %vm14073_vm10 = vmmov %vm14065_vm8 }
 0x1b4   : > { %vm14076_vm4 = vmmov %vm14074_vm1 }
 0x1b5   : > { %v2505_v33 = vpop.f32.mrf.mxu0  ;;  %v10294_v34 = vpop.f32.mrf.mxu1 }
 0x1b6   : > { %v10299_v13 = vadd.f32 %v2505_v33, %v10198_v57  ;;  %v2333_v50 = vpop.f32.mrf.mxu3  ;;  %v14071_v57 = vld [vmem:[#allocation44_spill] sm:$0xff]  ;;  %v2986_v33 = vpack.c.bf16 %v10228_v0, %v2968_v61  ;;  %v14078_v0 = vld [vmem:[#allocation2_spill] sm:$0xff] }
 0x1b7   : > { %v2386_v8 = vadd.f32 %v2333_v50, %v10034_v37  ;;  %v2700_v48 = vpack.c.bf16 %v2683_v10, %v14071_v57  ;;  %v9045_v50 = vld [vmem:[%s9158_s30 + $0xf8] sm:$0xff]  ;;  %v14079_v61 = vrot.slane %v14078_v0, 1 }
 0x1b8   : > { %v1732_v10 = vrot.slane %v9045_v50, 1 }
 0x1bd   : > { %v2508_v40 = vpop.f32.mrf.mxu0  ;;  %v2794_v19 = vpop.f32.mrf.mxu1 }
 0x1be   : > { %v2570_v2 = vadd.f32 %v2508_v40, %v10210_v41  ;;  %v2335_v37 = vpop.f32.mrf.mxu3 }
 0x1bf   : > { %v2387_v25 = vadd.f32 %v2335_v37, %v10047_v47  ;;  %v9046_v37 = vld [vmem:[%s9158_s30 + $0xf0] sm:$0xff] }
 0x1c0   : > { %v10315_v51 = vadd.f32 %v2794_v19, %v2570_v2  ;;  %8611 = vmatmul.msk.bf16.gmra.mxu0 %vm14073_vm10, %v14072_v63  ;;  %8628 = vmatmul.msk.bf16.gmra.mxu1 %vm14065_vm8, %v2700_v48  ;;  %vm14080_vm10 = vcmask 1046528   ;;  %v14081_v19 = vrot.slane %v14036_v45, 1 }
 0x1c1   : > { %8645 = vmatmul.msk.bf16.gmra.mxu2 %vm14074_vm1, %v2986_v33  ;;  %v10333_v48 = vsel %vm14080_vm10, %v1732_v10, %v14079_v61  ;;  %vm14082_vm8 = vmmov %vm14080_vm10  ;;  %v14083_v33 = vld [vmem:[#allocation58_spill] sm:$0xff] }
 0x1c2   : > { %v10338_v47 = vsel %vm14082_vm8, %v14081_v19, %v1732_v10  ;;  %vm14084_vm1 = vnez %v14083_v33  ;;  %vm14086_vm10 = vmmov %vm14076_vm4  ;;  %v14087_v10 = vmov 0.0|0.0  }
 0x1c3   : > { %8649 = vmatmul.msk.bf16.gmra.mxu3 %vm14076_vm4, %v9392_v28  ;;  %v2685_v2 = vsel %vm14084_vm1, %v10333_v48, 0.0  ;;  %vm14089_vm8 = vmmov %vm14076_vm4 }
 0x1c5   : > { %v2510_v14 = vpop.f32.mrf.mxu0  ;;  %v10323_v56 = vpop.f32.mrf.mxu1 }
 0x1c6   : > { %14075 = vst [vmem:[#allocation68_spill] sm:$0xff] %v10323_v56  ;;  %v10328_v41 = vadd.f32 %v2510_v14, %v10238_v12  ;;  %v2338_v40 = vpop.f32.mrf.mxu3  ;;  %v10345_v14 = vpack.c.bf16 %v9045_v50, %v9046_v37  ;;  %v2701_v12 = vpack.c.bf16 %v2685_v2, %v10338_v47 }
 0x1c7   : > { %v2388_v28 = vadd.f32 %v2338_v40, %v10061_v53 }
 0x1c8   : > { %14077 = vst [vmem:[#allocation74_spill] sm:$0xff] %v10328_v41 }
 0x1cd   : > { %v2513_v0 = vpop.f32.mrf.mxu0  ;;  %v2799_v61 = vpop.f32.mrf.mxu1 }
 0x1ce   : > { %v2572_v56 = vadd.f32 %v2513_v0, %v10249_v1  ;;  %v2340_v45 = vpop.f32.mrf.mxu3 }
 0x1cf   : > { %v2389_v53 = vadd.f32 %v2340_v45, %v10074_v55 }
 0x1d0   : > { %v10349_v41 = vadd.f32 %v2799_v61, %v2572_v56  ;;  %8612 = vmatmul.msk.bf16.gmra.mxu0 %vm14076_vm4, %v10345_v14  ;;  %8629 = vmatmul.msk.bf16.gmra.mxu1 %vm14086_vm10, %v2701_v12  ;;  %v14091_v56 = vld [vmem:[#allocation7_spill] sm:$0xff]  ;;  %vm14095_vm10 = vmmov %vm14076_vm4 }
 0x1d1   : > { %3124 = vmatmul.bf16.gmra.mxu2 %v14087_v10  ;;  %vm14092_vm1 = vnez %v14091_v56 }
 0x1d2   : > { %14085 = vst [vmem:[#allocation69_spill] sm:$0xff] %v10349_v41  ;;  %v3513_v19 = vsel %vm14092_vm1, %v9263_v3, 0.0 }
 0x1d3   : > { %8650 = vmatmul.msk.bf16.gmra.mxu3 %vm14089_vm8, %v13953_v62  ;;  %v3544_v12 = vpack.c.bf16 %v3513_v19, %v9272_v6  ;;  %vm14098_vm8 = vmmov %vm14076_vm4 }
 0x1d5   : > { %v2515_v50 = vpop.f32.mrf.mxu0  ;;  %v10356_v40 = vpop.f32.mrf.mxu1 }
 0x1d6   : > { %14088 = vst [vmem:[#allocation80_spill] sm:$0xff] %v10356_v40  ;;  %v10361_v1 = vadd.f32 %v2515_v50, %v10264_v32  ;;  %v2343_v2 = vpop.f32.mrf.mxu3 }
 0x1d7   : > { %v2390_v37 = vadd.f32 %v2343_v2, %v10088_v49 }
 0x1d8   : > { %14090 = vst [vmem:[#allocation77_spill] sm:$0xff] %v10361_v1 }
 0x1dd   : > { %v2518_v0 = vpop.f32.mrf.mxu0  ;;  %v2804_v55 = vpop.f32.mrf.mxu1 }
 0x1de   : > { %v2574_v61 = vadd.f32 %v2518_v0, %v10277_v43  ;;  %v2345_v62 = vpop.f32.mrf.mxu3  ;;  %v3515_v43 = vsel %vm9199_vm7, %v9317_v46, 0.0 }
 0x1df   : > { %v2391_v32 = vadd.f32 %v2345_v62, %v10101_v36  ;;  %v3545_v2 = vpack.c.bf16 %v3515_v43, %v9328_v58  ;;  %v14102_v58 = vld [vmem:[#allocation22_spill] sm:$0xff]  ;;  %v14104_v43 = vld [vmem:[#allocation88_spill] sm:$0xff] }
 0x1e0   : > { %v10369_v45 = vadd.f32 %v2804_v55, %v2574_v61  ;;  %8663 = vmatmul.msk.bf16.vlgmr.msra.gmra.mxu0 %vm14076_vm4, %v3544_v12  ;;  %4121 = vmatmul.bf16.vlgmr.msra.gmra.mxu1 %v14087_v10 }
 0x1e2   : > { %14093 = vst [vmem:[#allocation78_spill] sm:$0xff] %v10369_v45 }
 0x1e3   : > { %8651 = vmatmul.msk.bf16.gmra.mxu3 %vm14095_vm10, %v13967_v59  ;;  %vm14107_vm10 = vmmov %vm14076_vm4 }
 0x1e5   : > { %v2520_v50 = vpop.f32.mrf.mxu0  ;;  %v10374_v3 = vpop.f32.mrf.mxu1 }
 0x1e6   : > { %14094 = vst [vmem:[#allocation18_spill] sm:$0xff] %v10374_v3  ;;  %v10379_v6 = vadd.f32 %v2520_v50, %v10292_v31  ;;  %v2348_v49 = vpop.f32.mrf.mxu3  ;;  %v14100_v50 = vld [vmem:[#allocation49_spill] sm:$0xff] }
 0x1e7   : > { %v2392_v19 = vadd.f32 %v2348_v49, %v10115_v17  ;;  %v14219_v49 = vld [vmem:[#allocation27_spill] sm:$0xff] }
 0x1e8   : > { %14096 = vst [vmem:[#allocation67_spill] sm:$0xff] %v10379_v6 }
 0x1ed   : > { %v2523_v12 = vpop.f32.mrf.mxu0  ;;  %v2809_v36 = vpop.f32.mrf.mxu1 }
 0x1ee   : > { %v2576_v0 = vadd.f32 %v2523_v12, %v2386_v8  ;;  %v2350_v59 = vpop.f32.mrf.mxu3  ;;  %v3517_v8 = vsel %vm9258_vm9, %v14102_v58, 0.0 }
 0x1ef   : > { %v2393_v31 = vadd.f32 %v2350_v59, %v10128_v4 }
 0x1f0   : > { %v10386_v55 = vadd.f32 %v2809_v36, %v2576_v0  ;;  %8664 = vmatmul.msk.bf16.gmra.mxu0 %vm14098_vm8, %v3545_v2  ;;  %v14105_v36 = vld [vmem:[#allocation23_spill] sm:$0xff]  ;;  %vm14111_vm8 = vmmov %vm14076_vm4 }
 0x1f1   : > { %v3546_v2 = vpack.c.bf16 %v3517_v8, %v14105_v36  ;;  %v14113_v8 = vld [vmem:[#allocation29_spill] sm:$0xff] }
 0x1f2   : > { %14097 = vst [vmem:[#allocation19_spill] sm:$0xff] %v10386_v55  ;;  %v14110_v55 = vld [vmem:[#allocation57_spill] sm:$0xff] }
 0x1f3   : > { %8652 = vmatmul.msk.bf16.gmra.mxu3 %vm14076_vm4, %v14100_v50  ;;  %v14108_v50 = vld [vmem:[#allocation89_spill] sm:$0xff] }
 0x1f5   : > { %v2525_v61 = vpop.f32.mrf.mxu0  ;;  %v10390_v62 = vpop.f32.mrf.mxu1 }
 0x1f6   : > { %14099 = vst [vmem:[#allocation75_spill] sm:$0xff] %v10390_v62  ;;  %v10394_v46 = vadd.f32 %v2525_v61, %v2387_v25  ;;  %v2353_v17 = vpop.f32.mrf.mxu3 }
 0x1f7   : > { %v2394_v12 = vadd.f32 %v2353_v17, %v14104_v43  ;;  %v14233_v43 = vld [vmem:[#allocation74_spill] sm:$0xff] }
 0x1f8   : > { %14101 = vst [vmem:[#allocation25_spill] sm:$0xff] %v10394_v46 }
 0x1fd   : > { %v2528_v0 = vpop.f32.mrf.mxu0  ;;  %v2814_v33 = vpop.f32.mrf.mxu1 }
 0x1fe   : > { %v2578_v4 = vadd.f32 %v2528_v0, %v2388_v28  ;;  %v2355_v62 = vpop.f32.mrf.mxu3  ;;  %v3519_v28 = vsel %vm9312_vm11, %v14113_v8, 0.0  ;;  %v14116_v0 = vld [vmem:[#allocation30_spill] sm:$0xff] }
 0x1ff   : > { %v2395_v25 = vadd.f32 %v2355_v62, %v14108_v50 }
 0x200   : > { %v10401_v59 = vadd.f32 %v2814_v33, %v2578_v4  ;;  %8665 = vmatmul.msk.bf16.gmra.mxu0 %vm14107_vm10, %v3546_v2  ;;  %v14115_v33 = vld [vmem:[#allocation90_spill] sm:$0xff]  ;;  %v3547_v2 = vpack.c.bf16 %v3519_v28, %v14116_v0  ;;  %vm14120_vm10 = vmmov %vm14076_vm4  ;;  %v14122_v28 = vld [vmem:[#allocation39_spill] sm:$0xff] }
 0x202   : > { %14106 = vst [vmem:[#allocation76_spill] sm:$0xff] %v10401_v59 }
 0x203   : > { %8653 = vmatmul.msk.bf16.gmra.mxu3 %vm14111_vm8, %v14110_v55  ;;  %v14118_v55 = vld [vmem:[#allocation91_spill] sm:$0xff]  ;;  %vm14127_vm8 = vmmov %vm14076_vm4 }
 0x205   : > { %v2530_v61 = vpop.f32.mrf.mxu0  ;;  %v10405_v46 = vpop.f32.mrf.mxu1 }
 0x206   : > { %14109 = vst [vmem:[#allocation26_spill] sm:$0xff] %v10405_v46  ;;  %v10409_v58 = vadd.f32 %v2530_v61, %v2389_v53  ;;  %v2358_v17 = vpop.f32.mrf.mxu3 }
 0x207   : > { %v2396_v36 = vadd.f32 %v2358_v17, %v14115_v33  ;;  %v14251_v33 = vld [vmem:[#allocation77_spill] sm:$0xff] }
 0x208   : > { %14112 = vst [vmem:[#allocation83_spill] sm:$0xff] %v10409_v58 }
 0x20d   : > { %v2533_v4 = vpop.f32.mrf.mxu0  ;;  %v2819_v59 = vpop.f32.mrf.mxu1 }
 0x20e   : > { %v2580_v62 = vadd.f32 %v2533_v4, %v2390_v37  ;;  %v2360_v46 = vpop.f32.mrf.mxu3  ;;  %v3521_v37 = vsel %vm13947_vm3, %v14122_v28, 0.0  ;;  %v14125_v4 = vld [vmem:[#allocation40_spill] sm:$0xff] }
 0x20f   : > { %v2397_v53 = vadd.f32 %v2360_v46, %v14118_v55 }
 0x210   : > { %v10416_v50 = vadd.f32 %v2819_v59, %v2580_v62  ;;  %8666 = vmatmul.msk.bf16.gmra.mxu0 %vm14076_vm4, %v3547_v2  ;;  %v14124_v59 = vld [vmem:[#allocation55_spill] sm:$0xff]  ;;  %v3548_v2 = vpack.c.bf16 %v3521_v37, %v14125_v4 }
 0x211   : > { %v14131_v37 = vld [vmem:[#allocation47_spill] sm:$0xff] }
 0x212   : > { %14117 = vst [vmem:[#allocation33_spill] sm:$0xff] %v10416_v50 }
 0x213   : > { %8654 = vmatmul.msk.bf16.gmra.mxu3 %vm14120_vm10, %v14002_v24  ;;  %v14128_v24 = vld [vmem:[#allocation62_spill] sm:$0xff]  ;;  %vm14135_vm10 = vmmov %vm14076_vm4 }
 0x215   : > { %v2535_v61 = vpop.f32.mrf.mxu0  ;;  %v10420_v58 = vpop.f32.mrf.mxu1 }
 0x216   : > { %14119 = vst [vmem:[#allocation84_spill] sm:$0xff] %v10420_v58  ;;  %v10424_v8 = vadd.f32 %v2535_v61, %v2391_v32  ;;  %v2363_v17 = vpop.f32.mrf.mxu3 }
 0x217   : > { %v2398_v0 = vadd.f32 %v2363_v17, %v14124_v59 }
 0x218   : > { %14121 = vst [vmem:[#allocation34_spill] sm:$0xff] %v10424_v8 }
 0x21d   : > { %v2538_v62 = vpop.f32.mrf.mxu0  ;;  %v2824_v50 = vpop.f32.mrf.mxu1 }
 0x21e   : > { %v2582_v46 = vadd.f32 %v2538_v62, %v2392_v19  ;;  %v2365_v58 = vpop.f32.mrf.mxu3  ;;  %v3523_v19 = vsel %vm13961_vm14, %v14131_v37, 0.0  ;;  %v14140_v37 = vld [vmem:[#allocation54_spill] sm:$0xff] }
 0x21f   : > { %v2399_v32 = vadd.f32 %v2365_v58, %v14128_v24 }
 0x220   : > { %v10431_v55 = vadd.f32 %v2824_v50, %v2582_v46  ;;  %8667 = vmatmul.msk.bf16.gmra.mxu0 %vm14127_vm8, %v3548_v2  ;;  %v14133_v50 = vld [vmem:[#allocation48_spill] sm:$0xff]  ;;  %vm14137_vm8 = vmmov %vm14076_vm4 }
 0x221   : > { %v3549_v4 = vpack.c.bf16 %v3523_v19, %v14133_v50  ;;  %v3525_v50 = vsel %vm13975_vm13, %v14140_v37, 0.0 }
 0x222   : > { %14126 = vst [vmem:[#allocation51_spill] sm:$0xff] %v10431_v55 }
 0x223   : > { %8655 = vmatmul.msk.bf16.gmra.mxu3 %vm14076_vm4, %v14016_v30  ;;  %vm14139_vm4 = vcmask 1043456  }
 0x225   : > { %v2540_v61 = vpop.f32.mrf.mxu0  ;;  %v10435_v8 = vpop.f32.mrf.mxu1 }
 0x226   : > { %14129 = vst [vmem:[#allocation13_spill] sm:$0xff] %v10435_v8  ;;  %v10439_v28 = vadd.f32 %v2540_v61, %v2393_v31  ;;  %v3336_v17 = vpop.f32.mrf.mxu3  ;;  %v4011_v31 = vld [vmem:[%s13349_s3] sm:$0xf] }
 0x227   : > { %v4251_v61 = vsel %vm14139_vm4, %v4011_v31, 0  ;;  %vm14151_vm4 = vmmov %vm14137_vm8 }
 0x228   : > { %14130 = vst [vmem:[#allocation4_spill] sm:$0xff] %v10439_v28  ;;  %4260 = vmatpush.bf16.msra.mxu2 %v4251_v61  ;;  %v14160_v28 = vld [vmem:[#allocation63_spill] sm:$0xff] }
 0x22d   : > { %v2543_v62 = vpop.f32.mrf.mxu0  ;;  %v2829_v2 = vpop.f32.mrf.mxu1 }
 0x22e   : > { %v2584_v46 = vadd.f32 %v2543_v62, %v2394_v12  ;;  %v3338_v58 = vpop.f32.mrf.mxu3  ;;  %v14142_v62 = vld [vmem:[#allocation56_spill] sm:$0xff] }
 0x230   : > { %v10445_v55 = vadd.f32 %v2829_v2, %v2584_v46  ;;  %8668 = vmatmul.msk.bf16.gmra.mxu0 %vm14135_vm10, %v3549_v4  ;;  %v10461_v4 = vpop.f32.mrf.mxu2  ;;  %4261 = vmatmul.bf16.vlgmr.msra.gmra.mxu2 %v14087_v10  ;;  %vm14144_vm10 = vmmov %vm14137_vm8 }
 0x232   : > { %14134 = vst [vmem:[#allocation9_spill] sm:$0xff] %v10445_v55  ;;  %v14147_v55 = vld [vmem:[#allocation64_spill] sm:$0xff] }
 0x233   : > { %8656 = vmatmul.msk.bf16.gmra.mxu3 %vm14137_vm8, %v14030_v22  ;;  %v3550_v22 = vpack.c.bf16 %v3525_v50, %v14142_v62  ;;  %v3527_v62 = vsel %vm13987_vm0, %v14147_v55, 0.0 }
 0x235   : > { %v2545_v24 = vpop.f32.mrf.mxu0  ;;  %v10448_v8 = vpop.f32.mrf.mxu1 }
 0x236   : > { %14136 = vst [vmem:[#allocation43_spill] sm:$0xff] %v10448_v8  ;;  %v10452_v30 = vadd.f32 %v2545_v24, %v2395_v25  ;;  %v3341_v12 = vpop.f32.mrf.mxu3 }
 0x238   : > { %14138 = vst [vmem:[#allocation3_spill] sm:$0xff] %v10452_v30 }
 0x23d   : > { %v2548_v25 = vpop.f32.mrf.mxu0  ;;  %v2834_v2 = vpop.f32.mrf.mxu1 }
 0x23e   : > { %v2586_v46 = vadd.f32 %v2548_v25, %v2396_v36  ;;  %v3343_v31 = vpop.f32.mrf.mxu3  ;;  %v14149_v36 = vld [vmem:[#allocation66_spill] sm:$0xff] }
 0x23f   : > { %v3551_v25 = vpack.c.bf16 %v3527_v62, %v14149_v36  ;;  %v14154_v62 = vld [vmem:[#allocation73_spill] sm:$0xff] }
 0x240   : > { %v10465_v24 = vadd.f32 %v2834_v2, %v2586_v46  ;;  %8669 = vmatmul.msk.bf16.gmra.mxu0 %vm14144_vm10, %v3550_v22  ;;  %vm14152_vm10 = vmmov %vm14151_vm4 }
 0x242   : > { %14143 = vst [vmem:[#allocation36_spill] sm:$0xff] %v10465_v24 }
 0x243   : > { %8657 = vmatmul.msk.bf16.gmra.mxu3 %vm14137_vm8, %v9885_v23  ;;  %vm14157_vm8 = vmmov %vm14151_vm4 }
 0x245   : > { %v2550_v61 = vpop.f32.mrf.mxu0  ;;  %v10468_v8 = vpop.f32.mrf.mxu1 }
 0x246   : > { %14145 = vst [vmem:[#allocation35_spill] sm:$0xff] %v10468_v8  ;;  %v10472_v37 = vadd.f32 %v2550_v61, %v2397_v53  ;;  %v10474_v30 = vpop.f32.mrf.mxu3  ;;  %v10485_v53 = vpop.f32.mrf.mxu2 }
 0x248   : > { %14146 = vst [vmem:[#allocation10_spill] sm:$0xff] %v10472_v37  ;;  %v10501_v37 = vld [vmem:[%s13348_s2] ss:$0 sm:$0xff] }
 0x24d   : > { %v2553_v2 = vpop.f32.mrf.mxu0  ;;  %v2839_v46 = vpop.f32.mrf.mxu1 }
 0x24e   : > { %v2588_v22 = vadd.f32 %v2553_v2, %v2398_v0  ;;  %v10483_v8 = vpop.f32.mrf.mxu3  ;;  %v3529_v0 = vsel %vm13998_vm2, %v14154_v62, 0.0  ;;  %v14158_v62 = vld [vmem:[#allocation65_spill] sm:$0xff] }
 0x24f   : > { %v3552_v2 = vpack.c.bf16 %v3529_v0, %v14011_v5 }
 0x250   : > { %v10480_v24 = vadd.f32 %v2839_v46, %v2588_v22  ;;  %8670 = vmatmul.msk.bf16.gmra.mxu0 %vm14151_vm4, %v3551_v25  ;;  %v14156_v46 = vld [vmem:[#allocation31_spill] sm:$0xff] }
 0x251   : > { %v3416_v25 = vadd.f32 %v3336_v17, %v14156_v46 }
 0x252   : > { %14150 = vst [vmem:[#allocation59_spill] sm:$0xff] %v10480_v24 }
 0x253   : > { %8658 = vmatmul.msk.bf16.gmra.mxu3 %vm14152_vm10, %v14055_v20  ;;  %v10503_v20 = vpop.f32.mrf.mxu2  ;;  %vm14161_vm10 = vnez %v14160_v28 }
 0x255   : > { %v2555_v23 = vpop.f32.mrf.mxu0 }
 0x256   : > { %v10489_v61 = vadd.f32 %v2555_v23, %v2399_v32  ;;  %v10491_v55 = vpop.f32.mrf.mxu3 }
 0x258   : > { %14153 = vst [vmem:[#allocation44_spill] sm:$0xff] %v10489_v61  ;;  %v3417_v61 = vadd.f32 %v3338_v58, %v14158_v62  ;;  %v14163_v58 = vld [vmem:[#allocation60_spill] sm:$0xff] }
 0x259   : > { %v3418_v62 = vadd.f32 %v3341_v12, %v14163_v58 }
 0x25b   : > { %v10518_v36 = vpop.f32.mrf.mxu2 }
 0x25d   : > { %v3622_v22 = vpop.f32.mrf.mxu0 }
 0x25e   : > { %v3702_v24 = vadd.f32 %v3622_v22, %v3416_v25  ;;  %v10506_v32 = vpop.f32.mrf.mxu3  ;;  %v14159_v22 = vld [vmem:[#allocation82_spill] sm:$0xff] }
 0x25f   : > { %v14391_v54 = vld [vmem:[#allocation44_spill] sm:$0xff] }
 0x260   : > { %8671 = vmatmul.msk.bf16.gmra.mxu0 %vm14157_vm8, %v3552_v2  ;;  %v3738_v23 = vadd.f32 %v10501_v37, %v3702_v24  ;;  %v3531_v2 = vsel %vm14161_vm10, %v14159_v22, 0.0  ;;  %vm14165_vm8 = vmmov %vm14151_vm4 }
 0x262   : > { %v3770_v0 = vmul.f32 0.2, %v3738_v23 }
 0x263   : > { %8659 = vmatmul.msk.bf16.gmra.mxu3 %vm14151_vm4, %v14063_v42  ;;  %v3553_v42 = vpack.c.bf16 %v3531_v2, %v14025_v38  ;;  %v10539_v12 = vpop.f32.mrf.mxu2 }
 0x264   : > { %v10520_v24 = vmax.f32 %v3738_v23, %v3770_v0  ;;  %14168 = vst [vmem:[#allocation22_spill] sm:$0xff] %v10539_v12  ;;  %v14169_v0 = vld [vmem:[#allocation71_spill] sm:$0xff] }
 0x265   : > { %v3624_v5 = vpop.f32.mrf.mxu0 }
 0x266   : > { %v3703_v17 = vadd.f32 %v3624_v5, %v3417_v61  ;;  %v10513_v25 = vpop.f32.mrf.mxu3  ;;  %14162 = vst [vmem:[#allocation14_spill] sm:$0xff] %v10520_v24  ;;  %v13599_v50 = vrot.slane %v10520_v24, 7 }
 0x268   : > { %v3739_v46 = vadd.f32 %v10501_v37, %v3703_v17 }
 0x26a   : > { %v3771_v3 = vmul.f32 0.2, %v3739_v46 }
 0x26b   : > { %v10567_v41 = vpop.f32.mrf.mxu2 }
 0x26c   : > { %v3803_v6 = vmax.f32 %v3739_v46, %v3771_v3  ;;  %v3419_v46 = vadd.f32 %v3343_v31, %v14169_v0  ;;  %v14173_v31 = vld [vmem:[#allocation87_spill] sm:$0xff] }
 0x26d   : > { %v3627_v61 = vpop.f32.mrf.mxu0 }
 0x26e   : > { %v3875_v5 = vrot.slane %v3803_v6, 7  ;;  %v3704_v45 = vadd.f32 %v3627_v61, %v3418_v62  ;;  %v10525_v17 = vpack.c.bf16 %v3803_v6, %v10520_v24  ;;  %v10532_v23 = vpop.f32.mrf.mxu3  ;;  %v4348_v58 = vrot.slane %v3803_v6, 1 }
 0x270   : > { %14164 = vst [vmem:[#allocation2_spill] sm:$0xff] %v10525_v17  ;;  %v3740_v22 = vadd.f32 %v10501_v37, %v3704_v45  ;;  %8672 = vmatmul.msk.bf16.gmra.mxu0 %vm14165_vm8, %v3553_v42  ;;  %8679 = vmatmul.msk.bf16.gmra.mxu1 %vm14151_vm4, %v10525_v17  ;;  %v10537_v38 = vsel %vm14166_vm15, %v13599_v50, %v3875_v5  ;;  %vm14170_vm8 = vmmov %vm14151_vm4  ;;  %v13604_v17 = vrot.slane %v10520_v24, 1  ;;  %vm14171_vm15 = vcmask 1046528  }
 0x271   : > { %14167 = vst [vmem:[#allocation49_spill] sm:$0xff] %v10537_v38  ;;  %vm14172_vm4 = vcmask 1040384   ;;  %vm14176_vm2 = vmmov %vm14171_vm15 }
 0x272   : > { %v3772_v3 = vmul.f32 0.2, %v3740_v22 }
 0x273   : > { %8660 = vmatmul.msk.bf16.gmra.mxu3 %vm14170_vm8, %v14072_v63 }
 0x274   : > { %v3804_v2 = vmax.f32 %v3740_v22, %v3772_v3  ;;  %v14174_v22 = vld [vmem:[#allocation72_spill] sm:$0xff]  ;;  %v4349_v3 = vsel %vm14176_vm2, %v13604_v17, %v4348_v58  ;;  %vm14180_vm2 = vmmov %vm14170_vm8 }
 0x275   : > { %v3629_v45 = vpop.f32.mrf.mxu0  ;;  %vm14175_vm10 = vnez %v14174_v22  ;;  %vm14181_vm8 = vmmov %vm14180_vm2 }
 0x276   : > { %v3877_v62 = vrot.slane %v3804_v2, 7  ;;  %v4350_v42 = vrot.slane %v3804_v2, 1  ;;  %v3705_v61 = vadd.f32 %v3629_v45, %v3419_v46  ;;  %v10548_v40 = vpop.f32.mrf.mxu3  ;;  %v3533_v6 = vsel %vm14175_vm10, %v14173_v31, 0.0 }
 0x277   : > { %v3554_v31 = vpack.c.bf16 %v3533_v6, %v9878_v16  ;;  %v8709_v16 = vld [vmem:[%s13349_s3 + $0x8] sm:$0xf] }
 0x278   : > { %v3741_v28 = vadd.f32 %v10501_v37, %v3705_v61  ;;  %v4351_v50 = vsel %vm14171_vm15, %v4348_v58, %v4350_v42  ;;  %v3878_v38 = vsel %vm14172_vm4, %v3875_v5, %v3877_v62  ;;  %v14178_v61 = vld [vmem:[#allocation41_spill] sm:$0xff] }
 0x279   : > { %v4442_v63 = vsel %vm9199_vm7, %v4351_v50, 0.0  ;;  %v5074_v0 = vsel %vm14092_vm1, %v4351_v50, 0.0  ;;  %v3420_v1 = vadd.f32 %v10474_v30, %v14178_v61 }
 0x27a   : > { %v3773_v46 = vmul.f32 0.2, %v3741_v28  ;;  %v10560_v45 = vpack.c.bf16 %v4442_v63, %v4349_v3  ;;  %v10562_v5 = vpack.c.bf16 %v5074_v0, %v4349_v3 }
 0x27c   : > { %14177 = vst [vmem:[#allocation88_spill] sm:$0xff] %v10562_v5  ;;  %v3805_v22 = vmax.f32 %v3741_v28, %v3773_v46 }
 0x27d   : > { %v3632_v24 = vpop.f32.mrf.mxu0 }
 0x27e   : > { %v3879_v58 = vrot.slane %v3805_v22, 7  ;;  %v4352_v17 = vrot.slane %v3805_v22, 1  ;;  %v3706_v19 = vadd.f32 %v3632_v24, %v3420_v1  ;;  %v10569_v12 = vpack.c.bf16 %v3805_v22, %v3804_v2  ;;  %v10576_v28 = vpop.f32.mrf.mxu3  ;;  %v14182_v1 = vld [vmem:[#allocation11_spill] sm:$0xff]  ;;  %v14184_v2 = vld [vmem:[#allocation5_spill] sm:$0xff] }
 0x27f   : > { %vm14183_vm10 = vnez %v14182_v1  ;;  %vm14185_vm0 = vnez %v14184_v2 }
 0x280   : > { %14179 = vst [vmem:[#allocation23_spill] sm:$0xff] %v10569_v12  ;;  %v3742_v50 = vadd.f32 %v10501_v37, %v3706_v19  ;;  %8673 = vmatmul.msk.bf16.gmra.mxu0 %vm14180_vm2, %v3554_v31  ;;  %8680 = vmatmul.msk.bf16.gmra.mxu1 %vm14181_vm8, %v10569_v12  ;;  %v4353_v30 = vsel %vm14171_vm15, %v4350_v42, %v4352_v17  ;;  %v3967_v24 = vsel %vm14183_vm10, %v3878_v38, 0.0  ;;  %v5295_v19 = vsel %vm14185_vm0, %v3878_v38, 0.0  ;;  %v14188_v42 = vld [vmem:[#allocation6_spill] sm:$0xff] }
 0x281   : > { %v3880_v6 = vsel %vm14172_vm4, %v3877_v62, %v3879_v58  ;;  %vm14186_vm2 = vcmask 1043456   ;;  %vm14189_vm8 = vnez %v14188_v42  ;;  %v3421_v62 = vadd.f32 %v10483_v8, %v10221_v21  ;;  %v14195_v21 = vld [vmem:[#allocation81_spill] sm:$0xff] }
 0x282   : > { %v3774_v22 = vmul.f32 0.2, %v3742_v50  ;;  %v4538_v3 = vsel %vm14186_vm2, %v8709_v16, 0  ;;  %v10587_v63 = vpack.c.bf16 %v3880_v6, %v3967_v24  ;;  %v4663_v0 = vsel %vm14189_vm8, %v3878_v38, 0.0  ;;  %v10599_v24 = vpop.f32.mrf.mxu2 }
 0x283   : > { %4547 = vmatpush.bf16.msrb.mxu3 %v4538_v3  ;;  %v10591_v46 = vpack.c.bf16 %v3880_v6, %v5295_v19  ;;  %v10593_v61 = vpack.c.bf16 %v3880_v6, %v4663_v0  ;;  %vm14192_vm15 = vcmask 64512   ;;  %vm14193_vm4 = vcmask 1046528  }
 0x284   : > { %14187 = vst [vmem:[#allocation89_spill] sm:$0xff] %v10587_v63  ;;  %v3806_v31 = vmax.f32 %v3742_v50, %v3774_v22  ;;  %8661 = vmatmul.msk.bf16.gmra.mxu3 %vm14192_vm15, %v10345_v14  ;;  %vm14194_vm2 = vcmask 1040384   ;;  %vm14196_vm0 = vnez %v14195_v21 }
 0x285   : > { %14190 = vst [vmem:[#allocation57_spill] sm:$0xff] %v10591_v46  ;;  %v3634_v5 = vpop.f32.mrf.mxu0  ;;  %v3535_v8 = vsel %vm14196_vm0, %v14051_v9, 0.0 }
 0x286   : > { %14191 = vst [vmem:[#allocation29_spill] sm:$0xff] %v10593_v61  ;;  %v3881_v12 = vrot.slane %v3806_v31, 7  ;;  %v4354_v2 = vrot.slane %v3806_v31, 1  ;;  %v3707_v16 = vadd.f32 %v3634_v5, %v3421_v62  ;;  %v10604_v3 = vpop.f32.mrf.mxu3  ;;  %v3555_v9 = vpack.c.bf16 %v3535_v8, %v14054_v26 }
 0x288   : > { %v3743_v38 = vadd.f32 %v10501_v37, %v3707_v16  ;;  %v4355_v19 = vsel %vm14193_vm4, %v4352_v17, %v4354_v2  ;;  %v3882_v6 = vsel %vm14194_vm2, %v3879_v58, %v3881_v12  ;;  %v3422_v58 = vadd.f32 %v10491_v55, %v10241_v60  ;;  %vm14199_vm4 = vmmov %vm14192_vm15 }
 0x289   : > { %v4444_v50 = vsel %vm9258_vm9, %v4355_v19, 0.0  ;;  %v5740_v14 = vsel %vm14092_vm1, %v4355_v19, 0.0  ;;  %v5076_v17 = vsel %vm9199_vm7, %v4355_v19, 0.0  ;;  %vm14200_vm2 = vcmask 1046528  }
 0x28a   : > { %v3775_v5 = vmul.f32 0.2, %v3743_v38  ;;  %v10613_v22 = vpack.c.bf16 %v4444_v50, %v4353_v30  ;;  %v10615_v0 = vpack.c.bf16 %v5740_v14, %v4353_v30  ;;  %v10622_v16 = vpack.c.bf16 %v5076_v17, %v4353_v30  ;;  %v14202_v30 = vld [vmem:[#allocation15_spill] sm:$0xff] }
 0x28b   : > { %vm14201_vm1 = vcmask 1040384   ;;  %vm14203_vm0 = vnez %v14202_v30  ;;  %v14234_v30 = vld [vmem:[#allocation68_spill] sm:$0xff] }
 0x28c   : > { %14197 = vst [vmem:[#allocation90_spill] sm:$0xff] %v10615_v0  ;;  %v3807_v62 = vmax.f32 %v3743_v38, %v3775_v5  ;;  %v3969_v38 = vsel %vm14203_vm0, %v3882_v6, 0.0 }
 0x28d   : > { %14198 = vst [vmem:[#allocation30_spill] sm:$0xff] %v10622_v16  ;;  %v3637_v46 = vpop.f32.mrf.mxu0 }
 0x28e   : > { %v3883_v61 = vrot.slane %v3807_v62, 7  ;;  %v4356_v56 = vrot.slane %v3807_v62, 1  ;;  %v3708_v63 = vadd.f32 %v3637_v46, %v3422_v58  ;;  %v10624_v21 = vpack.c.bf16 %v3807_v62, %v3806_v31  ;;  %v10631_v55 = vpop.f32.mrf.mxu3  ;;  %v10638_v31 = vpop.f32.mrf.mxu2 }
 0x28f   : > { %v4665_v46 = vsel %vm14183_vm10, %v3882_v6, 0.0 }
 0x290   : > { %v3744_v50 = vadd.f32 %v10501_v37, %v3708_v63  ;;  %8674 = vmatmul.msk.bf16.gmra.mxu0 %vm14192_vm15, %v3555_v9  ;;  %8681 = vmatmul.msk.bf16.gmra.mxu1 %vm14199_vm4, %v10624_v21  ;;  %v4357_v60 = vsel %vm14200_vm2, %v4354_v2, %v4356_v56  ;;  %v3884_v26 = vsel %vm14201_vm1, %v3881_v12, %v3883_v61  ;;  %v5297_v2 = vsel %vm14189_vm8, %v3882_v6, 0.0  ;;  %vm14206_vm1 = vmmov %vm14200_vm2 }
 0x291   : > { %v10640_v19 = vpack.c.bf16 %v3884_v26, %v3969_v38  ;;  %v10642_v8 = vpack.c.bf16 %v3884_v26, %v4665_v46  ;;  %v10646_v14 = vpack.c.bf16 %v3884_v26, %v5297_v2  ;;  %v3423_v12 = vadd.f32 %v10506_v32, %v10255_v44  ;;  %vm14210_vm2 = vmmov %vm14199_vm4 }
 0x292   : > { %v3776_v63 = vmul.f32 0.2, %v3744_v50  ;;  %vm14207_vm15 = vcmask 1040384   ;;  %v3537_v6 = vsel %vm14053_vm12, %v14059_v29, 0.0  ;;  %v3424_v2 = vadd.f32 %v10513_v25, %v10266_v7 }
 0x293   : > { %14204 = vst [vmem:[#allocation91_spill] sm:$0xff] %v10642_v8 }
 0x294   : > { %14205 = vst [vmem:[#allocation39_spill] sm:$0xff] %v10646_v14  ;;  %v3808_v5 = vmax.f32 %v3744_v50, %v3776_v63  ;;  %3410 = vmatmul.bf16.gmra.mxu3 %v14087_v10 }
 0x295   : > { %v3639_v17 = vpop.f32.mrf.mxu0 }
 0x296   : > { %v3885_v58 = vrot.slane %v3808_v5, 7  ;;  %v4358_v62 = vrot.slane %v3808_v5, 1  ;;  %v3709_v9 = vadd.f32 %v3639_v17, %v3423_v12  ;;  %v10654_v0 = vpop.f32.mrf.mxu3  ;;  %v3556_v12 = vpack.c.bf16 %v3537_v6, %v14062_v15 }
 0x297   : > { %v3139_v15 = vadd.f32 %v10461_v4, %v10271_v11 }
 0x298   : > { %v3745_v38 = vadd.f32 %v10501_v37, %v3709_v9  ;;  %v4359_v46 = vsel %vm14206_vm1, %v4356_v56, %v4358_v62  ;;  %v3886_v16 = vsel %vm14207_vm15, %v3883_v61, %v3885_v58  ;;  %v10669_v61 = vpop.f32.mrf.mxu2 }
 0x299   : > { %v4446_v44 = vsel %vm9312_vm11, %v4359_v46, 0.0  ;;  %v5742_v26 = vsel %vm9199_vm7, %v4359_v46, 0.0  ;;  %v5078_v56 = vsel %vm9258_vm9, %v4359_v46, 0.0  ;;  %v3425_v11 = vadd.f32 %v10532_v23, %v3139_v15 }
 0x29a   : > { %v3777_v32 = vmul.f32 0.2, %v3745_v38  ;;  %v10661_v50 = vpack.c.bf16 %v4446_v44, %v4357_v60  ;;  %v10665_v63 = vpack.c.bf16 %v5742_v26, %v4357_v60  ;;  %v10674_v17 = vpack.c.bf16 %v5078_v56, %v4357_v60 }
 0x29b   : > { %v3539_v23 = vsel %vm14061_vm5, %v14068_v39, 0.0  ;;  %v3140_v15 = vadd.f32 %v10485_v53, %v10285_v27  ;;  %v14449_v52 = vld [vmem:[#allocation39_spill] sm:$0xff] }
 0x29c   : > { %14208 = vst [vmem:[#allocation55_spill] sm:$0xff] %v10665_v63  ;;  %v3809_v29 = vmax.f32 %v3745_v38, %v3777_v32  ;;  %v14211_v38 = vld [vmem:[#allocation20_spill] sm:$0xff] }
 0x29d   : > { %14209 = vst [vmem:[#allocation40_spill] sm:$0xff] %v10674_v17  ;;  %v3642_v9 = vpop.f32.mrf.mxu0  ;;  %vm14212_vm7 = vnez %v14211_v38 }
 0x29e   : > { %v3887_v44 = vrot.slane %v3809_v29, 7  ;;  %v4360_v14 = vrot.slane %v3809_v29, 1  ;;  %v3710_v35 = vadd.f32 %v3642_v9, %v3424_v2  ;;  %v10676_v8 = vpack.c.bf16 %v3809_v29, %v3808_v5  ;;  %v10685_v25 = vpop.f32.mrf.mxu3 }
 0x29f   : > { %v3971_v5 = vsel %vm14212_vm7, %v3886_v16, 0.0 }
 0x2a0   : > { %v3746_v26 = vadd.f32 %v10501_v37, %v3710_v35  ;;  %8675 = vmatmul.msk.bf16.gmra.mxu0 %vm14199_vm4, %v3556_v12  ;;  %8682 = vmatmul.msk.bf16.gmra.mxu1 %vm14210_vm2, %v10676_v8  ;;  %v4361_v7 = vsel %vm14206_vm1, %v4358_v62, %v4360_v14  ;;  %v3888_v60 = vsel %vm14207_vm15, %v3885_v58, %v3887_v44  ;;  %v4667_v35 = vsel %vm14203_vm0, %v3886_v16, 0.0  ;;  %v10701_v2 = vpop.f32.mrf.mxu2  ;;  %vm14214_vm4 = vmmov %vm14206_vm1 }
 0x2a1   : > { %v10692_v6 = vpack.c.bf16 %v3888_v60, %v3971_v5  ;;  %v10694_v32 = vpack.c.bf16 %v3888_v60, %v4667_v35  ;;  %v5299_v62 = vsel %vm14183_vm10, %v3886_v16, 0.0  ;;  %vm14215_vm2 = vmmov %vm14207_vm15  ;;  %vm14220_vm1 = vnez %v14219_v49 }
 0x2a2   : > { %v3778_v46 = vmul.f32 0.2, %v3746_v26  ;;  %v10698_v56 = vpack.c.bf16 %v3888_v60, %v5299_v62  ;;  %vm14221_vm15 = vcmask 64512  }
 0x2a4   : > { %14213 = vst [vmem:[#allocation62_spill] sm:$0xff] %v10698_v56  ;;  %v3810_v4 = vmax.f32 %v3746_v26, %v3778_v46  ;;  %4548 = vmatmul.bf16.vlgmr.msrb.gmra.mxu3 %v14087_v10 }
 0x2a5   : > { %v3644_v58 = vpop.f32.mrf.mxu0 }
 0x2a6   : > { %v3889_v29 = vrot.slane %v3810_v4, 7  ;;  %v4362_v12 = vrot.slane %v3810_v4, 1  ;;  %v3711_v9 = vadd.f32 %v3644_v58, %v3425_v11  ;;  %v10707_v16 = vpop.f32.mrf.mxu3  ;;  %v3426_v11 = vadd.f32 %v10548_v40, %v3140_v15 }
 0x2a7   : > { %v3557_v58 = vpack.c.bf16 %v3539_v23, %v14071_v57 }
 0x2a8   : > { %v3747_v5 = vadd.f32 %v10501_v37, %v3711_v9  ;;  %v4363_v35 = vsel %vm14214_vm4, %v4360_v14, %v4362_v12  ;;  %v3890_v1 = vsel %vm14215_vm2, %v3887_v44, %v3889_v29  ;;  %vm14222_vm4 = vmmov %vm14221_vm15  ;;  %vm14223_vm2 = vcmask 1046528  }
 0x2a9   : > { %v4448_v26 = vsel %vm13947_vm3, %v4363_v35, 0.0  ;;  %v5744_v14 = vsel %vm9258_vm9, %v4363_v35, 0.0  ;;  %v5080_v44 = vsel %vm9312_vm11, %v4363_v35, 0.0  ;;  %v4669_v40 = vsel %vm14212_vm7, %v3890_v1, 0.0 }
 0x2aa   : > { %v3779_v60 = vmul.f32 0.2, %v3747_v5  ;;  %v10716_v46 = vpack.c.bf16 %v4448_v26, %v4361_v7  ;;  %v10720_v62 = vpack.c.bf16 %v5744_v14, %v4361_v7  ;;  %v10726_v9 = vpack.c.bf16 %v5080_v44, %v4361_v7 }
 0x2ab   : > { %v2855_v14 = vadd.f32 %v10294_v34, %v10299_v13  ;;  %vm14224_vm9 = vcmask 1040384   ;;  %v5301_v34 = vsel %vm14203_vm0, %v3890_v1, 0.0  ;;  %v14459_v42 = vld [vmem:[#allocation62_spill] sm:$0xff] }
 0x2ac   : > { %14216 = vst [vmem:[#allocation47_spill] sm:$0xff] %v10720_v62  ;;  %v3811_v39 = vmax.f32 %v3747_v5, %v3779_v60  ;;  %v3973_v62 = vsel %vm14220_vm1, %v3890_v1, 0.0  ;;  %v10736_v5 = vpop.f32.mrf.mxu2 }
 0x2ad   : > { %14217 = vst [vmem:[#allocation48_spill] sm:$0xff] %v10726_v9  ;;  %v3647_v17 = vpop.f32.mrf.mxu0  ;;  %v3141_v15 = vadd.f32 %v10503_v20, %v2855_v14 }
 0x2ae   : > { %v3891_v27 = vrot.slane %v3811_v39, 7  ;;  %v4364_v53 = vrot.slane %v3811_v39, 1  ;;  %v3712_v26 = vadd.f32 %v3647_v17, %v3426_v11  ;;  %v10728_v63 = vpack.c.bf16 %v3811_v39, %v3810_v4  ;;  %v10746_v13 = vpop.f32.mrf.mxu3 }
 0x2af   : > { %v3427_v44 = vadd.f32 %v10576_v28, %v3141_v15 }
 0x2b0   : > { %14218 = vst [vmem:[#allocation54_spill] sm:$0xff] %v10728_v63  ;;  %v3748_v57 = vadd.f32 %v10501_v37, %v3712_v26  ;;  %8676 = vmatmul.msk.bf16.gmra.mxu0 %vm14221_vm15, %v3557_v58  ;;  %8683 = vmatmul.msk.bf16.gmra.mxu1 %vm14222_vm4, %v10728_v63  ;;  %v4365_v17 = vsel %vm14223_vm2, %v4362_v12, %v4364_v53  ;;  %v8742_v58 = vld [vmem:[%s13349_s3 + $0x10] sm:$0xf]  ;;  %vm14227_vm15 = vcmask 1043456  }
 0x2b1   : > { %v3892_v7 = vsel %vm14224_vm9, %v3889_v29, %v3891_v27  ;;  %vm14226_vm9 = vmmov %vm14222_vm4 }
 0x2b2   : > { %v10748_v4 = vpack.c.bf16 %v3892_v7, %v3973_v62  ;;  %v10750_v35 = vpack.c.bf16 %v3892_v7, %v4669_v40  ;;  %v10752_v23 = vpack.c.bf16 %v3892_v7, %v5301_v34  ;;  %v3780_v60 = vmul.f32 0.2, %v3748_v57  ;;  %v8725_v62 = vld [vmem:[%s13349_s3 + $0xc] sm:$0xf]  ;;  %vm14228_vm4 = vmmov %vm14227_vm15 }
 0x2b3   : > { %v4760_v20 = vsel %vm14227_vm15, %v8725_v62, 0  ;;  %v4950_v28 = vsel %vm14228_vm4, %v8742_v58, 0  ;;  %v3142_v34 = vadd.f32 %v10518_v36, %v10315_v51  ;;  %vm14237_vm4 = vcmask 64512  }
 0x2b4   : > { %14225 = vst [vmem:[#allocation56_spill] sm:$0xff] %v10752_v23  ;;  %v3812_v11 = vmax.f32 %v3748_v57, %v3780_v60  ;;  %8710 = vmatmul.msk.bf16.gmra.mxu3 %vm14226_vm9, %v10560_v45  ;;  %4769 = vmatpush.bf16.msrb.mxu0 %v4760_v20  ;;  %vm14229_vm9 = vcmask 1040384   ;;  %v3541_v57 = vsel %vm14070_vm6, %v10333_v48, 0.0  ;;  %v10778_v15 = vpop.f32.mrf.mxu2 }
 0x2b5   : > { %v3649_v12 = vpop.f32.mrf.mxu0  ;;  %4959 = vmatpush.bf16.msrb.mxu1 %v4950_v28  ;;  %v3428_v48 = vadd.f32 %v10604_v3, %v3142_v34  ;;  %v3558_v62 = vpack.c.bf16 %v3541_v57, %v10338_v47  ;;  %v14242_v34 = vld [vmem:[#allocation22_spill] sm:$0xff] }
 0x2b6   : > { %v3893_v39 = vrot.slane %v3812_v11, 7  ;;  %v4366_v29 = vrot.slane %v3812_v11, 1  ;;  %v3713_v1 = vadd.f32 %v3649_v12, %v3427_v44  ;;  %v10769_v40 = vpop.f32.mrf.mxu3 }
 0x2b8   : > { %v3749_v26 = vadd.f32 %v10501_v37, %v3713_v1  ;;  %v4367_v14 = vsel %vm14223_vm2, %v4364_v53, %v4366_v29  ;;  %v3894_v45 = vsel %vm14229_vm9, %v3891_v27, %v3893_v39  ;;  %vm14238_vm2 = vmmov %vm14237_vm4  ;;  %vm14239_vm9 = vcmask 1046528  }
 0x2b9   : > { %v4450_v7 = vsel %vm13961_vm14, %v4367_v14, 0.0  ;;  %v5746_v27 = vsel %vm9312_vm11, %v4367_v14, 0.0  ;;  %v5082_v12 = vsel %vm13947_vm3, %v4367_v14, 0.0  ;;  %v4671_v3 = vsel %vm14220_vm1, %v3894_v45, 0.0 }
 0x2ba   : > { %v3781_v60 = vmul.f32 0.2, %v3749_v26  ;;  %v10780_v44 = vpack.c.bf16 %v4450_v7, %v4365_v17  ;;  %v10784_v53 = vpack.c.bf16 %v5746_v27, %v4365_v17  ;;  %v10790_v58 = vpack.c.bf16 %v5082_v12, %v4365_v17 }
 0x2bb   : > { %v2857_v27 = vadd.f32 %v14234_v30, %v14233_v43  ;;  %vm14240_vm11 = vcmask 1040384   ;;  %v5303_v43 = vsel %vm14212_vm7, %v3894_v45, 0.0 }
 0x2bc   : > { %14230 = vst [vmem:[#allocation64_spill] sm:$0xff] %v10784_v53  ;;  %v3813_v1 = vmax.f32 %v3749_v26, %v3781_v60  ;;  %v14235_v53 = vld [vmem:[#allocation37_spill] sm:$0xff] }
 0x2bd   : > { %14231 = vst [vmem:[#allocation66_spill] sm:$0xff] %v10790_v58  ;;  %v3652_v51 = vpop.f32.mrf.mxu0  ;;  %vm14236_vm15 = vnez %v14235_v53  ;;  %v3143_v60 = vadd.f32 %v14242_v34, %v2857_v27 }
 0x2be   : > { %v3895_v36 = vrot.slane %v3813_v1, 7  ;;  %v4368_v20 = vrot.slane %v3813_v1, 1  ;;  %v3714_v28 = vadd.f32 %v3652_v51, %v3428_v48  ;;  %v10792_v7 = vpack.c.bf16 %v3813_v1, %v3812_v11  ;;  %v10808_v30 = vpop.f32.mrf.mxu3  ;;  %v10817_v48 = vpop.f32.mrf.mxu2 }
 0x2bf   : > { %v3975_v9 = vsel %vm14236_vm15, %v3894_v45, 0.0 }
 0x2c0   : > { %14232 = vst [vmem:[#allocation73_spill] sm:$0xff] %v10792_v7  ;;  %v3750_v26 = vadd.f32 %v10501_v37, %v3714_v28  ;;  %8677 = vmatmul.msk.bf16.gmra.mxu0 %vm14237_vm4, %v3558_v62  ;;  %8684 = vmatmul.msk.bf16.gmra.mxu1 %vm14238_vm2, %v10792_v7  ;;  %v4369_v47 = vsel %vm14239_vm9, %v4366_v29, %v4368_v20  ;;  %vm14244_vm4 = vmmov %vm14239_vm9 }
 0x2c1   : > { %v3896_v17 = vsel %vm14240_vm11, %v3893_v39, %v3895_v36  ;;  %v3429_v29 = vadd.f32 %v10631_v55, %v3143_v60  ;;  %vm14243_vm11 = vmmov %vm14238_vm2  ;;  %vm14245_vm2 = vcmask 1040384   ;;  %v14247_v55 = vld [vmem:[#allocation69_spill] sm:$0xff] }
 0x2c2   : > { %v10810_v11 = vpack.c.bf16 %v3896_v17, %v3975_v9  ;;  %v10812_v14 = vpack.c.bf16 %v3896_v17, %v4671_v3  ;;  %v10814_v57 = vpack.c.bf16 %v3896_v17, %v5303_v43  ;;  %v3782_v12 = vmul.f32 0.2, %v3750_v26 }
 0x2c4   : > { %14241 = vst [vmem:[#allocation31_spill] sm:$0xff] %v10814_v57  ;;  %v3814_v1 = vmax.f32 %v3750_v26, %v3782_v12  ;;  %8711 = vmatmul.msk.bf16.gmra.mxu3 %vm14243_vm11, %v10613_v22  ;;  %v3144_v26 = vadd.f32 %v10567_v41, %v14247_v55  ;;  %v14252_v57 = vld [vmem:[#allocation80_spill] sm:$0xff] }
 0x2c5   : > { %v3654_v39 = vpop.f32.mrf.mxu0 }
 0x2c6   : > { %v3897_v62 = vrot.slane %v3814_v1, 7  ;;  %v4370_v51 = vrot.slane %v3814_v1, 1  ;;  %v3715_v9 = vadd.f32 %v3654_v39, %v3429_v29  ;;  %v10825_v27 = vpop.f32.mrf.mxu3  ;;  %v10842_v38 = vpop.f32.mrf.mxu2 }
 0x2c8   : > { %v3751_v45 = vadd.f32 %v10501_v37, %v3715_v9  ;;  %v4371_v28 = vsel %vm14244_vm4, %v4368_v20, %v4370_v51  ;;  %v3898_v3 = vsel %vm14245_vm2, %v3895_v36, %v3897_v62  ;;  %v3430_v36 = vadd.f32 %v10654_v0, %v3144_v26 }
 0x2c9   : > { %v4452_v43 = vsel %vm13975_vm13, %v4371_v28, 0.0  ;;  %v5748_v22 = vsel %vm13947_vm3, %v4371_v28, 0.0  ;;  %v5084_v20 = vsel %vm13961_vm14, %v4371_v28, 0.0  ;;  %v4673_v0 = vsel %vm14236_vm15, %v3898_v3, 0.0 }
 0x2ca   : > { %v3783_v34 = vmul.f32 0.2, %v3751_v45  ;;  %v10831_v60 = vpack.c.bf16 %v4452_v43, %v4369_v47  ;;  %v10835_v12 = vpack.c.bf16 %v5748_v22, %v4369_v47  ;;  %v10840_v39 = vpack.c.bf16 %v5084_v20, %v4369_v47 }
 0x2cb   : > { %v2859_v22 = vadd.f32 %v14252_v57, %v14251_v33  ;;  %v5305_v33 = vsel %vm14220_vm1, %v3898_v3, 0.0  ;;  %v10860_v57 = vpop.f32.mrf.mxu1 }
 0x2cc   : > { %14248 = vst [vmem:[#allocation65_spill] sm:$0xff] %v10835_v12  ;;  %v3815_v29 = vmax.f32 %v3751_v45, %v3783_v34  ;;  %v14253_v12 = vld [vmem:[#allocation45_spill] sm:$0xff] }
 0x2cd   : > { %14249 = vst [vmem:[#allocation82_spill] sm:$0xff] %v10840_v39  ;;  %v3657_v9 = vpop.f32.mrf.mxu0  ;;  %vm14254_vm9 = vnez %v14253_v12 }
 0x2ce   : > { %v3899_v41 = vrot.slane %v3815_v29, 7  ;;  %v4372_v55 = vrot.slane %v3815_v29, 1  ;;  %v3716_v43 = vadd.f32 %v3657_v9, %v3430_v36  ;;  %v10844_v58 = vpack.c.bf16 %v3815_v29, %v3814_v1  ;;  %v10862_v28 = vpop.f32.mrf.mxu3  ;;  %v10874_v39 = vpop.f32.mrf.mxu2 }
 0x2cf   : > { %v3977_v23 = vsel %vm14254_vm9, %v3898_v3, 0.0  ;;  %v3145_v36 = vadd.f32 %v10599_v24, %v2859_v22 }
 0x2d0   : > { %14250 = vst [vmem:[#allocation60_spill] sm:$0xff] %v10844_v58  ;;  %v3752_v47 = vadd.f32 %v10501_v37, %v3716_v43  ;;  %3696 = vmatmul.bf16.gmra.mxu0 %v14087_v10  ;;  %8685 = vmatmul.msk.bf16.gmra.mxu1 %vm14243_vm11, %v10844_v58  ;;  %v4373_v45 = vsel %vm14244_vm4, %v4370_v51, %v4372_v55  ;;  %v14266_v58 = vld [vmem:[#allocation52_spill] sm:$0xff] }
 0x2d1   : > { %v3900_v1 = vsel %vm14245_vm2, %v3897_v62, %v3899_v41  ;;  %v3431_v51 = vadd.f32 %v10685_v25, %v3145_v36  ;;  %v14258_v25 = vld [vmem:[#allocation46_spill] sm:$0xff] }
 0x2d2   : > { %v10864_v26 = vpack.c.bf16 %v3900_v1, %v3977_v23  ;;  %v10866_v34 = vpack.c.bf16 %v3900_v1, %v4673_v0  ;;  %v10868_v20 = vpack.c.bf16 %v3900_v1, %v5305_v33  ;;  %v3784_v29 = vmul.f32 0.2, %v3752_v47  ;;  %v14260_v33 = vld [vmem:[#allocation78_spill] sm:$0xff] }
 0x2d3   : > { %v10881_v22 = vpop.f32.mrf.mxu1  ;;  %vm14259_vm1 = vnez %v14258_v25  ;;  %v3146_v36 = vadd.f32 %v10638_v31, %v14260_v33  ;;  %v14306_v25 = vld [vmem:[#allocation83_spill] sm:$0xff] }
 0x2d4   : > { %14255 = vst [vmem:[#allocation71_spill] sm:$0xff] %v10864_v26  ;;  %v3816_v9 = vmax.f32 %v3752_v47, %v3784_v29  ;;  %8712 = vmatmul.msk.bf16.gmra.mxu3 %vm14243_vm11, %v10661_v50  ;;  %v14265_v26 = vld [vmem:[#allocation18_spill] sm:$0xff]  ;;  %vm14267_vm11 = vnez %v14266_v58 }
 0x2d5   : > { %14256 = vst [vmem:[#allocation87_spill] sm:$0xff] %v10866_v34  ;;  %v3659_v62 = vpop.f32.mrf.mxu0 }
 0x2d6   : > { %14257 = vst [vmem:[#allocation41_spill] sm:$0xff] %v10868_v20  ;;  %v3901_v43 = vrot.slane %v3816_v9, 7  ;;  %v4374_v49 = vrot.slane %v3816_v9, 1  ;;  %v3717_v3 = vadd.f32 %v3659_v62, %v3431_v51  ;;  %v10879_v24 = vpop.f32.mrf.mxu3 }
 0x2d8   : > { %v3753_v23 = vadd.f32 %v10501_v37, %v3717_v3  ;;  %v4375_v0 = vsel %vm14244_vm4, %v4372_v55, %v4374_v49  ;;  %v3902_v1 = vsel %vm14245_vm2, %v3899_v41, %v3901_v43  ;;  %v3432_v55 = vadd.f32 %v10707_v16, %v3146_v36 }
 0x2d9   : > { %v4454_v47 = vsel %vm14259_vm1, %v4375_v0, 0.0  ;;  %v5750_v51 = vsel %vm13961_vm14, %v4375_v0, 0.0  ;;  %v5086_v41 = vsel %vm13975_vm13, %v4375_v0, 0.0  ;;  %v4675_v0 = vsel %vm14254_vm9, %v3902_v1, 0.0 }
 0x2da   : > { %v3785_v50 = vmul.f32 0.2, %v3753_v23  ;;  %v10887_v29 = vpack.c.bf16 %v4454_v47, %v4373_v45  ;;  %v10891_v62 = vpack.c.bf16 %v5750_v51, %v4373_v45  ;;  %v10896_v10 = vpack.c.bf16 %v5086_v41, %v4373_v45  ;;  %v14264_v47 = vld [vmem:[#allocation67_spill] sm:$0xff] }
 0x2db   : > { %v2861_v59 = vadd.f32 %v14265_v26, %v14264_v47  ;;  %v3979_v51 = vsel %vm14267_vm11, %v3902_v1, 0.0  ;;  %vm14268_vm4 = vcmask 64512   ;;  %vm14269_vm2 = vcmask 1046528  }
 0x2dc   : > { %14261 = vst [vmem:[#allocation74_spill] sm:$0xff] %v10891_v62  ;;  %v3817_v3 = vmax.f32 %v3753_v23, %v3785_v50  ;;  %vm14270_vm14 = vcmask 1040384  }
 0x2dd   : > { %14262 = vst [vmem:[#allocation68_spill] sm:$0xff] %v10896_v10  ;;  %v3662_v20 = vpop.f32.mrf.mxu0  ;;  %v3147_v41 = vadd.f32 %v10669_v61, %v2861_v59 }
 0x2de   : > { %v3903_v56 = vrot.slane %v3817_v3, 7  ;;  %v4376_v34 = vrot.slane %v3817_v3, 1  ;;  %v3718_v31 = vadd.f32 %v3662_v20, %v3432_v55  ;;  %v10898_v33 = vpack.c.bf16 %v3817_v3, %v3816_v9  ;;  %v10913_v23 = vpop.f32.mrf.mxu3  ;;  %v10922_v55 = vpop.f32.mrf.mxu2 }
 0x2df   : > { %v5307_v9 = vsel %vm14236_vm15, %v3902_v1, 0.0 }
 0x2e0   : > { %14263 = vst [vmem:[#allocation22_spill] sm:$0xff] %v10898_v33  ;;  %v3754_v16 = vadd.f32 %v10501_v37, %v3718_v31  ;;  %8686 = vmatmul.msk.bf16.gmra.mxu1 %vm14268_vm4, %v10898_v33  ;;  %v4377_v45 = vsel %vm14269_vm2, %v4374_v49, %v4376_v34  ;;  %v3904_v20 = vsel %vm14270_vm14, %v3901_v43, %v3903_v56  ;;  %v10924_v31 = vpop.f32.mrf.mxu1  ;;  %vm14275_vm14 = vmmov %vm14268_vm4 }
 0x2e1   : > { %v10915_v26 = vpack.c.bf16 %v3904_v20, %v3979_v51  ;;  %v10917_v36 = vpack.c.bf16 %v3904_v20, %v4675_v0  ;;  %v10919_v50 = vpack.c.bf16 %v3904_v20, %v5307_v9  ;;  %14274 = vst [vmem:[#allocation78_spill] sm:$0xff] %v10924_v31  ;;  %v3433_v49 = vadd.f32 %v10746_v13, %v3147_v41  ;;  %vm14276_vm4 = vmmov %vm14269_vm2  ;;  %v14278_v9 = vld [vmem:[#allocation53_spill] sm:$0xff]  ;;  %v14280_v13 = vld [vmem:[#allocation19_spill] sm:$0xff] }
 0x2e2   : > { %v3786_v3 = vmul.f32 0.2, %v3754_v16  ;;  %vm14277_vm2 = vcmask 1040384   ;;  %vm14279_vm15 = vnez %v14278_v9  ;;  %v14327_v9 = vld [vmem:[#allocation34_spill] sm:$0xff] }
 0x2e3   : > { %14271 = vst [vmem:[#allocation69_spill] sm:$0xff] %v10915_v26  ;;  %v14287_v26 = vld [vmem:[#allocation61_spill] sm:$0xff] }
 0x2e4   : > { %14272 = vst [vmem:[#allocation77_spill] sm:$0xff] %v10917_v36  ;;  %v3818_v43 = vmax.f32 %v3754_v16, %v3786_v3  ;;  %8713 = vmatmul.msk.bf16.gmra.mxu3 %vm14275_vm14, %v10716_v46  ;;  %v3148_v16 = vadd.f32 %v10701_v2, %v14280_v13  ;;  %vm14288_vm14 = vnez %v14287_v26 }
 0x2e5   : > { %14273 = vst [vmem:[#allocation80_spill] sm:$0xff] %v10919_v50  ;;  %v3664_v47 = vpop.f32.mrf.mxu0 }
 0x2e6   : > { %v3905_v1 = vrot.slane %v3818_v43, 7  ;;  %v4378_v53 = vrot.slane %v3818_v43, 1  ;;  %v3719_v51 = vadd.f32 %v3664_v47, %v3433_v49  ;;  %v10932_v61 = vpop.f32.mrf.mxu3  ;;  %v3434_v47 = vadd.f32 %v10769_v40, %v3148_v16 }
 0x2e8   : > { %v3755_v0 = vadd.f32 %v10501_v37, %v3719_v51  ;;  %v4379_v20 = vsel %vm14276_vm4, %v4376_v34, %v4378_v53  ;;  %v3906_v59 = vsel %vm14277_vm2, %v3903_v56, %v3905_v1  ;;  %v10946_v56 = vpop.f32.mrf.mxu2  ;;  %vm14289_vm4 = vcmask 64512  }
 0x2e9   : > { %v4456_v10 = vsel %vm14279_vm15, %v4379_v20, 0.0  ;;  %v5752_v46 = vsel %vm13975_vm13, %v4379_v20, 0.0  ;;  %v5088_v34 = vsel %vm14259_vm1, %v4379_v20, 0.0  ;;  %v3981_v20 = vsel %vm14288_vm14, %v3906_v59, 0.0 }
 0x2ea   : > { %v3787_v41 = vmul.f32 0.2, %v3755_v0  ;;  %v10938_v3 = vpack.c.bf16 %v4456_v10, %v4377_v45  ;;  %v10942_v49 = vpack.c.bf16 %v5752_v46, %v4377_v45  ;;  %v10949_v62 = vpack.c.bf16 %v5088_v34, %v4377_v45  ;;  %v14285_v46 = vld [vmem:[#allocation25_spill] sm:$0xff] }
 0x2eb   : > { %v4677_v40 = vsel %vm14267_vm11, %v3906_v59, 0.0  ;;  %vm14290_vm2 = vcmask 1046528   ;;  %vm14291_vm13 = vcmask 1040384  }
 0x2ec   : > { %14281 = vst [vmem:[#allocation67_spill] sm:$0xff] %v10942_v49  ;;  %v3819_v51 = vmax.f32 %v3755_v0, %v3787_v41  ;;  %v14286_v49 = vld [vmem:[#allocation75_spill] sm:$0xff] }
 0x2ed   : > { %14282 = vst [vmem:[#allocation18_spill] sm:$0xff] %v10949_v62  ;;  %v3667_v50 = vpop.f32.mrf.mxu0  ;;  %v10951_v2 = vpop.f32.mrf.mxu1  ;;  %v2863_v36 = vadd.f32 %v14286_v49, %v14285_v46 }
 0x2ee   : > { %14283 = vst [vmem:[#allocation19_spill] sm:$0xff] %v10951_v2  ;;  %v3907_v10 = vrot.slane %v3819_v51, 7  ;;  %v4380_v13 = vrot.slane %v3819_v51, 1  ;;  %v3720_v31 = vadd.f32 %v3667_v50, %v3434_v47  ;;  %v10953_v17 = vpack.c.bf16 %v3819_v51, %v3818_v43  ;;  %v10968_v16 = vpop.f32.mrf.mxu3 }
 0x2ef   : > { %v5309_v43 = vsel %vm14254_vm9, %v3906_v59, 0.0 }
 0x2f0   : > { %14284 = vst [vmem:[#allocation92_spill] sm:$0xff] %v10953_v17  ;;  %v3756_v45 = vadd.f32 %v10501_v37, %v3720_v31  ;;  %8687 = vmatmul.msk.bf16.gmra.mxu1 %vm14289_vm4, %v10953_v17  ;;  %v4381_v0 = vsel %vm14290_vm2, %v4378_v53, %v4380_v13  ;;  %v3908_v50 = vsel %vm14291_vm13, %v3905_v1, %v3907_v10  ;;  %v10980_v1 = vpop.f32.mrf.mxu2  ;;  %vm14296_vm13 = vmmov %vm14289_vm4 }
 0x2f1   : > { %v10970_v41 = vpack.c.bf16 %v3908_v50, %v3981_v20  ;;  %v10972_v49 = vpack.c.bf16 %v3908_v50, %v4677_v40  ;;  %v10974_v34 = vpack.c.bf16 %v3908_v50, %v5309_v43  ;;  %v3149_v31 = vadd.f32 %v10736_v5, %v2863_v36  ;;  %vm14297_vm4 = vmmov %vm14290_vm2  ;;  %v14301_v43 = vld [vmem:[#allocation76_spill] sm:$0xff] }
 0x2f2   : > { %v3788_v47 = vmul.f32 0.2, %v3756_v45  ;;  %vm14298_vm2 = vcmask 1040384  }
 0x2f3   : > { %14292 = vst [vmem:[#allocation25_spill] sm:$0xff] %v10970_v41  ;;  %v3435_v51 = vadd.f32 %v10808_v30, %v3149_v31  ;;  %v14299_v30 = vld [vmem:[#allocation63_spill] sm:$0xff]  ;;  %v3150_v31 = vadd.f32 %v10778_v15, %v14301_v43  ;;  %v14307_v41 = vld [vmem:[#allocation26_spill] sm:$0xff] }
 0x2f4   : > { %14293 = vst [vmem:[#allocation75_spill] sm:$0xff] %v10972_v49  ;;  %v3820_v46 = vmax.f32 %v3756_v45, %v3788_v47  ;;  %8714 = vmatmul.msk.bf16.gmra.mxu3 %vm14296_vm13, %v10780_v44  ;;  %vm14300_vm9 = vnez %v14299_v30  ;;  %v14348_v30 = vld [vmem:[#allocation4_spill] sm:$0xff] }
 0x2f5   : > { %14294 = vst [vmem:[#allocation93_spill] sm:$0xff] %v10974_v34  ;;  %v3669_v53 = vpop.f32.mrf.mxu0  ;;  %v10978_v62 = vpop.f32.mrf.mxu1 }
 0x2f6   : > { %14295 = vst [vmem:[#allocation94_spill] sm:$0xff] %v10978_v62  ;;  %v3909_v59 = vrot.slane %v3820_v46, 7  ;;  %v4382_v12 = vrot.slane %v3820_v46, 1  ;;  %v3721_v20 = vadd.f32 %v3669_v53, %v3435_v51  ;;  %v10987_v36 = vpop.f32.mrf.mxu3 }
 0x2f8   : > { %v3757_v40 = vadd.f32 %v10501_v37, %v3721_v20  ;;  %v4383_v50 = vsel %vm14297_vm4, %v4380_v13, %v4382_v12  ;;  %v3910_v5 = vsel %vm14298_vm2, %v3907_v10, %v3909_v59  ;;  %v3436_v10 = vadd.f32 %v10825_v27, %v3150_v31 }
 0x2f9   : > { %v4458_v45 = vsel %vm14300_vm9, %v4383_v50, 0.0  ;;  %v5754_v44 = vsel %vm14259_vm1, %v4383_v50, 0.0  ;;  %v5090_v13 = vsel %vm14279_vm15, %v4383_v50, 0.0  ;;  %v4679_v27 = vsel %vm14288_vm14, %v3910_v5, 0.0 }
 0x2fa   : > { %v3789_v47 = vmul.f32 0.2, %v3757_v40  ;;  %v10993_v34 = vpack.c.bf16 %v4458_v45, %v4381_v0  ;;  %v10997_v51 = vpack.c.bf16 %v5754_v44, %v4381_v0  ;;  %v11002_v20 = vpack.c.bf16 %v5090_v13, %v4381_v0 }
 0x2fb   : > { %v2865_v44 = vadd.f32 %v14307_v41, %v14306_v25  ;;  %vm14310_vm4 = vcmask 64512   ;;  %vm14311_vm2 = vcmask 1046528   ;;  %vm14312_vm1 = vcmask 1040384  }
 0x2fc   : > { %14302 = vst [vmem:[#allocation76_spill] sm:$0xff] %v10997_v51  ;;  %v3821_v53 = vmax.f32 %v3757_v40, %v3789_v47  ;;  %v14308_v51 = vld [vmem:[#allocation70_spill] sm:$0xff]  ;;  %v11014_v40 = vpop.f32.mrf.mxu2  ;;  %v5311_v25 = vsel %vm14267_vm11, %v3910_v5, 0.0 }
 0x2fd   : > { %14303 = vst [vmem:[#allocation95_spill] sm:$0xff] %v11002_v20  ;;  %v3672_v62 = vpop.f32.mrf.mxu0  ;;  %v11004_v2 = vpop.f32.mrf.mxu1  ;;  %vm14309_vm13 = vnez %v14308_v51  ;;  %v3151_v13 = vadd.f32 %v10817_v48, %v2865_v44  ;;  %v14320_v44 = vld [vmem:[#allocation72_spill] sm:$0xff] }
 0x2fe   : > { %14304 = vst [vmem:[#allocation96_spill] sm:$0xff] %v11004_v2  ;;  %v3911_v15 = vrot.slane %v3821_v53, 7  ;;  %v4384_v43 = vrot.slane %v3821_v53, 1  ;;  %v3722_v45 = vadd.f32 %v3672_v62, %v3436_v10  ;;  %v11006_v49 = vpack.c.bf16 %v3821_v53, %v3820_v46  ;;  %v11023_v41 = vpop.f32.mrf.mxu3 }
 0x2ff   : > { %v3983_v17 = vsel %vm14309_vm13, %v3910_v5, 0.0  ;;  %v3437_v53 = vadd.f32 %v10862_v28, %v3151_v13  ;;  %vm14321_vm11 = vnez %v14320_v44  ;;  %v14365_v44 = vld [vmem:[#allocation3_spill] sm:$0xff] }
 0x300   : > { %14305 = vst [vmem:[#allocation97_spill] sm:$0xff] %v11006_v49  ;;  %v3758_v0 = vadd.f32 %v10501_v37, %v3722_v45  ;;  %8688 = vmatmul.msk.bf16.gmra.mxu1 %vm14310_vm4, %v11006_v49  ;;  %v4385_v62 = vsel %vm14311_vm2, %v4382_v12, %v4384_v43  ;;  %v3912_v46 = vsel %vm14312_vm1, %v3909_v59, %v3911_v15  ;;  %vm14317_vm1 = vmmov %vm14310_vm4 }
 0x301   : > { %v11025_v50 = vpack.c.bf16 %v3912_v46, %v3983_v17  ;;  %v11027_v31 = vpack.c.bf16 %v3912_v46, %v4679_v27  ;;  %v11029_v47 = vpack.c.bf16 %v3912_v46, %v5311_v25  ;;  %vm14318_vm4 = vmmov %vm14311_vm2  ;;  %vm14319_vm2 = vcmask 1040384  }
 0x302   : > { %v3790_v10 = vmul.f32 0.2, %v3758_v0 }
 0x303   : > { %14313 = vst [vmem:[#allocation83_spill] sm:$0xff] %v11025_v50  ;;  %v14328_v50 = vld [vmem:[#allocation84_spill] sm:$0xff] }
 0x304   : > { %14314 = vst [vmem:[#allocation26_spill] sm:$0xff] %v11027_v31  ;;  %v3822_v45 = vmax.f32 %v3758_v0, %v3790_v10  ;;  %8715 = vmatmul.msk.bf16.gmra.mxu3 %vm14317_vm1, %v10831_v60  ;;  %v14322_v0 = vld [vmem:[#allocation33_spill] sm:$0xff]  ;;  %v11046_v13 = vpop.f32.mrf.mxu2 }
 0x305   : > { %14315 = vst [vmem:[#allocation98_spill] sm:$0xff] %v11029_v47  ;;  %v3674_v12 = vpop.f32.mrf.mxu0  ;;  %v11033_v20 = vpop.f32.mrf.mxu1  ;;  %v3152_v25 = vadd.f32 %v10842_v38, %v14322_v0 }
 0x306   : > { %14316 = vst [vmem:[#allocation99_spill] sm:$0xff] %v11033_v20  ;;  %v3913_v59 = vrot.slane %v3822_v45, 7  ;;  %v4386_v58 = vrot.slane %v3822_v45, 1  ;;  %v3723_v17 = vadd.f32 %v3674_v12, %v3437_v53 }
 0x307   : > { %v11040_v48 = vpop.f32.mrf.mxu3 }
 0x308   : > { %v3759_v5 = vadd.f32 %v10501_v37, %v3723_v17  ;;  %v4387_v27 = vsel %vm14318_vm4, %v4384_v43, %v4386_v58  ;;  %v3914_v46 = vsel %vm14319_vm2, %v3911_v15, %v3913_v59  ;;  %v3438_v43 = vadd.f32 %v10879_v24, %v3152_v25 }
 0x309   : > { %v4460_v28 = vsel %vm14321_vm11, %v4387_v27, 0.0  ;;  %v5756_v60 = vsel %vm14279_vm15, %v4387_v27, 0.0  ;;  %v5092_v15 = vsel %vm14300_vm9, %v4387_v27, 0.0  ;;  %v4681_v24 = vsel %vm14309_vm13, %v3914_v46, 0.0 }
 0x30a   : > { %v3791_v10 = vmul.f32 0.2, %v3759_v5  ;;  %v11048_v47 = vpack.c.bf16 %v4460_v28, %v4385_v62  ;;  %v11052_v53 = vpack.c.bf16 %v5756_v60, %v4385_v62  ;;  %v11057_v17 = vpack.c.bf16 %v5092_v15, %v4385_v62 }
 0x30b   : > { %v2867_v60 = vadd.f32 %v14328_v50, %v14327_v9  ;;  %vm14331_vm4 = vcmask 64512   ;;  %vm14332_vm2 = vcmask 1046528   ;;  %vm14333_vm15 = vcmask 1040384  }
 0x30c   : > { %14323 = vst [vmem:[#allocation33_spill] sm:$0xff] %v11052_v53  ;;  %v3823_v12 = vmax.f32 %v3759_v5, %v3791_v10  ;;  %v14329_v53 = vld [vmem:[#allocation79_spill] sm:$0xff] }
 0x30d   : > { %14324 = vst [vmem:[#allocation100_spill] sm:$0xff] %v11057_v17  ;;  %v3677_v20 = vpop.f32.mrf.mxu0  ;;  %v11059_v38 = vpop.f32.mrf.mxu1  ;;  %vm14330_vm1 = vnez %v14329_v53  ;;  %v3153_v10 = vadd.f32 %v10874_v39, %v2867_v60 }
 0x30e   : > { %14325 = vst [vmem:[#allocation101_spill] sm:$0xff] %v11059_v38  ;;  %v3915_v0 = vrot.slane %v3823_v12, 7  ;;  %v4388_v2 = vrot.slane %v3823_v12, 1  ;;  %v3724_v28 = vadd.f32 %v3677_v20, %v3438_v43  ;;  %v11061_v31 = vpack.c.bf16 %v3823_v12, %v3822_v45  ;;  %v11085_v43 = vpop.f32.mrf.mxu2 }
 0x30f   : > { %v3985_v49 = vsel %vm14330_vm1, %v3914_v46, 0.0  ;;  %v5313_v45 = vsel %vm14288_vm14, %v3914_v46, 0.0  ;;  %v11076_v27 = vpop.f32.mrf.mxu3 }
 0x310   : > { %14326 = vst [vmem:[#allocation102_spill] sm:$0xff] %v11061_v31  ;;  %v3760_v62 = vadd.f32 %v10501_v37, %v3724_v28  ;;  %8689 = vmatmul.msk.bf16.gmra.mxu1 %vm14331_vm4, %v11061_v31  ;;  %v4389_v5 = vsel %vm14332_vm2, %v4386_v58, %v4388_v2  ;;  %v3916_v20 = vsel %vm14333_vm15, %v3913_v59, %v3915_v0  ;;  %vm14338_vm15 = vmmov %vm14331_vm4 }
 0x311   : > { %v11078_v9 = vpack.c.bf16 %v3916_v20, %v3985_v49  ;;  %v11080_v50 = vpack.c.bf16 %v3916_v20, %v4681_v24  ;;  %v11082_v25 = vpack.c.bf16 %v3916_v20, %v5313_v45  ;;  %v3439_v58 = vadd.f32 %v10913_v23, %v3153_v10  ;;  %vm14339_vm4 = vmmov %vm14332_vm2  ;;  %v14341_v45 = vld [vmem:[#allocation81_spill] sm:$0xff] }
 0x312   : > { %v3792_v15 = vmul.f32 0.2, %v3760_v62  ;;  %vm14340_vm2 = vcmask 1040384   ;;  %vm14342_vm14 = vnez %v14341_v45  ;;  %v14380_v45 = vld [vmem:[#allocation10_spill] sm:$0xff] }
 0x313   : > { %14334 = vst [vmem:[#allocation34_spill] sm:$0xff] %v11078_v9  ;;  %v14350_v9 = vld [vmem:[#allocation85_spill] sm:$0xff] }
 0x314   : > { %14335 = vst [vmem:[#allocation84_spill] sm:$0xff] %v11080_v50  ;;  %v3824_v12 = vmax.f32 %v3760_v62, %v3792_v15  ;;  %8716 = vmatmul.msk.bf16.gmra.mxu3 %vm14338_vm15, %v10887_v29  ;;  %v14343_v62 = vld [vmem:[#allocation51_spill] sm:$0xff]  ;;  %v14349_v50 = vld [vmem:[#allocation13_spill] sm:$0xff]  ;;  %vm14351_vm15 = vnez %v14350_v9 }
 0x315   : > { %14336 = vst [vmem:[#allocation103_spill] sm:$0xff] %v11082_v25  ;;  %v3679_v59 = vpop.f32.mrf.mxu0  ;;  %v11088_v28 = vpop.f32.mrf.mxu1  ;;  %v3154_v10 = vadd.f32 %v10922_v55, %v14343_v62 }
 0x316   : > { %14337 = vst [vmem:[#allocation104_spill] sm:$0xff] %v11088_v28  ;;  %v3917_v46 = vrot.slane %v3824_v12, 7  ;;  %v4390_v26 = vrot.slane %v3824_v12, 1  ;;  %v3725_v49 = vadd.f32 %v3679_v59, %v3439_v58 }
 0x317   : > { %v11095_v60 = vpop.f32.mrf.mxu3 }
 0x318   : > { %v3761_v24 = vadd.f32 %v10501_v37, %v3725_v49  ;;  %v4391_v20 = vsel %vm14339_vm4, %v4388_v2, %v4390_v26  ;;  %v3918_v39 = vsel %vm14340_vm2, %v3915_v0, %v3917_v46  ;;  %v3440_v0 = vadd.f32 %v10932_v61, %v3154_v10 }
 0x319   : > { %v4462_v23 = vsel %vm14342_vm14, %v4391_v20, 0.0  ;;  %v5758_v29 = vsel %vm14300_vm9, %v4391_v20, 0.0  ;;  %v5094_v2 = vsel %vm14321_vm11, %v4391_v20, 0.0  ;;  %v3987_v20 = vsel %vm14351_vm15, %v3918_v39, 0.0 }
 0x31a   : > { %v3793_v15 = vmul.f32 0.2, %v3761_v24  ;;  %v11101_v17 = vpack.c.bf16 %v4462_v23, %v4389_v5  ;;  %v11105_v58 = vpack.c.bf16 %v5758_v29, %v4389_v5  ;;  %v11110_v49 = vpack.c.bf16 %v5094_v2, %v4389_v5 }
 0x31b   : > { %v2869_v29 = vadd.f32 %v14349_v50, %v14348_v30  ;;  %v4683_v61 = vsel %vm14330_vm1, %v3918_v39, 0.0  ;;  %vm14352_vm4 = vcmask 64512   ;;  %vm14353_vm2 = vcmask 1046528  }
 0x31c   : > { %14344 = vst [vmem:[#allocation51_spill] sm:$0xff] %v11105_v58  ;;  %v3825_v59 = vmax.f32 %v3761_v24, %v3793_v15  ;;  %v11118_v58 = vpop.f32.mrf.mxu2  ;;  %vm14354_vm9 = vcmask 1040384   ;;  %v5315_v30 = vsel %vm14309_vm13, %v3918_v39, 0.0 }
 0x31d   : > { %14345 = vst [vmem:[#allocation105_spill] sm:$0xff] %v11110_v49  ;;  %v3682_v25 = vpop.f32.mrf.mxu0  ;;  %v11112_v28 = vpop.f32.mrf.mxu1 }
 0x31e   : > { %14346 = vst [vmem:[#allocation106_spill] sm:$0xff] %v11112_v28  ;;  %v3919_v55 = vrot.slane %v3825_v59, 7  ;;  %v4392_v62 = vrot.slane %v3825_v59, 1  ;;  %v3726_v23 = vadd.f32 %v3682_v25, %v3440_v0  ;;  %v11114_v38 = vpack.c.bf16 %v3825_v59, %v3824_v12 }
 0x31f   : > { %v11131_v50 = vpop.f32.mrf.mxu3 }
 0x320   : > { %14347 = vst [vmem:[#allocation107_spill] sm:$0xff] %v11114_v38  ;;  %v3762_v5 = vadd.f32 %v10501_v37, %v3726_v23  ;;  %8690 = vmatmul.msk.bf16.gmra.mxu1 %vm14352_vm4, %v11114_v38  ;;  %v4393_v25 = vsel %vm14353_vm2, %v4390_v26, %v4392_v62  ;;  %v3920_v12 = vsel %vm14354_vm9, %v3917_v46, %v3919_v55  ;;  %vm14359_vm9 = vmmov %vm14352_vm4  ;;  %v14367_v38 = vld [vmem:[#allocation17_spill] sm:$0xff] }
 0x321   : > { %v11133_v24 = vpack.c.bf16 %v3920_v12, %v3987_v20  ;;  %v11135_v10 = vpack.c.bf16 %v3920_v12, %v4683_v61  ;;  %v11137_v15 = vpack.c.bf16 %v3920_v12, %v5315_v30  ;;  %v3155_v37 = vadd.f32 %v10946_v56, %v2869_v29  ;;  %v11148_v20 = vld [vmem:[%s13348_s2] ss:$0 sm:$0xff]  ;;  %vm14360_vm4 = vmmov %vm14353_vm2  ;;  %v14362_v61 = vld [vmem:[#allocation9_spill] sm:$0xff] }
 0x322   : > { %v3794_v2 = vmul.f32 0.2, %v3762_v5  ;;  %vm14361_vm2 = vcmask 1040384  }
 0x323   : > { %14355 = vst [vmem:[#allocation4_spill] sm:$0xff] %v11133_v24  ;;  %v3441_v0 = vadd.f32 %v10968_v16, %v3155_v37 }
 0x324   : > { %14356 = vst [vmem:[#allocation13_spill] sm:$0xff] %v11135_v10  ;;  %v3826_v59 = vmax.f32 %v3762_v5, %v3794_v2  ;;  %8717 = vmatmul.msk.bf16.gmra.mxu3 %vm14359_vm9, %v10938_v3  ;;  %v3156_v5 = vadd.f32 %v10980_v1, %v14362_v61  ;;  %v11155_v12 = vpop.f32.mrf.mxu2  ;;  %v14366_v10 = vld [vmem:[#allocation43_spill] sm:$0xff]  ;;  %vm14368_vm9 = vnez %v14367_v38 }
 0x325   : > { %14357 = vst [vmem:[#allocation108_spill] sm:$0xff] %v11137_v15  ;;  %v3684_v26 = vpop.f32.mrf.mxu0  ;;  %v11141_v23 = vpop.f32.mrf.mxu1  ;;  %v2871_v24 = vadd.f32 %v14366_v10, %v14365_v44 }
 0x326   : > { %14358 = vst [vmem:[#allocation109_spill] sm:$0xff] %v11141_v23  ;;  %v3921_v46 = vrot.slane %v3826_v59, 7  ;;  %v4394_v51 = vrot.slane %v3826_v59, 1  ;;  %v3727_v39 = vadd.f32 %v3684_v26, %v3441_v0  ;;  %v3442_v1 = vadd.f32 %v10987_v36, %v3156_v5 }
 0x327   : > { %v4549_v30 = vpop.f32.mrf.mxu3 }
 0x328   : > { %v3763_v56 = vadd.f32 %v11148_v20, %v3727_v39  ;;  %v4395_v29 = vsel %vm14360_vm4, %v4392_v62, %v4394_v51  ;;  %v3922_v16 = vsel %vm14361_vm2, %v3919_v55, %v3921_v46  ;;  %vm14369_vm4 = vcmask 64512  }
 0x329   : > { %v4464_v3 = vsel %vm14053_vm12, %v4395_v29, 0.0  ;;  %v5760_v0 = vsel %vm14321_vm11, %v4395_v29, 0.0  ;;  %v5096_v62 = vsel %vm14342_vm14, %v4395_v29, 0.0  ;;  %v3989_v29 = vsel %vm14368_vm9, %v3922_v16, 0.0 }
 0x32a   : > { %v3795_v37 = vmul.f32 0.2, %v3763_v56  ;;  %v11159_v2 = vpack.c.bf16 %v4464_v3, %v4393_v25  ;;  %v11165_v26 = vpack.c.bf16 %v5760_v0, %v4393_v25  ;;  %v11167_v55 = vpack.c.bf16 %v5096_v62, %v4393_v25 }
 0x32b   : > { %v4685_v25 = vsel %vm14351_vm15, %v3922_v16, 0.0  ;;  %vm14370_vm2 = vcmask 1046528   ;;  %vm14371_vm11 = vcmask 1040384  }
 0x32c   : > { %14363 = vst [vmem:[#allocation9_spill] sm:$0xff] %v11165_v26  ;;  %v3827_v39 = vmax.f32 %v3763_v56, %v3795_v37  ;;  %v4262_v44 = vpop.f32.mrf.mxu2  ;;  %v14381_v26 = vld [vmem:[#allocation35_spill] sm:$0xff] }
 0x32d   : > { %14364 = vst [vmem:[#allocation110_spill] sm:$0xff] %v11167_v55  ;;  %v3687_v61 = vpop.f32.mrf.mxu0  ;;  %v11170_v49 = vpop.f32.mrf.mxu1 }
 0x32e   : > { %v3923_v15 = vrot.slane %v3827_v39, 7  ;;  %v4396_v23 = vrot.slane %v3827_v39, 1  ;;  %v3728_v3 = vadd.f32 %v3687_v61, %v3442_v1  ;;  %v11172_v28 = vpack.c.bf16 %v3827_v39, %v3826_v59 }
 0x32f   : > { %v5317_v59 = vsel %vm14330_vm1, %v3922_v16, 0.0  ;;  %v11187_v37 = vpop.f32.mrf.mxu3  ;;  %v3157_v1 = vadd.f32 %v11014_v40, %v2871_v24  ;;  %v4263_v61 = vadd.f32 %v4262_v44, %v10881_v22  ;;  %vm14376_vm1 = vcmask 1040384  }
 0x330   : > { %v3764_v36 = vadd.f32 %v11148_v20, %v3728_v3  ;;  %8691 = vmatmul.msk.bf16.gmra.mxu1 %vm14369_vm4, %v11172_v28  ;;  %v4397_v56 = vsel %vm14370_vm2, %v4394_v51, %v4396_v23  ;;  %v3924_v5 = vsel %vm14371_vm11, %v3921_v46, %v3923_v15  ;;  %vm14374_vm11 = vmmov %vm14369_vm4  ;;  %vm14375_vm4 = vcmask 1043456  }
 0x331   : > { %v11189_v10 = vpack.c.bf16 %v3924_v5, %v3989_v29  ;;  %v11191_v0 = vpack.c.bf16 %v3924_v5, %v4685_v25  ;;  %v11193_v62 = vpack.c.bf16 %v3924_v5, %v5317_v59  ;;  %v3443_v51 = vadd.f32 %v11023_v41, %v3157_v1  ;;  %v8759_v25 = vld [vmem:[%s13349_s3 + $0x14] sm:$0xf] }
 0x332   : > { %v3796_v39 = vmul.f32 0.2, %v3764_v36  ;;  %v11205_v40 = vadd.f32 %v4549_v30, %v4263_v61  ;;  %v5172_v22 = vsel %vm14375_vm4, %v8759_v25, 0  ;;  %v14377_v5 = vld [vmem:[#allocation36_spill] sm:$0xff]  ;;  %vm14384_vm4 = vmmov %vm14370_vm2 }
 0x333   : > { %14372 = vst [vmem:[#allocation3_spill] sm:$0xff] %v11193_v62  ;;  %5181 = vmatpush.bf16.msrb.mxu2 %v5172_v22  ;;  %v3158_v59 = vadd.f32 %v11046_v13, %v14377_v5  ;;  %v2873_v62 = vadd.f32 %v14381_v26, %v14380_v45 }
 0x334   : > { %v3828_v46 = vmax.f32 %v3764_v36, %v3796_v39  ;;  %8718 = vmatmul.msk.bf16.gmra.mxu3 %vm14374_vm11, %v10993_v34 }
 0x335   : > { %v3689_v3 = vpop.f32.mrf.mxu0  ;;  %v11198_v53 = vpop.f32.mrf.mxu1  ;;  %v3444_v13 = vadd.f32 %v11040_v48, %v3158_v59 }
 0x336   : > { %14373 = vst [vmem:[#allocation43_spill] sm:$0xff] %v11198_v53  ;;  %v3925_v16 = vrot.slane %v3828_v46, 7  ;;  %v4398_v55 = vrot.slane %v3828_v46, 1  ;;  %v3729_v29 = vadd.f32 %v3689_v3, %v3443_v51  ;;  %v14382_v53 = vld [vmem:[#allocation24_spill] sm:$0xff] }
 0x337   : > { %v11213_v34 = vpop.f32.mrf.mxu3 }
 0x338   : > { %v3765_v41 = vadd.f32 %v11148_v20, %v3729_v29  ;;  %v4399_v24 = vsel %vm14370_vm2, %v4396_v23, %v4398_v55  ;;  %v3926_v36 = vsel %vm14376_vm1, %v3923_v15, %v3925_v16  ;;  %vm14383_vm1 = vnez %v14382_v53 }
 0x339   : > { %v4466_v44 = vsel %vm14061_vm5, %v4399_v24, 0.0  ;;  %v5762_v39 = vsel %vm14342_vm14, %v4399_v24, 0.0  ;;  %v5098_v61 = vsel %vm14053_vm12, %v4399_v24, 0.0  ;;  %v3991_v24 = vsel %vm14383_vm1, %v3926_v36, 0.0 }
 0x33a   : > { %v3797_v1 = vmul.f32 0.2, %v3765_v41  ;;  %v11217_v30 = vpack.c.bf16 %v4466_v44, %v4397_v56  ;;  %v11223_v23 = vpack.c.bf16 %v5762_v39, %v4397_v56  ;;  %v11225_v15 = vpack.c.bf16 %v5098_v61, %v4397_v56 }
 0x33b   : > { %v4687_v56 = vsel %vm14368_vm9, %v3926_v36, 0.0  ;;  %vm14385_vm2 = vcmask 1040384   ;;  %v3159_v61 = vadd.f32 %v11085_v43, %v2873_v62  ;;  %v14388_v43 = vld [vmem:[#allocation59_spill] sm:$0xff] }
 0x33c   : > { %14378 = vst [vmem:[#allocation36_spill] sm:$0xff] %v11223_v23  ;;  %v3829_v51 = vmax.f32 %v3765_v41, %v3797_v1  ;;  %v3160_v62 = vadd.f32 %v11118_v58, %v14388_v43 }
 0x33d   : > { %14379 = vst [vmem:[#allocation111_spill] sm:$0xff] %v11225_v15  ;;  %v3692_v3 = vpop.f32.mrf.mxu0  ;;  %v11228_v29 = vpop.f32.mrf.mxu1 }
 0x33e   : > { %v3927_v25 = vrot.slane %v3829_v51, 7  ;;  %v4400_v22 = vrot.slane %v3829_v51, 1  ;;  %v3730_v5 = vadd.f32 %v3692_v3, %v3444_v13  ;;  %v11230_v44 = vpack.c.bf16 %v3829_v51, %v3828_v46 }
 0x33f   : > { %v5319_v46 = vsel %vm14351_vm15, %v3926_v36, 0.0  ;;  %v11245_v1 = vpop.f32.mrf.mxu3  ;;  %v3445_v51 = vadd.f32 %v11076_v27, %v3159_v61  ;;  %v3446_v58 = vadd.f32 %v11095_v60, %v3160_v62 }
 0x340   : > { %v3766_v48 = vadd.f32 %v11148_v20, %v3730_v5  ;;  %8692 = vmatmul.msk.bf16.gmra.mxu1 %vm14374_vm11, %v11230_v44  ;;  %v4401_v41 = vsel %vm14384_vm4, %v4398_v55, %v4400_v22  ;;  %v3928_v59 = vsel %vm14385_vm2, %v3925_v16, %v3927_v25 }
 0x341   : > { %v11247_v45 = vpack.c.bf16 %v3928_v59, %v3991_v24  ;;  %v11249_v26 = vpack.c.bf16 %v3928_v59, %v4687_v56  ;;  %v11251_v39 = vpack.c.bf16 %v3928_v59, %v5319_v46 }
 0x342   : > { %v3798_v13 = vmul.f32 0.2, %v3766_v48 }
 0x343   : > { %14386 = vst [vmem:[#allocation10_spill] sm:$0xff] %v11251_v39  ;;  %v2875_v39 = vadd.f32 %v10860_v57, %v14391_v54 }
 0x344   : > { %v3830_v3 = vmax.f32 %v3766_v48, %v3798_v13  ;;  %8719 = vmatmul.msk.bf16.gmra.mxu3 %vm14374_vm11, %v11048_v47 }
 0x345   : > { %v3694_v55 = vpop.f32.mrf.mxu0  ;;  %v11255_v5 = vpop.f32.mrf.mxu1 }
 0x346   : > { %14387 = vst [vmem:[#allocation35_spill] sm:$0xff] %v11255_v5  ;;  %v3929_v16 = vrot.slane %v3830_v3, 7  ;;  %v4402_v9 = vrot.slane %v3830_v3, 1  ;;  %v3731_v36 = vadd.f32 %v3694_v55, %v3445_v51  ;;  %v14392_v5 = vld [vmem:[#allocation32_spill] sm:$0xff] }
 0x347   : > { %v11264_v27 = vpop.f32.mrf.mxu3  ;;  %vm14393_vm11 = vnez %v14392_v5  ;;  %v14411_v5 = vld [vmem:[#allocation5_spill] sm:$0xff] }
 0x348   : > { %v3767_v24 = vadd.f32 %v11148_v20, %v3731_v36  ;;  %v4403_v56 = vsel %vm14384_vm4, %v4400_v22, %v4402_v9  ;;  %v3930_v59 = vsel %vm14385_vm2, %v3927_v25, %v3929_v16  ;;  %vm14394_vm4 = vcmask 64512  }
 0x349   : > { %v4468_v48 = vsel %vm14070_vm6, %v4403_v56, 0.0  ;;  %v5764_v47 = vsel %vm14053_vm12, %v4403_v56, 0.0  ;;  %v5100_v13 = vsel %vm14061_vm5, %v4403_v56, 0.0  ;;  %v3993_v56 = vsel %vm14393_vm11, %v3930_v59, 0.0 }
 0x34a   : > { %v3799_v46 = vmul.f32 0.2, %v3767_v24  ;;  %v11268_v61 = vpack.c.bf16 %v4468_v48, %v4401_v41  ;;  %v11274_v22 = vpack.c.bf16 %v5764_v47, %v4401_v41  ;;  %v11276_v25 = vpack.c.bf16 %v5100_v13, %v4401_v41 }
 0x34b   : > { %v4689_v41 = vsel %vm14383_vm1, %v3930_v59, 0.0  ;;  %vm14395_vm2 = vcmask 1046528   ;;  %vm14396_vm12 = vcmask 1040384   ;;  %v3161_v13 = vadd.f32 %v11155_v12, %v2875_v39  ;;  %v14400_v39 = vld [vmem:[#allocation58_spill] sm:$0xff] }
 0x34c   : > { %14389 = vst [vmem:[#allocation59_spill] sm:$0xff] %v11274_v22  ;;  %v3831_v51 = vmax.f32 %v3767_v24, %v3799_v46 }
 0x34d   : > { %14390 = vst [vmem:[#allocation112_spill] sm:$0xff] %v11276_v25  ;;  %v3697_v55 = vpop.f32.mrf.mxu0  ;;  %v11279_v36 = vpop.f32.mrf.mxu1  ;;  %v14454_v25 = vld [vmem:[#allocation71_spill] sm:$0xff] }
 0x34e   : > { %v3837_v43 = vrot.slane %v3831_v51, 7  ;;  %v4404_v15 = vrot.slane %v3831_v51, 1  ;;  %v3732_v48 = vadd.f32 %v3697_v55, %v3446_v58  ;;  %v11281_v23 = vpack.c.bf16 %v3831_v51, %v3830_v3 }
 0x34f   : > { %v5321_v3 = vsel %vm14368_vm9, %v3930_v59, 0.0  ;;  %v11296_v46 = vpop.f32.mrf.mxu3  ;;  %v3447_v51 = vadd.f32 %v11131_v50, %v3161_v13  ;;  %vm14401_vm9 = vnez %v14400_v39 }
 0x350   : > { %v3768_v60 = vadd.f32 %v11148_v20, %v3732_v48  ;;  %8693 = vmatmul.msk.bf16.gmra.mxu1 %vm14394_vm4, %v11281_v23  ;;  %v4405_v24 = vsel %vm14395_vm2, %v4402_v9, %v4404_v15  ;;  %v3931_v62 = vsel %vm14396_vm12, %v3929_v16, %v3837_v43  ;;  %vm14397_vm12 = vmmov %vm14394_vm4 }
 0x351   : > { %v11298_v54 = vpack.c.bf16 %v3931_v62, %v3993_v56  ;;  %v11300_v57 = vpack.c.bf16 %v3931_v62, %v4689_v41  ;;  %v11302_v47 = vpack.c.bf16 %v3931_v62, %v5321_v3  ;;  %vm14398_vm4 = vmmov %vm14395_vm2  ;;  %vm14399_vm2 = vcmask 1040384  }
 0x352   : > { %v3800_v58 = vmul.f32 0.2, %v3768_v60 }
 0x354   : > { %v3832_v55 = vmax.f32 %v3768_v60, %v3800_v58  ;;  %8720 = vmatmul.msk.bf16.gmra.mxu3 %vm14397_vm12, %v11101_v17 }
 0x355   : > { %v3699_v9 = vpop.f32.mrf.mxu0  ;;  %v11306_v48 = vpop.f32.mrf.mxu1 }
 0x356   : > { %v3838_v16 = vrot.slane %v3832_v55, 7  ;;  %v4342_v38 = vrot.slane %v3832_v55, 1  ;;  %v3733_v59 = vadd.f32 %v3699_v9, %v3447_v51 }
 0x357   : > { %v11313_v12 = vpop.f32.mrf.mxu3 }
 0x358   : > { %v3769_v56 = vadd.f32 %v11148_v20, %v3733_v59  ;;  %v4406_v41 = vsel %vm14398_vm4, %v4404_v15, %v4342_v38  ;;  %v3839_v62 = vsel %vm14399_vm2, %v3837_v43, %v3838_v16  ;;  %vm14407_vm4 = vmmov %vm14399_vm2 }
 0x359   : > { %v4470_v50 = vsel %vm14401_vm9, %v4406_v41, 0.0  ;;  %v5766_v60 = vsel %vm14061_vm5, %v4406_v41, 0.0  ;;  %v5102_v17 = vsel %vm14070_vm6, %v4406_v41, 0.0  ;;  %v4691_v18 = vsel %vm14393_vm11, %v3839_v62, 0.0 }
 0x35a   : > { %v3801_v3 = vmul.f32 0.2, %v3769_v56  ;;  %v4486_v13 = vpack.c.bf16 %v4470_v50, %v4405_v24  ;;  %v11319_v58 = vpack.c.bf16 %v5766_v60, %v4405_v24  ;;  %v11323_v20 = vpack.c.bf16 %v5102_v17, %v4405_v24  ;;  %v14404_v60 = vld [vmem:[#allocation2_spill] sm:$0xff] }
 0x35b   : > { %v5323_v50 = vsel %vm14383_vm1, %v3839_v62, 0.0  ;;  %vm14408_vm5 = vcmask 1046528   ;;  %vm14412_vm11 = vnez %v14411_v5  ;;  %v14463_v5 = vld [vmem:[#allocation69_spill] sm:$0xff] }
 0x35c   : > { %14402 = vst [vmem:[#allocation44_spill] sm:$0xff] %v11319_v58  ;;  %v3833_v15 = vmax.f32 %v3769_v56, %v3801_v3  ;;  %v14405_v58 = vld [vmem:[#allocation14_spill] sm:$0xff]  ;;  %vm14410_vm15 = vmmov %vm14408_vm5 }
 0x35d   : > { %14403 = vst [vmem:[#allocation113_spill] sm:$0xff] %v11323_v20  ;;  %v11325_v51 = vpop.f32.mrf.mxu1  ;;  %v14406_v41 = vrot.slane %v14405_v58, 7 }
 0x35e   : > { %v3840_v43 = vrot.slane %v3833_v15, 7  ;;  %v4343_v9 = vrot.slane %v3833_v15, 1  ;;  %v11327_v59 = vpack.c.bf16 %v3833_v15, %v3832_v55  ;;  %v14409_v55 = vrot.slane %v14405_v58, 1 }
 0x35f   : > { %v11343_v15 = vpop.f32.mrf.mxu3 }
 0x360   : > { %8743 = vmatmul.msk.bf16.vlgmr.msrb.gmra.mxu1 %vm14397_vm12, %v14404_v60  ;;  %v3962_v24 = vsel %vm14407_vm4, %v3840_v43, %v14406_v41  ;;  %v3841_v56 = vsel %vm14399_vm2, %v3838_v16, %v3840_v43  ;;  %v4344_v3 = vsel %vm14408_vm5, %v4342_v38, %v4343_v9  ;;  %v4438_v17 = vsel %vm14410_vm15, %v4343_v9, %v14409_v55  ;;  %v14414_v41 = vld [vmem:[#allocation49_spill] sm:$0xff]  ;;  %vm14417_vm5 = vmmov %vm14397_vm12 }
 0x361   : > { %v3965_v62 = vsel %vm14189_vm8, %v3962_v24, 0.0  ;;  %v4661_v60 = vsel %vm14412_vm11, %v3962_v24, 0.0  ;;  %v11349_v53 = vpack.c.bf16 %v3841_v56, %v4691_v18  ;;  %v11351_v20 = vpack.c.bf16 %v3841_v56, %v5323_v50  ;;  %vm14418_vm15 = vmmov %vm14417_vm5  ;;  %v14420_v56 = vld [vmem:[#allocation23_spill] sm:$0xff] }
 0x362   : > { %v3996_v16 = vpack.c.bf16 %v14414_v41, %v3965_v62  ;;  %v4693_v38 = vpack.c.bf16 %v14414_v41, %v4661_v60  ;;  %v5768_v58 = vsel %vm14070_vm6, %v4438_v17, 0.0  ;;  %v5104_v43 = vsel %vm14401_vm9, %v4438_v17, 0.0  ;;  %vm14419_vm12 = vmmov %vm14417_vm5  ;;  %v14424_v62 = vld [vmem:[#allocation29_spill] sm:$0xff] }
 0x363   : > { %14413 = vst [vmem:[#allocation2_spill] sm:$0xff] %v11351_v20  ;;  %v11359_v9 = vpack.c.bf16 %v5768_v58, %v4344_v3  ;;  %v11361_v55 = vpack.c.bf16 %v5104_v43, %v4344_v3  ;;  %vm14421_vm4 = vmmov %vm14417_vm5  ;;  %v14422_v3 = vld [vmem:[#allocation89_spill] sm:$0xff] }
 0x364   : > { %8694 = vmatmul.msk.bf16.gmra.mxu2 %vm14417_vm5, %v3996_v16  ;;  %8726 = vmatmul.msk.bf16.vlgmr.msrb.gmra.mxu0 %vm14418_vm15, %v4693_v38  ;;  %vm14423_vm2 = vmmov %vm14421_vm4  ;;  %v8776_v38 = vld [vmem:[%s13349_s3 + $0x18] sm:$0xf] }
 0x365   : > { %14415 = vst [vmem:[#allocation14_spill] sm:$0xff] %v11359_v9  ;;  %v11365_v18 = vpop.f32.mrf.mxu1  ;;  %8721 = vmatmul.msk.bf16.gmra.mxu3 %vm14419_vm12, %v11159_v2  ;;  %vm14425_vm5 = vmmov %vm14423_vm2 }
 0x366   : > { %14416 = vst [vmem:[#allocation49_spill] sm:$0xff] %v11361_v55  ;;  %vm14426_vm15 = vmmov %vm14423_vm2  ;;  %v8808_v55 = vld [vmem:[%s13349_s3 + $0x20] sm:$0xf] }
 0x367   : > { %v11369_v50 = vpop.f32.mrf.mxu3  ;;  %vm14427_vm12 = vmmov %vm14423_vm2 }
 0x368   : > { %vm14440_vm9 = vmmov %vm14423_vm2 }
 0x36d   : > { %v11371_v24 = vpop.f32.mrf.mxu1 }
 0x36f   : > { %v11375_v17 = vpop.f32.mrf.mxu3 }
 0x370   : > { %8744 = vmatmul.msk.bf16.gmra.mxu1 %vm14421_vm4, %v14420_v56  ;;  %vm14428_vm4 = vcmask 1043456  }
 0x371   : > { %v5394_v58 = vsel %vm14428_vm4, %v8776_v38, 0  ;;  %vm14434_vm4 = vmmov %vm14423_vm2 }
 0x372   : > { %5403 = vmatpush.bf16.msra.mxu3 %v5394_v58 }
 0x374   : > { %8695 = vmatmul.msk.bf16.gmra.mxu2 %vm14423_vm2, %v14422_v3  ;;  %8727 = vmatmul.msk.bf16.gmra.mxu0 %vm14425_vm5, %v14424_v62  ;;  %vm14430_vm5 = vmmov %vm14423_vm2 }
 0x375   : > { %v11381_v60 = vpop.f32.mrf.mxu1  ;;  %8722 = vmatmul.msk.bf16.gmra.mxu3 %vm14426_vm15, %v11217_v30  ;;  %v14429_v30 = vld [vmem:[#allocation91_spill] sm:$0xff]  ;;  %vm14431_vm15 = vmmov %vm14423_vm2 }
 0x377   : > { %v11385_v2 = vpop.f32.mrf.mxu3 }
 0x37d   : > { %v11387_v41 = vpop.f32.mrf.mxu1 }
 0x37f   : > { %v11391_v16 = vpop.f32.mrf.mxu3 }
 0x380   : > { %8745 = vmatmul.msk.bf16.gmra.mxu1 %vm14427_vm12, %v10624_v21  ;;  %vm14433_vm12 = vmmov %vm14423_vm2 }
 0x384   : > { %8696 = vmatmul.msk.bf16.gmra.mxu2 %vm14423_vm2, %v10640_v19  ;;  %8728 = vmatmul.msk.bf16.gmra.mxu0 %vm14430_vm5, %v14429_v30  ;;  %vm14436_vm5 = vmmov %vm14423_vm2  ;;  %v14442_v30 = vld [vmem:[#allocation57_spill] sm:$0xff] }
 0x385   : > { %v11401_v43 = vpop.f32.mrf.mxu1  ;;  %8723 = vmatmul.msk.bf16.gmra.mxu3 %vm14431_vm15, %v11268_v61  ;;  %vm14438_vm15 = vmmov %vm14423_vm2 }
 0x387   : > { %v11405_v3 = vpop.f32.mrf.mxu3 }
 0x38d   : > { %v11407_v62 = vpop.f32.mrf.mxu1 }
 0x38e   : > { %14432 = vst [vmem:[#allocation23_spill] sm:$0xff] %v11407_v62 }
 0x38f   : > { %v11411_v38 = vpop.f32.mrf.mxu3 }
 0x390   : > { %8746 = vmatmul.msk.bf16.gmra.mxu1 %vm14433_vm12, %v10676_v8  ;;  %vm14439_vm12 = vmmov %vm14423_vm2 }
 0x394   : > { %8697 = vmatmul.msk.bf16.gmra.mxu2 %vm14434_vm4, %v10692_v6  ;;  %8729 = vmatmul.msk.bf16.gmra.mxu0 %vm14423_vm2, %v10694_v32  ;;  %vm14443_vm4 = vmmov %vm14423_vm2 }
 0x395   : > { %v11417_v19 = vpop.f32.mrf.mxu1  ;;  %8724 = vmatmul.msk.bf16.gmra.mxu3 %vm14436_vm5, %v4486_v13  ;;  %vm14445_vm5 = vcmask 1043456  }
 0x396   : > { %14435 = vst [vmem:[#allocation89_spill] sm:$0xff] %v11417_v19 }
 0x397   : > { %v11420_v61 = vpop.f32.mrf.mxu3 }
 0x39d   : > { %v11422_v58 = vpop.f32.mrf.mxu1 }
 0x39e   : > { %14437 = vst [vmem:[#allocation29_spill] sm:$0xff] %v11422_v58  ;;  %v14478_v58 = vld [vmem:[#allocation31_spill] sm:$0xff] }
 0x39f   : > { %v11432_v32 = vpop.f32.mrf.mxu3 }
 0x3a0   : > { %8747 = vmatmul.msk.bf16.gmra.mxu1 %vm14438_vm15, %v10728_v63  ;;  %vm14447_vm15 = vmmov %vm14423_vm2 }
 0x3a4   : > { %8698 = vmatmul.msk.bf16.gmra.mxu2 %vm14439_vm12, %v10748_v4  ;;  %8730 = vmatmul.msk.bf16.gmra.mxu0 %vm14440_vm9, %v10750_v35  ;;  %v8792_v4 = vld [vmem:[%s13349_s3 + $0x1c] sm:$0xf]  ;;  %vm14446_vm9 = vmmov %vm14423_vm2 }
 0x3a5   : > { %v11430_v6 = vpop.f32.mrf.mxu1  ;;  %8777 = vmatmul.msk.bf16.vlgmr.msra.gmra.mxu3 %vm14443_vm4, %v14442_v30  ;;  %v5616_v35 = vsel %vm14445_vm5, %v8792_v4, 0  ;;  %vm14450_vm12 = vmmov %vm14423_vm2 }
 0x3a6   : > { %14441 = vst [vmem:[#allocation91_spill] sm:$0xff] %v11430_v6  ;;  %5625 = vmatpush.bf16.msra.mxu0 %v5616_v35  ;;  %vm14451_vm4 = vmmov %vm14445_vm5 }
 0x3a7   : > { %v11438_v39 = vpop.f32.mrf.mxu3  ;;  %v5838_v9 = vsel %vm14451_vm4, %v8808_v55, 0  ;;  %vm14455_vm5 = vmmov %vm14423_vm2 }
 0x3a8   : > { %5847 = vmatpush.bf16.msra.mxu1 %v5838_v9  ;;  %vm14464_vm4 = vmmov %vm14423_vm2 }
 0x3ad   : > { %v11436_v13 = vpop.f32.mrf.mxu1 }
 0x3ae   : > { %14444 = vst [vmem:[#allocation57_spill] sm:$0xff] %v11436_v13  ;;  %v14472_v13 = vld [vmem:[#allocation78_spill] sm:$0xff] }
 0x3af   : > { %v11458_v4 = vpop.f32.mrf.mxu3 }
 0x3b0   : > { %8748 = vmatmul.msk.bf16.gmra.mxu1 %vm14423_vm2, %v10792_v7 }
 0x3b4   : > { %8699 = vmatmul.msk.bf16.gmra.mxu2 %vm14446_vm9, %v10810_v11  ;;  %8731 = vmatmul.msk.bf16.gmra.mxu0 %vm14447_vm15, %v10812_v14  ;;  %v14453_v11 = vld [vmem:[#allocation60_spill] sm:$0xff]  ;;  %vm14457_vm9 = vmmov %vm14423_vm2 }
 0x3b5   : > { %v11450_v30 = vpop.f32.mrf.mxu1  ;;  %8778 = vmatmul.msk.bf16.gmra.mxu3 %vm14450_vm12, %v14449_v52  ;;  %v14456_v52 = vld [vmem:[#allocation87_spill] sm:$0xff]  ;;  %vm14460_vm15 = vmmov %vm14423_vm2 }
 0x3b6   : > { %14448 = vst [vmem:[#allocation114_spill] sm:$0xff] %v11450_v30  ;;  %vm14462_vm12 = vmmov %vm14423_vm2 }
 0x3b7   : > { %v11464_v14 = vpop.f32.mrf.mxu3 }
 0x3bd   : > { %v11460_v35 = vpop.f32.mrf.mxu1 }
 0x3be   : > { %14452 = vst [vmem:[#allocation39_spill] sm:$0xff] %v11460_v35  ;;  %v14465_v35 = vld [vmem:[#allocation77_spill] sm:$0xff] }
 0x3bf   : > { %v11476_v55 = vpop.f32.mrf.mxu3 }
 0x3c0   : > { %8749 = vmatmul.msk.bf16.gmra.mxu1 %vm14423_vm2, %v14453_v11  ;;  %v14469_v11 = vld [vmem:[#allocation92_spill] sm:$0xff] }
 0x3c4   : > { %8700 = vmatmul.msk.bf16.gmra.mxu2 %vm14455_vm5, %v14454_v25  ;;  %8732 = vmatmul.msk.bf16.gmra.mxu0 %vm14457_vm9, %v14456_v52  ;;  %v14467_v52 = vld [vmem:[#allocation56_spill] sm:$0xff]  ;;  %vm14468_vm5 = vmmov %vm14423_vm2 }
 0x3c5   : > { %v11470_v22 = vpop.f32.mrf.mxu1  ;;  %8779 = vmatmul.msk.bf16.gmra.mxu3 %vm14460_vm15, %v14459_v42  ;;  %vm14470_vm9 = vmmov %vm14423_vm2 }
 0x3c6   : > { %14458 = vst [vmem:[#allocation71_spill] sm:$0xff] %v11470_v22  ;;  %vm14474_vm15 = vmmov %vm14423_vm2 }
 0x3c7   : > { %v11488_v22 = vpop.f32.mrf.mxu3 }
 0x3cd   : > { %v11474_v9 = vpop.f32.mrf.mxu1 }
 0x3ce   : > { %14461 = vst [vmem:[#allocation87_spill] sm:$0xff] %v11474_v9  ;;  %v4264_v9 = vpop.f32.mrf.mxu2 }
 0x3cf   : > { %v4265_v7 = vadd.f32 %v4264_v9, %v14472_v13  ;;  %v14480_v13 = vld [vmem:[#allocation19_spill] sm:$0xff] }
 0x3d0   : > { %8750 = vmatmul.msk.bf16.gmra.mxu1 %vm14462_vm12, %v10898_v33  ;;  %v11492_v33 = vpop.f32.mrf.mxu3  ;;  %vm14476_vm12 = vmmov %vm14423_vm2 }
 0x3d1   : > { %14471 = vst [vmem:[#allocation69_spill] sm:$0xff] %v11492_v33  ;;  %v4630_v63 = vadd.f32 %v11187_v37, %v4265_v7  ;;  %v14483_v7 = vld [vmem:[#allocation83_spill] sm:$0xff] }
 0x3d4   : > { %8701 = vmatmul.msk.bf16.gmra.mxu2 %vm14464_vm4, %v14463_v5  ;;  %8733 = vmatmul.msk.bf16.gmra.mxu0 %vm14423_vm2, %v14465_v35  ;;  %v14473_v35 = vld [vmem:[#allocation25_spill] sm:$0xff]  ;;  %vm14479_vm4 = vmmov %vm14423_vm2 }
 0x3d5   : > { %v11484_v25 = vpop.f32.mrf.mxu1  ;;  %8780 = vmatmul.msk.bf16.gmra.mxu3 %vm14468_vm5, %v14467_v52  ;;  %vm14484_vm5 = vmmov %vm14423_vm2 }
 0x3d6   : > { %14466 = vst [vmem:[#allocation62_spill] sm:$0xff] %v11484_v25  ;;  %v14475_v25 = vld [vmem:[#allocation75_spill] sm:$0xff] }
 0x3dd   : > { %v4961_v42 = vpop.f32.mrf.mxu1 }
 0x3e0   : > { %8751 = vmatmul.msk.bf16.gmra.mxu1 %vm14470_vm9, %v14469_v11  ;;  %vm14486_vm9 = vmmov %vm14423_vm2 }
 0x3e1   : > { %v4771_v30 = vpop.f32.mrf.mxu0 }
 0x3e2   : > { %v4851_v5 = vadd.f32 %v4771_v30, %v11205_v40  ;;  %v11505_v40 = vpop.f32.mrf.mxu3 }
 0x3e4   : > { %8702 = vmatmul.msk.bf16.gmra.mxu2 %vm14474_vm15, %v14473_v35  ;;  %8734 = vmatmul.msk.bf16.gmra.mxu0 %vm14476_vm12, %v14475_v25  ;;  %v11500_v52 = vadd.f32 %v4961_v42, %v4851_v5  ;;  %v14481_v25 = vld [vmem:[#allocation97_spill] sm:$0xff]  ;;  %vm14489_vm15 = vmmov %vm14423_vm2 }
 0x3e5   : > { %v4963_v6 = vpop.f32.mrf.mxu1  ;;  %8781 = vmatmul.msk.bf16.gmra.mxu3 %vm14479_vm4, %v14478_v58  ;;  %vm14491_vm12 = vmmov %vm14423_vm2 }
 0x3e6   : > { %14477 = vst [vmem:[#allocation77_spill] sm:$0xff] %v11500_v52  ;;  %v14482_v52 = vld [vmem:[#allocation94_spill] sm:$0xff]  ;;  %vm14494_vm4 = vmmov %vm14423_vm2 }
 0x3e7   : > { %v4267_v11 = vpop.f32.mrf.mxu2 }
 0x3e8   : > { %v4268_v30 = vadd.f32 %v4267_v11, %v14480_v13 }
 0x3e9   : > { %v4773_v19 = vpop.f32.mrf.mxu0 }
 0x3ea   : > { %v4852_v62 = vadd.f32 %v4773_v19, %v4630_v63  ;;  %v4631_v42 = vadd.f32 %v11213_v34, %v4268_v30  ;;  %v14485_v63 = vld [vmem:[#allocation26_spill] sm:$0xff]  ;;  %v11520_v19 = vpop.f32.mrf.mxu3 }
 0x3ec   : > { %v11508_v9 = vadd.f32 %v4963_v6, %v4852_v62  ;;  %v14488_v6 = vld [vmem:[#allocation41_spill] sm:$0xff] }
 0x3ed   : > { %v4966_v35 = vpop.f32.mrf.mxu1 }
 0x3ef   : > { %v4269_v33 = vpop.f32.mrf.mxu2 }
 0x3f0   : > { %8752 = vmatmul.msk.bf16.gmra.mxu1 %vm14423_vm2, %v14481_v25  ;;  %v4270_v20 = vadd.f32 %v4269_v33, %v14482_v52  ;;  %v14490_v33 = vld [vmem:[#allocation96_spill] sm:$0xff] }
 0x3f1   : > { %v4776_v5 = vpop.f32.mrf.mxu0 }
 0x3f2   : > { %v4853_v58 = vadd.f32 %v4776_v5, %v4631_v42  ;;  %v4632_v34 = vadd.f32 %v11245_v1, %v4270_v20  ;;  %v14493_v1 = vld [vmem:[#allocation34_spill] sm:$0xff]  ;;  %v14495_v20 = vld [vmem:[#allocation84_spill] sm:$0xff] }
 0x3f4   : > { %8703 = vmatmul.msk.bf16.gmra.mxu2 %vm14484_vm5, %v14483_v7  ;;  %8735 = vmatmul.msk.bf16.gmra.mxu0 %vm14486_vm9, %v14485_v63  ;;  %v11518_v37 = vadd.f32 %v4966_v35, %v4853_v58  ;;  %v11528_v63 = vpop.f32.mrf.mxu3  ;;  %vm14498_vm5 = vmmov %vm14423_vm2 }
 0x3f5   : > { %v4968_v62 = vpop.f32.mrf.mxu1  ;;  %8782 = vmatmul.msk.bf16.gmra.mxu3 %vm14489_vm15, %v14488_v6  ;;  %vm14501_vm9 = vmmov %vm14423_vm2 }
 0x3f6   : > { %14487 = vst [vmem:[#allocation56_spill] sm:$0xff] %v11518_v37  ;;  %v14492_v37 = vld [vmem:[#allocation99_spill] sm:$0xff]  ;;  %vm14504_vm15 = vmmov %vm14423_vm2 }
 0x3f7   : > { %v4272_v11 = vpop.f32.mrf.mxu2 }
 0x3f8   : > { %v4273_v52 = vadd.f32 %v4272_v11, %v14490_v33 }
 0x3f9   : > { %v4778_v13 = vpop.f32.mrf.mxu0 }
 0x3fa   : > { %v4854_v30 = vadd.f32 %v4778_v13, %v4632_v34  ;;  %v4633_v35 = vadd.f32 %v11264_v27, %v4273_v52  ;;  %v14497_v34 = vld [vmem:[#allocation80_spill] sm:$0xff] }
 0x3fc   : > { %v11526_v42 = vadd.f32 %v4968_v62, %v4854_v30  ;;  %v11543_v33 = vpop.f32.mrf.mxu3 }
 0x3fd   : > { %v4971_v5 = vpop.f32.mrf.mxu1 }
 0x3ff   : > { %v4274_v7 = vpop.f32.mrf.mxu2 }
 0x400   : > { %8753 = vmatmul.msk.bf16.gmra.mxu1 %vm14491_vm12, %v11061_v31  ;;  %v4275_v25 = vadd.f32 %v4274_v7, %v14492_v37  ;;  %v14499_v37 = vld [vmem:[#allocation101_spill] sm:$0xff]  ;;  %v14503_v31 = vld [vmem:[#allocation4_spill] sm:$0xff]  ;;  %vm14506_vm12 = vmmov %vm14423_vm2 }
 0x401   : > { %v4781_v58 = vpop.f32.mrf.mxu0 }
 0x402   : > { %v4855_v6 = vadd.f32 %v4781_v58, %v4633_v35  ;;  %v4634_v30 = vadd.f32 %v11296_v46, %v4275_v25  ;;  %v14502_v46 = vld [vmem:[#allocation104_spill] sm:$0xff] }
 0x404   : > { %8704 = vmatmul.msk.bf16.gmra.mxu2 %vm14494_vm4, %v14493_v1  ;;  %8736 = vmatmul.msk.bf16.gmra.mxu0 %vm14423_vm2, %v14495_v20  ;;  %v11538_v62 = vadd.f32 %v4971_v5, %v4855_v6  ;;  %v14500_v20 = vld [vmem:[#allocation107_spill] sm:$0xff]  ;;  %vm14509_vm4 = vmmov %vm14423_vm2 }
 0x405   : > { %v4973_v11 = vpop.f32.mrf.mxu1  ;;  %8783 = vmatmul.msk.bf16.gmra.mxu3 %vm14498_vm5, %v14497_v34  ;;  %vm14512_vm5 = vmmov %vm14423_vm2 }
 0x406   : > { %14496 = vst [vmem:[#allocation78_spill] sm:$0xff] %v11538_v62  ;;  %v11551_v62 = vpop.f32.mrf.mxu3 }
 0x407   : > { %v4277_v13 = vpop.f32.mrf.mxu2 }
 0x408   : > { %v4278_v7 = vadd.f32 %v4277_v13, %v14499_v37 }
 0x409   : > { %v4783_v27 = vpop.f32.mrf.mxu0 }
 0x40a   : > { %v4856_v52 = vadd.f32 %v4783_v27, %v4634_v30  ;;  %v4635_v5 = vadd.f32 %v11313_v12, %v4278_v7  ;;  %v14505_v30 = vld [vmem:[#allocation13_spill] sm:$0xff] }
 0x40b   : > { %v14508_v27 = vld [vmem:[#allocation93_spill] sm:$0xff] }
 0x40c   : > { %v11546_v35 = vadd.f32 %v4973_v11, %v4856_v52 }
 0x40d   : > { %v4976_v58 = vpop.f32.mrf.mxu1 }
 0x40f   : > { %v4279_v1 = vpop.f32.mrf.mxu2 }
 0x410   : > { %8754 = vmatmul.msk.bf16.gmra.mxu1 %vm14501_vm9, %v14500_v20  ;;  %v4280_v25 = vadd.f32 %v4279_v1, %v14502_v46  ;;  %vm14513_vm9 = vmmov %vm14423_vm2 }
 0x411   : > { %v4786_v6 = vpop.f32.mrf.mxu0 }
 0x412   : > { %v4857_v34 = vadd.f32 %v4786_v6, %v4635_v5  ;;  %v4636_v12 = vadd.f32 %v11343_v15, %v4280_v25  ;;  %v14510_v5 = vld [vmem:[#allocation106_spill] sm:$0xff] }
 0x414   : > { %8705 = vmatmul.msk.bf16.gmra.mxu2 %vm14504_vm15, %v14503_v31  ;;  %8737 = vmatmul.msk.bf16.gmra.mxu0 %vm14506_vm12, %v14505_v30  ;;  %v11558_v11 = vadd.f32 %v4976_v58, %v4857_v34  ;;  %v11566_v31 = vpop.f32.mrf.mxu3  ;;  %vm14515_vm15 = vmmov %vm14423_vm2 }
 0x415   : > { %v4978_v13 = vpop.f32.mrf.mxu1  ;;  %8784 = vmatmul.msk.bf16.gmra.mxu3 %vm14509_vm4, %v14508_v27  ;;  %v14511_v27 = vld [vmem:[#allocation109_spill] sm:$0xff]  ;;  %vm14516_vm12 = vmmov %vm14423_vm2 }
 0x416   : > { %14507 = vst [vmem:[#allocation25_spill] sm:$0xff] %v11558_v11  ;;  %vm14518_vm4 = vmmov %vm14423_vm2 }
 0x417   : > { %v4282_v52 = vpop.f32.mrf.mxu2 }
 0x418   : > { %v4283_v6 = vadd.f32 %v4282_v52, %v14510_v5 }
 0x419   : > { %v4788_v37 = vpop.f32.mrf.mxu0 }
 0x41a   : > { %v4858_v7 = vadd.f32 %v4788_v37, %v4636_v12  ;;  %v4637_v58 = vadd.f32 %v11369_v50, %v4283_v6 }
 0x41c   : > { %v11564_v1 = vadd.f32 %v4978_v13, %v4858_v7  ;;  %v14514_v13 = vld [vmem:[#allocation98_spill] sm:$0xff]  ;;  %v11580_v12 = vpop.f32.mrf.mxu3 }
 0x41d   : > { %v4981_v46 = vpop.f32.mrf.mxu1 }
 0x41f   : > { %v4284_v20 = vpop.f32.mrf.mxu2 }
 0x420   : > { %8755 = vmatmul.msk.bf16.gmra.mxu1 %vm14423_vm2, %v11172_v28  ;;  %v4285_v11 = vadd.f32 %v4284_v20, %v14511_v27 }
 0x421   : > { %v4791_v34 = vpop.f32.mrf.mxu0 }
 0x422   : > { %v4859_v30 = vadd.f32 %v4791_v34, %v4637_v58  ;;  %v4638_v50 = vadd.f32 %v11375_v17, %v4285_v11  ;;  %v14519_v11 = vld [vmem:[#allocation103_spill] sm:$0xff] }
 0x424   : > { %8706 = vmatmul.msk.bf16.gmra.mxu2 %vm14512_vm5, %v11189_v10  ;;  %8738 = vmatmul.msk.bf16.gmra.mxu0 %vm14513_vm9, %v11191_v0  ;;  %v11576_v15 = vadd.f32 %v4981_v46, %v4859_v30  ;;  %v11589_v58 = vpop.f32.mrf.mxu3  ;;  %v14517_v30 = vld [vmem:[#allocation43_spill] sm:$0xff]  ;;  %vm14520_vm5 = vmmov %vm14423_vm2 }
 0x425   : > { %v4983_v25 = vpop.f32.mrf.mxu1  ;;  %8785 = vmatmul.msk.bf16.gmra.mxu3 %vm14515_vm15, %v14514_v13  ;;  %vm14521_vm9 = vmmov %vm14423_vm2 }
 0x426   : > { %vm14523_vm15 = vmmov %vm14423_vm2 }
 0x427   : > { %v4287_v52 = vpop.f32.mrf.mxu2 }
 0x428   : > { %v4288_v20 = vadd.f32 %v4287_v52, %v11170_v49 }
 0x429   : > { %v4793_v37 = vpop.f32.mrf.mxu0 }
 0x42a   : > { %v4860_v7 = vadd.f32 %v4793_v37, %v4638_v50  ;;  %v4639_v0 = vadd.f32 %v11385_v2, %v4288_v20  ;;  %v9019_v2 = vld [vmem:[%s13351_s5 + $0x8] sm:$0xff] }
 0x42b   : > { %6353 = vmatpush.bf16.msra.mxu2 %v9019_v2 }
 0x42c   : > { %v11584_v5 = vadd.f32 %v4983_v25, %v4860_v7 }
 0x42d   : > { %v4986_v10 = vpop.f32.mrf.mxu1 }
 0x42f   : > { %v4289_v6 = vpop.f32.mrf.mxu2 }
 0x430   : > { %8756 = vmatmul.msk.bf16.gmra.mxu1 %vm14516_vm12, %v11230_v44  ;;  %v4290_v27 = vadd.f32 %v4289_v6, %v14517_v30  ;;  %vm14524_vm12 = vmmov %vm14423_vm2 }
 0x431   : > { %v4796_v46 = vpop.f32.mrf.mxu0 }
 0x432   : > { %v4861_v34 = vadd.f32 %v4796_v46, %v4639_v0  ;;  %v4640_v13 = vadd.f32 %v11391_v16, %v4290_v27  ;;  %v14522_v46 = vld [vmem:[#allocation35_spill] sm:$0xff]  ;;  %v14525_v27 = vld [vmem:[#allocation108_spill] sm:$0xff] }
 0x434   : > { %8707 = vmatmul.msk.bf16.gmra.mxu2 %vm14518_vm4, %v11247_v45  ;;  %8739 = vmatmul.msk.bf16.gmra.mxu0 %vm14423_vm2, %v11249_v26  ;;  %v11596_v49 = vadd.f32 %v4986_v10, %v4861_v34  ;;  %v11604_v45 = vpop.f32.mrf.mxu3  ;;  %vm14526_vm4 = vmmov %vm14423_vm2 }
 0x435   : > { %v4988_v17 = vpop.f32.mrf.mxu1  ;;  %8786 = vmatmul.msk.bf16.gmra.mxu3 %vm14520_vm5, %v14519_v11  ;;  %vm14527_vm5 = vmmov %vm14423_vm2 }
 0x437   : > { %v4292_v25 = vpop.f32.mrf.mxu2 }
 0x438   : > { %v4293_v26 = vadd.f32 %v4292_v25, %v11228_v29 }
 0x439   : > { %v4798_v52 = vpop.f32.mrf.mxu0 }
 0x43a   : > { %v4862_v50 = vadd.f32 %v4798_v52, %v4640_v13  ;;  %v4641_v10 = vadd.f32 %v11405_v3, %v4293_v26 }
 0x43c   : > { %v11607_v37 = vadd.f32 %v4988_v17, %v4862_v50  ;;  %v11619_v30 = vpop.f32.mrf.mxu3 }
 0x43d   : > { %v4991_v7 = vpop.f32.mrf.mxu1 }
 0x43f   : > { %v4294_v20 = vpop.f32.mrf.mxu2 }
 0x440   : > { %8757 = vmatmul.msk.bf16.gmra.mxu1 %vm14521_vm9, %v11281_v23  ;;  %v4295_v16 = vadd.f32 %v4294_v20, %v14522_v46  ;;  %vm14529_vm9 = vmmov %vm14423_vm2 }
 0x441   : > { %v4801_v6 = vpop.f32.mrf.mxu0 }
 0x442   : > { %v4863_v0 = vadd.f32 %v4801_v6, %v4641_v10  ;;  %v4642_v3 = vadd.f32 %v11411_v38, %v4295_v16  ;;  %v14528_v38 = vld [vmem:[#allocation88_spill] sm:$0xff]  ;;  %v14530_v6 = vld [vmem:[#allocation3_spill] sm:$0xff] }
 0x444   : > { %8708 = vmatmul.msk.bf16.gmra.mxu2 %vm14523_vm15, %v11298_v54  ;;  %8740 = vmatmul.msk.bf16.gmra.mxu0 %vm14524_vm12, %v11300_v57  ;;  %v11617_v29 = vadd.f32 %v4991_v7, %v4863_v0  ;;  %v11627_v57 = vpop.f32.mrf.mxu3  ;;  %vm14531_vm15 = vmmov %vm14423_vm2 }
 0x445   : > { %v4993_v34 = vpop.f32.mrf.mxu1  ;;  %8787 = vmatmul.msk.bf16.gmra.mxu3 %vm14526_vm4, %v14525_v27  ;;  %vm14533_vm12 = vmmov %vm14423_vm2 }
 0x446   : > { %vm14535_vm4 = vmmov %vm14423_vm2 }
 0x447   : > { %v4297_v17 = vpop.f32.mrf.mxu2 }
 0x448   : > { %v4298_v25 = vadd.f32 %v4297_v17, %v11279_v36 }
 0x449   : > { %v4803_v11 = vpop.f32.mrf.mxu0 }
 0x44a   : > { %v4864_v2 = vadd.f32 %v4803_v11, %v4642_v3  ;;  %v4643_v50 = vadd.f32 %v11420_v61, %v4298_v25  ;;  %v14532_v3 = vld [vmem:[#allocation90_spill] sm:$0xff] }
 0x44c   : > { %v11625_v13 = vadd.f32 %v4993_v34, %v4864_v2  ;;  %v11642_v16 = vpop.f32.mrf.mxu3 }
 0x44d   : > { %v4996_v54 = vpop.f32.mrf.mxu1 }
 0x44f   : > { %v4299_v52 = vpop.f32.mrf.mxu2 }
 0x450   : > { %8758 = vmatmul.msk.bf16.gmra.mxu1 %vm14423_vm2, %v11327_v59  ;;  %v4300_v20 = vadd.f32 %v4299_v52, %v11306_v48  ;;  %v14534_v52 = vld [vmem:[#allocation30_spill] sm:$0xff] }
 0x451   : > { %v4806_v26 = vpop.f32.mrf.mxu0 }
 0x452   : > { %v4865_v7 = vadd.f32 %v4806_v26, %v4643_v50  ;;  %v4644_v46 = vadd.f32 %v11432_v32, %v4300_v20  ;;  %v14536_v26 = vld [vmem:[#allocation10_spill] sm:$0xff] }
 0x454   : > { %8741 = vmatmul.msk.bf16.gmra.mxu0 %vm14527_vm5, %v11349_v53  ;;  %8760 = vmatmul.msk.bf16.vlgmr.msrb.gmra.mxu2 %vm14529_vm9, %v14528_v38  ;;  %v11637_v36 = vadd.f32 %v4996_v54, %v4865_v7  ;;  %v11650_v54 = vpop.f32.mrf.mxu3  ;;  %vm14537_vm5 = vmmov %vm14423_vm2 }
 0x455   : > { %v4998_v10 = vpop.f32.mrf.mxu1  ;;  %8788 = vmatmul.msk.bf16.gmra.mxu3 %vm14531_vm15, %v14530_v6  ;;  %vm14539_vm9 = vmmov %vm14423_vm2 }
 0x456   : > { %vm14541_vm15 = vmmov %vm14423_vm2 }
 0x457   : > { %v4302_v0 = vpop.f32.mrf.mxu2 }
 0x458   : > { %v4303_v48 = vadd.f32 %v4302_v0, %v11325_v51 }
 0x459   : > { %v4808_v61 = vpop.f32.mrf.mxu0 }
 0x45a   : > { %v4866_v34 = vadd.f32 %v4808_v61, %v4644_v46  ;;  %v4645_v11 = vadd.f32 %v11438_v39, %v4303_v48 }
 0x45c   : > { %v11645_v27 = vadd.f32 %v4998_v10, %v4866_v34  ;;  %v11665_v0 = vpop.f32.mrf.mxu3 }
 0x45d   : > { %v5001_v53 = vpop.f32.mrf.mxu1 }
 0x45f   : > { %v4304_v17 = vpop.f32.mrf.mxu2 }
 0x460   : > { %8809 = vmatmul.msk.bf16.vlgmr.msra.gmra.mxu1 %vm14533_vm12, %v14532_v3  ;;  %v4305_v32 = vadd.f32 %v4304_v17, %v11365_v18  ;;  %vm14542_vm12 = vmmov %vm14423_vm2 }
 0x461   : > { %v4811_v2 = vpop.f32.mrf.mxu0 }
 0x462   : > { %v4867_v25 = vadd.f32 %v4811_v2, %v4645_v11  ;;  %v4646_v39 = vadd.f32 %v11458_v4, %v4305_v32  ;;  %v14540_v4 = vld [vmem:[#allocation40_spill] sm:$0xff] }
 0x464   : > { %8761 = vmatmul.msk.bf16.gmra.mxu2 %vm14535_vm4, %v14534_v52  ;;  %8793 = vmatmul.msk.bf16.vlgmr.msra.gmra.mxu0 %vm14423_vm2, %v14420_v56  ;;  %v11657_v51 = vadd.f32 %v5001_v53, %v4867_v25  ;;  %v14538_v56 = vld [vmem:[#allocation55_spill] sm:$0xff]  ;;  %vm14543_vm4 = vmmov %vm14423_vm2  ;;  %v11679_v11 = vpop.f32.mrf.mxu3 }
 0x465   : > { %v5003_v50 = vpop.f32.mrf.mxu1  ;;  %8789 = vmatmul.msk.bf16.gmra.mxu3 %vm14537_vm5, %v14536_v26  ;;  %vm14546_vm5 = vmmov %vm14423_vm2 }
 0x467   : > { %v4307_v7 = vpop.f32.mrf.mxu2 }
 0x468   : > { %v4308_v10 = vadd.f32 %v4307_v7, %v11371_v24 }
 0x469   : > { %v4813_v20 = vpop.f32.mrf.mxu0 }
 0x46a   : > { %v4868_v38 = vadd.f32 %v4813_v20, %v4646_v39  ;;  %v4647_v61 = vadd.f32 %v11464_v14, %v4308_v10  ;;  %v14548_v10 = vld [vmem:[#allocation2_spill] sm:$0xff] }
 0x46c   : > { %v11663_v18 = vadd.f32 %v5003_v50, %v4868_v38 }
 0x46d   : > { %v5006_v6 = vpop.f32.mrf.mxu1 }
 0x46f   : > { %v4309_v46 = vpop.f32.mrf.mxu2 }
 0x470   : > { %8810 = vmatmul.msk.bf16.gmra.mxu1 %vm14539_vm9, %v14538_v56  ;;  %v4310_v53 = vadd.f32 %v4309_v46, %v11381_v60  ;;  %vm14547_vm9 = vmmov %vm14423_vm2 }
 0x471   : > { %v4816_v34 = vpop.f32.mrf.mxu0 }
 0x472   : > { %v4869_v48 = vadd.f32 %v4816_v34, %v4647_v61  ;;  %v4648_v14 = vadd.f32 %v11476_v55, %v4310_v53  ;;  %v14545_v55 = vld [vmem:[#allocation48_spill] sm:$0xff] }
 0x474   : > { %8762 = vmatmul.msk.bf16.gmra.mxu2 %vm14541_vm15, %v14540_v4  ;;  %8794 = vmatmul.msk.bf16.gmra.mxu0 %vm14542_vm12, %v10624_v21  ;;  %v11675_v24 = vadd.f32 %v5006_v6, %v4869_v48  ;;  %v14544_v21 = vld [vmem:[#allocation47_spill] sm:$0xff]  ;;  %vm14549_vm15 = vmmov %vm14423_vm2 }
 0x475   : > { %v5008_v17 = vpop.f32.mrf.mxu1  ;;  %8790 = vmatmul.msk.bf16.gmra.mxu3 %vm14543_vm4, %v11302_v47  ;;  %v11688_v47 = vpop.f32.mrf.mxu3  ;;  %vm14553_vm12 = vmmov %vm14423_vm2 }
 0x476   : > { %vm14556_vm4 = vmmov %vm14423_vm2 }
 0x477   : > { %v4312_v3 = vpop.f32.mrf.mxu2 }
 0x478   : > { %v4313_v60 = vadd.f32 %v4312_v3, %v11387_v41 }
 0x479   : > { %v4818_v2 = vpop.f32.mrf.mxu0 }
 0x47a   : > { %v4870_v25 = vadd.f32 %v4818_v2, %v4648_v14  ;;  %v4649_v26 = vadd.f32 %v11488_v22, %v4313_v60  ;;  %v14550_v22 = vld [vmem:[#allocation69_spill] sm:$0xff] }
 0x47c   : > { %v11683_v32 = vadd.f32 %v5008_v17, %v4870_v25  ;;  %v14554_v25 = vld [vmem:[#allocation89_spill] sm:$0xff] }
 0x47d   : > { %v5011_v52 = vpop.f32.mrf.mxu1  ;;  %v11700_v34 = vpop.f32.mrf.mxu3 }
 0x47f   : > { %v4314_v50 = vpop.f32.mrf.mxu2 }
 0x480   : > { %8811 = vmatmul.msk.bf16.gmra.mxu1 %vm14423_vm2, %v14544_v21  ;;  %v4315_v20 = vadd.f32 %v4314_v50, %v11401_v43  ;;  %v14551_v43 = vld [vmem:[#allocation23_spill] sm:$0xff]  ;;  %v14557_v50 = vld [vmem:[#allocation54_spill] sm:$0xff] }
 0x481   : > { %v4821_v7 = vpop.f32.mrf.mxu0 }
 0x482   : > { %v4871_v39 = vadd.f32 %v4821_v7, %v4649_v26  ;;  %v4650_v46 = vadd.f32 %v14550_v22, %v4315_v20 }
 0x484   : > { %8763 = vmatmul.msk.bf16.gmra.mxu2 %vm14546_vm5, %v14545_v55  ;;  %8795 = vmatmul.msk.bf16.gmra.mxu0 %vm14547_vm9, %v10676_v8  ;;  %v11695_v41 = vadd.f32 %v5011_v52, %v4871_v39  ;;  %v14552_v8 = vld [vmem:[#allocation64_spill] sm:$0xff]  ;;  %v14555_v52 = vld [vmem:[#allocation66_spill] sm:$0xff]  ;;  %v14558_v39 = vmov 0.0|0.0   ;;  %vm14561_vm5 = vmmov %vm14423_vm2 }
 0x485   : > { %v5013_v38 = vpop.f32.mrf.mxu1  ;;  %8791 = vmatmul.msk.bf16.gmra.mxu3 %vm14549_vm15, %v14548_v10  ;;  %v11715_v7 = vpop.f32.mrf.mxu3  ;;  %v14559_v10 = vld [vmem:[#allocation29_spill] sm:$0xff]  ;;  %vm14564_vm9 = vmmov %vm14423_vm2 }
 0x486   : > { %vm14566_vm15 = vmmov %vm14423_vm2 }
 0x487   : > { %v4317_v6 = vpop.f32.mrf.mxu2 }
 0x488   : > { %v4318_v48 = vadd.f32 %v4317_v6, %v14551_v43 }
 0x489   : > { %v4823_v56 = vpop.f32.mrf.mxu0 }
 0x48a   : > { %v4872_v61 = vadd.f32 %v4823_v56, %v4650_v46  ;;  %v4651_v3 = vadd.f32 %v11505_v40, %v4318_v48 }
 0x48c   : > { %v11703_v53 = vadd.f32 %v5013_v38, %v4872_v61  ;;  %v14560_v61 = vld [vmem:[#allocation65_spill] sm:$0xff] }
 0x48d   : > { %v5016_v4 = vpop.f32.mrf.mxu1 }
 0x48f   : > { %v4319_v17 = vpop.f32.mrf.mxu2 }
 0x490   : > { %8812 = vmatmul.msk.bf16.gmra.mxu1 %vm14553_vm12, %v14552_v8  ;;  %v4320_v60 = vadd.f32 %v4319_v17, %v14554_v25  ;;  %v14562_v17 = vld [vmem:[#allocation91_spill] sm:$0xff]  ;;  %vm14570_vm12 = vmmov %vm14423_vm2 }
 0x491   : > { %v4826_v14 = vpop.f32.mrf.mxu0 }
 0x492   : > { %v4873_v2 = vadd.f32 %v4826_v14, %v4651_v3  ;;  %v4652_v40 = vadd.f32 %v11520_v19, %v4320_v60  ;;  %v14563_v3 = vld [vmem:[#allocation82_spill] sm:$0xff]  ;;  %v14565_v19 = vld [vmem:[#allocation73_spill] sm:$0xff] }
 0x494   : > { %8764 = vmatmul.msk.bf16.gmra.mxu2 %vm14556_vm4, %v14555_v52  ;;  %8796 = vmatmul.msk.bf16.gmra.mxu0 %vm14423_vm2, %v14557_v50  ;;  %v11713_v21 = vadd.f32 %v5016_v4, %v4873_v2  ;;  %vm14573_vm4 = vmmov %vm14423_vm2 }
 0x495   : > { %v5018_v26 = vpop.f32.mrf.mxu1  ;;  %5479 = vmatmul.bf16.gmra.mxu3 %v14558_v39 }
 0x497   : > { %v4322_v20 = vpop.f32.mrf.mxu2 }
 0x498   : > { %v4323_v6 = vadd.f32 %v4322_v20, %v14559_v10 }
 0x499   : > { %v4828_v55 = vpop.f32.mrf.mxu0 }
 0x49a   : > { %v4874_v38 = vadd.f32 %v4828_v55, %v4652_v40  ;;  %v4653_v43 = vadd.f32 %v11528_v63, %v4323_v6 }
 0x49c   : > { %v11720_v22 = vadd.f32 %v5018_v26, %v4874_v38  ;;  %v14567_v26 = vld [vmem:[#allocation57_spill] sm:$0xff]  ;;  %v14569_v38 = vld [vmem:[#allocation74_spill] sm:$0xff] }
 0x49d   : > { %v5021_v46 = vpop.f32.mrf.mxu1 }
 0x49f   : > { %v4324_v56 = vpop.f32.mrf.mxu2 }
 0x4a0   : > { %8813 = vmatmul.msk.bf16.gmra.mxu1 %vm14561_vm5, %v14560_v61  ;;  %v4325_v8 = vadd.f32 %v4324_v56, %v14562_v17  ;;  %v14571_v56 = vld [vmem:[#allocation114_spill] sm:$0xff]  ;;  %vm14579_vm5 = vmmov %vm14423_vm2 }
 0x4a1   : > { %v4831_v48 = vpop.f32.mrf.mxu0 }
 0x4a2   : > { %v4875_v4 = vadd.f32 %v4831_v48, %v4653_v43  ;;  %v4654_v60 = vadd.f32 %v11543_v33, %v4325_v8  ;;  %v14572_v43 = vld [vmem:[#allocation68_spill] sm:$0xff] }
 0x4a3   : > { %v14574_v33 = vld [vmem:[#allocation60_spill] sm:$0xff] }
 0x4a4   : > { %8765 = vmatmul.msk.bf16.gmra.mxu2 %vm14564_vm9, %v14563_v3  ;;  %8797 = vmatmul.msk.bf16.gmra.mxu0 %vm14566_vm15, %v14565_v19  ;;  %v11730_v14 = vadd.f32 %v5021_v46, %v4875_v4  ;;  %vm14582_vm9 = vmmov %vm14423_vm2 }
 0x4a5   : > { %v5023_v2 = vpop.f32.mrf.mxu1  ;;  %vm14584_vm15 = vmmov %vm14423_vm2 }
 0x4a7   : > { %v4327_v25 = vpop.f32.mrf.mxu2 }
 0x4a8   : > { %v4328_v63 = vadd.f32 %v4327_v25, %v14567_v26 }
 0x4a9   : > { %v4833_v52 = vpop.f32.mrf.mxu0 }
 0x4aa   : > { %v4876_v50 = vadd.f32 %v4833_v52, %v4654_v60  ;;  %v4655_v10 = vadd.f32 %v11551_v62, %v4328_v63 }
 0x4ac   : > { %v11734_v20 = vadd.f32 %v5023_v2, %v4876_v50  ;;  %v14576_v2 = vld [vmem:[#allocation39_spill] sm:$0xff] }
 0x4ad   : > { %v5026_v40 = vpop.f32.mrf.mxu1  ;;  %v14578_v50 = vld [vmem:[#allocation67_spill] sm:$0xff] }
 0x4ae   : > { %14568 = vst [vmem:[#allocation75_spill] sm:$0xff] %v11734_v20 }
 0x4af   : > { %v4329_v55 = vpop.f32.mrf.mxu2 }
 0x4b0   : > { %8814 = vmatmul.msk.bf16.gmra.mxu1 %vm14570_vm12, %v14569_v38  ;;  %v4330_v61 = vadd.f32 %v4329_v55, %v14571_v56  ;;  %v14580_v55 = vld [vmem:[#allocation71_spill] sm:$0xff]  ;;  %vm14589_vm12 = vmmov %vm14423_vm2 }
 0x4b1   : > { %v4836_v6 = vpop.f32.mrf.mxu0 }
 0x4b2   : > { %v4877_v46 = vadd.f32 %v4836_v6, %v4655_v10  ;;  %v4656_v8 = vadd.f32 %v11566_v31, %v4330_v61  ;;  %v14581_v10 = vld [vmem:[#allocation18_spill] sm:$0xff] }
 0x4b3   : > { %v14583_v31 = vld [vmem:[#allocation22_spill] sm:$0xff] }
 0x4b4   : > { %8766 = vmatmul.msk.bf16.gmra.mxu2 %vm14573_vm4, %v14572_v43  ;;  %8798 = vmatmul.msk.bf16.gmra.mxu0 %vm14423_vm2, %v14574_v33  ;;  %v11744_v48 = vadd.f32 %v5026_v40, %v4877_v46  ;;  %vm14592_vm4 = vmmov %vm14423_vm2 }
 0x4b5   : > { %v5028_v4 = vpop.f32.mrf.mxu1 }
 0x4b6   : > { %14575 = vst [vmem:[#allocation31_spill] sm:$0xff] %v11744_v48 }
 0x4b7   : > { %v4332_v17 = vpop.f32.mrf.mxu2 }
 0x4b8   : > { %v4333_v62 = vadd.f32 %v4332_v17, %v14576_v2 }
 0x4b9   : > { %v4838_v3 = vpop.f32.mrf.mxu0 }
 0x4ba   : > { %v4878_v19 = vadd.f32 %v4838_v3, %v4656_v8  ;;  %v4657_v26 = vadd.f32 %v11580_v12, %v4333_v62 }
 0x4bc   : > { %v11748_v25 = vadd.f32 %v5028_v4, %v4878_v19  ;;  %v14586_v4 = vld [vmem:[#allocation87_spill] sm:$0xff]  ;;  %v14588_v19 = vld [vmem:[#allocation76_spill] sm:$0xff] }
 0x4bd   : > { %v5031_v60 = vpop.f32.mrf.mxu1 }
 0x4be   : > { %14577 = vst [vmem:[#allocation19_spill] sm:$0xff] %v11748_v25 }
 0x4bf   : > { %v4334_v52 = vpop.f32.mrf.mxu2 }
 0x4c0   : > { %8815 = vmatmul.msk.bf16.gmra.mxu1 %vm14579_vm5, %v14578_v50  ;;  %v4335_v38 = vadd.f32 %v4334_v52, %v14580_v55  ;;  %v14590_v52 = vld [vmem:[#allocation62_spill] sm:$0xff]  ;;  %vm14598_vm5 = vmmov %vm14423_vm2 }
 0x4c1   : > { %v4841_v63 = vpop.f32.mrf.mxu0 }
 0x4c2   : > { %v4879_v40 = vadd.f32 %v4841_v63, %v4657_v26  ;;  %v4658_v61 = vadd.f32 %v11589_v58, %v4335_v38  ;;  %v14591_v26 = vld [vmem:[#allocation95_spill] sm:$0xff]  ;;  %v14593_v58 = vld [vmem:[#allocation92_spill] sm:$0xff]  ;;  %v14595_v38 = vld [vmem:[#allocation77_spill] sm:$0xff] }
 0x4c4   : > { %8767 = vmatmul.msk.bf16.gmra.mxu2 %vm14582_vm9, %v14581_v10  ;;  %8799 = vmatmul.msk.bf16.gmra.mxu0 %vm14584_vm15, %v14583_v31  ;;  %v11758_v6 = vadd.f32 %v5031_v60, %v4879_v40  ;;  %vm14600_vm9 = vmmov %vm14423_vm2 }
 0x4c5   : > { %v5033_v46 = vpop.f32.mrf.mxu1  ;;  %vm14602_vm15 = vmmov %vm14423_vm2 }
 0x4c6   : > { %14585 = vst [vmem:[#allocation94_spill] sm:$0xff] %v11758_v6 }
 0x4c7   : > { %v4337_v56 = vpop.f32.mrf.mxu2 }
 0x4c8   : > { %v4338_v12 = vadd.f32 %v4337_v56, %v14586_v4  ;;  %v14597_v4 = vld [vmem:[#allocation33_spill] sm:$0xff] }
 0x4c9   : > { %v4843_v43 = vpop.f32.mrf.mxu0 }
 0x4ca   : > { %v4880_v33 = vadd.f32 %v4843_v43, %v4658_v61  ;;  %v4659_v2 = vadd.f32 %v11604_v45, %v4338_v12 }
 0x4cc   : > { %v11762_v17 = vadd.f32 %v5033_v46, %v4880_v33 }
 0x4cd   : > { %v5036_v8 = vpop.f32.mrf.mxu1 }
 0x4ce   : > { %14587 = vst [vmem:[#allocation83_spill] sm:$0xff] %v11762_v17 }
 0x4cf   : > { %v4339_v3 = vpop.f32.mrf.mxu2 }
 0x4d0   : > { %8816 = vmatmul.msk.bf16.gmra.mxu1 %vm14589_vm12, %v14588_v19  ;;  %v4340_v50 = vadd.f32 %v4339_v3, %v14590_v52  ;;  %vm14606_vm12 = vmmov %vm14423_vm2 }
 0x4d1   : > { %v4846_v62 = vpop.f32.mrf.mxu0 }
 0x4d2   : > { %v4881_v60 = vadd.f32 %v4846_v62, %v4659_v2  ;;  %v4660_v31 = vadd.f32 %v11619_v30, %v4340_v50  ;;  %v11785_v30 = vld [vmem:[%s13350_s4] ss:$0 sm:$0xff]  ;;  %v14599_v2 = vld [vmem:[#allocation100_spill] sm:$0xff]  ;;  %v14601_v62 = vld [vmem:[#allocation97_spill] sm:$0xff] }
 0x4d3   : > { %v14603_v50 = vld [vmem:[#allocation56_spill] sm:$0xff] }
 0x4d4   : > { %8768 = vmatmul.msk.bf16.gmra.mxu2 %vm14592_vm4, %v14591_v26  ;;  %8800 = vmatmul.msk.bf16.gmra.mxu0 %vm14423_vm2, %v14593_v58  ;;  %v11772_v63 = vadd.f32 %v5036_v8, %v4881_v60  ;;  %v11791_v60 = vpop.f32.mrf.mxu3  ;;  %vm14608_vm4 = vmmov %vm14423_vm2 }
 0x4d5   : > { %v5038_v40 = vpop.f32.mrf.mxu1 }
 0x4d6   : > { %14594 = vst [vmem:[#allocation26_spill] sm:$0xff] %v11772_v63  ;;  %v14634_v63 = vld [vmem:[#allocation25_spill] sm:$0xff] }
 0x4d7   : > { %v5183_v55 = vpop.f32.mrf.mxu2 }
 0x4d8   : > { %v5263_v10 = vadd.f32 %v5183_v55, %v14595_v38 }
 0x4d9   : > { %v4848_v46 = vpop.f32.mrf.mxu0 }
 0x4da   : > { %v4882_v45 = vadd.f32 %v4848_v46, %v4660_v31  ;;  %v5485_v12 = vadd.f32 %v11627_v57, %v5263_v10 }
 0x4dc   : > { %v11776_v56 = vadd.f32 %v5038_v40, %v4882_v45 }
 0x4dd   : > { %v5849_v61 = vpop.f32.mrf.mxu1 }
 0x4de   : > { %14596 = vst [vmem:[#allocation41_spill] sm:$0xff] %v11776_v56  ;;  %v14623_v56 = vld [vmem:[#allocation110_spill] sm:$0xff] }
 0x4df   : > { %v5185_v43 = vpop.f32.mrf.mxu2 }
 0x4e0   : > { %v5264_v33 = vadd.f32 %v5185_v43, %v11508_v9  ;;  %8817 = vmatmul.msk.bf16.gmra.mxu1 %vm14598_vm5, %v14597_v4  ;;  %vm14610_vm5 = vcmask 1040384  }
 0x4e1   : > { %v5627_v8 = vpop.f32.mrf.mxu0 }
 0x4e2   : > { %v5707_v3 = vadd.f32 %v5627_v8, %v5485_v12  ;;  %v5486_v58 = vadd.f32 %v11642_v16, %v5264_v33  ;;  %v14605_v12 = vld [vmem:[#allocation51_spill] sm:$0xff] }
 0x4e4   : > { %v5929_v19 = vadd.f32 %v5849_v61, %v5707_v3  ;;  %8769 = vmatmul.msk.bf16.gmra.mxu2 %vm14600_vm9, %v14599_v2  ;;  %8801 = vmatmul.msk.bf16.gmra.mxu0 %vm14602_vm15, %v14601_v62  ;;  %v11803_v3 = vpop.f32.mrf.mxu3  ;;  %vm14613_vm9 = vcmask 1046528   ;;  %vm14614_vm15 = vmmov %vm14610_vm5 }
 0x4e5   : > { %v5851_v9 = vpop.f32.mrf.mxu1 }
 0x4e6   : > { %v5965_v57 = vadd.f32 %v11785_v30, %v5929_v19 }
 0x4e7   : > { %v5188_v52 = vpop.f32.mrf.mxu2 }
 0x4e8   : > { %v5265_v26 = vadd.f32 %v5188_v52, %v14603_v50  ;;  %v5997_v38 = vmul.f32 0.2, %v5965_v57  ;;  %v14607_v52 = vld [vmem:[#allocation105_spill] sm:$0xff] }
 0x4e9   : > { %v5629_v40 = vpop.f32.mrf.mxu0 }
 0x4ea   : > { %v5708_v55 = vadd.f32 %v5629_v40, %v5486_v58  ;;  %v11797_v61 = vmax.f32 %v5965_v57, %v5997_v38  ;;  %v5487_v8 = vadd.f32 %v11650_v54, %v5265_v26  ;;  %v14609_v57 = vld [vmem:[#allocation102_spill] sm:$0xff] }
 0x4ec   : > { %v5930_v10 = vadd.f32 %v5851_v9, %v5708_v55  ;;  %14604 = vst [vmem:[#allocation96_spill] sm:$0xff] %v11797_v61  ;;  %v13678_v2 = vrot.slane %v11797_v61, 7  ;;  %v14612_v55 = vld [vmem:[#allocation78_spill] sm:$0xff] }
 0x4ed   : > { %v5854_v31 = vpop.f32.mrf.mxu1 }
 0x4ee   : > { %v5966_v46 = vadd.f32 %v11785_v30, %v5930_v10 }
 0x4ef   : > { %v5190_v45 = vpop.f32.mrf.mxu2 }
 0x4f0   : > { %v5998_v43 = vmul.f32 0.2, %v5966_v46  ;;  %v5266_v4 = vadd.f32 %v5190_v45, %v11526_v42  ;;  %8818 = vmatmul.msk.bf16.gmra.mxu1 %vm14606_vm12, %v14605_v12  ;;  %vm14615_vm12 = vmmov %vm14613_vm9 }
 0x4f1   : > { %v5632_v16 = vpop.f32.mrf.mxu0 }
 0x4f2   : > { %v6030_v33 = vmax.f32 %v5966_v46, %v5998_v43  ;;  %v5709_v19 = vadd.f32 %v5632_v16, %v5487_v8  ;;  %v5488_v10 = vadd.f32 %v11665_v0, %v5266_v4  ;;  %v11821_v43 = vpop.f32.mrf.mxu3 }
 0x4f4   : > { %v6102_v62 = vrot.slane %v6030_v33, 7  ;;  %v5931_v9 = vadd.f32 %v5854_v31, %v5709_v19  ;;  %8770 = vmatmul.msk.bf16.gmra.mxu2 %vm14608_vm4, %v14607_v52  ;;  %8802 = vmatmul.msk.bf16.gmra.mxu0 %vm14423_vm2, %v14609_v57  ;;  %v11811_v42 = vpack.c.bf16 %v6030_v33, %v11797_v61  ;;  %v6584_v12 = vrot.slane %v6030_v33, 1  ;;  %v14616_v33 = vld [vmem:[#allocation8_spill] sm:$0xff] }
 0x4f5   : > { %v5856_v50 = vpop.f32.mrf.mxu1  ;;  %vm14617_vm4 = vnez %v14616_v33 }
 0x4f6   : > { %v5967_v54 = vadd.f32 %v11785_v30, %v5931_v9  ;;  %v11817_v26 = vsel %vm14610_vm5, %v13678_v2, %v6102_v62  ;;  %v13680_v9 = vrot.slane %v11797_v61, 1  ;;  %vm14621_vm5 = vcmask 64512  }
 0x4f7   : > { %14611 = vst [vmem:[#allocation99_spill] sm:$0xff] %v11817_v26  ;;  %v5193_v58 = vpop.f32.mrf.mxu2 }
 0x4f8   : > { %v5999_v40 = vmul.f32 0.2, %v5967_v54  ;;  %v5267_v38 = vadd.f32 %v5193_v58, %v14612_v55  ;;  %v6585_v4 = vsel %vm14615_vm12, %v13680_v9, %v6584_v12 }
 0x4f9   : > { %v5634_v31 = vpop.f32.mrf.mxu0 }
 0x4fa   : > { %v6031_v46 = vmax.f32 %v5967_v54, %v5999_v40  ;;  %v5710_v45 = vadd.f32 %v5634_v31, %v5488_v10  ;;  %v5489_v0 = vadd.f32 %v11679_v11, %v5267_v38 }
 0x4fc   : > { %v6104_v8 = vrot.slane %v6031_v46, 7  ;;  %v6586_v16 = vrot.slane %v6031_v46, 1  ;;  %v5932_v19 = vadd.f32 %v5856_v50, %v5710_v45  ;;  %v14618_v50 = vld [vmem:[#allocation7_spill] sm:$0xff]  ;;  %v14620_v45 = vld [vmem:[#allocation9_spill] sm:$0xff] }
 0x4fd   : > { %v5859_v52 = vpop.f32.mrf.mxu1  ;;  %vm14619_vm2 = vnez %v14618_v50 }
 0x4fe   : > { %v5968_v57 = vadd.f32 %v11785_v30, %v5932_v19  ;;  %v6587_v2 = vsel %vm14613_vm9, %v6584_v12, %v6586_v16  ;;  %v6105_v58 = vsel %vm14614_vm15, %v6102_v62, %v6104_v8  ;;  %vm14624_vm9 = vmmov %vm14621_vm5 }
 0x4ff   : > { %v5195_v55 = vpop.f32.mrf.mxu2  ;;  %v6678_v54 = vsel %vm14617_vm4, %v6587_v2, 0.0  ;;  %v7322_v40 = vsel %vm14619_vm2, %v6587_v2, 0.0  ;;  %v14625_v2 = vld [vmem:[#allocation107_spill] sm:$0xff]  ;;  %vm14626_vm15 = vmmov %vm14621_vm5 }
 0x500   : > { %v6000_v10 = vmul.f32 0.2, %v5968_v57  ;;  %v5268_v31 = vadd.f32 %v5195_v55, %v11546_v35  ;;  %8819 = vmatmul.msk.bf16.gmra.mxu1 %vm14621_vm5, %v14620_v45  ;;  %v11838_v62 = vpack.c.bf16 %v6678_v54, %v6585_v4  ;;  %v11840_v19 = vpack.c.bf16 %v7322_v40, %v6585_v4  ;;  %v11848_v55 = vpop.f32.mrf.mxu3 }
 0x501   : > { %v5637_v11 = vpop.f32.mrf.mxu0  ;;  %v6194_v4 = vsel %vm14183_vm10, %v6105_v58, 0.0  ;;  %vm14630_vm5 = vcmask 1040384  }
 0x502   : > { %14622 = vst [vmem:[#allocation34_spill] sm:$0xff] %v11840_v19  ;;  %v6032_v38 = vmax.f32 %v5968_v57, %v6000_v10  ;;  %v5711_v26 = vadd.f32 %v5637_v11, %v5489_v0  ;;  %v7547_v57 = vsel %vm14412_vm11, %v6105_v58, 0.0  ;;  %v6903_v10 = vsel %vm14189_vm8, %v6105_v58, 0.0 }
 0x503   : > { %v5490_v17 = vadd.f32 %v11688_v47, %v5268_v31 }
 0x504   : > { %v6106_v12 = vrot.slane %v6032_v38, 7  ;;  %v6588_v9 = vrot.slane %v6032_v38, 1  ;;  %v5933_v61 = vadd.f32 %v5859_v52, %v5711_v26  ;;  %8771 = vmatmul.msk.bf16.gmra.mxu2 %vm14624_vm9, %v14623_v56  ;;  %8803 = vmatmul.msk.bf16.gmra.mxu0 %vm14626_vm15, %v14625_v2  ;;  %v11846_v35 = vpack.c.bf16 %v6032_v38, %v6031_v46  ;;  %vm14635_vm9 = vmmov %vm14615_vm12 }
 0x505   : > { %v5861_v54 = vpop.f32.mrf.mxu1  ;;  %vm14636_vm15 = vmmov %vm14630_vm5 }
 0x506   : > { %14627 = vst [vmem:[#allocation84_spill] sm:$0xff] %v11846_v35  ;;  %v5969_v0 = vadd.f32 %v11785_v30, %v5933_v61  ;;  %v6589_v26 = vsel %vm14615_vm12, %v6586_v16, %v6588_v9  ;;  %v6107_v56 = vsel %vm14630_vm5, %v6104_v8, %v6106_v12  ;;  %vm14640_vm5 = vcmask 64512  }
 0x507   : > { %v5198_v46 = vpop.f32.mrf.mxu2  ;;  %v11859_v11 = vpack.c.bf16 %v6107_v56, %v6194_v4  ;;  %v11861_v38 = vpack.c.bf16 %v6107_v56, %v7547_v57  ;;  %v11863_v2 = vpack.c.bf16 %v6107_v56, %v6903_v10 }
 0x508   : > { %v6001_v19 = vmul.f32 0.2, %v5969_v0  ;;  %v5269_v40 = vadd.f32 %v5198_v46, %v14634_v63  ;;  %v11870_v56 = vpop.f32.mrf.mxu3  ;;  %v14637_v46 = vld [vmem:[#allocation12_spill] sm:$0xff] }
 0x509   : > { %14632 = vst [vmem:[#allocation80_spill] sm:$0xff] %v11861_v38  ;;  %v5639_v61 = vpop.f32.mrf.mxu0  ;;  %vm14638_vm12 = vnez %v14637_v46 }
 0x50a   : > { %14633 = vst [vmem:[#allocation101_spill] sm:$0xff] %v11863_v2  ;;  %v6033_v6 = vmax.f32 %v5969_v0, %v6001_v19  ;;  %v5712_v16 = vadd.f32 %v5639_v61, %v5490_v17  ;;  %v5491_v63 = vadd.f32 %v11700_v34, %v5269_v40  ;;  %v14643_v2 = vld [vmem:[#allocation111_spill] sm:$0xff] }
 0x50c   : > { %v6108_v25 = vrot.slane %v6033_v6, 7  ;;  %v6590_v8 = vrot.slane %v6033_v6, 1  ;;  %v5934_v48 = vadd.f32 %v5861_v54, %v5712_v16  ;;  %v14639_v54 = vld [vmem:[#allocation36_spill] sm:$0xff] }
 0x50d   : > { %v5864_v20 = vpop.f32.mrf.mxu1 }
 0x50e   : > { %v5970_v58 = vadd.f32 %v11785_v30, %v5934_v48  ;;  %v6591_v4 = vsel %vm14635_vm9, %v6588_v9, %v6590_v8  ;;  %v6109_v57 = vsel %vm14636_vm15, %v6106_v12, %v6108_v25  ;;  %vm14648_vm15 = vcmask 1046528  }
 0x50f   : > { %v5200_v10 = vpop.f32.mrf.mxu2  ;;  %v6680_v47 = vsel %vm14638_vm12, %v6591_v4, 0.0  ;;  %v8000_v17 = vsel %vm14619_vm2, %v6591_v4, 0.0  ;;  %v7324_v34 = vsel %vm14617_vm4, %v6591_v4, 0.0  ;;  %vm14644_vm2 = vmmov %vm14640_vm5 }
 0x510   : > { %v6002_v31 = vmul.f32 0.2, %v5970_v58  ;;  %v5270_v19 = vadd.f32 %v5200_v10, %v11564_v1  ;;  %8820 = vmatmul.msk.bf16.gmra.mxu1 %vm14640_vm5, %v14639_v54  ;;  %v11880_v48 = vpack.c.bf16 %v6680_v47, %v6589_v26  ;;  %v11882_v9 = vpack.c.bf16 %v8000_v17, %v6589_v26  ;;  %vm14645_vm9 = vmmov %vm14644_vm2 }
 0x511   : > { %v5642_v12 = vpop.f32.mrf.mxu0  ;;  %v11886_v61 = vpack.c.bf16 %v7324_v34, %v6589_v26  ;;  %v6196_v17 = vsel %vm14203_vm0, %v6109_v57, 0.0  ;;  %vm14649_vm5 = vcmask 1040384  }
 0x512   : > { %14641 = vst [vmem:[#allocation104_spill] sm:$0xff] %v11882_v9  ;;  %v6034_v40 = vmax.f32 %v5970_v58, %v6002_v31  ;;  %v5713_v0 = vadd.f32 %v5642_v12, %v5491_v63  ;;  %v6905_v58 = vsel %vm14183_vm10, %v6109_v57, 0.0  ;;  %v5492_v34 = vadd.f32 %v11715_v7, %v5270_v19 }
 0x513   : > { %14642 = vst [vmem:[#allocation4_spill] sm:$0xff] %v11886_v61 }
 0x514   : > { %v6110_v50 = vrot.slane %v6034_v40, 7  ;;  %v6592_v16 = vrot.slane %v6034_v40, 1  ;;  %v5935_v38 = vadd.f32 %v5864_v20, %v5713_v0  ;;  %8772 = vmatmul.msk.bf16.gmra.mxu2 %vm14644_vm2, %v14643_v2  ;;  %8804 = vmatmul.msk.bf16.gmra.mxu0 %vm14645_vm9, %v11172_v28  ;;  %v11892_v1 = vpack.c.bf16 %v6034_v40, %v6033_v6  ;;  %vm14652_vm2 = vmmov %vm14648_vm15 }
 0x515   : > { %v5866_v10 = vpop.f32.mrf.mxu1  ;;  %v7549_v2 = vsel %vm14189_vm8, %v6109_v57, 0.0  ;;  %vm14653_vm9 = vmmov %vm14649_vm5 }
 0x516   : > { %14646 = vst [vmem:[#allocation13_spill] sm:$0xff] %v11892_v1  ;;  %v5971_v26 = vadd.f32 %v11785_v30, %v5935_v38  ;;  %v6593_v4 = vsel %vm14648_vm15, %v6590_v8, %v6592_v16  ;;  %v6111_v20 = vsel %vm14649_vm5, %v6108_v25, %v6110_v50  ;;  %v11911_v38 = vpop.f32.mrf.mxu3  ;;  %vm14657_vm5 = vcmask 64512  }
 0x517   : > { %v5203_v63 = vpop.f32.mrf.mxu2  ;;  %v11903_v28 = vpack.c.bf16 %v6111_v20, %v6196_v17  ;;  %v11905_v6 = vpack.c.bf16 %v6111_v20, %v6905_v58  ;;  %v11907_v31 = vpack.c.bf16 %v6111_v20, %v7549_v2 }
 0x518   : > { %v6003_v54 = vmul.f32 0.2, %v5971_v26  ;;  %v5271_v12 = vadd.f32 %v5203_v63, %v11576_v15  ;;  %v14654_v63 = vld [vmem:[#allocation16_spill] sm:$0xff] }
 0x519   : > { %14650 = vst [vmem:[#allocation93_spill] sm:$0xff] %v11905_v6  ;;  %v5644_v8 = vpop.f32.mrf.mxu0  ;;  %vm14655_vm15 = vnez %v14654_v63 }
 0x51a   : > { %14651 = vst [vmem:[#allocation106_spill] sm:$0xff] %v11907_v31  ;;  %v6035_v40 = vmax.f32 %v5971_v26, %v6003_v54  ;;  %v5714_v25 = vadd.f32 %v5644_v8, %v5492_v34  ;;  %v5493_v15 = vadd.f32 %v11791_v60, %v5271_v12  ;;  %v14656_v54 = vld [vmem:[#allocation59_spill] sm:$0xff] }
 0x51c   : > { %v6112_v0 = vrot.slane %v6035_v40, 7  ;;  %v6594_v9 = vrot.slane %v6035_v40, 1  ;;  %v5936_v57 = vadd.f32 %v5866_v10, %v5714_v25 }
 0x51d   : > { %v5869_v61 = vpop.f32.mrf.mxu1 }
 0x51e   : > { %v5972_v17 = vadd.f32 %v11785_v30, %v5936_v57  ;;  %v6595_v58 = vsel %vm14652_vm2, %v6592_v16, %v6594_v9  ;;  %v6113_v20 = vsel %vm14653_vm9, %v6110_v50, %v6112_v0  ;;  %v11932_v57 = vpop.f32.mrf.mxu3  ;;  %vm14661_vm2 = vmmov %vm14657_vm5 }
 0x51f   : > { %v5205_v2 = vpop.f32.mrf.mxu2  ;;  %v6682_v7 = vsel %vm14655_vm15, %v6595_v58, 0.0  ;;  %v7326_v34 = vsel %vm14638_vm12, %v6595_v58, 0.0  ;;  %v8002_v60 = vsel %vm14617_vm4, %v6595_v58, 0.0  ;;  %vm14662_vm9 = vmmov %vm14661_vm2  ;;  %vm14664_vm4 = vcmask 1046528  }
 0x520   : > { %v6004_v19 = vmul.f32 0.2, %v5972_v17  ;;  %v5272_v26 = vadd.f32 %v5205_v2, %v11584_v5  ;;  %8821 = vmatmul.msk.bf16.gmra.mxu1 %vm14657_vm5, %v14656_v54  ;;  %v11922_v10 = vpack.c.bf16 %v6682_v7, %v6593_v4  ;;  %v11926_v8 = vpack.c.bf16 %v7326_v34, %v6593_v4  ;;  %v14660_v7 = vld [vmem:[#allocation112_spill] sm:$0xff] }
 0x521   : > { %v5647_v16 = vpop.f32.mrf.mxu0  ;;  %v11930_v25 = vpack.c.bf16 %v8002_v60, %v6593_v4  ;;  %v6907_v4 = vsel %vm14203_vm0, %v6113_v20, 0.0  ;;  %vm14665_vm5 = vcmask 1040384  }
 0x522   : > { %14658 = vst [vmem:[#allocation109_spill] sm:$0xff] %v11926_v8  ;;  %v6036_v50 = vmax.f32 %v5972_v17, %v6004_v19  ;;  %v5715_v12 = vadd.f32 %v5647_v16, %v5493_v15  ;;  %v6198_v17 = vsel %vm14212_vm7, %v6113_v20, 0.0  ;;  %v7551_v19 = vsel %vm14183_vm10, %v6113_v20, 0.0  ;;  %vm14667_vm10 = vmmov %vm14664_vm4 }
 0x523   : > { %14659 = vst [vmem:[#allocation98_spill] sm:$0xff] %v11930_v25 }
 0x524   : > { %v6114_v5 = vrot.slane %v6036_v50, 7  ;;  %v6596_v2 = vrot.slane %v6036_v50, 1  ;;  %v5937_v54 = vadd.f32 %v5869_v61, %v5715_v12  ;;  %8773 = vmatmul.msk.bf16.gmra.mxu2 %vm14661_vm2, %v14660_v7  ;;  %8805 = vmatmul.msk.bf16.gmra.mxu0 %vm14662_vm9, %v11230_v44  ;;  %v11938_v34 = vpack.c.bf16 %v6036_v50, %v6035_v40  ;;  %vm14668_vm2 = vmmov %vm14665_vm5 }
 0x525   : > { %v5871_v8 = vpop.f32.mrf.mxu1  ;;  %v5494_v7 = vadd.f32 %v11803_v3, %v5272_v26 }
 0x526   : > { %v5973_v58 = vadd.f32 %v11785_v30, %v5937_v54  ;;  %v6597_v15 = vsel %vm14664_vm4, %v6594_v9, %v6596_v2  ;;  %v6115_v61 = vsel %vm14665_vm5, %v6112_v0, %v6114_v5  ;;  %v11957_v45 = vpop.f32.mrf.mxu3  ;;  %vm14674_vm4 = vmmov %vm14662_vm9 }
 0x527   : > { %v5208_v16 = vpop.f32.mrf.mxu2  ;;  %v11949_v44 = vpack.c.bf16 %v6115_v61, %v6198_v17  ;;  %v11951_v40 = vpack.c.bf16 %v6115_v61, %v6907_v4  ;;  %v11953_v60 = vpack.c.bf16 %v6115_v61, %v7551_v19  ;;  %vm14675_vm5 = vmmov %vm14674_vm4 }
 0x528   : > { %v6005_v50 = vmul.f32 0.2, %v5973_v58  ;;  %v5273_v12 = vadd.f32 %v5208_v16, %v11596_v49 }
 0x529   : > { %14666 = vst [vmem:[#allocation43_spill] sm:$0xff] %v11953_v60  ;;  %v5649_v54 = vpop.f32.mrf.mxu0 }
 0x52a   : > { %v6037_v25 = vmax.f32 %v5973_v58, %v6005_v50  ;;  %v5716_v9 = vadd.f32 %v5649_v54, %v5494_v7  ;;  %v5495_v49 = vadd.f32 %v11821_v43, %v5273_v12  ;;  %v14670_v50 = vld [vmem:[#allocation44_spill] sm:$0xff] }
 0x52c   : > { %v6116_v31 = vrot.slane %v6037_v25, 7  ;;  %v6598_v0 = vrot.slane %v6037_v25, 1  ;;  %v5938_v6 = vadd.f32 %v5871_v8, %v5716_v9 }
 0x52d   : > { %v5874_v20 = vpop.f32.mrf.mxu1 }
 0x52e   : > { %v5974_v17 = vadd.f32 %v11785_v30, %v5938_v6  ;;  %v6599_v4 = vsel %vm14667_vm10, %v6596_v2, %v6598_v0  ;;  %v6117_v61 = vsel %vm14668_vm2, %v6114_v5, %v6116_v31  ;;  %v9018_v5 = vld [vmem:[%s13351_s5] sm:$0xff] }
 0x52f   : > { %v5210_v19 = vpop.f32.mrf.mxu2  ;;  %v6684_v3 = vsel %vm13947_vm3, %v6599_v4, 0.0  ;;  %v7328_v6 = vsel %vm14655_vm15, %v6599_v4, 0.0  ;;  %v8004_v12 = vsel %vm14638_vm12, %v6599_v4, 0.0  ;;  %6496 = vmatpush.bf16.msrb.mxu3 %v9018_v5  ;;  %vm14679_vm12 = vcmask 1046528  }
 0x530   : > { %v6006_v26 = vmul.f32 0.2, %v5974_v17  ;;  %v5274_v58 = vadd.f32 %v5210_v19, %v11607_v37  ;;  %8822 = vmatmul.msk.bf16.gmra.mxu1 %vm14662_vm9, %v14670_v50  ;;  %v11968_v8 = vpack.c.bf16 %v6684_v3, %v6597_v15  ;;  %v11975_v43 = vpack.c.bf16 %v7328_v6, %v6597_v15  ;;  %v14673_v50 = vld [vmem:[#allocation113_spill] sm:$0xff]  ;;  %vm14683_vm9 = vmmov %vm14668_vm2 }
 0x531   : > { %v5652_v2 = vpop.f32.mrf.mxu0  ;;  %v11979_v54 = vpack.c.bf16 %v8004_v12, %v6597_v15  ;;  %v6909_v15 = vsel %vm14212_vm7, %v6117_v61, 0.0 }
 0x532   : > { %14671 = vst [vmem:[#allocation103_spill] sm:$0xff] %v11975_v43  ;;  %v6038_v7 = vmax.f32 %v5974_v17, %v6006_v26  ;;  %v5717_v37 = vadd.f32 %v5652_v2, %v5495_v49  ;;  %v14677_v43 = vld [vmem:[#allocation27_spill] sm:$0xff]  ;;  %6497 = vmatmul.bf16.vlgmr.msrb.gmra.mxu3 %v14558_v39 }
 0x533   : > { %14672 = vst [vmem:[#allocation35_spill] sm:$0xff] %v11979_v54  ;;  %vm14678_vm10 = vnez %v14677_v43 }
 0x534   : > { %v6118_v9 = vrot.slane %v6038_v7, 7  ;;  %v6600_v19 = vrot.slane %v6038_v7, 1  ;;  %v5939_v3 = vadd.f32 %v5874_v20, %v5717_v37  ;;  %8774 = vmatmul.msk.bf16.gmra.mxu2 %vm14674_vm4, %v14673_v50  ;;  %8806 = vmatmul.msk.bf16.gmra.mxu0 %vm14675_vm5, %v11281_v23  ;;  %v11985_v60 = vpack.c.bf16 %v6038_v7, %v6037_v25  ;;  %v11997_v25 = vpop.f32.mrf.mxu3 }
 0x535   : > { %v5876_v6 = vpop.f32.mrf.mxu1  ;;  %v6200_v46 = vsel %vm14678_vm10, %v6117_v61, 0.0  ;;  %v7553_v23 = vsel %vm14203_vm0, %v6117_v61, 0.0  ;;  %v5496_v37 = vadd.f32 %v11848_v55, %v5274_v58  ;;  %vm14682_vm0 = vmmov %vm14679_vm12 }
 0x536   : > { %14676 = vst [vmem:[#allocation108_spill] sm:$0xff] %v11985_v60  ;;  %v5975_v17 = vadd.f32 %v11785_v30, %v5939_v3  ;;  %v6601_v20 = vsel %vm14679_vm12, %v6598_v0, %v6600_v19  ;;  %v6119_v4 = vsel %vm14668_vm2, %v6116_v31, %v6118_v9  ;;  %vm14690_vm12 = vmmov %vm14675_vm5 }
 0x537   : > { %v5213_v49 = vpop.f32.mrf.mxu2  ;;  %v11999_v26 = vpack.c.bf16 %v6119_v4, %v6200_v46  ;;  %v12001_v2 = vpack.c.bf16 %v6119_v4, %v6909_v15  ;;  %v12003_v5 = vpack.c.bf16 %v6119_v4, %v7553_v23  ;;  %v9022_v46 = vld [vmem:[%s13351_s5 + $0x20] sm:$0xff]  ;;  %v9020_v15 = vld [vmem:[%s13351_s5 + $0x10] sm:$0xff]  ;;  %vm14691_vm2 = vmmov %vm14675_vm5 }
 0x538   : > { %v6007_v12 = vmul.f32 0.2, %v5975_v17  ;;  %v5275_v7 = vadd.f32 %v5213_v49, %v11617_v29  ;;  %v9021_v29 = vld [vmem:[%s13351_s5 + $0x18] sm:$0xff]  ;;  %7207 = vmatpush.bf16.msrb.mxu2 %v9022_v46  ;;  %6787 = vmatpush.bf16.msrb.mxu0 %v9020_v15  ;;  %v14684_v49 = vld [vmem:[#allocation28_spill] sm:$0xff] }
 0x539   : > { %14680 = vst [vmem:[#allocation88_spill] sm:$0xff] %v12001_v2  ;;  %v5654_v0 = vpop.f32.mrf.mxu0  ;;  %7013 = vmatpush.bf16.msrb.mxu1 %v9021_v29  ;;  %vm14685_vm4 = vnez %v14684_v49 }
 0x53a   : > { %14681 = vst [vmem:[#allocation3_spill] sm:$0xff] %v12003_v5  ;;  %v6039_v3 = vmax.f32 %v5975_v17, %v6007_v12  ;;  %v5718_v31 = vadd.f32 %v5654_v0, %v5496_v37  ;;  %v5497_v23 = vadd.f32 %v11870_v56, %v5275_v7 }
 0x53c   : > { %v6120_v50 = vrot.slane %v6039_v3, 7  ;;  %v6602_v47 = vrot.slane %v6039_v3, 1  ;;  %v5940_v61 = vadd.f32 %v5876_v6, %v5718_v31  ;;  %v14686_v31 = vld [vmem:[#allocation14_spill] sm:$0xff]  ;;  %v12029_v46 = vpop.f32.mrf.mxu3 }
 0x53d   : > { %v5879_v4 = vpop.f32.mrf.mxu1 }
 0x53e   : > { %v5976_v55 = vadd.f32 %v11785_v30, %v5940_v61  ;;  %v6603_v58 = vsel %vm14682_vm0, %v6600_v19, %v6602_v47  ;;  %v6121_v6 = vsel %vm14683_vm9, %v6118_v9, %v6120_v50 }
 0x53f   : > { %v5215_v17 = vpop.f32.mrf.mxu2  ;;  %v6686_v12 = vsel %vm14685_vm4, %v6603_v58, 0.0  ;;  %v7330_v19 = vsel %vm13947_vm3, %v6603_v58, 0.0  ;;  %v8006_v56 = vsel %vm14655_vm15, %v6603_v58, 0.0  ;;  %vm14695_vm15 = vcmask 1046528  }
 0x540   : > { %v6008_v37 = vmul.f32 0.2, %v5976_v55  ;;  %v5276_v0 = vadd.f32 %v5215_v17, %v11625_v13  ;;  %8823 = vmatmul.msk.bf16.gmra.mxu1 %vm14675_vm5, %v14686_v31  ;;  %v12025_v61 = vpack.c.bf16 %v6686_v12, %v6601_v20  ;;  %v12031_v15 = vpack.c.bf16 %v7330_v19, %v6601_v20  ;;  %v14689_v12 = vld [vmem:[#allocation49_spill] sm:$0xff]  ;;  %vm14700_vm5 = vmmov %vm14683_vm9 }
 0x541   : > { %v5657_v9 = vpop.f32.mrf.mxu0  ;;  %v12035_v54 = vpack.c.bf16 %v8006_v56, %v6601_v20 }
 0x542   : > { %14687 = vst [vmem:[#allocation90_spill] sm:$0xff] %v12031_v15  ;;  %v6040_v7 = vmax.f32 %v5976_v55, %v6008_v37  ;;  %v5719_v29 = vadd.f32 %v5657_v9, %v5497_v23  ;;  %v14693_v15 = vld [vmem:[#allocation37_spill] sm:$0xff]  ;;  %v6911_v55 = vsel %vm14678_vm10, %v6121_v6, 0.0  ;;  %v7555_v23 = vsel %vm14212_vm7, %v6121_v6, 0.0  ;;  %vm14699_vm7 = vmmov %vm14695_vm15 }
 0x543   : > { %14688 = vst [vmem:[#allocation30_spill] sm:$0xff] %v12035_v54  ;;  %vm14694_vm0 = vnez %v14693_v15 }
 0x544   : > { %v6122_v13 = vrot.slane %v6040_v7, 7  ;;  %v6604_v17 = vrot.slane %v6040_v7, 1  ;;  %v5941_v31 = vadd.f32 %v5879_v4, %v5719_v29  ;;  %8775 = vmatmul.msk.bf16.gmra.mxu2 %vm14690_vm12, %v14689_v12  ;;  %8807 = vmatmul.msk.bf16.gmra.mxu0 %vm14691_vm2, %v11327_v59  ;;  %v12041_v5 = vpack.c.bf16 %v6040_v7, %v6039_v3  ;;  %v12060_v54 = vpop.f32.mrf.mxu3 }
 0x545   : > { %v5881_v19 = vpop.f32.mrf.mxu1  ;;  %v6202_v63 = vsel %vm14694_vm0, %v6121_v6, 0.0  ;;  %v5498_v29 = vadd.f32 %v11911_v38, %v5276_v0 }
 0x546   : > { %14692 = vst [vmem:[#allocation10_spill] sm:$0xff] %v12041_v5  ;;  %v5977_v20 = vadd.f32 %v11785_v30, %v5941_v31  ;;  %v6605_v58 = vsel %vm14695_vm15, %v6602_v47, %v6604_v17  ;;  %v6123_v4 = vsel %vm14683_vm9, %v6120_v50, %v6122_v13  ;;  %vm14709_vm15 = vmmov %vm14700_vm5 }
 0x547   : > { %v5218_v37 = vpop.f32.mrf.mxu2  ;;  %v12052_v59 = vpack.c.bf16 %v6123_v4, %v6202_v63  ;;  %v12054_v3 = vpack.c.bf16 %v6123_v4, %v6911_v55  ;;  %v12056_v9 = vpack.c.bf16 %v6123_v4, %v7555_v23  ;;  %vm14712_vm9 = vmmov %vm14700_vm5 }
 0x548   : > { %v6009_v56 = vmul.f32 0.2, %v5977_v20  ;;  %v5277_v7 = vadd.f32 %v5218_v37, %v11637_v36  ;;  %v14701_v37 = vld [vmem:[#allocation38_spill] sm:$0xff] }
 0x549   : > { %14696 = vst [vmem:[#allocation55_spill] sm:$0xff] %v12052_v59  ;;  %v5659_v31 = vpop.f32.mrf.mxu0  ;;  %vm14702_vm12 = vnez %v14701_v37  ;;  %v14729_v37 = vld [vmem:[#allocation61_spill] sm:$0xff] }
 0x54a   : > { %14697 = vst [vmem:[#allocation40_spill] sm:$0xff] %v12054_v3  ;;  %v6041_v12 = vmax.f32 %v5977_v20, %v6009_v56  ;;  %v5720_v47 = vadd.f32 %v5659_v31, %v5498_v29  ;;  %v5499_v36 = vadd.f32 %v11932_v57, %v5277_v7 }
 0x54b   : > { %14698 = vst [vmem:[#allocation47_spill] sm:$0xff] %v12056_v9 }
 0x54c   : > { %v6124_v50 = vrot.slane %v6041_v12, 7  ;;  %v6606_v33 = vrot.slane %v6041_v12, 1  ;;  %v5942_v6 = vadd.f32 %v5881_v19, %v5720_v47 }
 0x54d   : > { %v5884_v2 = vpop.f32.mrf.mxu1 }
 0x54e   : > { %v5978_v63 = vadd.f32 %v11785_v30, %v5942_v6  ;;  %v6607_v55 = vsel %vm14699_vm7, %v6604_v17, %v6606_v33  ;;  %v6125_v4 = vsel %vm14700_vm5, %v6122_v13, %v6124_v50  ;;  %vm6297_vm5 = vcmask 130048  }
 0x54f   : > { %v5220_v23 = vpop.f32.mrf.mxu2  ;;  %v6688_v38 = vsel %vm14702_vm12, %v6607_v55, 0.0  ;;  %v7332_v19 = vsel %vm14685_vm4, %v6607_v55, 0.0  ;;  %v8008_v13 = vsel %vm13947_vm3, %v6607_v55, 0.0  ;;  %vm14708_vm3 = vmmov %vm14699_vm7 }
 0x550   : > { %v6010_v0 = vmul.f32 0.2, %v5978_v63  ;;  %v5278_v20 = vadd.f32 %v5220_v23, %v11645_v27  ;;  %5923 = vmatmul.bf16.gmra.mxu1 %v14558_v39  ;;  %v12070_v56 = vpack.c.bf16 %v6688_v38, %v6605_v58  ;;  %v12074_v17 = vpack.c.bf16 %v7332_v19, %v6605_v58  ;;  %v12084_v38 = vpop.f32.mrf.mxu3 }
 0x551   : > { %v5662_v29 = vpop.f32.mrf.mxu0  ;;  %v12078_v31 = vpack.c.bf16 %v8008_v13, %v6605_v58 }
 0x552   : > { %14703 = vst [vmem:[#allocation48_spill] sm:$0xff] %v12074_v17  ;;  %v6042_v57 = vmax.f32 %v5978_v63, %v6010_v0  ;;  %v5721_v7 = vadd.f32 %v5662_v29, %v5499_v36  ;;  %v14706_v17 = vld [vmem:[#allocation45_spill] sm:$0xff]  ;;  %v6913_v63 = vsel %vm14694_vm0, %v6125_v4, 0.0  ;;  %v7557_v36 = vsel %vm14678_vm10, %v6125_v4, 0.0  ;;  %vm14711_vm10 = vmmov %vm14708_vm3 }
 0x553   : > { %14704 = vst [vmem:[#allocation2_spill] sm:$0xff] %v12078_v31  ;;  %vm14707_vm2 = vnez %v14706_v17  ;;  %v5500_v31 = vadd.f32 %v11957_v45, %v5278_v20 }
 0x554   : > { %v6126_v47 = vrot.slane %v6042_v57, 7  ;;  %v6608_v6 = vrot.slane %v6042_v57, 1  ;;  %v5943_v27 = vadd.f32 %v5884_v2, %v5721_v7  ;;  %5701 = vmatmul.bf16.gmra.mxu0 %v14558_v39  ;;  %6354 = vmatmul.bf16.vlgmr.msra.gmra.mxu2 %v14558_v39  ;;  %v12082_v23 = vpack.c.bf16 %v6042_v57, %v6041_v12 }
 0x555   : > { %v5886_v19 = vpop.f32.mrf.mxu1  ;;  %v6204_v16 = vsel %vm14707_vm2, %v6125_v4, 0.0 }
 0x556   : > { %14705 = vst [vmem:[#allocation69_spill] sm:$0xff] %v12082_v23  ;;  %v5979_v58 = vadd.f32 %v11785_v30, %v5943_v27  ;;  %v6609_v55 = vsel %vm14708_vm3, %v6606_v33, %v6608_v6  ;;  %v6127_v2 = vsel %vm14709_vm15, %v6124_v50, %v6126_v47  ;;  %vm14721_vm15 = vmmov %vm14712_vm9 }
 0x557   : > { %v5223_v12 = vpop.f32.mrf.mxu2  ;;  %v12095_v0 = vpack.c.bf16 %v6127_v2, %v6204_v16  ;;  %v12097_v29 = vpack.c.bf16 %v6127_v2, %v6913_v63  ;;  %v12099_v13 = vpack.c.bf16 %v6127_v2, %v7557_v36 }
 0x558   : > { %v6011_v57 = vmul.f32 0.2, %v5979_v58  ;;  %v5279_v7 = vadd.f32 %v5223_v12, %v11657_v51  ;;  %v12106_v2 = vpop.f32.mrf.mxu3  ;;  %v14713_v12 = vld [vmem:[#allocation46_spill] sm:$0xff] }
 0x559   : > { %14710 = vst [vmem:[#allocation23_spill] sm:$0xff] %v12099_v13  ;;  %v5664_v27 = vpop.f32.mrf.mxu0  ;;  %vm14714_vm7 = vnez %v14713_v12 }
 0x55a   : > { %v6043_v9 = vmax.f32 %v5979_v58, %v6011_v57  ;;  %v5722_v33 = vadd.f32 %v5664_v27, %v5500_v31  ;;  %v5501_v51 = vadd.f32 %v11997_v25, %v5279_v7 }
 0x55c   : > { %v6128_v3 = vrot.slane %v6043_v9, 7  ;;  %v6610_v50 = vrot.slane %v6043_v9, 1  ;;  %v5944_v59 = vadd.f32 %v5886_v19, %v5722_v33 }
 0x55d   : > { %v5889_v43 = vpop.f32.mrf.mxu1 }
 0x55e   : > { %v5980_v4 = vadd.f32 %v11785_v30, %v5944_v59  ;;  %v6611_v16 = vsel %vm14711_vm10, %v6608_v6, %v6610_v50  ;;  %v6129_v63 = vsel %vm14712_vm9, %v6126_v47, %v6128_v3 }
 0x55f   : > { %v5225_v36 = vpop.f32.mrf.mxu2  ;;  %v6690_v45 = vsel %vm14714_vm7, %v6611_v16, 0.0  ;;  %v7334_v59 = vsel %vm14702_vm12, %v6611_v16, 0.0  ;;  %v8010_v47 = vsel %vm14685_vm4, %v6611_v16, 0.0  ;;  %v6915_v49 = vsel %vm14707_vm2, %v6129_v63, 0.0  ;;  %vm14720_vm4 = vmmov %vm14711_vm10 }
 0x560   : > { %v6012_v20 = vmul.f32 0.2, %v5980_v4  ;;  %v5280_v31 = vadd.f32 %v5225_v36, %v11663_v18  ;;  %v12112_v58 = vpack.c.bf16 %v6690_v45, %v6609_v55  ;;  %v12116_v6 = vpack.c.bf16 %v7334_v59, %v6609_v55  ;;  %v14718_v45 = vld [vmem:[#allocation52_spill] sm:$0xff]  ;;  %vm14724_vm10 = vmmov %vm14712_vm9 }
 0x561   : > { %v5667_v19 = vpop.f32.mrf.mxu0  ;;  %v12120_v7 = vpack.c.bf16 %v8010_v47, %v6609_v55  ;;  %vm14719_vm3 = vnez %v14718_v45  ;;  %v7559_v16 = vsel %vm14694_vm0, %v6129_v63, 0.0  ;;  %vm14723_vm0 = vmmov %vm14720_vm4 }
 0x562   : > { %14715 = vst [vmem:[#allocation64_spill] sm:$0xff] %v12116_v6  ;;  %v6044_v57 = vmax.f32 %v5980_v4, %v6012_v20  ;;  %v5723_v25 = vadd.f32 %v5667_v19, %v5501_v51  ;;  %v6206_v59 = vsel %vm14719_vm3, %v6129_v63, 0.0 }
 0x563   : > { %14716 = vst [vmem:[#allocation89_spill] sm:$0xff] %v12120_v7 }
 0x564   : > { %v6130_v27 = vrot.slane %v6044_v57, 7  ;;  %v6612_v33 = vrot.slane %v6044_v57, 1  ;;  %v5945_v13 = vadd.f32 %v5889_v43, %v5723_v25  ;;  %8830 = vmatmul.msk.bf16.gmra.mxu2 %vm6297_vm5, %v11811_v42  ;;  %6788 = vmatmul.bf16.vlgmr.msrb.gmra.mxu0 %v14558_v39  ;;  %v12125_v18 = vpack.c.bf16 %v6044_v57, %v6043_v9 }
 0x565   : > { %v5891_v36 = vpop.f32.mrf.mxu1  ;;  %v5502_v25 = vadd.f32 %v12029_v46, %v5280_v31 }
 0x566   : > { %14717 = vst [vmem:[#allocation66_spill] sm:$0xff] %v12125_v18  ;;  %v5981_v55 = vadd.f32 %v11785_v30, %v5945_v13  ;;  %v6613_v4 = vsel %vm14720_vm4, %v6610_v50, %v6612_v33  ;;  %v6131_v43 = vsel %vm14721_vm15, %v6128_v3, %v6130_v27  ;;  %v12144_v13 = vpop.f32.mrf.mxu3  ;;  %vm14731_vm4 = vmmov %vm14723_vm0 }
 0x567   : > { %v5228_v51 = vpop.f32.mrf.mxu2  ;;  %v12136_v20 = vpack.c.bf16 %v6131_v43, %v6206_v59  ;;  %v12138_v9 = vpack.c.bf16 %v6131_v43, %v6915_v49  ;;  %v12140_v19 = vpack.c.bf16 %v6131_v43, %v7559_v16  ;;  %vm14732_vm15 = vmmov %vm14724_vm10 }
 0x568   : > { %v6013_v47 = vmul.f32 0.2, %v5981_v55  ;;  %v5281_v57 = vadd.f32 %v5228_v51, %v11675_v24  ;;  %v14725_v51 = vld [vmem:[#allocation53_spill] sm:$0xff] }
 0x569   : > { %14722 = vst [vmem:[#allocation54_spill] sm:$0xff] %v12140_v19  ;;  %v5669_v50 = vpop.f32.mrf.mxu0  ;;  %vm14726_vm9 = vnez %v14725_v51 }
 0x56a   : > { %v6045_v7 = vmax.f32 %v5981_v55, %v6013_v47  ;;  %v5724_v3 = vadd.f32 %v5669_v50, %v5502_v25  ;;  %v5503_v24 = vadd.f32 %v12060_v54, %v5281_v57 }
 0x56c   : > { %v6132_v39 = vrot.slane %v6045_v7, 7  ;;  %v6614_v15 = vrot.slane %v6045_v7, 1  ;;  %v5946_v63 = vadd.f32 %v5891_v36, %v5724_v3 }
 0x56d   : > { %v5894_v6 = vpop.f32.mrf.mxu1 }
 0x56e   : > { %v5982_v59 = vadd.f32 %v11785_v30, %v5946_v63  ;;  %v6615_v49 = vsel %vm14723_vm0, %v6612_v33, %v6614_v15  ;;  %v6133_v43 = vsel %vm14724_vm10, %v6130_v27, %v6132_v39  ;;  %v12163_v57 = vpop.f32.mrf.mxu3 }
 0x56f   : > { %v5230_v16 = vpop.f32.mrf.mxu2  ;;  %v6692_v46 = vsel %vm14726_vm9, %v6615_v49, 0.0  ;;  %v7336_v36 = vsel %vm14714_vm7, %v6615_v49, 0.0  ;;  %v8012_v27 = vsel %vm14702_vm12, %v6615_v49, 0.0  ;;  %vm14730_vm12 = vnez %v14729_v37 }
 0x570   : > { %v6014_v31 = vmul.f32 0.2, %v5982_v59  ;;  %v5282_v55 = vadd.f32 %v5230_v16, %v11683_v32  ;;  %v12153_v47 = vpack.c.bf16 %v6692_v46, %v6613_v4  ;;  %v12157_v50 = vpack.c.bf16 %v7336_v36, %v6613_v4 }
 0x571   : > { %v5672_v25 = vpop.f32.mrf.mxu0  ;;  %v12161_v54 = vpack.c.bf16 %v8012_v27, %v6613_v4  ;;  %v6917_v4 = vsel %vm14719_vm3, %v6133_v43, 0.0 }
 0x572   : > { %14727 = vst [vmem:[#allocation29_spill] sm:$0xff] %v12157_v50  ;;  %v6046_v33 = vmax.f32 %v5982_v59, %v6014_v31  ;;  %v5725_v3 = vadd.f32 %v5672_v25, %v5503_v24  ;;  %v6208_v59 = vsel %vm14730_vm12, %v6133_v43, 0.0  ;;  %v7561_v31 = vsel %vm14707_vm2, %v6133_v43, 0.0  ;;  %vm14734_vm2 = vmmov %vm14723_vm0 }
 0x573   : > { %14728 = vst [vmem:[#allocation65_spill] sm:$0xff] %v12161_v54  ;;  %vm14735_vm0 = vmmov %vm14724_vm10 }
 0x574   : > { %v6134_v63 = vrot.slane %v6046_v33, 7  ;;  %v6616_v19 = vrot.slane %v6046_v33, 1  ;;  %v5947_v32 = vadd.f32 %v5894_v6, %v5725_v3  ;;  %8831 = vmatmul.msk.bf16.gmra.mxu2 %vm6297_vm5, %v11846_v35  ;;  %8870 = vmatmul.msk.bf16.gmra.mxu0 %vm6297_vm5, %v11838_v62  ;;  %v12169_v16 = vpack.c.bf16 %v6046_v33, %v6045_v7 }
 0x575   : > { %v5896_v46 = vpop.f32.mrf.mxu1  ;;  %v5504_v3 = vadd.f32 %v12084_v38, %v5282_v55 }
 0x576   : > { %v5983_v49 = vadd.f32 %v11785_v30, %v5947_v32  ;;  %v6617_v24 = vsel %vm14731_vm4, %v6614_v15, %v6616_v19  ;;  %v6135_v6 = vsel %vm14732_vm15, %v6132_v39, %v6134_v63  ;;  %v12188_v17 = vpop.f32.mrf.mxu3  ;;  %vm14742_vm4 = vmmov %vm14735_vm0 }
 0x577   : > { %v5233_v36 = vpop.f32.mrf.mxu2  ;;  %v12180_v62 = vpack.c.bf16 %v6135_v6, %v6208_v59  ;;  %v12182_v7 = vpack.c.bf16 %v6135_v6, %v6917_v4  ;;  %v12184_v25 = vpack.c.bf16 %v6135_v6, %v7561_v31  ;;  %vm14745_vm15 = vmmov %vm14735_vm0 }
 0x578   : > { %v6015_v27 = vmul.f32 0.2, %v5983_v49  ;;  %v5283_v33 = vadd.f32 %v5233_v36, %v11695_v41  ;;  %v14736_v36 = vld [vmem:[#allocation63_spill] sm:$0xff] }
 0x579   : > { %14733 = vst [vmem:[#allocation91_spill] sm:$0xff] %v12184_v25  ;;  %v5674_v32 = vpop.f32.mrf.mxu0  ;;  %vm14737_vm10 = vnez %v14736_v36 }
 0x57a   : > { %v6047_v54 = vmax.f32 %v5983_v49, %v6015_v27  ;;  %v5726_v15 = vadd.f32 %v5674_v32, %v5504_v3  ;;  %v5505_v41 = vadd.f32 %v12106_v2, %v5283_v33 }
 0x57c   : > { %v6136_v50 = vrot.slane %v6047_v54, 7  ;;  %v6618_v39 = vrot.slane %v6047_v54, 1  ;;  %v5948_v35 = vadd.f32 %v5896_v46, %v5726_v15 }
 0x57d   : > { %v5899_v43 = vpop.f32.mrf.mxu1 }
 0x57e   : > { %v5984_v59 = vadd.f32 %v11785_v30, %v5948_v35  ;;  %v6619_v4 = vsel %vm14734_vm2, %v6616_v19, %v6618_v39  ;;  %v6137_v6 = vsel %vm14735_vm0, %v6134_v63, %v6136_v50 }
 0x57f   : > { %v5235_v31 = vpop.f32.mrf.mxu2  ;;  %v6694_v38 = vsel %vm14737_vm10, %v6619_v4, 0.0  ;;  %v7338_v46 = vsel %vm14726_vm9, %v6619_v4, 0.0  ;;  %v8014_v19 = vsel %vm14714_vm7, %v6619_v4, 0.0  ;;  %v6210_v12 = vsel %vm14309_vm13, %v6137_v6, 0.0  ;;  %vm14741_vm7 = vmmov %vm14734_vm2 }
 0x580   : > { %v6016_v55 = vmul.f32 0.2, %v5984_v59  ;;  %v5284_v49 = vadd.f32 %v5235_v31, %v11703_v53  ;;  %v12197_v27 = vpack.c.bf16 %v6694_v38, %v6617_v24  ;;  %v12201_v35 = vpack.c.bf16 %v7338_v46, %v6617_v24 }
 0x581   : > { %v5677_v3 = vpop.f32.mrf.mxu0  ;;  %v12205_v2 = vpack.c.bf16 %v8014_v19, %v6617_v24 }
 0x582   : > { %14738 = vst [vmem:[#allocation82_spill] sm:$0xff] %v12201_v35  ;;  %v6048_v63 = vmax.f32 %v5984_v59, %v6016_v55  ;;  %v5727_v32 = vadd.f32 %v5677_v3, %v5505_v41  ;;  %v6919_v59 = vsel %vm14730_vm12, %v6137_v6, 0.0  ;;  %v7563_v41 = vsel %vm14719_vm3, %v6137_v6, 0.0  ;;  %v12222_v55 = vpop.f32.mrf.mxu3  ;;  %vm14744_vm3 = vmmov %vm14734_vm2 }
 0x583   : > { %14739 = vst [vmem:[#allocation73_spill] sm:$0xff] %v12205_v2 }
 0x584   : > { %v6138_v33 = vrot.slane %v6048_v63, 7  ;;  %v6620_v15 = vrot.slane %v6048_v63, 1  ;;  %v5949_v25 = vadd.f32 %v5899_v43, %v5727_v32  ;;  %8832 = vmatmul.msk.bf16.gmra.mxu2 %vm6297_vm5, %v11892_v1  ;;  %8871 = vmatmul.msk.bf16.gmra.mxu0 %vm6297_vm5, %v11880_v48  ;;  %v12211_v53 = vpack.c.bf16 %v6048_v63, %v6047_v54 }
 0x585   : > { %v5901_v31 = vpop.f32.mrf.mxu1 }
 0x586   : > { %v5985_v24 = vadd.f32 %v11785_v30, %v5949_v25  ;;  %v6621_v4 = vsel %vm14741_vm7, %v6618_v39, %v6620_v15  ;;  %v6139_v43 = vsel %vm14742_vm4, %v6136_v50, %v6138_v33  ;;  %v5506_v25 = vadd.f32 %v12144_v13, %v5284_v49  ;;  %vm14753_vm7 = vmmov %vm14742_vm4 }
 0x587   : > { %v5238_v48 = vpop.f32.mrf.mxu2  ;;  %v12224_v54 = vpack.c.bf16 %v6139_v43, %v6210_v12  ;;  %v12226_v46 = vpack.c.bf16 %v6139_v43, %v6919_v59  ;;  %v12228_v3 = vpack.c.bf16 %v6139_v43, %v7563_v41 }
 0x588   : > { %v6017_v19 = vmul.f32 0.2, %v5985_v24  ;;  %v5285_v63 = vadd.f32 %v5238_v48, %v11713_v21 }
 0x589   : > { %14743 = vst [vmem:[#allocation57_spill] sm:$0xff] %v12228_v3  ;;  %v5679_v39 = vpop.f32.mrf.mxu0  ;;  %v14746_v3 = vld [vmem:[#allocation72_spill] sm:$0xff] }
 0x58a   : > { %v6049_v32 = vmax.f32 %v5985_v24, %v6017_v19  ;;  %v5728_v50 = vadd.f32 %v5679_v39, %v5506_v25  ;;  %v5507_v41 = vadd.f32 %v12163_v57, %v5285_v63  ;;  %vm14747_vm2 = vnez %v14746_v3  ;;  %v12243_v48 = vpop.f32.mrf.mxu3 }
 0x58c   : > { %v6140_v2 = vrot.slane %v6049_v32, 7  ;;  %v6622_v45 = vrot.slane %v6049_v32, 1  ;;  %v5950_v6 = vadd.f32 %v5901_v31, %v5728_v50 }
 0x58d   : > { %v5904_v35 = vpop.f32.mrf.mxu1 }
 0x58e   : > { %v5986_v1 = vadd.f32 %v11785_v30, %v5950_v6  ;;  %v6623_v12 = vsel %vm14744_vm3, %v6620_v15, %v6622_v45  ;;  %v6141_v59 = vsel %vm14745_vm15, %v6138_v33, %v6140_v2  ;;  %vm14765_vm15 = vmmov %vm14742_vm4 }
 0x58f   : > { %v5240_v43 = vpop.f32.mrf.mxu2  ;;  %v6696_v21 = vsel %vm14747_vm2, %v6623_v12, 0.0  ;;  %v7340_v31 = vsel %vm14737_vm10, %v6623_v12, 0.0  ;;  %v8016_v33 = vsel %vm14726_vm9, %v6623_v12, 0.0  ;;  %vm14752_vm9 = vmmov %vm14744_vm3 }
 0x590   : > { %v6018_v13 = vmul.f32 0.2, %v5986_v1  ;;  %v5286_v49 = vadd.f32 %v5240_v43, %v11720_v22  ;;  %v12239_v24 = vpack.c.bf16 %v6696_v21, %v6621_v4  ;;  %v12245_v15 = vpack.c.bf16 %v7340_v31, %v6621_v4  ;;  %v14750_v21 = vld [vmem:[#allocation79_spill] sm:$0xff] }
 0x591   : > { %v5682_v19 = vpop.f32.mrf.mxu0  ;;  %v12249_v25 = vpack.c.bf16 %v8016_v33, %v6621_v4  ;;  %vm14751_vm0 = vnez %v14750_v21 }
 0x592   : > { %14748 = vst [vmem:[#allocation74_spill] sm:$0xff] %v12245_v15  ;;  %v6050_v57 = vmax.f32 %v5986_v1, %v6018_v13  ;;  %v5729_v63 = vadd.f32 %v5682_v19, %v5507_v41  ;;  %v6212_v51 = vsel %vm14751_vm0, %v6141_v59, 0.0  ;;  %v6921_v1 = vsel %vm14309_vm13, %v6141_v59, 0.0 }
 0x593   : > { %14749 = vst [vmem:[#allocation114_spill] sm:$0xff] %v12249_v25  ;;  %v7565_v41 = vsel %vm14730_vm12, %v6141_v59, 0.0  ;;  %v5470_v25 = vpop.f32.mrf.mxu3  ;;  %vm14757_vm12 = vmmov %vm14744_vm3 }
 0x594   : > { %v6142_v39 = vrot.slane %v6050_v57, 7  ;;  %v6624_v50 = vrot.slane %v6050_v57, 1  ;;  %v5951_v22 = vadd.f32 %v5904_v35, %v5729_v63  ;;  %8833 = vmatmul.msk.bf16.gmra.mxu2 %vm6297_vm5, %v11938_v34  ;;  %8872 = vmatmul.msk.bf16.gmra.mxu0 %vm6297_vm5, %v11922_v10  ;;  %v12255_v6 = vpack.c.bf16 %v6050_v57, %v6049_v32 }
 0x595   : > { %v5906_v43 = vpop.f32.mrf.mxu1  ;;  %v5508_v57 = vadd.f32 %v12188_v17, %v5286_v49 }
 0x596   : > { %v5987_v4 = vadd.f32 %v11785_v30, %v5951_v22  ;;  %v6625_v12 = vsel %vm14752_vm9, %v6622_v45, %v6624_v50  ;;  %v6143_v35 = vsel %vm14753_vm7, %v6140_v2, %v6142_v39 }
 0x597   : > { %v5243_v13 = vpop.f32.mrf.mxu2  ;;  %v12266_v10 = vpack.c.bf16 %v6143_v35, %v6212_v51  ;;  %v12268_v32 = vpack.c.bf16 %v6143_v35, %v6921_v1  ;;  %v12270_v31 = vpack.c.bf16 %v6143_v35, %v7565_v41 }
 0x598   : > { %v6019_v19 = vmul.f32 0.2, %v5987_v4  ;;  %v5287_v33 = vadd.f32 %v5243_v13, %v11730_v14 }
 0x599   : > { %14754 = vst [vmem:[#allocation68_spill] sm:$0xff] %v12266_v10  ;;  %v5684_v63 = vpop.f32.mrf.mxu0 }
 0x59a   : > { %14755 = vst [vmem:[#allocation60_spill] sm:$0xff] %v12268_v32  ;;  %v6051_v22 = vmax.f32 %v5987_v4, %v6019_v19  ;;  %v5730_v45 = vadd.f32 %v5684_v63, %v5508_v57  ;;  %v14759_v4 = vld [vmem:[#allocation75_spill] sm:$0xff] }
 0x59b   : > { %14756 = vst [vmem:[#allocation39_spill] sm:$0xff] %v12270_v31  ;;  %v5509_v31 = vadd.f32 %v12222_v55, %v5287_v33 }
 0x59c   : > { %v6144_v2 = vrot.slane %v6051_v22, 7  ;;  %v6626_v15 = vrot.slane %v6051_v22, 1  ;;  %v5952_v37 = vadd.f32 %v5906_v43, %v5730_v45 }
 0x59d   : > { %v5909_v59 = vpop.f32.mrf.mxu1 }
 0x59e   : > { %v5988_v51 = vadd.f32 %v11785_v30, %v5952_v37  ;;  %v6627_v1 = vsel %vm14757_vm12, %v6624_v50, %v6626_v15  ;;  %v6145_v35 = vsel %vm14742_vm4, %v6142_v39, %v6144_v2 }
 0x59f   : > { %v5245_v41 = vpop.f32.mrf.mxu2  ;;  %v6698_v17 = vsel %vm14342_vm14, %v6627_v1, 0.0  ;;  %v7342_v43 = vsel %vm14747_vm2, %v6627_v1, 0.0  ;;  %v8018_v39 = vsel %vm14737_vm10, %v6627_v1, 0.0  ;;  %vm14764_vm10 = vmmov %vm14752_vm9 }
 0x5a0   : > { %v6020_v49 = vmul.f32 0.2, %v5988_v51  ;;  %v5288_v13 = vadd.f32 %v5245_v41, %v14759_v4  ;;  %v12281_v19 = vpack.c.bf16 %v6698_v17, %v6625_v12  ;;  %v12285_v30 = vpack.c.bf16 %v7342_v43, %v6625_v12  ;;  %v5472_v17 = vpop.f32.mrf.mxu3  ;;  %v14762_v43 = vld [vmem:[#allocation85_spill] sm:$0xff] }
 0x5a1   : > { %v5687_v57 = vpop.f32.mrf.mxu0  ;;  %v12289_v55 = vpack.c.bf16 %v8018_v39, %v6625_v12  ;;  %vm14763_vm3 = vnez %v14762_v43  ;;  %v6923_v12 = vsel %vm14751_vm0, %v6145_v35, 0.0 }
 0x5a2   : > { %14760 = vst [vmem:[#allocation67_spill] sm:$0xff] %v12285_v30  ;;  %v6052_v50 = vmax.f32 %v5988_v51, %v6020_v49  ;;  %v5731_v63 = vadd.f32 %v5687_v57, %v5509_v31  ;;  %v6214_v36 = vsel %vm14763_vm3, %v6145_v35, 0.0  ;;  %v12304_v31 = vld [vmem:[%s13350_s4] ss:$0 sm:$0xff]  ;;  %v5510_v30 = vadd.f32 %v12243_v48, %v5288_v13  ;;  %v14774_v13 = vld [vmem:[#allocation19_spill] sm:$0xff] }
 0x5a3   : > { %14761 = vst [vmem:[#allocation71_spill] sm:$0xff] %v12289_v55 }
 0x5a4   : > { %v6146_v33 = vrot.slane %v6052_v50, 7  ;;  %v6628_v45 = vrot.slane %v6052_v50, 1  ;;  %v5953_v37 = vadd.f32 %v5909_v59, %v5731_v63  ;;  %8834 = vmatmul.msk.bf16.gmra.mxu2 %vm6297_vm5, %v11985_v60  ;;  %8873 = vmatmul.msk.bf16.gmra.mxu0 %vm6297_vm5, %v11968_v8  ;;  %v12295_v41 = vpack.c.bf16 %v6052_v50, %v6051_v22  ;;  %v14769_v63 = vld [vmem:[#allocation31_spill] sm:$0xff] }
 0x5a5   : > { %v5911_v4 = vpop.f32.mrf.mxu1  ;;  %v7567_v22 = vsel %vm14309_vm13, %v6145_v35, 0.0  ;;  %vm14770_vm13 = vmmov %vm14752_vm9 }
 0x5a6   : > { %v5989_v59 = vadd.f32 %v12304_v31, %v5953_v37  ;;  %v6629_v51 = vsel %vm14764_vm10, %v6626_v15, %v6628_v45  ;;  %v6147_v8 = vsel %vm14765_vm15, %v6144_v2, %v6146_v33  ;;  %vm14771_vm9 = vmmov %vm14742_vm4 }
 0x5a7   : > { %v5248_v1 = vpop.f32.mrf.mxu2  ;;  %v12311_v49 = vpack.c.bf16 %v6147_v8, %v6214_v36  ;;  %v12313_v57 = vpack.c.bf16 %v6147_v8, %v6923_v12  ;;  %v12315_v39 = vpack.c.bf16 %v6147_v8, %v7567_v22 }
 0x5a8   : > { %v6021_v50 = vmul.f32 0.2, %v5989_v59  ;;  %v5289_v55 = vadd.f32 %v5248_v1, %v14769_v63  ;;  %v5475_v8 = vpop.f32.mrf.mxu3 }
 0x5a9   : > { %14766 = vst [vmem:[#allocation18_spill] sm:$0xff] %v12311_v49  ;;  %v5689_v37 = vpop.f32.mrf.mxu0 }
 0x5aa   : > { %14767 = vst [vmem:[#allocation22_spill] sm:$0xff] %v12313_v57  ;;  %v6053_v60 = vmax.f32 %v5989_v59, %v6021_v50  ;;  %v5732_v15 = vadd.f32 %v5689_v37, %v5510_v30  ;;  %v14772_v57 = vld [vmem:[#allocation86_spill] sm:$0xff] }
 0x5ab   : > { %14768 = vst [vmem:[#allocation87_spill] sm:$0xff] %v12315_v39  ;;  %v5511_v39 = vadd.f32 %v5470_v25, %v5289_v55  ;;  %vm14773_vm7 = vnez %v14772_v57  ;;  %v14804_v57 = vld [vmem:[#allocation32_spill] sm:$0xff] }
 0x5ac   : > { %v6148_v32 = vrot.slane %v6053_v60, 7  ;;  %v6630_v2 = vrot.slane %v6053_v60, 1  ;;  %v5954_v10 = vadd.f32 %v5911_v4, %v5732_v15 }
 0x5ad   : > { %v5914_v38 = vpop.f32.mrf.mxu1 }
 0x5ae   : > { %v5990_v35 = vadd.f32 %v12304_v31, %v5954_v10  ;;  %v6631_v36 = vsel %vm14770_vm13, %v6628_v45, %v6630_v2  ;;  %v6149_v12 = vsel %vm14771_vm9, %v6146_v33, %v6148_v32  ;;  %vm14794_vm13 = vmmov %vm14742_vm4 }
 0x5af   : > { %v5250_v22 = vpop.f32.mrf.mxu2  ;;  %v6700_v1 = vsel %vm14773_vm7, %v6631_v36, 0.0  ;;  %v7344_v4 = vsel %vm14342_vm14, %v6631_v36, 0.0  ;;  %v8020_v33 = vsel %vm14747_vm2, %v6631_v36, 0.0  ;;  %vm14779_vm2 = vmmov %vm14764_vm10  ;;  %v7569_v36 = vsel %vm14751_vm0, %v6149_v12, 0.0 }
 0x5b0   : > { %v6022_v48 = vmul.f32 0.2, %v5990_v35  ;;  %v5290_v59 = vadd.f32 %v5250_v22, %v14774_v13  ;;  %v12325_v30 = vpack.c.bf16 %v6700_v1, %v6629_v51  ;;  %v12329_v10 = vpack.c.bf16 %v7344_v4, %v6629_v51  ;;  %v14777_v13 = vld [vmem:[#allocation17_spill] sm:$0xff]  ;;  %vm14784_vm0 = vmmov %vm14779_vm2 }
 0x5b1   : > { %v5692_v50 = vpop.f32.mrf.mxu0  ;;  %v12333_v25 = vpack.c.bf16 %v8020_v33, %v6629_v51  ;;  %vm14778_vm12 = vnez %v14777_v13  ;;  %v14783_v33 = vld [vmem:[#allocation94_spill] sm:$0xff]  ;;  %vm14785_vm10 = vmmov %vm14742_vm4 }
 0x5b2   : > { %14775 = vst [vmem:[#allocation76_spill] sm:$0xff] %v12329_v10  ;;  %v6054_v45 = vmax.f32 %v5990_v35, %v6022_v48  ;;  %v5733_v63 = vadd.f32 %v5692_v50, %v5511_v39  ;;  %v6216_v3 = vsel %vm14778_vm12, %v6149_v12, 0.0  ;;  %v6925_v39 = vsel %vm14763_vm3, %v6149_v12, 0.0  ;;  %vm14798_vm9 = vmmov %vm14742_vm4 }
 0x5b3   : > { %14776 = vst [vmem:[#allocation62_spill] sm:$0xff] %v12333_v25  ;;  %v5477_v25 = vpop.f32.mrf.mxu3 }
 0x5b4   : > { %v6150_v55 = vrot.slane %v6054_v45, 7  ;;  %v6632_v37 = vrot.slane %v6054_v45, 1  ;;  %v5955_v15 = vadd.f32 %v5914_v38, %v5733_v63  ;;  %8835 = vmatmul.msk.bf16.gmra.mxu2 %vm6297_vm5, %v12041_v5  ;;  %8874 = vmatmul.msk.bf16.gmra.mxu0 %vm6297_vm5, %v12025_v61  ;;  %v12339_v22 = vpack.c.bf16 %v6054_v45, %v6053_v60 }
 0x5b5   : > { %v5916_v1 = vpop.f32.mrf.mxu1  ;;  %v5512_v63 = vadd.f32 %v5472_v17, %v5290_v59  ;;  %v14788_v59 = vld [vmem:[#allocation83_spill] sm:$0xff] }
 0x5b6   : > { %v5991_v51 = vadd.f32 %v12304_v31, %v5955_v15  ;;  %v6633_v35 = vsel %vm14779_vm2, %v6630_v2, %v6632_v37  ;;  %v6151_v38 = vsel %vm14742_vm4, %v6148_v32, %v6150_v55  ;;  %vm14806_vm2 = vmmov %vm14784_vm0 }
 0x5b7   : > { %v5253_v48 = vpop.f32.mrf.mxu2  ;;  %v12350_v61 = vpack.c.bf16 %v6151_v38, %v6216_v3  ;;  %v12352_v60 = vpack.c.bf16 %v6151_v38, %v6925_v39  ;;  %v12354_v4 = vpack.c.bf16 %v6151_v38, %v7569_v36 }
 0x5b8   : > { %v6023_v50 = vmul.f32 0.2, %v5991_v51  ;;  %v5291_v45 = vadd.f32 %v5253_v48, %v14783_v33 }
 0x5b9   : > { %14780 = vst [vmem:[#allocation95_spill] sm:$0xff] %v12350_v61  ;;  %v5694_v15 = vpop.f32.mrf.mxu0 }
 0x5ba   : > { %14781 = vst [vmem:[#allocation92_spill] sm:$0xff] %v12352_v60  ;;  %v6055_v10 = vmax.f32 %v5991_v51, %v6023_v50  ;;  %v5734_v2 = vadd.f32 %v5694_v15, %v5512_v63  ;;  %v5513_v36 = vadd.f32 %v5475_v8, %v5291_v45 }
 0x5bb   : > { %14782 = vst [vmem:[#allocation77_spill] sm:$0xff] %v12354_v4  ;;  %v14786_v4 = vld [vmem:[#allocation42_spill] sm:$0xff]  ;;  %v5480_v63 = vpop.f32.mrf.mxu3 }
 0x5bc   : > { %v6152_v5 = vrot.slane %v6055_v10, 7  ;;  %v6634_v32 = vrot.slane %v6055_v10, 1  ;;  %v5956_v49 = vadd.f32 %v5916_v1, %v5734_v2  ;;  %vm14787_vm15 = vnez %v14786_v4 }
 0x5bd   : > { %v5919_v21 = vpop.f32.mrf.mxu1 }
 0x5be   : > { %v5992_v12 = vadd.f32 %v12304_v31, %v5956_v49  ;;  %v6635_v3 = vsel %vm14784_vm0, %v6632_v37, %v6634_v32  ;;  %v6153_v39 = vsel %vm14785_vm10, %v6150_v55, %v6152_v5 }
 0x5bf   : > { %v5255_v38 = vpop.f32.mrf.mxu2  ;;  %v6702_v48 = vsel %vm14787_vm15, %v6635_v3, 0.0  ;;  %v7346_v1 = vsel %vm14773_vm7, %v6635_v3, 0.0  ;;  %v8022_v55 = vsel %vm14342_vm14, %v6635_v3, 0.0  ;;  %v6927_v14 = vsel %vm14778_vm12, %v6153_v39, 0.0  ;;  %vm14793_vm14 = vmmov %vm14784_vm0 }
 0x5c0   : > { %v6024_v17 = vmul.f32 0.2, %v5992_v12  ;;  %v5292_v33 = vadd.f32 %v5255_v38, %v14788_v59  ;;  %v12363_v51 = vpack.c.bf16 %v6702_v48, %v6633_v35  ;;  %v12367_v49 = vpack.c.bf16 %v7346_v1, %v6633_v35 }
 0x5c1   : > { %v5697_v50 = vpop.f32.mrf.mxu0  ;;  %v12371_v45 = vpack.c.bf16 %v8022_v55, %v6633_v35  ;;  %v6218_v59 = vsel %vm14383_vm1, %v6153_v39, 0.0  ;;  %v7571_v3 = vsel %vm14763_vm3, %v6153_v39, 0.0  ;;  %v14796_v55 = vld [vmem:[#allocation26_spill] sm:$0xff]  ;;  %vm14797_vm3 = vmmov %vm14784_vm0 }
 0x5c2   : > { %14789 = vst [vmem:[#allocation33_spill] sm:$0xff] %v12367_v49  ;;  %v6056_v37 = vmax.f32 %v5992_v12, %v6024_v17  ;;  %v5735_v8 = vadd.f32 %v5697_v50, %v5513_v36 }
 0x5c3   : > { %14790 = vst [vmem:[#allocation100_spill] sm:$0xff] %v12371_v45 }
 0x5c4   : > { %v6154_v15 = vrot.slane %v6056_v37, 7  ;;  %v6636_v2 = vrot.slane %v6056_v37, 1  ;;  %v5957_v60 = vadd.f32 %v5919_v21, %v5735_v8  ;;  %8836 = vmatmul.msk.bf16.gmra.mxu2 %vm6297_vm5, %v12082_v23  ;;  %8875 = vmatmul.msk.bf16.gmra.mxu0 %vm6297_vm5, %v12070_v56  ;;  %v12377_v38 = vpack.c.bf16 %v6056_v37, %v6055_v10 }
 0x5c5   : > { %v5921_v36 = vpop.f32.mrf.mxu1  ;;  %v5514_v8 = vadd.f32 %v5477_v25, %v5292_v33 }
 0x5c6   : > { %14791 = vst [vmem:[#allocation97_spill] sm:$0xff] %v12377_v38  ;;  %v5993_v35 = vadd.f32 %v12304_v31, %v5957_v60  ;;  %v6637_v12 = vsel %vm14793_vm14, %v6634_v32, %v6636_v2  ;;  %v6155_v21 = vsel %vm14794_vm13, %v6152_v5, %v6154_v15  ;;  %v5482_v5 = vpop.f32.mrf.mxu3  ;;  %vm14820_vm13 = vmmov %vm14806_vm2 }
 0x5c7   : > { %v5258_v17 = vpop.f32.mrf.mxu2  ;;  %v12388_v56 = vpack.c.bf16 %v6155_v21, %v6218_v59  ;;  %v12390_v10 = vpack.c.bf16 %v6155_v21, %v6927_v14  ;;  %v12392_v1 = vpack.c.bf16 %v6155_v21, %v7571_v3 }
 0x5c8   : > { %v6025_v50 = vmul.f32 0.2, %v5993_v35  ;;  %v5293_v37 = vadd.f32 %v5258_v17, %v14796_v55  ;;  %v14802_v55 = vld [vmem:[#allocation41_spill] sm:$0xff] }
 0x5c9   : > { %14795 = vst [vmem:[#allocation56_spill] sm:$0xff] %v12392_v1  ;;  %v5699_v60 = vpop.f32.mrf.mxu0 }
 0x5ca   : > { %v6057_v45 = vmax.f32 %v5993_v35, %v6025_v50  ;;  %v5515_v32 = vadd.f32 %v5480_v63, %v5293_v37  ;;  %v5736_v49 = vadd.f32 %v5699_v60, %v5514_v8 }
 0x5cc   : > { %v6156_v23 = vrot.slane %v6057_v45, 7  ;;  %v6638_v43 = vrot.slane %v6057_v45, 1  ;;  %v5958_v39 = vadd.f32 %v5921_v36, %v5736_v49 }
 0x5cd   : > { %v5924_v3 = vpop.f32.mrf.mxu1 }
 0x5ce   : > { %v5994_v61 = vadd.f32 %v12304_v31, %v5958_v39  ;;  %v6639_v59 = vsel %vm14797_vm3, %v6636_v2, %v6638_v43  ;;  %v6157_v14 = vsel %vm14798_vm9, %v6154_v15, %v6156_v23  ;;  %vm14822_vm3 = vmmov %vm14806_vm2 }
 0x5cf   : > { %v5260_v21 = vpop.f32.mrf.mxu2  ;;  %v6704_v17 = vsel %vm14070_vm6, %v6639_v59, 0.0  ;;  %v7348_v63 = vsel %vm14787_vm15, %v6639_v59, 0.0  ;;  %v8024_v49 = vsel %vm14773_vm7, %v6639_v59, 0.0  ;;  %vm14805_vm7 = vnez %v14804_v57 }
 0x5d0   : > { %v6026_v25 = vmul.f32 0.2, %v5994_v61  ;;  %v12400_v33 = vpack.c.bf16 %v6704_v17, %v6637_v12  ;;  %v12404_v50 = vpack.c.bf16 %v7348_v63, %v6637_v12  ;;  %v12408_v15 = vpack.c.bf16 %v8024_v49, %v6637_v12  ;;  %v6498_v63 = vpop.f32.mrf.mxu3 }
 0x5d1   : > { %v5702_v35 = vpop.f32.mrf.mxu0  ;;  %v5294_v37 = vadd.f32 %v5260_v21, %v14802_v55  ;;  %v6929_v12 = vsel %vm14383_vm1, %v6157_v14, 0.0 }
 0x5d2   : > { %14800 = vst [vmem:[#allocation51_spill] sm:$0xff] %v12404_v50  ;;  %v6058_v2 = vmax.f32 %v5994_v61, %v6026_v25  ;;  %v5737_v36 = vadd.f32 %v5702_v35, %v5515_v32  ;;  %v6220_v61 = vsel %vm14805_vm7, %v6157_v14, 0.0 }
 0x5d3   : > { %14801 = vst [vmem:[#allocation105_spill] sm:$0xff] %v12408_v15  ;;  %v5516_v49 = vadd.f32 %v5482_v5, %v5294_v37 }
 0x5d4   : > { %v6064_v8 = vrot.slane %v6058_v2, 7  ;;  %v6640_v60 = vrot.slane %v6058_v2, 1  ;;  %v5959_v39 = vadd.f32 %v5924_v3, %v5737_v36  ;;  %8837 = vmatmul.msk.bf16.gmra.mxu2 %vm6297_vm5, %v12125_v18  ;;  %8876 = vmatmul.msk.bf16.gmra.mxu0 %vm6297_vm5, %v12112_v58  ;;  %v12415_v17 = vpack.c.bf16 %v6058_v2, %v6057_v45 }
 0x5d5   : > { %v7573_v3 = vsel %vm14778_vm12, %v6157_v14, 0.0  ;;  %v5926_v15 = vpop.f32.mrf.mxu1  ;;  %vm14809_vm12 = vmmov %vm14784_vm0 }
 0x5d6   : > { %14803 = vst [vmem:[#allocation102_spill] sm:$0xff] %v12415_v17  ;;  %v5995_v32 = vadd.f32 %v12304_v31, %v5959_v39  ;;  %v6641_v59 = vsel %vm14806_vm2, %v6638_v43, %v6640_v60  ;;  %v6158_v21 = vsel %vm14742_vm4, %v6156_v23, %v6064_v8  ;;  %vm14810_vm0 = vmmov %vm14742_vm4 }
 0x5d7   : > { %v6355_v25 = vpop.f32.mrf.mxu2  ;;  %v12426_v58 = vpack.c.bf16 %v6158_v21, %v6220_v61  ;;  %v12428_v45 = vpack.c.bf16 %v6158_v21, %v6929_v12  ;;  %v12430_v35 = vpack.c.bf16 %v6158_v21, %v7573_v3  ;;  %vm14819_vm14 = vmmov %vm14810_vm0 }
 0x5d8   : > { %v6027_v2 = vmul.f32 0.2, %v5995_v32  ;;  %v6499_v36 = vadd.f32 %v6498_v63, %v6355_v25 }
 0x5d9   : > { %14807 = vst [vmem:[#allocation78_spill] sm:$0xff] %v12428_v45  ;;  %v5704_v55 = vpop.f32.mrf.mxu0  ;;  %v14811_v45 = vld [vmem:[#allocation58_spill] sm:$0xff] }
 0x5da   : > { %14808 = vst [vmem:[#allocation8_spill] sm:$0xff] %v12430_v35  ;;  %v6059_v39 = vmax.f32 %v5995_v32, %v6027_v2  ;;  %v5738_v50 = vadd.f32 %v5704_v55, %v5516_v49  ;;  %vm14812_vm10 = vnez %v14811_v45 }
 0x5dc   : > { %v6065_v43 = vrot.slane %v6059_v39, 7  ;;  %v6578_v18 = vrot.slane %v6059_v39, 1  ;;  %v5960_v23 = vadd.f32 %v5926_v15, %v5738_v50  ;;  %v6500_v15 = vpop.f32.mrf.mxu3 }
 0x5de   : > { %v5996_v13 = vadd.f32 %v12304_v31, %v5960_v23  ;;  %v6642_v14 = vsel %vm14809_vm12, %v6640_v60, %v6578_v18  ;;  %v6066_v61 = vsel %vm14810_vm0, %v6064_v8, %v6065_v43  ;;  %v14816_v23 = vld [vmem:[#allocation96_spill] sm:$0xff] }
 0x5df   : > { %v6357_v12 = vpop.f32.mrf.mxu2  ;;  %v6706_v21 = vsel %vm14812_vm10, %v6642_v14, 0.0  ;;  %v7350_v5 = vsel %vm14070_vm6, %v6642_v14, 0.0  ;;  %v8026_v31 = vsel %vm14787_vm15, %v6642_v14, 0.0  ;;  %v6931_v4 = vsel %vm14805_vm7, %v6066_v61, 0.0  ;;  %vm14818_vm15 = vmmov %vm14810_vm0 }
 0x5e0   : > { %v6028_v37 = vmul.f32 0.2, %v5996_v13  ;;  %v12439_v63 = vpack.c.bf16 %v6706_v21, %v6641_v59  ;;  %v12441_v32 = vpack.c.bf16 %v7350_v5, %v6641_v59  ;;  %v12447_v8 = vpack.c.bf16 %v8026_v31, %v6641_v59 }
 0x5e1   : > { %v6789_v3 = vpop.f32.mrf.mxu0  ;;  %v6501_v55 = vadd.f32 %v6500_v15, %v6357_v12  ;;  %v14817_v59 = vrot.slane %v14816_v23, 7  ;;  %v14821_v5 = vrot.slane %v14816_v23, 1 }
 0x5e2   : > { %14813 = vst [vmem:[#allocation7_spill] sm:$0xff] %v12441_v32  ;;  %v6060_v50 = vmax.f32 %v5996_v13, %v6028_v37  ;;  %v12445_v60 = vadd.f32 %v6789_v3, %v6499_v36  ;;  %v7575_v36 = vsel %vm14383_vm1, %v6066_v61, 0.0  ;;  %v14825_v3 = vld [vmem:[#allocation99_spill] sm:$0xff] }
 0x5e3   : > { %14814 = vst [vmem:[#allocation9_spill] sm:$0xff] %v12447_v8  ;;  %v14835_v8 = vld [vmem:[#allocation13_spill] sm:$0xff] }
 0x5e4   : > { %v6067_v25 = vrot.slane %v6060_v50, 7  ;;  %v6579_v49 = vrot.slane %v6060_v50, 1  ;;  %8838 = vmatmul.msk.bf16.gmra.mxu2 %vm6297_vm5, %v12169_v16  ;;  %8877 = vmatmul.msk.bf16.gmra.mxu0 %vm6297_vm5, %v12153_v47  ;;  %v12453_v2 = vpack.c.bf16 %v6060_v50, %v6059_v39 }
 0x5e6   : > { %14815 = vst [vmem:[#allocation110_spill] sm:$0xff] %v12453_v2  ;;  %v6189_v13 = vsel %vm14818_vm15, %v6067_v25, %v14817_v59  ;;  %v6068_v14 = vsel %vm14819_vm14, %v6065_v43, %v6067_v25  ;;  %v6580_v21 = vsel %vm14820_vm13, %v6578_v18, %v6579_v49  ;;  %v6674_v47 = vsel %vm14822_vm3, %v6579_v49, %v14821_v5 }
 0x5e7   : > { %v12467_v39 = vpop.f32.mrf.mxu2  ;;  %v6192_v57 = vsel %vm14189_vm8, %v6189_v13, 0.0  ;;  %v6901_v48 = vsel %vm14412_vm11, %v6189_v13, 0.0  ;;  %v12473_v61 = vpack.c.bf16 %v6068_v14, %v6931_v4  ;;  %v12475_v37 = vpack.c.bf16 %v6068_v14, %v7575_v36 }
 0x5e8   : > { %v6223_v43 = vpack.c.bf16 %v14825_v3, %v6192_v57  ;;  %v6933_v18 = vpack.c.bf16 %v14825_v3, %v6901_v48  ;;  %v7352_v31 = vsel %vm14812_vm10, %v6674_v47, 0.0  ;;  %v8028_v50 = vsel %vm14070_vm6, %v6674_v47, 0.0 }
 0x5e9   : > { %14824 = vst [vmem:[#allocation107_spill] sm:$0xff] %v12475_v37  ;;  %v6791_v15 = vpop.f32.mrf.mxu0  ;;  %v12483_v52 = vpack.c.bf16 %v7352_v31, %v6580_v21  ;;  %v12485_v25 = vpack.c.bf16 %v8028_v50, %v6580_v21  ;;  %vm8325_vm6 = vcmask 261120  }
 0x5ea   : > { %v12487_v49 = vadd.f32 %v6791_v15, %v6501_v55  ;;  %8849 = vmatmul.msk.bf16.gmra.mxu3 %vm6297_vm5, %v6223_v43  ;;  %8891 = vmatmul.msk.bf16.vlgmr.msrb.gmra.mxu1 %vm6297_vm5, %v6933_v18  ;;  %v14828_v55 = vld [vmem:[#allocation101_spill] sm:$0xff]  ;;  %v14831_v18 = vld [vmem:[#allocation55_spill] sm:$0xff] }
 0x5eb   : > { %14826 = vst [vmem:[#allocation11_spill] sm:$0xff] %v12483_v52  ;;  %v9025_v43 = vld [vmem:[%s13351_s5 + $0x38] sm:$0xff] }
 0x5ec   : > { %14827 = vst [vmem:[#allocation6_spill] sm:$0xff] %v12485_v25  ;;  %7885 = vmatpush.bf16.msra.mxu1 %v9025_v43 }
 0x5ef   : > { %v12491_v4 = vpop.f32.mrf.mxu2 }
 0x5f1   : > { %v12493_v36 = vpop.f32.mrf.mxu0 }
 0x5f4   : > { %8839 = vmatmul.msk.bf16.gmra.mxu2 %vm6297_vm5, %v12211_v53  ;;  %8878 = vmatmul.msk.bf16.gmra.mxu0 %vm6297_vm5, %v12197_v27 }
 0x5f7   : > { %v12499_v1 = vpop.f32.mrf.mxu2 }
 0x5f9   : > { %v12501_v45 = vpop.f32.mrf.mxu0 }
 0x5fa   : > { %8850 = vmatmul.msk.bf16.gmra.mxu3 %vm6297_vm5, %v11859_v11  ;;  %8892 = vmatmul.msk.bf16.gmra.mxu1 %vm6297_vm5, %v14828_v55  ;;  %v14829_v11 = vld [vmem:[#allocation93_spill] sm:$0xff] }
 0x5ff   : > { %v12507_v23 = vpop.f32.mrf.mxu2 }
 0x601   : > { %v12509_v59 = vpop.f32.mrf.mxu0 }
 0x604   : > { %8840 = vmatmul.msk.bf16.gmra.mxu2 %vm6297_vm5, %v12255_v6  ;;  %8879 = vmatmul.msk.bf16.gmra.mxu0 %vm6297_vm5, %v12239_v24 }
 0x607   : > { %v12515_v27 = vpop.f32.mrf.mxu2 }
 0x609   : > { %v12517_v13 = vpop.f32.mrf.mxu0 }
 0x60a   : > { %8851 = vmatmul.msk.bf16.gmra.mxu3 %vm6297_vm5, %v11903_v28  ;;  %8893 = vmatmul.msk.bf16.gmra.mxu1 %vm6297_vm5, %v14829_v11 }
 0x60f   : > { %v12523_v14 = vpop.f32.mrf.mxu2 }
 0x611   : > { %v12525_v21 = vpop.f32.mrf.mxu0 }
 0x614   : > { %8841 = vmatmul.msk.bf16.gmra.mxu2 %vm6297_vm5, %v12295_v41  ;;  %8880 = vmatmul.msk.bf16.gmra.mxu0 %vm6297_vm5, %v12281_v19 }
 0x617   : > { %v12531_v24 = vpop.f32.mrf.mxu2 }
 0x619   : > { %v12533_v5 = vpop.f32.mrf.mxu0 }
 0x61a   : > { %8852 = vmatmul.msk.bf16.gmra.mxu3 %vm6297_vm5, %v11949_v44  ;;  %8894 = vmatmul.msk.bf16.gmra.mxu1 %vm6297_vm5, %v11951_v40  ;;  %v14830_v44 = vld [vmem:[#allocation88_spill] sm:$0xff]  ;;  %v9023_v40 = vld [vmem:[%s13351_s5 + $0x28] sm:$0xff] }
 0x61b   : > { %7433 = vmatpush.bf16.msra.mxu3 %v9023_v40 }
 0x61f   : > { %v12539_v28 = vpop.f32.mrf.mxu2 }
 0x621   : > { %v12541_v47 = vpop.f32.mrf.mxu0 }
 0x624   : > { %8842 = vmatmul.msk.bf16.gmra.mxu2 %vm6297_vm5, %v12339_v22  ;;  %8881 = vmatmul.msk.bf16.gmra.mxu0 %vm6297_vm5, %v12325_v30  ;;  %v9024_v30 = vld [vmem:[%s13351_s5 + $0x30] sm:$0xff] }
 0x625   : > { %7659 = vmatpush.bf16.msra.mxu0 %v9024_v30 }
 0x627   : > { %v12547_v19 = vpop.f32.mrf.mxu2 }
 0x629   : > { %v12549_v57 = vpop.f32.mrf.mxu0 }
 0x62a   : > { %8853 = vmatmul.msk.bf16.gmra.mxu3 %vm6297_vm5, %v11999_v26  ;;  %8895 = vmatmul.msk.bf16.gmra.mxu1 %vm6297_vm5, %v14830_v44  ;;  %v9026_v26 = vld [vmem:[%s13351_s5 + $0x40] sm:$0xff] }
 0x62b   : > { %8111 = vmatpush.bf16.msra.mxu2 %v9026_v26  ;;  %v14833_v26 = vld [vmem:[#allocation84_spill] sm:$0xff] }
 0x62f   : > { %v12558_v12 = vpop.f32.mrf.mxu2 }
 0x631   : > { %v12560_v48 = vpop.f32.mrf.mxu0 }
 0x634   : > { %8843 = vmatmul.msk.bf16.gmra.mxu2 %vm6297_vm5, %v12377_v38  ;;  %8882 = vmatmul.msk.bf16.gmra.mxu0 %vm6297_vm5, %v12363_v51  ;;  %v14832_v51 = vld [vmem:[#allocation40_spill] sm:$0xff] }
 0x637   : > { %v12572_v3 = vpop.f32.mrf.mxu2 }
 0x639   : > { %v12581_v31 = vpop.f32.mrf.mxu0 }
 0x63a   : > { %8854 = vmatmul.msk.bf16.gmra.mxu3 %vm6297_vm5, %v14831_v18  ;;  %8896 = vmatmul.msk.bf16.gmra.mxu1 %vm6297_vm5, %v14832_v51 }
 0x63f   : > { %v12583_v50 = vpop.f32.mrf.mxu2 }
 0x641   : > { %v12589_v15 = vpop.f32.mrf.mxu0 }
 0x644   : > { %8844 = vmatmul.msk.bf16.gmra.mxu2 %vm6297_vm5, %v12415_v17  ;;  %8883 = vmatmul.msk.bf16.gmra.mxu0 %vm6297_vm5, %v12400_v33 }
 0x647   : > { %v12591_v55 = vpop.f32.mrf.mxu2 }
 0x649   : > { %v12599_v44 = vpop.f32.mrf.mxu0 }
 0x64a   : > { %8855 = vmatmul.msk.bf16.gmra.mxu3 %vm6297_vm5, %v12095_v0  ;;  %8897 = vmatmul.msk.bf16.gmra.mxu1 %vm6297_vm5, %v12097_v29 }
 0x64f   : > { %v12597_v11 = vpop.f32.mrf.mxu2 }
 0x651   : > { %v12607_v40 = vpop.f32.mrf.mxu0 }
 0x654   : > { %8884 = vmatmul.msk.bf16.gmra.mxu0 %vm6297_vm5, %v12439_v63  ;;  %8913 = vmatmul.msk.bf16.vlgmr.msrb.gmra.mxu2 %vm6297_vm5, %v11811_v42  ;;  %v14834_v63 = vld [vmem:[#allocation80_spill] sm:$0xff] }
 0x657   : > { %v12605_v33 = vpop.f32.mrf.mxu2 }
 0x659   : > { %v12615_v29 = vpop.f32.mrf.mxu0 }
 0x65a   : > { %8856 = vmatmul.msk.bf16.gmra.mxu3 %vm6297_vm5, %v12136_v20  ;;  %8898 = vmatmul.msk.bf16.gmra.mxu1 %vm6297_vm5, %v12138_v9 }
 0x65f   : > { %v12613_v0 = vpop.f32.mrf.mxu2 }
 0x661   : > { %v12630_v9 = vpop.f32.mrf.mxu0 }
 0x664   : > { %8914 = vmatmul.msk.bf16.gmra.mxu2 %vm6297_vm5, %v14833_v26  ;;  %8957 = vmatmul.msk.bf16.vlgmr.msra.gmra.mxu0 %vm6297_vm5, %v14834_v63 }
 0x667   : > { %v12621_v42 = vpop.f32.mrf.mxu2  ;;  %v7015_v30 = vpop.f32.mrf.mxu1 }
 0x668   : > { %v12624_v43 = vadd.f32 %v7015_v30, %v12445_v60  ;;  %v14836_v60 = vld [vmem:[#allocation106_spill] sm:$0xff] }
 0x669   : > { %v12645_v32 = vpop.f32.mrf.mxu0 }
 0x66a   : > { %8857 = vmatmul.msk.bf16.gmra.mxu3 %vm6297_vm5, %v12180_v62  ;;  %8899 = vmatmul.msk.bf16.gmra.mxu1 %vm6297_vm5, %v12182_v7 }
 0x66d   : > { %v6503_v20 = vpop.f32.mrf.mxu3 }
 0x66e   : > { %v6504_v25 = vadd.f32 %v6503_v20, %v12467_v39 }
 0x66f   : > { %v12632_v18 = vpop.f32.mrf.mxu2  ;;  %v7017_v51 = vpop.f32.mrf.mxu1 }
 0x670   : > { %v12635_v63 = vadd.f32 %v7017_v51, %v12487_v49  ;;  %v6871_v7 = vadd.f32 %v12493_v36, %v6504_v25 }
 0x674   : > { %8915 = vmatmul.msk.bf16.gmra.mxu2 %vm6297_vm5, %v14835_v8  ;;  %8958 = vmatmul.msk.bf16.gmra.mxu0 %vm6297_vm5, %v14836_v60  ;;  %v12659_v60 = vpop.f32.mrf.mxu0 }
 0x675   : > { %v6505_v62 = vpop.f32.mrf.mxu3 }
 0x676   : > { %v6506_v49 = vadd.f32 %v6505_v62, %v12491_v4  ;;  %v14837_v4 = vld [vmem:[#allocation43_spill] sm:$0xff] }
 0x677   : > { %v12643_v30 = vpop.f32.mrf.mxu2  ;;  %v7020_v52 = vpop.f32.mrf.mxu1 }
 0x678   : > { %v12647_v37 = vadd.f32 %v7020_v52, %v6871_v7  ;;  %v6872_v20 = vadd.f32 %v12501_v45, %v6506_v49 }
 0x67a   : > { %8858 = vmatmul.msk.bf16.gmra.mxu3 %vm6297_vm5, %v12224_v54  ;;  %8900 = vmatmul.msk.bf16.gmra.mxu1 %vm6297_vm5, %v12226_v46 }
 0x67d   : > { %v6508_v39 = vpop.f32.mrf.mxu3 }
 0x67e   : > { %v6509_v52 = vadd.f32 %v6508_v39, %v12499_v1  ;;  %v14839_v1 = vld [vmem:[#allocation60_spill] sm:$0xff]  ;;  %v12676_v39 = vpop.f32.mrf.mxu0 }
 0x67f   : > { %v12655_v51 = vpop.f32.mrf.mxu2  ;;  %v7022_v25 = vpop.f32.mrf.mxu1 }
 0x680   : > { %v12657_v36 = vadd.f32 %v7022_v25, %v6872_v20  ;;  %v6873_v46 = vadd.f32 %v12509_v59, %v6509_v52  ;;  %v14838_v20 = vld [vmem:[#allocation68_spill] sm:$0xff] }
 0x684   : > { %8916 = vmatmul.msk.bf16.gmra.mxu2 %vm6297_vm5, %v11938_v34  ;;  %8959 = vmatmul.msk.bf16.gmra.mxu0 %vm6297_vm5, %v14837_v4 }
 0x685   : > { %v6510_v54 = vpop.f32.mrf.mxu3 }
 0x686   : > { %v6511_v49 = vadd.f32 %v6510_v54, %v12507_v23  ;;  %v14841_v23 = vld [vmem:[#allocation3_spill] sm:$0xff] }
 0x687   : > { %v12667_v62 = vpop.f32.mrf.mxu2  ;;  %v7025_v45 = vpop.f32.mrf.mxu1 }
 0x688   : > { %v12669_v7 = vadd.f32 %v7025_v45, %v6873_v46  ;;  %v6874_v4 = vadd.f32 %v12517_v13, %v6511_v49  ;;  %v14840_v45 = vld [vmem:[#allocation108_spill] sm:$0xff] }
 0x68a   : > { %8859 = vmatmul.msk.bf16.gmra.mxu3 %vm6297_vm5, %v14838_v20  ;;  %8901 = vmatmul.msk.bf16.gmra.mxu1 %vm6297_vm5, %v14839_v1  ;;  %v12688_v20 = vpop.f32.mrf.mxu0 }
 0x68d   : > { %v6513_v25 = vpop.f32.mrf.mxu3 }
 0x68e   : > { %v6514_v46 = vadd.f32 %v6513_v25, %v12515_v27  ;;  %v14843_v27 = vld [vmem:[#allocation22_spill] sm:$0xff] }
 0x68f   : > { %v12679_v2 = vpop.f32.mrf.mxu2  ;;  %v7027_v59 = vpop.f32.mrf.mxu1 }
 0x690   : > { %v12681_v52 = vadd.f32 %v7027_v59, %v6874_v4  ;;  %v6875_v1 = vadd.f32 %v12525_v21, %v6514_v46  ;;  %v14842_v59 = vld [vmem:[#allocation18_spill] sm:$0xff] }
 0x692   : > { %v12703_v21 = vpop.f32.mrf.mxu0 }
 0x694   : > { %8917 = vmatmul.msk.bf16.gmra.mxu2 %vm6297_vm5, %v14840_v45  ;;  %8960 = vmatmul.msk.bf16.gmra.mxu0 %vm6297_vm5, %v14841_v23 }
 0x695   : > { %v6515_v54 = vpop.f32.mrf.mxu3 }
 0x696   : > { %v6516_v4 = vadd.f32 %v6515_v54, %v12523_v14  ;;  %v14846_v14 = vld [vmem:[#allocation47_spill] sm:$0xff] }
 0x697   : > { %v12691_v35 = vpop.f32.mrf.mxu2  ;;  %v7030_v13 = vpop.f32.mrf.mxu1 }
 0x698   : > { %v12693_v49 = vadd.f32 %v7030_v13, %v6875_v1  ;;  %v6876_v23 = vadd.f32 %v12533_v5, %v6516_v4  ;;  %v14845_v13 = vld [vmem:[#allocation10_spill] sm:$0xff] }
 0x69a   : > { %8860 = vmatmul.msk.bf16.gmra.mxu3 %vm6297_vm5, %v14842_v59  ;;  %8902 = vmatmul.msk.bf16.gmra.mxu1 %vm6297_vm5, %v14843_v27 }
 0x69d   : > { %v6518_v25 = vpop.f32.mrf.mxu3 }
 0x69e   : > { %v6519_v1 = vadd.f32 %v6518_v25, %v12531_v24  ;;  %v14849_v24 = vld [vmem:[#allocation92_spill] sm:$0xff] }
 0x69f   : > { %v12701_v17 = vpop.f32.mrf.mxu2  ;;  %v7032_v38 = vpop.f32.mrf.mxu1 }
 0x6a0   : > { %14844 = vst [vmem:[#allocation25_spill] sm:$0xff] %v12701_v17  ;;  %v12705_v46 = vadd.f32 %v7032_v38, %v6876_v23  ;;  %v6877_v59 = vadd.f32 %v12541_v47, %v6519_v1  ;;  %v12717_v17 = vpop.f32.mrf.mxu0  ;;  %v14848_v23 = vld [vmem:[#allocation95_spill] sm:$0xff] }
 0x6a4   : > { %8918 = vmatmul.msk.bf16.gmra.mxu2 %vm6297_vm5, %v14845_v13  ;;  %8961 = vmatmul.msk.bf16.gmra.mxu0 %vm6297_vm5, %v14846_v14 }
 0x6a5   : > { %v6520_v54 = vpop.f32.mrf.mxu3 }
 0x6a6   : > { %v6521_v38 = vadd.f32 %v6520_v54, %v12539_v28  ;;  %v14851_v28 = vld [vmem:[#allocation23_spill] sm:$0xff] }
 0x6a7   : > { %v12713_v27 = vpop.f32.mrf.mxu2  ;;  %v7035_v5 = vpop.f32.mrf.mxu1 }
 0x6a8   : > { %14847 = vst [vmem:[#allocation12_spill] sm:$0xff] %v12713_v27  ;;  %v12715_v4 = vadd.f32 %v7035_v5, %v6877_v59  ;;  %v6878_v14 = vadd.f32 %v12549_v57, %v6521_v38  ;;  %v12730_v5 = vpop.f32.mrf.mxu0  ;;  %v14850_v27 = vld [vmem:[#allocation69_spill] sm:$0xff] }
 0x6aa   : > { %8861 = vmatmul.msk.bf16.gmra.mxu3 %vm6297_vm5, %v14848_v23  ;;  %8903 = vmatmul.msk.bf16.gmra.mxu1 %vm6297_vm5, %v14849_v24 }
 0x6ad   : > { %v6523_v25 = vpop.f32.mrf.mxu3 }
 0x6ae   : > { %v6524_v59 = vadd.f32 %v6523_v25, %v12547_v19 }
 0x6af   : > { %v12725_v13 = vpop.f32.mrf.mxu2  ;;  %v7037_v47 = vpop.f32.mrf.mxu1 }
 0x6b0   : > { %v12727_v1 = vadd.f32 %v7037_v47, %v6878_v14  ;;  %v6879_v23 = vadd.f32 %v12560_v48, %v6524_v59  ;;  %v12746_v25 = vpop.f32.mrf.mxu0 }
 0x6b4   : > { %8919 = vmatmul.msk.bf16.gmra.mxu2 %vm6297_vm5, %v14850_v27  ;;  %8962 = vmatmul.msk.bf16.gmra.mxu0 %vm6297_vm5, %v14851_v28 }
 0x6b5   : > { %v6525_v54 = vpop.f32.mrf.mxu3 }
 0x6b6   : > { %v6526_v14 = vadd.f32 %v6525_v54, %v12558_v12  ;;  %v14854_v12 = vld [vmem:[#allocation54_spill] sm:$0xff] }
 0x6b7   : > { %v12737_v24 = vpop.f32.mrf.mxu2  ;;  %v7040_v57 = vpop.f32.mrf.mxu1 }
 0x6b8   : > { %14852 = vst [vmem:[#allocation36_spill] sm:$0xff] %v12737_v24  ;;  %v12739_v38 = vadd.f32 %v7040_v57, %v6879_v23  ;;  %v6880_v47 = vadd.f32 %v12581_v31, %v6526_v14  ;;  %v14853_v57 = vld [vmem:[#allocation66_spill] sm:$0xff]  ;;  %v12761_v31 = vpop.f32.mrf.mxu0 }
 0x6ba   : > { %8862 = vmatmul.msk.bf16.gmra.mxu3 %vm6297_vm5, %v12388_v56  ;;  %8904 = vmatmul.msk.bf16.gmra.mxu1 %vm6297_vm5, %v12390_v10 }
 0x6bd   : > { %v6528_v19 = vpop.f32.mrf.mxu3 }
 0x6be   : > { %v6529_v23 = vadd.f32 %v6528_v19, %v12572_v3  ;;  %v14856_v3 = vld [vmem:[#allocation78_spill] sm:$0xff] }
 0x6bf   : > { %v12749_v28 = vpop.f32.mrf.mxu2  ;;  %v7042_v48 = vpop.f32.mrf.mxu1 }
 0x6c0   : > { %v12751_v59 = vadd.f32 %v7042_v48, %v6880_v47  ;;  %v6881_v10 = vadd.f32 %v12589_v15, %v6529_v23 }
 0x6c4   : > { %8920 = vmatmul.msk.bf16.gmra.mxu2 %vm6297_vm5, %v14853_v57  ;;  %8963 = vmatmul.msk.bf16.gmra.mxu0 %vm6297_vm5, %v14854_v12 }
 0x6c5   : > { %v6530_v56 = vpop.f32.mrf.mxu3 }
 0x6c6   : > { %v6531_v47 = vadd.f32 %v6530_v56, %v12583_v50  ;;  %v14857_v50 = vld [vmem:[#allocation91_spill] sm:$0xff] }
 0x6c7   : > { %v12759_v54 = vpop.f32.mrf.mxu2  ;;  %v7045_v24 = vpop.f32.mrf.mxu1 }
 0x6c8   : > { %14855 = vst [vmem:[#allocation111_spill] sm:$0xff] %v12759_v54  ;;  %v12763_v14 = vadd.f32 %v7045_v24, %v6881_v10  ;;  %v6882_v48 = vadd.f32 %v12599_v44, %v6531_v47  ;;  %v12775_v54 = vpop.f32.mrf.mxu0 }
 0x6ca   : > { %8863 = vmatmul.msk.bf16.gmra.mxu3 %vm6297_vm5, %v12426_v58  ;;  %8905 = vmatmul.msk.bf16.gmra.mxu1 %vm6297_vm5, %v14856_v3 }
 0x6cd   : > { %v6533_v19 = vpop.f32.mrf.mxu3 }
 0x6ce   : > { %v6534_v24 = vadd.f32 %v6533_v19, %v12591_v55  ;;  %v14858_v55 = vld [vmem:[#allocation34_spill] sm:$0xff] }
 0x6cf   : > { %v12771_v12 = vpop.f32.mrf.mxu2  ;;  %v7047_v15 = vpop.f32.mrf.mxu1 }
 0x6d0   : > { %v12773_v23 = vadd.f32 %v7047_v15, %v6882_v48  ;;  %v6883_v56 = vadd.f32 %v12607_v40, %v6534_v24  ;;  %v12793_v19 = vpop.f32.mrf.mxu0 }
 0x6d4   : > { %8921 = vmatmul.msk.bf16.gmra.mxu2 %vm6297_vm5, %v12169_v16  ;;  %8964 = vmatmul.msk.bf16.gmra.mxu0 %vm6297_vm5, %v14857_v50 }
 0x6d5   : > { %v6535_v58 = vpop.f32.mrf.mxu3 }
 0x6d6   : > { %v6536_v48 = vadd.f32 %v6535_v58, %v12597_v11 }
 0x6d7   : > { %v7050_v10 = vpop.f32.mrf.mxu1  ;;  %v7209_v44 = vpop.f32.mrf.mxu2 }
 0x6d8   : > { %v12783_v47 = vadd.f32 %v7050_v10, %v6883_v56  ;;  %v12786_v3 = vadd.f32 %v7209_v44, %v12624_v43  ;;  %v6884_v40 = vadd.f32 %v12615_v29, %v6536_v48  ;;  %v12806_v10 = vpop.f32.mrf.mxu0 }
 0x6da   : > { %8906 = vmatmul.msk.bf16.gmra.mxu1 %vm6297_vm5, %v12473_v61  ;;  %8935 = vmatmul.msk.bf16.vlgmr.msra.gmra.mxu3 %vm6297_vm5, %v14858_v55  ;;  %v14859_v61 = vld [vmem:[#allocation57_spill] sm:$0xff] }
 0x6dd   : > { %v6538_v15 = vpop.f32.mrf.mxu3 }
 0x6de   : > { %v6539_v11 = vadd.f32 %v6538_v15, %v12605_v33  ;;  %v14860_v15 = vld [vmem:[#allocation4_spill] sm:$0xff] }
 0x6df   : > { %v7052_v24 = vpop.f32.mrf.mxu1  ;;  %v7211_v50 = vpop.f32.mrf.mxu2 }
 0x6e0   : > { %v12796_v56 = vadd.f32 %v7052_v24, %v6884_v40  ;;  %v12799_v43 = vadd.f32 %v7211_v50, %v12635_v63  ;;  %v6885_v29 = vadd.f32 %v12630_v9, %v6539_v11  ;;  %v12820_v11 = vpop.f32.mrf.mxu0 }
 0x6e4   : > { %8922 = vmatmul.msk.bf16.gmra.mxu2 %vm6297_vm5, %v12211_v53  ;;  %8965 = vmatmul.msk.bf16.gmra.mxu0 %vm6297_vm5, %v14859_v61 }
 0x6e5   : > { %v6540_v58 = vpop.f32.mrf.mxu3 }
 0x6e6   : > { %v6541_v33 = vadd.f32 %v6540_v58, %v12613_v0  ;;  %v14861_v58 = vld [vmem:[#allocation39_spill] sm:$0xff] }
 0x6e7   : > { %v7055_v44 = vpop.f32.mrf.mxu1  ;;  %v7214_v48 = vpop.f32.mrf.mxu2 }
 0x6e8   : > { %v12809_v55 = vadd.f32 %v7055_v44, %v6885_v29  ;;  %v12812_v63 = vadd.f32 %v7214_v48, %v12647_v37  ;;  %v6886_v24 = vadd.f32 %v12645_v32, %v6541_v33 }
 0x6ea   : > { %8936 = vmatmul.msk.bf16.gmra.mxu3 %vm6297_vm5, %v14860_v15  ;;  %8978 = vmatmul.msk.bf16.vlgmr.msra.gmra.mxu1 %vm6297_vm5, %v14833_v26  ;;  %v14862_v15 = vld [vmem:[#allocation109_spill] sm:$0xff] }
 0x6ed   : > { %v6543_v40 = vpop.f32.mrf.mxu3 }
 0x6ee   : > { %v6544_v0 = vadd.f32 %v6543_v40, %v12621_v42 }
 0x6ef   : > { %v7057_v50 = vpop.f32.mrf.mxu1  ;;  %v7216_v9 = vpop.f32.mrf.mxu2 }
 0x6f0   : > { %v12822_v61 = vadd.f32 %v7057_v50, %v6886_v24  ;;  %v12825_v37 = vadd.f32 %v7216_v9, %v12657_v36  ;;  %v6887_v32 = vadd.f32 %v12659_v60, %v6544_v0  ;;  %v12838_v36 = vpop.f32.mrf.mxu0 }
 0x6f4   : > { %8923 = vmatmul.msk.bf16.gmra.mxu2 %vm6297_vm5, %v12255_v6  ;;  %8966 = vmatmul.msk.bf16.gmra.mxu0 %vm6297_vm5, %v14861_v58 }
 0x6f5   : > { %v6545_v26 = vpop.f32.mrf.mxu3 }
 0x6f6   : > { %v6546_v42 = vadd.f32 %v6545_v26, %v12632_v18  ;;  %v14863_v18 = vld [vmem:[#allocation87_spill] sm:$0xff] }
 0x6f7   : > { %v7060_v29 = vpop.f32.mrf.mxu1  ;;  %v7219_v44 = vpop.f32.mrf.mxu2 }
 0x6f8   : > { %v12833_v48 = vadd.f32 %v7060_v29, %v6887_v32  ;;  %v12836_v33 = vadd.f32 %v7219_v44, %v12669_v7  ;;  %v6888_v60 = vadd.f32 %v12676_v39, %v6546_v42  ;;  %v12852_v58 = vpop.f32.mrf.mxu0  ;;  %v14864_v44 = vld [vmem:[#allocation103_spill] sm:$0xff] }
 0x6fa   : > { %8937 = vmatmul.msk.bf16.gmra.mxu3 %vm6297_vm5, %v14862_v15  ;;  %8979 = vmatmul.msk.bf16.gmra.mxu1 %vm6297_vm5, %v14835_v8 }
 0x6fd   : > { %v6548_v40 = vpop.f32.mrf.mxu3 }
 0x6fe   : > { %v6549_v0 = vadd.f32 %v6548_v40, %v12643_v30 }
 0x6ff   : > { %v7062_v24 = vpop.f32.mrf.mxu1  ;;  %v7221_v50 = vpop.f32.mrf.mxu2 }
 0x700   : > { %v12846_v9 = vadd.f32 %v7062_v24, %v6888_v60  ;;  %v12849_v7 = vadd.f32 %v7221_v50, %v12681_v52  ;;  %v6889_v39 = vadd.f32 %v12688_v20, %v6549_v0  ;;  %v12869_v15 = vpop.f32.mrf.mxu0  ;;  %v14865_v50 = vld [vmem:[#allocation77_spill] sm:$0xff] }
 0x704   : > { %8924 = vmatmul.msk.bf16.gmra.mxu2 %vm6297_vm5, %v12295_v41  ;;  %8967 = vmatmul.msk.bf16.gmra.mxu0 %vm6297_vm5, %v14863_v18 }
 0x705   : > { %v6550_v8 = vpop.f32.mrf.mxu3 }
 0x706   : > { %v6551_v30 = vadd.f32 %v6550_v8, %v12655_v51 }
 0x707   : > { %v7065_v26 = vpop.f32.mrf.mxu1  ;;  %v7224_v32 = vpop.f32.mrf.mxu2 }
 0x708   : > { %v12859_v29 = vadd.f32 %v7065_v26, %v6889_v39  ;;  %v12862_v52 = vadd.f32 %v7224_v32, %v12693_v49  ;;  %v6890_v20 = vadd.f32 %v12703_v21, %v6551_v30  ;;  %v12883_v8 = vpop.f32.mrf.mxu0  ;;  %v14866_v26 = vld [vmem:[#allocation90_spill] sm:$0xff] }
 0x70a   : > { %8938 = vmatmul.msk.bf16.gmra.mxu3 %vm6297_vm5, %v14864_v44  ;;  %8980 = vmatmul.msk.bf16.gmra.mxu1 %vm6297_vm5, %v11938_v34 }
 0x70d   : > { %v6553_v42 = vpop.f32.mrf.mxu3 }
 0x70e   : > { %v6554_v51 = vadd.f32 %v6553_v42, %v12667_v62 }
 0x70f   : > { %v7067_v40 = vpop.f32.mrf.mxu1  ;;  %v7226_v60 = vpop.f32.mrf.mxu2 }
 0x710   : > { %v12872_v24 = vadd.f32 %v7067_v40, %v6890_v20  ;;  %v12875_v49 = vadd.f32 %v7226_v60, %v12705_v46  ;;  %v6891_v0 = vadd.f32 %v12717_v17, %v6554_v51  ;;  %v14867_v40 = vld [vmem:[#allocation97_spill] sm:$0xff]  ;;  %v14868_v60 = vld [vmem:[#allocation56_spill] sm:$0xff] }
 0x714   : > { %8925 = vmatmul.msk.bf16.gmra.mxu2 %vm6297_vm5, %v12339_v22  ;;  %8968 = vmatmul.msk.bf16.gmra.mxu0 %vm6297_vm5, %v14865_v50 }
 0x715   : > { %v6555_v34 = vpop.f32.mrf.mxu3 }
 0x716   : > { %v6556_v62 = vadd.f32 %v6555_v34, %v12679_v2 }
 0x717   : > { %v7070_v18 = vpop.f32.mrf.mxu1  ;;  %v7229_v21 = vpop.f32.mrf.mxu2 }
 0x718   : > { %v12885_v39 = vadd.f32 %v7070_v18, %v6891_v0  ;;  %v12888_v46 = vadd.f32 %v7229_v21, %v12715_v4  ;;  %v6892_v17 = vadd.f32 %v12730_v5, %v6556_v62  ;;  %v12901_v4 = vpop.f32.mrf.mxu0  ;;  %v14869_v0 = vld [vmem:[#allocation25_spill] sm:$0xff]  ;;  %v14870_v21 = vld [vmem:[#allocation48_spill] sm:$0xff] }
 0x71a   : > { %8939 = vmatmul.msk.bf16.gmra.mxu3 %vm6297_vm5, %v14866_v26  ;;  %8981 = vmatmul.msk.bf16.gmra.mxu1 %vm6297_vm5, %v14840_v45 }
 0x71d   : > { %v6558_v32 = vpop.f32.mrf.mxu3 }
 0x71e   : > { %v6559_v2 = vadd.f32 %v6558_v32, %v12691_v35  ;;  %v14871_v35 = vld [vmem:[#allocation10_spill] sm:$0xff] }
 0x71f   : > { %v7072_v30 = vpop.f32.mrf.mxu1  ;;  %v7231_v44 = vpop.f32.mrf.mxu2 }
 0x720   : > { %v12896_v42 = vadd.f32 %v7072_v30, %v6892_v17  ;;  %v12899_v20 = vadd.f32 %v7231_v44, %v12727_v1  ;;  %v6893_v5 = vadd.f32 %v12746_v25, %v6559_v2  ;;  %v12919_v62 = vpop.f32.mrf.mxu0  ;;  %v14872_v44 = vld [vmem:[#allocation12_spill] sm:$0xff] }
 0x724   : > { %8926 = vmatmul.msk.bf16.gmra.mxu2 %vm6297_vm5, %v14867_v40  ;;  %8969 = vmatmul.msk.bf16.gmra.mxu0 %vm6297_vm5, %v14868_v60  ;;  %v14873_v60 = vld [vmem:[#allocation102_spill] sm:$0xff] }
 0x725   : > { %v6560_v45 = vpop.f32.mrf.mxu3 }
 0x726   : > { %v6561_v18 = vadd.f32 %v6560_v45, %v14869_v0  ;;  %v14874_v45 = vld [vmem:[#allocation8_spill] sm:$0xff] }
 0x727   : > { %v7075_v51 = vpop.f32.mrf.mxu1  ;;  %v7234_v50 = vpop.f32.mrf.mxu2 }
 0x728   : > { %v12909_v34 = vadd.f32 %v7075_v51, %v6893_v5  ;;  %v12912_v1 = vadd.f32 %v7234_v50, %v12739_v38  ;;  %v6894_v25 = vadd.f32 %v12761_v31, %v6561_v18  ;;  %v12932_v51 = vpop.f32.mrf.mxu0 }
 0x72a   : > { %8940 = vmatmul.msk.bf16.gmra.mxu3 %vm6297_vm5, %v14870_v21  ;;  %8982 = vmatmul.msk.bf16.gmra.mxu1 %vm6297_vm5, %v14871_v35  ;;  %v14875_v35 = vld [vmem:[#allocation64_spill] sm:$0xff] }
 0x72d   : > { %v6563_v26 = vpop.f32.mrf.mxu3 }
 0x72e   : > { %v6564_v2 = vadd.f32 %v6563_v26, %v14872_v44 }
 0x72f   : > { %v7077_v32 = vpop.f32.mrf.mxu1  ;;  %v7236_v17 = vpop.f32.mrf.mxu2 }
 0x730   : > { %v12922_v30 = vadd.f32 %v7077_v32, %v6894_v25  ;;  %v12925_v38 = vadd.f32 %v7236_v17, %v12751_v59  ;;  %v6895_v31 = vadd.f32 %v12775_v54, %v6564_v2  ;;  %v12946_v17 = vpop.f32.mrf.mxu0  ;;  %v14876_v2 = vld [vmem:[#allocation36_spill] sm:$0xff] }
 0x734   : > { %8927 = vmatmul.msk.bf16.gmra.mxu2 %vm6297_vm5, %v14873_v60  ;;  %8970 = vmatmul.msk.bf16.gmra.mxu0 %vm6297_vm5, %v14874_v45  ;;  %v14877_v45 = vld [vmem:[#allocation110_spill] sm:$0xff] }
 0x735   : > { %v6565_v5 = vpop.f32.mrf.mxu3 }
 0x736   : > { %v6566_v21 = vadd.f32 %v6565_v5, %v12725_v13  ;;  %v14878_v5 = vld [vmem:[#allocation107_spill] sm:$0xff] }
 0x737   : > { %v7080_v50 = vpop.f32.mrf.mxu1  ;;  %v7239_v0 = vpop.f32.mrf.mxu2 }
 0x738   : > { %v12935_v18 = vadd.f32 %v7080_v50, %v6895_v31  ;;  %v12938_v59 = vadd.f32 %v7239_v0, %v12763_v14  ;;  %v6896_v25 = vadd.f32 %v12793_v19, %v6566_v21 }
 0x73a   : > { %8941 = vmatmul.msk.bf16.gmra.mxu3 %vm6297_vm5, %v14875_v35  ;;  %8983 = vmatmul.msk.bf16.gmra.mxu1 %vm6297_vm5, %v14850_v27 }
 0x73d   : > { %v6568_v26 = vpop.f32.mrf.mxu3 }
 0x73e   : > { %v6569_v13 = vadd.f32 %v6568_v26, %v14876_v2  ;;  %v14879_v26 = vld [vmem:[#allocation29_spill] sm:$0xff] }
 0x73f   : > { %v7082_v32 = vpop.f32.mrf.mxu1  ;;  %v7241_v54 = vpop.f32.mrf.mxu2 }
 0x740   : > { %v12948_v44 = vadd.f32 %v7082_v32, %v6896_v25  ;;  %v12951_v14 = vadd.f32 %v7241_v54, %v12773_v23  ;;  %v6897_v19 = vadd.f32 %v12806_v10, %v6569_v13  ;;  %v12964_v23 = vpop.f32.mrf.mxu0  ;;  %v14880_v13 = vld [vmem:[#allocation111_spill] sm:$0xff] }
 0x744   : > { %8928 = vmatmul.msk.bf16.gmra.mxu2 %vm6297_vm5, %v14877_v45  ;;  %8971 = vmatmul.msk.bf16.gmra.mxu0 %vm6297_vm5, %v14878_v5 }
 0x745   : > { %v6570_v27 = vpop.f32.mrf.mxu3 }
 0x746   : > { %v6571_v35 = vadd.f32 %v6570_v27, %v12749_v28  ;;  %v14881_v28 = vld [vmem:[#allocation104_spill] sm:$0xff]  ;;  %v14882_v27 = vmov 0.0|0.0  }
 0x747   : > { %v7085_v31 = vpop.f32.mrf.mxu1  ;;  %v7244_v50 = vpop.f32.mrf.mxu2 }
 0x748   : > { %v12959_v0 = vadd.f32 %v7085_v31, %v6897_v19  ;;  %v12962_v21 = vadd.f32 %v7244_v50, %v12783_v47  ;;  %v6898_v10 = vadd.f32 %v12820_v11, %v6571_v35  ;;  %v12978_v19 = vpop.f32.mrf.mxu0 }
 0x74a   : > { %8942 = vmatmul.msk.bf16.gmra.mxu3 %vm6297_vm5, %v14879_v26  ;;  %8984 = vmatmul.msk.bf16.gmra.mxu1 %vm6297_vm5, %v14853_v57 }
 0x74d   : > { %v6573_v25 = vpop.f32.mrf.mxu3 }
 0x74e   : > { %v6574_v5 = vadd.f32 %v6573_v25, %v14880_v13  ;;  %v14883_v25 = vld [vmem:[#allocation82_spill] sm:$0xff] }
 0x74f   : > { %v7087_v32 = vpop.f32.mrf.mxu1  ;;  %v7246_v54 = vpop.f32.mrf.mxu2 }
 0x750   : > { %v12972_v2 = vadd.f32 %v7087_v32, %v6898_v10  ;;  %v12975_v47 = vadd.f32 %v7246_v54, %v12796_v56  ;;  %v6899_v31 = vadd.f32 %v12838_v36, %v6574_v5 }
 0x754   : > { %8999 = vmatmul.msk.bf16.vlgmr.msra.gmra.mxu2 %vm6297_vm5, %v14881_v28  ;;  %7735 = vmatmul.bf16.gmra.mxu0 %v14882_v27  ;;  %v14884_v28 = vld [vmem:[#allocation98_spill] sm:$0xff] }
 0x755   : > { %v6575_v57 = vpop.f32.mrf.mxu3 }
 0x756   : > { %v6576_v56 = vadd.f32 %v6575_v57, %v12771_v12 }
 0x757   : > { %v7090_v11 = vpop.f32.mrf.mxu1  ;;  %v7249_v50 = vpop.f32.mrf.mxu2 }
 0x758   : > { %v12984_v35 = vadd.f32 %v7090_v11, %v6899_v31  ;;  %v12987_v26 = vadd.f32 %v7249_v50, %v12809_v55  ;;  %v6900_v36 = vadd.f32 %v12852_v58, %v6576_v56  ;;  %v14885_v50 = vld [vmem:[#allocation74_spill] sm:$0xff] }
 0x75a   : > { %8943 = vmatmul.msk.bf16.gmra.mxu3 %vm6297_vm5, %v14883_v25  ;;  %8985 = vmatmul.msk.bf16.gmra.mxu1 %vm6297_vm5, %v12169_v16 }
 0x75d   : > { %v7435_v10 = vpop.f32.mrf.mxu3 }
 0x75e   : > { %v7515_v32 = vadd.f32 %v7435_v10, %v12786_v3 }
 0x75f   : > { %v7092_v54 = vpop.f32.mrf.mxu1  ;;  %v7251_v13 = vpop.f32.mrf.mxu2 }
 0x760   : > { %v12996_v5 = vadd.f32 %v7092_v54, %v6900_v36  ;;  %v12999_v55 = vadd.f32 %v7251_v13, %v12822_v61  ;;  %v7741_v16 = vadd.f32 %v12869_v15, %v7515_v32  ;;  %v14886_v32 = vld [vmem:[#allocation35_spill] sm:$0xff] }
 0x764   : > { %9000 = vmatmul.msk.bf16.gmra.mxu2 %vm6297_vm5, %v14884_v28 }
 0x765   : > { %v7437_v12 = vpop.f32.mrf.mxu3 }
 0x766   : > { %v7516_v57 = vadd.f32 %v7437_v12, %v12799_v43  ;;  %v14887_v12 = vld [vmem:[#allocation67_spill] sm:$0xff] }
 0x767   : > { %v7254_v31 = vpop.f32.mrf.mxu2  ;;  %v7887_v11 = vpop.f32.mrf.mxu1 }
 0x768   : > { %v13006_v3 = vadd.f32 %v7254_v31, %v12833_v48  ;;  %v13008_v58 = vadd.f32 %v7887_v11, %v7741_v16  ;;  %v7742_v43 = vadd.f32 %v12883_v8, %v7516_v57  ;;  %v14888_v11 = vld [vmem:[#allocation30_spill] sm:$0xff] }
 0x76a   : > { %8944 = vmatmul.msk.bf16.gmra.mxu3 %vm6297_vm5, %v14885_v50  ;;  %8986 = vmatmul.msk.bf16.gmra.mxu1 %vm6297_vm5, %v12211_v53 }
 0x76d   : > { %v7440_v61 = vpop.f32.mrf.mxu3 }
 0x76e   : > { %v7517_v56 = vadd.f32 %v7440_v61, %v12812_v63  ;;  %v7681_v61 = vpop.f32.mrf.mxu0 }
 0x76f   : > { %v7256_v25 = vpop.f32.mrf.mxu2  ;;  %v7889_v15 = vpop.f32.mrf.mxu1 }
 0x770   : > { %v13017_v10 = vadd.f32 %v7256_v25, %v12846_v9  ;;  %v13019_v48 = vadd.f32 %v7889_v15, %v7742_v43  ;;  %v7743_v53 = vadd.f32 %v12901_v4, %v7517_v56 }
 0x774   : > { %9001 = vmatmul.msk.bf16.gmra.mxu2 %vm6297_vm5, %v14886_v32 }
 0x775   : > { %v7442_v36 = vpop.f32.mrf.mxu3 }
 0x776   : > { %v7518_v54 = vadd.f32 %v7442_v36, %v12825_v37 }
 0x777   : > { %v7259_v13 = vpop.f32.mrf.mxu2  ;;  %v7892_v28 = vpop.f32.mrf.mxu1 }
 0x778   : > { %v13026_v63 = vadd.f32 %v7259_v13, %v12859_v29  ;;  %v13028_v8 = vadd.f32 %v7892_v28, %v7743_v53  ;;  %v7744_v37 = vadd.f32 %v12919_v62, %v7518_v54  ;;  %v7683_v54 = vpop.f32.mrf.mxu0  ;;  %v14890_v13 = vld [vmem:[#allocation2_spill] sm:$0xff] }
 0x77a   : > { %8945 = vmatmul.msk.bf16.gmra.mxu3 %vm6297_vm5, %v14887_v12  ;;  %8987 = vmatmul.msk.bf16.gmra.mxu1 %vm6297_vm5, %v12255_v6 }
 0x77d   : > { %v7445_v9 = vpop.f32.mrf.mxu3 }
 0x77e   : > { %v7519_v57 = vadd.f32 %v7445_v9, %v12836_v33 }
 0x77f   : > { %v7261_v16 = vpop.f32.mrf.mxu2  ;;  %v7894_v4 = vpop.f32.mrf.mxu1 }
 0x780   : > { %v13037_v31 = vadd.f32 %v7261_v16, %v12872_v24  ;;  %v13039_v29 = vadd.f32 %v7894_v4, %v7744_v37  ;;  %v7745_v6 = vadd.f32 %v12932_v51, %v7519_v57  ;;  %v14889_v24 = vld [vmem:[#allocation76_spill] sm:$0xff]  ;;  %v7686_v37 = vpop.f32.mrf.mxu0 }
 0x784   : > { %9002 = vmatmul.msk.bf16.gmra.mxu2 %vm6297_vm5, %v14888_v11 }
 0x785   : > { %v7447_v50 = vpop.f32.mrf.mxu3 }
 0x786   : > { %v7520_v56 = vadd.f32 %v7447_v50, %v12849_v7 }
 0x787   : > { %v7264_v43 = vpop.f32.mrf.mxu2  ;;  %v7897_v33 = vpop.f32.mrf.mxu1 }
 0x788   : > { %v13046_v62 = vadd.f32 %v7264_v43, %v12885_v39  ;;  %v13048_v25 = vadd.f32 %v7897_v33, %v7745_v6  ;;  %v7746_v7 = vadd.f32 %v12946_v17, %v7520_v56  ;;  %v7688_v56 = vpop.f32.mrf.mxu0  ;;  %v14892_v6 = vld [vmem:[#allocation89_spill] sm:$0xff] }
 0x78a   : > { %8946 = vmatmul.msk.bf16.gmra.mxu3 %vm6297_vm5, %v14889_v24  ;;  %8988 = vmatmul.msk.bf16.gmra.mxu1 %vm6297_vm5, %v12295_v41 }
 0x78d   : > { %v7450_v15 = vpop.f32.mrf.mxu3 }
 0x78e   : > { %v7521_v32 = vadd.f32 %v7450_v15, %v12862_v52 }
 0x78f   : > { %v7266_v36 = vpop.f32.mrf.mxu2  ;;  %v7899_v51 = vpop.f32.mrf.mxu1 }
 0x790   : > { %v13057_v53 = vadd.f32 %v7266_v36, %v12896_v42  ;;  %v13059_v39 = vadd.f32 %v7899_v51, %v7746_v7  ;;  %v7747_v41 = vadd.f32 %v12964_v23, %v7521_v32  ;;  %v14891_v42 = vld [vmem:[#allocation33_spill] sm:$0xff]  ;;  %v14893_v32 = vld [vmem:[#allocation51_spill] sm:$0xff]  ;;  %v7691_v7 = vpop.f32.mrf.mxu0 }
 0x794   : > { %9003 = vmatmul.msk.bf16.gmra.mxu2 %vm6297_vm5, %v14890_v13 }
 0x795   : > { %v7452_v28 = vpop.f32.mrf.mxu3 }
 0x796   : > { %v7522_v12 = vadd.f32 %v7452_v28, %v12875_v49 }
 0x797   : > { %v7269_v9 = vpop.f32.mrf.mxu2  ;;  %v7902_v52 = vpop.f32.mrf.mxu1 }
 0x798   : > { %v13066_v17 = vadd.f32 %v7269_v9, %v12909_v34  ;;  %v13068_v57 = vadd.f32 %v7902_v52, %v7747_v41  ;;  %v7748_v4 = vadd.f32 %v12978_v19, %v7522_v12  ;;  %v14894_v12 = vld [vmem:[#allocation65_spill] sm:$0xff] }
 0x79a   : > { %8947 = vmatmul.msk.bf16.gmra.mxu3 %vm6297_vm5, %v14891_v42  ;;  %8989 = vmatmul.msk.bf16.gmra.mxu1 %vm6297_vm5, %v12339_v22  ;;  %v7693_v42 = vpop.f32.mrf.mxu0 }
 0x79d   : > { %v7455_v16 = vpop.f32.mrf.mxu3 }
 0x79e   : > { %v7523_v34 = vadd.f32 %v7455_v16, %v12888_v46  ;;  %v14895_v16 = vld [vmem:[#allocation7_spill] sm:$0xff] }
 0x79f   : > { %v7271_v49 = vpop.f32.mrf.mxu2  ;;  %v7904_v11 = vpop.f32.mrf.mxu1 }
 0x7a0   : > { %v13076_v23 = vadd.f32 %v7271_v49, %v12922_v30  ;;  %v13078_v50 = vadd.f32 %v7904_v11, %v7748_v4  ;;  %v7749_v33 = vadd.f32 %v7681_v61, %v7523_v34 }
 0x7a4   : > { %9004 = vmatmul.msk.bf16.gmra.mxu2 %vm6297_vm5, %v14892_v6  ;;  %v14896_v6 = vld [vmem:[#allocation73_spill] sm:$0xff] }
 0x7a5   : > { %v7457_v43 = vpop.f32.mrf.mxu3 }
 0x7a6   : > { %v7524_v30 = vadd.f32 %v7457_v43, %v12899_v20 }
 0x7a7   : > { %v7274_v24 = vpop.f32.mrf.mxu2  ;;  %v7907_v22 = vpop.f32.mrf.mxu1 }
 0x7a8   : > { %v13084_v15 = vadd.f32 %v7274_v24, %v12935_v18  ;;  %v13086_v19 = vadd.f32 %v7907_v22, %v7749_v33  ;;  %v7750_v61 = vadd.f32 %v7683_v54, %v7524_v30  ;;  %v14897_v30 = vld [vmem:[#allocation11_spill] sm:$0xff] }
 0x7aa   : > { %8948 = vmatmul.msk.bf16.gmra.mxu3 %vm6297_vm5, %v14893_v32  ;;  %8990 = vmatmul.msk.bf16.gmra.mxu1 %vm6297_vm5, %v14867_v40 }
 0x7ad   : > { %v7460_v46 = vpop.f32.mrf.mxu3 }
 0x7ae   : > { %v7525_v36 = vadd.f32 %v7460_v46, %v12912_v1 }
 0x7af   : > { %v7276_v51 = vpop.f32.mrf.mxu2  ;;  %v7909_v13 = vpop.f32.mrf.mxu1 }
 0x7b0   : > { %v13095_v18 = vadd.f32 %v7276_v51, %v12948_v44  ;;  %v13097_v28 = vadd.f32 %v7909_v13, %v7750_v61  ;;  %v7751_v9 = vadd.f32 %v7686_v37, %v7525_v36  ;;  %v8406_v51 = vld [vmem:[%s13353_s7 + $0x18] sm:$0xff]  ;;  %v14898_v13 = vld [vmem:[#allocation114_spill] sm:$0xff] }
 0x7b1   : > { %8423 = vmatpush.msrb.mxu3 %v8406_v51 }
 0x7b4   : > { %9005 = vmatmul.msk.bf16.gmra.mxu2 %vm6297_vm5, %v14894_v12 }
 0x7b5   : > { %v7462_v20 = vpop.f32.mrf.mxu3 }
 0x7b6   : > { %v7526_v41 = vadd.f32 %v7462_v20, %v12925_v38 }
 0x7b7   : > { %v7279_v40 = vpop.f32.mrf.mxu2  ;;  %v7912_v52 = vpop.f32.mrf.mxu1 }
 0x7b8   : > { %v13103_v1 = vadd.f32 %v7279_v40, %v12959_v0  ;;  %v13105_v54 = vadd.f32 %v7912_v52, %v7751_v9  ;;  %v7752_v49 = vadd.f32 %v7688_v56, %v7526_v41  ;;  %v7696_v0 = vpop.f32.mrf.mxu0  ;;  %v13147_v52 = vld [vmem:[%s13352_s6] ss:$0 sm:$0xff] }
 0x7ba   : > { %8949 = vmatmul.msk.bf16.gmra.mxu3 %vm6297_vm5, %v14895_v16  ;;  %8991 = vmatmul.msk.bf16.gmra.mxu1 %vm6297_vm5, %v14873_v60 }
 0x7bd   : > { %v7465_v44 = vpop.f32.mrf.mxu3 }
 0x7be   : > { %v7527_v4 = vadd.f32 %v7465_v44, %v12938_v59 }
 0x7bf   : > { %v7281_v38 = vpop.f32.mrf.mxu2  ;;  %v7914_v37 = vpop.f32.mrf.mxu1 }
 0x7c0   : > { %v13113_v11 = vadd.f32 %v7281_v38, %v12972_v2  ;;  %v13115_v34 = vadd.f32 %v7914_v37, %v7752_v49  ;;  %v7753_v24 = vadd.f32 %v7691_v7, %v7527_v4  ;;  %v7698_v2 = vpop.f32.mrf.mxu0 }
 0x7c4   : > { %9006 = vmatmul.msk.bf16.gmra.mxu2 %vm6297_vm5, %v14896_v6 }
 0x7c5   : > { %v7467_v43 = vpop.f32.mrf.mxu3 }
 0x7c6   : > { %v7528_v33 = vadd.f32 %v7467_v43, %v12951_v14 }
 0x7c7   : > { %v7284_v60 = vpop.f32.mrf.mxu2  ;;  %v7917_v22 = vpop.f32.mrf.mxu1 }
 0x7c8   : > { %v13121_v59 = vadd.f32 %v7284_v60, %v12984_v35  ;;  %v13123_v56 = vadd.f32 %v7917_v22, %v7753_v24  ;;  %v7754_v36 = vadd.f32 %v7693_v42, %v7528_v33  ;;  %v7701_v12 = vpop.f32.mrf.mxu0  ;;  %v14899_v24 = vld [vmem:[#allocation71_spill] sm:$0xff] }
 0x7ca   : > { %8950 = vmatmul.msk.bf16.gmra.mxu3 %vm6297_vm5, %v14897_v30  ;;  %8992 = vmatmul.msk.bf16.gmra.mxu1 %vm6297_vm5, %v14877_v45 }
 0x7cd   : > { %v7470_v32 = vpop.f32.mrf.mxu3 }
 0x7ce   : > { %v7529_v46 = vadd.f32 %v7470_v32, %v12962_v21 }
 0x7cf   : > { %v7286_v14 = vpop.f32.mrf.mxu2  ;;  %v7919_v7 = vpop.f32.mrf.mxu1 }
 0x7d0   : > { %v13131_v61 = vadd.f32 %v7286_v14, %v12996_v5  ;;  %v13133_v35 = vadd.f32 %v7919_v7, %v7754_v36  ;;  %v7755_v20 = vadd.f32 %v7696_v0, %v7529_v46  ;;  %v7703_v38 = vpop.f32.mrf.mxu0 }
 0x7d4   : > { %9007 = vmatmul.msk.bf16.gmra.mxu2 %vm6297_vm5, %v14898_v13 }
 0x7d5   : > { %v7472_v45 = vpop.f32.mrf.mxu3 }
 0x7d6   : > { %v7530_v21 = vadd.f32 %v7472_v45, %v12975_v47 }
 0x7d7   : > { %v7922_v41 = vpop.f32.mrf.mxu1  ;;  %v8113_v9 = vpop.f32.mrf.mxu2 }
 0x7d8   : > { %v13141_v40 = vadd.f32 %v7922_v41, %v7755_v20  ;;  %v8193_v5 = vadd.f32 %v8113_v9, %v13008_v58  ;;  %v7756_v47 = vadd.f32 %v7698_v2, %v7530_v21  ;;  %v7706_v51 = vpop.f32.mrf.mxu0 }
 0x7da   : > { %7961 = vmatmul.bf16.gmra.mxu1 %v14882_v27  ;;  %v8229_v42 = vadd.f32 %v13147_v52, %v8193_v5 }
 0x7dc   : > { %v8261_v37 = vmul.f32 0.2, %v8229_v42 }
 0x7dd   : > { %v7475_v16 = vpop.f32.mrf.mxu3 }
 0x7de   : > { %v7531_v44 = vadd.f32 %v7475_v16, %v12987_v26  ;;  %v8293_v43 = vmax.f32 %v8229_v42, %v8261_v37 }
 0x7df   : > { %v7924_v4 = vpop.f32.mrf.mxu1  ;;  %v8115_v49 = vpop.f32.mrf.mxu2 }
 0x7e0   : > { %v13152_v0 = vadd.f32 %v7924_v4, %v7756_v47  ;;  %v8194_v58 = vadd.f32 %v8115_v49, %v13019_v48  ;;  %v7757_v30 = vadd.f32 %v7701_v12, %v7531_v44  ;;  %v8326_v46 = vsel %vm8325_vm6, %v8293_v43, 0.0  ;;  %v7708_v47 = vpop.f32.mrf.mxu0  ;;  %v14900_v49 = vld [vmem:[#allocation62_spill] sm:$0xff] }
 0x7e2   : > { %v8230_v6 = vadd.f32 %v13147_v52, %v8194_v58 }
 0x7e4   : > { %v8262_v33 = vmul.f32 0.2, %v8230_v6  ;;  %9008 = vmatmul.msk.bf16.gmra.mxu2 %vm6297_vm5, %v14899_v24 }
 0x7e5   : > { %v7477_v60 = vpop.f32.mrf.mxu3 }
 0x7e6   : > { %v8294_v22 = vmax.f32 %v8230_v6, %v8262_v33  ;;  %v7532_v26 = vadd.f32 %v7477_v60, %v12999_v55 }
 0x7e7   : > { %v7927_v2 = vpop.f32.mrf.mxu1  ;;  %v8118_v32 = vpop.f32.mrf.mxu2 }
 0x7e8   : > { %v8327_v36 = vsel %vm8325_vm6, %v8294_v22, 0.0  ;;  %v13161_v48 = vadd.f32 %v7927_v2, %v7757_v30  ;;  %v8195_v14 = vadd.f32 %v8118_v32, %v13028_v8  ;;  %v7758_v12 = vadd.f32 %v7703_v38, %v7532_v26  ;;  %v7711_v2 = vpop.f32.mrf.mxu0 }
 0x7e9   : > { %v8328_v7 = vadd.f32 %v8327_v36, %v8326_v46 }
 0x7ea   : > { %v8231_v13 = vadd.f32 %v13147_v52, %v8195_v14 }
 0x7ec   : > { %v8263_v45 = vmul.f32 0.2, %v8231_v13 }
 0x7ed   : > { %v7480_v21 = vpop.f32.mrf.mxu3 }
 0x7ee   : > { %v8295_v20 = vmax.f32 %v8231_v13, %v8263_v45  ;;  %v7533_v55 = vadd.f32 %v7480_v21, %v13006_v3 }
 0x7ef   : > { %v7929_v41 = vpop.f32.mrf.mxu1  ;;  %v8120_v9 = vpop.f32.mrf.mxu2 }
 0x7f0   : > { %v8329_v5 = vsel %vm8325_vm6, %v8295_v20, 0.0  ;;  %v13167_v42 = vadd.f32 %v7929_v41, %v7758_v12  ;;  %v8196_v16 = vadd.f32 %v8120_v9, %v13039_v29  ;;  %v7759_v38 = vadd.f32 %v7706_v51, %v7533_v55  ;;  %v14901_v55 = vld [vmem:[#allocation100_spill] sm:$0xff] }
 0x7f1   : > { %v8330_v44 = vadd.f32 %v8329_v5, %v8328_v7 }
 0x7f2   : > { %v8232_v8 = vadd.f32 %v13147_v52, %v8196_v16 }
 0x7f4   : > { %v8264_v4 = vmul.f32 0.2, %v8232_v8  ;;  %9009 = vmatmul.msk.bf16.gmra.mxu2 %vm6297_vm5, %v14900_v49 }
 0x7f5   : > { %v7482_v37 = vpop.f32.mrf.mxu3 }
 0x7f6   : > { %v8296_v58 = vmax.f32 %v8232_v8, %v8264_v4  ;;  %v7534_v3 = vadd.f32 %v7482_v37, %v13017_v10 }
 0x7f7   : > { %v7932_v6 = vpop.f32.mrf.mxu1  ;;  %v8123_v43 = vpop.f32.mrf.mxu2 }
 0x7f8   : > { %v8331_v33 = vsel %vm8325_vm6, %v8296_v58, 0.0  ;;  %v13175_v24 = vadd.f32 %v7932_v6, %v7759_v38  ;;  %v8197_v29 = vadd.f32 %v8123_v43, %v13048_v25  ;;  %v7760_v36 = vadd.f32 %v7708_v47, %v7534_v3  ;;  %v8405_v3 = vld [vmem:[%s13353_s7 + $0x10] sm:$0xff] }
 0x7f9   : > { %v8332_v60 = vadd.f32 %v8331_v33, %v8330_v44  ;;  %8424 = vmatpush.msrb.mxu3 %v8405_v3 }
 0x7fa   : > { %v8233_v22 = vadd.f32 %v13147_v52, %v8197_v29 }
 0x7fc   : > { %v8265_v26 = vmul.f32 0.2, %v8233_v22 }
 0x7fd   : > { %v7485_v30 = vpop.f32.mrf.mxu3 }
 0x7fe   : > { %v8297_v32 = vmax.f32 %v8233_v22, %v8265_v26  ;;  %v7535_v46 = vadd.f32 %v7485_v30, %v13026_v63 }
 0x7ff   : > { %v7934_v10 = vpop.f32.mrf.mxu1  ;;  %v8125_v14 = vpop.f32.mrf.mxu2 }
 0x800   : > { %v8333_v7 = vsel %vm8325_vm6, %v8297_v32, 0.0  ;;  %v13181_v51 = vadd.f32 %v7934_v10, %v7760_v36  ;;  %v8198_v13 = vadd.f32 %v8125_v14, %v13059_v39  ;;  %v7761_v45 = vadd.f32 %v7711_v2, %v7535_v46 }
 0x801   : > { %v8334_v25 = vadd.f32 %v8333_v7, %v8332_v60  ;;  %v14903_v7 = vld [vmem:[#allocation9_spill] sm:$0xff] }
 0x802   : > { %v8234_v21 = vadd.f32 %v13147_v52, %v8198_v13 }
 0x804   : > { %v8266_v20 = vmul.f32 0.2, %v8234_v21  ;;  %9010 = vmatmul.msk.bf16.gmra.mxu2 %vm6297_vm5, %v14901_v55 }
 0x806   : > { %v8298_v12 = vmax.f32 %v8234_v21, %v8266_v20 }
 0x807   : > { %v7937_v41 = vpop.f32.mrf.mxu1  ;;  %v8128_v63 = vpop.f32.mrf.mxu2 }
 0x808   : > { %v8335_v9 = vsel %vm8325_vm6, %v8298_v12, 0.0  ;;  %v13188_v5 = vadd.f32 %v7937_v41, %v7761_v45  ;;  %v8199_v16 = vadd.f32 %v8128_v63, %v13068_v57  ;;  %v14902_v57 = vld [vmem:[#allocation105_spill] sm:$0xff] }
 0x809   : > { %v8336_v44 = vadd.f32 %v8335_v9, %v8334_v25 }
 0x80a   : > { %v8235_v39 = vadd.f32 %v13147_v52, %v8199_v16 }
 0x80c   : > { %v8267_v8 = vmul.f32 0.2, %v8235_v39 }
 0x80e   : > { %v8299_v47 = vmax.f32 %v8235_v39, %v8267_v8  ;;  %v14904_v39 = vld [vmem:[#allocation6_spill] sm:$0xff] }
 0x80f   : > { %v8130_v4 = vpop.f32.mrf.mxu2 }
 0x810   : > { %v8337_v49 = vsel %vm8325_vm6, %v8299_v47, 0.0  ;;  %v8200_v37 = vadd.f32 %v8130_v4, %v13078_v50 }
 0x811   : > { %v8338_v58 = vadd.f32 %v8337_v49, %v8336_v44 }
 0x812   : > { %v8236_v38 = vadd.f32 %v13147_v52, %v8200_v37 }
 0x814   : > { %v8268_v6 = vmul.f32 0.2, %v8236_v38  ;;  %9011 = vmatmul.msk.bf16.gmra.mxu2 %vm6297_vm5, %v14902_v57 }
 0x816   : > { %v8300_v43 = vmax.f32 %v8236_v38, %v8268_v6 }
 0x817   : > { %v8133_v33 = vpop.f32.mrf.mxu2 }
 0x818   : > { %v8339_v29 = vsel %vm8325_vm6, %v8300_v43, 0.0  ;;  %v8201_v60 = vadd.f32 %v8133_v33, %v13086_v19 }
 0x819   : > { %v8340_v22 = vadd.f32 %v8339_v29, %v8338_v58 }
 0x81a   : > { %v8237_v50 = vadd.f32 %v13147_v52, %v8201_v60 }
 0x81c   : > { %v8269_v26 = vmul.f32 0.2, %v8237_v50 }
 0x81e   : > { %v8301_v30 = vmax.f32 %v8237_v50, %v8269_v26 }
 0x81f   : > { %v8135_v2 = vpop.f32.mrf.mxu2 }
 0x820   : > { %v8341_v32 = vsel %vm8325_vm6, %v8301_v30, 0.0  ;;  %v8202_v46 = vadd.f32 %v8135_v2, %v13097_v28 }
 0x821   : > { %v8342_v36 = vadd.f32 %v8341_v32, %v8340_v22 }
 0x822   : > { %v8238_v10 = vadd.f32 %v13147_v52, %v8202_v46 }
 0x824   : > { %v8270_v14 = vmul.f32 0.2, %v8238_v10  ;;  %9012 = vmatmul.msk.bf16.gmra.mxu2 %vm6297_vm5, %v14903_v7 }
 0x826   : > { %v8302_v13 = vmax.f32 %v8238_v10, %v8270_v14 }
 0x827   : > { %v8138_v45 = vpop.f32.mrf.mxu2 }
 0x828   : > { %v8343_v19 = vsel %vm8325_vm6, %v8302_v13, 0.0  ;;  %v8203_v25 = vadd.f32 %v8138_v45, %v13105_v54 }
 0x829   : > { %v8344_v21 = vadd.f32 %v8343_v19, %v8342_v36 }
 0x82a   : > { %v8239_v20 = vadd.f32 %v13147_v52, %v8203_v25 }
 0x82c   : > { %v8271_v55 = vmul.f32 0.2, %v8239_v20 }
 0x82e   : > { %v8303_v12 = vmax.f32 %v8239_v20, %v8271_v55 }
 0x82f   : > { %v8140_v41 = vpop.f32.mrf.mxu2 }
 0x830   : > { %v8345_v28 = vsel %vm8325_vm6, %v8303_v12, 0.0  ;;  %v8204_v63 = vadd.f32 %v8140_v41, %v13115_v34  ;;  %v7487_v41 = vpop.f32.mrf.mxu3 }
 0x831   : > { %v8346_v9 = vadd.f32 %v8345_v28, %v8344_v21 }
 0x832   : > { %v8240_v16 = vadd.f32 %v13147_v52, %v8204_v63 }
 0x834   : > { %v8272_v44 = vmul.f32 0.2, %v8240_v16  ;;  %9013 = vmatmul.msk.bf16.gmra.mxu2 %vm6297_vm5, %v14904_v39  ;;  %v7939_v39 = vpop.f32.mrf.mxu1 }
 0x836   : > { %v8304_v8 = vmax.f32 %v8240_v16, %v8272_v44  ;;  %v7713_v16 = vpop.f32.mrf.mxu0 }
 0x837   : > { %v8143_v47 = vpop.f32.mrf.mxu2 }
 0x838   : > { %v8347_v54 = vsel %vm8325_vm6, %v8304_v8, 0.0  ;;  %v8205_v4 = vadd.f32 %v8143_v47, %v13123_v56 }
 0x839   : > { %v8348_v49 = vadd.f32 %v8347_v54, %v8346_v9 }
 0x83a   : > { %v8241_v37 = vadd.f32 %v13147_v52, %v8205_v4 }
 0x83c   : > { %v8273_v58 = vmul.f32 0.2, %v8241_v37 }
 0x83e   : > { %v8305_v3 = vmax.f32 %v8241_v37, %v8273_v58 }
 0x83f   : > { %v8145_v38 = vpop.f32.mrf.mxu2 }
 0x840   : > { %v8349_v34 = vsel %vm8325_vm6, %v8305_v3, 0.0  ;;  %v8206_v6 = vadd.f32 %v8145_v38, %v13133_v35  ;;  %v7716_v3 = vpop.f32.mrf.mxu0 }
 0x841   : > { %v8350_v57 = vadd.f32 %v8349_v34, %v8348_v49  ;;  %v7490_v49 = vpop.f32.mrf.mxu3 }
 0x842   : > { %v8242_v43 = vadd.f32 %v13147_v52, %v8206_v6  ;;  %v7942_v6 = vpop.f32.mrf.mxu1 }
 0x844   : > { %v8274_v33 = vmul.f32 0.2, %v8242_v43  ;;  %8187 = vmatmul.bf16.gmra.mxu2 %v14882_v27  ;;  %v8404_v27 = vld [vmem:[%s13353_s7 + $0x8] sm:$0xff] }
 0x845   : > { %8425 = vmatpush.msrb.mxu3 %v8404_v27 }
 0x846   : > { %v8306_v29 = vmax.f32 %v8242_v43, %v8274_v33 }
 0x847   : > { %v8148_v60 = vpop.f32.mrf.mxu2 }
 0x848   : > { %v8351_v56 = vsel %vm8325_vm6, %v8306_v29, 0.0  ;;  %v8207_v22 = vadd.f32 %v8148_v60, %v13141_v40 }
 0x849   : > { %v8352_v50 = vadd.f32 %v8351_v56, %v8350_v57  ;;  %v7492_v29 = vpop.f32.mrf.mxu3  ;;  %v7536_v56 = vadd.f32 %v7487_v41, %v13037_v31 }
 0x84a   : > { %v8243_v26 = vadd.f32 %v13147_v52, %v8207_v22 }
 0x84c   : > { %v8275_v30 = vmul.f32 0.2, %v8243_v26 }
 0x84e   : > { %v8307_v2 = vmax.f32 %v8243_v26, %v8275_v30  ;;  %v7718_v30 = vpop.f32.mrf.mxu0 }
 0x84f   : > { %v8150_v32 = vpop.f32.mrf.mxu2 }
 0x850   : > { %v8353_v35 = vsel %vm8325_vm6, %v8307_v2, 0.0  ;;  %v8208_v46 = vadd.f32 %v8150_v32, %v13152_v0  ;;  %v7944_v32 = vpop.f32.mrf.mxu1 }
 0x851   : > { %v8354_v36 = vadd.f32 %v8353_v35, %v8352_v50  ;;  %v7495_v27 = vpop.f32.mrf.mxu3 }
 0x852   : > { %v8244_v10 = vadd.f32 %v13147_v52, %v8208_v46 }
 0x854   : > { %v8276_v14 = vmul.f32 0.2, %v8244_v10 }
 0x856   : > { %v8308_v40 = vmax.f32 %v8244_v10, %v8276_v14  ;;  %v7537_v14 = vadd.f32 %v7490_v49, %v13046_v62 }
 0x857   : > { %v8153_v7 = vpop.f32.mrf.mxu2 }
 0x858   : > { %v8355_v13 = vsel %vm8325_vm6, %v8308_v40, 0.0  ;;  %v8209_v45 = vadd.f32 %v8153_v7, %v13161_v48 }
 0x859   : > { %v8356_v19 = vadd.f32 %v8355_v13, %v8354_v36 }
 0x85a   : > { %v8245_v25 = vadd.f32 %v13147_v52, %v8209_v45  ;;  %v7763_v45 = vadd.f32 %v7716_v3, %v7537_v14 }
 0x85c   : > { %v8277_v21 = vmul.f32 0.2, %v8245_v25 }
 0x85e   : > { %v8309_v0 = vmax.f32 %v8245_v25, %v8277_v21  ;;  %v7947_v25 = vpop.f32.mrf.mxu1  ;;  %v7989_v21 = vadd.f32 %v7942_v6, %v7763_v45 }
 0x85f   : > { %v8155_v20 = vpop.f32.mrf.mxu2 }
 0x860   : > { %v8357_v55 = vsel %vm8325_vm6, %v8309_v0, 0.0  ;;  %v8210_v12 = vadd.f32 %v8155_v20, %v13167_v42 }
 0x861   : > { %v8358_v28 = vadd.f32 %v8357_v55, %v8356_v19  ;;  %v7538_v55 = vadd.f32 %v7492_v29, %v13057_v53 }
 0x862   : > { %v8246_v63 = vadd.f32 %v13147_v52, %v8210_v12 }
 0x864   : > { %v8278_v9 = vmul.f32 0.2, %v8246_v63 }
 0x866   : > { %v8310_v44 = vmax.f32 %v8246_v63, %v8278_v9  ;;  %v7764_v9 = vadd.f32 %v7718_v30, %v7538_v55 }
 0x867   : > { %v8158_v8 = vpop.f32.mrf.mxu2 }
 0x868   : > { %v8359_v48 = vsel %vm8325_vm6, %v8310_v44, 0.0  ;;  %v8211_v47 = vadd.f32 %v8158_v8, %v13175_v24 }
 0x869   : > { %v8360_v54 = vadd.f32 %v8359_v48, %v8358_v28  ;;  %v7497_v28 = vpop.f32.mrf.mxu3  ;;  %v7949_v48 = vpop.f32.mrf.mxu1 }
 0x86a   : > { %v8247_v4 = vadd.f32 %v13147_v52, %v8211_v47 }
 0x86c   : > { %v8279_v37 = vmul.f32 0.2, %v8247_v4 }
 0x86e   : > { %v8311_v58 = vmax.f32 %v8247_v4, %v8279_v37  ;;  %v8403_v37 = vld [vmem:[%s13353_s7] sm:$0xff] }
 0x86f   : > { %v8160_v42 = vpop.f32.mrf.mxu2  ;;  %8426 = vmatpush.msrb.mxu3 %v8403_v37 }
 0x870   : > { %v8361_v38 = vsel %vm8325_vm6, %v8311_v58, 0.0  ;;  %v8212_v34 = vadd.f32 %v8160_v42, %v13181_v51  ;;  %v7762_v51 = vadd.f32 %v7713_v16, %v7536_v56 }
 0x871   : > { %v8362_v57 = vadd.f32 %v8361_v38, %v8360_v54  ;;  %v7539_v54 = vadd.f32 %v7495_v27, %v13066_v17  ;;  %v7500_v42 = vpop.f32.mrf.mxu3  ;;  %v7540_v17 = vadd.f32 %v7497_v28, %v13076_v23 }
 0x872   : > { %v8248_v43 = vadd.f32 %v13147_v52, %v8212_v34  ;;  %v7988_v46 = vadd.f32 %v7939_v39, %v7762_v51  ;;  %v7990_v39 = vadd.f32 %v7944_v32, %v7764_v9  ;;  %v7541_v51 = vadd.f32 %v7500_v42, %v13084_v15 }
 0x874   : > { %v8280_v33 = vmul.f32 0.2, %v8248_v43 }
 0x876   : > { %v8312_v60 = vmax.f32 %v8248_v43, %v8280_v33 }
 0x877   : > { %v8163_v24 = vpop.f32.mrf.mxu2 }
 0x878   : > { %v8363_v22 = vsel %vm8325_vm6, %v8312_v60, 0.0  ;;  %v8213_v50 = vadd.f32 %v8163_v24, %v13188_v5  ;;  %v7721_v5 = vpop.f32.mrf.mxu0  ;;  %v7952_v60 = vpop.f32.mrf.mxu1 }
 0x879   : > { %v8364_v26 = vadd.f32 %v8363_v22, %v8362_v57  ;;  %v7765_v3 = vadd.f32 %v7721_v5, %v7539_v54 }
 0x87a   : > { %v8249_v2 = vadd.f32 %v13147_v52, %v8213_v50 }
 0x87b   : > { %v7991_v34 = vadd.f32 %v7947_v25, %v7765_v3 }
 0x87c   : > { %v8281_v35 = vmul.f32 0.2, %v8249_v2 }
 0x87e   : > { %v8313_v36 = vmax.f32 %v8249_v2, %v8281_v35 }
 0x87f   : > { %v8165_v10 = vpop.f32.mrf.mxu2 }
 0x880   : > { %v8365_v40 = vsel %vm8325_vm6, %v8313_v36, 0.0  ;;  %v8214_v31 = vadd.f32 %v8165_v10, %v7988_v46  ;;  %v7723_v44 = vpop.f32.mrf.mxu0  ;;  %v7954_v10 = vpop.f32.mrf.mxu1 }
 0x881   : > { %v8366_v7 = vadd.f32 %v8365_v40, %v8364_v26  ;;  %v7766_v22 = vadd.f32 %v7723_v44, %v7540_v17  ;;  %v7502_v26 = vpop.f32.mrf.mxu3 }
 0x882   : > { %v8250_v13 = vadd.f32 %v13147_v52, %v8214_v31  ;;  %v7542_v45 = vadd.f32 %v7502_v26, %v13095_v18 }
 0x883   : > { %v7992_v30 = vadd.f32 %v7949_v48, %v7766_v22 }
 0x884   : > { %v8282_v19 = vmul.f32 0.2, %v8250_v13 }
 0x886   : > { %v8314_v0 = vmax.f32 %v8250_v13, %v8282_v19 }
 0x887   : > { %v8168_v20 = vpop.f32.mrf.mxu2 }
 0x888   : > { %v8367_v12 = vsel %vm8325_vm6, %v8314_v0, 0.0  ;;  %v8215_v41 = vadd.f32 %v8168_v20, %v7989_v21  ;;  %v7726_v43 = vpop.f32.mrf.mxu0 }
 0x889   : > { %v8368_v62 = vadd.f32 %v8367_v12, %v8366_v7  ;;  %v7767_v14 = vadd.f32 %v7726_v43, %v7541_v51  ;;  %v7505_v13 = vpop.f32.mrf.mxu3  ;;  %v7957_v12 = vpop.f32.mrf.mxu1 }
 0x88a   : > { %v8251_v63 = vadd.f32 %v13147_v52, %v8215_v41 }
 0x88b   : > { %v7993_v31 = vadd.f32 %v7952_v60, %v7767_v14 }
 0x88c   : > { %v8283_v16 = vmul.f32 0.2, %v8251_v63 }
 0x88e   : > { %v8315_v8 = vmax.f32 %v8251_v63, %v8283_v16  ;;  %v7543_v63 = vadd.f32 %v7505_v13, %v13103_v1 }
 0x88f   : > { %v8170_v47 = vpop.f32.mrf.mxu2 }
 0x890   : > { %v8369_v4 = vsel %vm8325_vm6, %v8315_v8, 0.0  ;;  %v8216_v49 = vadd.f32 %v8170_v47, %v7990_v39  ;;  %v7728_v23 = vpop.f32.mrf.mxu0 }
 0x891   : > { %v8370_v53 = vadd.f32 %v8369_v4, %v8368_v62  ;;  %v7768_v20 = vadd.f32 %v7728_v23, %v7542_v45  ;;  %v7507_v44 = vpop.f32.mrf.mxu3 }
 0x892   : > { %v8252_v58 = vadd.f32 %v13147_v52, %v8216_v49  ;;  %v7959_v49 = vpop.f32.mrf.mxu1  ;;  %v7544_v37 = vadd.f32 %v7507_v44, %v13113_v11  ;;  %v8439_v44 = vld [vmem:[%s13355_s9 + $0x38] sm:$0xff] }
 0x893   : > { %v7994_v41 = vadd.f32 %v7954_v10, %v7768_v20  ;;  %v8446_v10 = vld [vmem:[%s13355_s9 + $0x70] sm:$0xff] }
 0x894   : > { %v8284_v38 = vmul.f32 0.2, %v8252_v58 }
 0x896   : > { %v8316_v6 = vmax.f32 %v8252_v58, %v8284_v38 }
 0x897   : > { %v8173_v57 = vpop.f32.mrf.mxu2 }
 0x898   : > { %v8371_v33 = vsel %vm8325_vm6, %v8316_v6, 0.0  ;;  %v8217_v29 = vadd.f32 %v8173_v57, %v7991_v34  ;;  %v7731_v0 = vpop.f32.mrf.mxu0 }
 0x899   : > { %v8372_v24 = vadd.f32 %v8371_v33, %v8370_v53  ;;  %v7769_v8 = vadd.f32 %v7731_v0, %v7543_v63  ;;  %v7510_v38 = vpop.f32.mrf.mxu3 }
 0x89a   : > { %v8253_v56 = vadd.f32 %v13147_v52, %v8217_v29  ;;  %v7545_v29 = vadd.f32 %v7510_v38, %v13121_v59 }
 0x89b   : > { %v7995_v54 = vadd.f32 %v7957_v12, %v7769_v8  ;;  %v8442_v12 = vld [vmem:[%s13355_s9 + $0x50] sm:$0xff] }
 0x89c   : > { %v8285_v50 = vmul.f32 0.2, %v8253_v56  ;;  %v8438_v8 = vld [vmem:[%s13355_s9 + $0x30] sm:$0xff] }
 0x89e   : > { %v8317_v2 = vmax.f32 %v8253_v56, %v8285_v50  ;;  %v7962_v56 = vpop.f32.mrf.mxu1 }
 0x89f   : > { %v8175_v32 = vpop.f32.mrf.mxu2 }
 0x8a0   : > { %v8373_v35 = vsel %vm8325_vm6, %v8317_v2, 0.0  ;;  %v8218_v46 = vadd.f32 %v8175_v32, %v7992_v30  ;;  %v7733_v47 = vpop.f32.mrf.mxu0 }
 0x8a1   : > { %v8374_v36 = vadd.f32 %v8373_v35, %v8372_v24  ;;  %v7770_v34 = vadd.f32 %v7733_v47, %v7544_v37  ;;  %v7512_v30 = vpop.f32.mrf.mxu3  ;;  %v8437_v47 = vld [vmem:[%s13355_s9 + $0x28] sm:$0xff]  ;;  %v8435_v37 = vld [vmem:[%s13355_s9 + $0x18] sm:$0xff] }
 0x8a2   : > { %v8254_v27 = vadd.f32 %v13147_v52, %v8218_v46  ;;  %v7546_v35 = vadd.f32 %v7512_v30, %v13131_v61  ;;  %v8445_v61 = vld [vmem:[%s13355_s9 + $0x68] sm:$0xff] }
 0x8a3   : > { %v7996_v57 = vadd.f32 %v7959_v49, %v7770_v34  ;;  %v8436_v49 = vld [vmem:[%s13355_s9 + $0x20] sm:$0xff] }
 0x8a4   : > { %v8286_v40 = vmul.f32 0.2, %v8254_v27 }
 0x8a6   : > { %v8318_v7 = vmax.f32 %v8254_v27, %v8286_v40  ;;  %v8447_v27 = vld [vmem:[%s13355_s9 + $0x78] sm:$0xff]  ;;  %v7964_v40 = vpop.f32.mrf.mxu1 }
 0x8a7   : > { %v8178_v5 = vpop.f32.mrf.mxu2  ;;  %8449 = vmatpush.msra.mxu3 %v8447_v27 }
 0x8a8   : > { %v8375_v19 = vsel %vm8325_vm6, %v8318_v7, 0.0  ;;  %v8219_v25 = vadd.f32 %v8178_v5, %v7993_v31  ;;  %v7736_v17 = vpop.f32.mrf.mxu0  ;;  %v9058_v31 = vmov 256.0   ;;  %v8444_v5 = vld [vmem:[%s13355_s9 + $0x60] sm:$0xff] }
 0x8a9   : > { %v8376_v15 = vadd.f32 %v8375_v19, %v8374_v36  ;;  %v7771_v50 = vadd.f32 %v7736_v17, %v7545_v29  ;;  %9043 = vrcp.f32 %v9058_v31  ;;  %8450 = vmatpush.msra.mxu3 %v8446_v10  ;;  %v8407_v17 = vld [vmem:[%s13354_s8] sm:$0x1] }
 0x8aa   : > { %v8255_v21 = vadd.f32 %v13147_v52, %v8219_v25 }
 0x8ab   : > { %v7997_v2 = vadd.f32 %v7962_v56, %v7771_v50  ;;  %8451 = vmatpush.msra.mxu3 %v8445_v61 }
 0x8ac   : > { %v8287_v55 = vmul.f32 0.2, %v8255_v21 }
 0x8ad   : > { %8452 = vmatpush.msra.mxu3 %v8444_v5 }
 0x8ae   : > { %v8319_v28 = vmax.f32 %v8255_v21, %v8287_v55 }
 0x8af   : > { %v8180_v62 = vpop.f32.mrf.mxu2  ;;  %v9044_v20 = vpop.eup %9043 }
 0x8b0   : > { %v8377_v9 = vsel %vm8325_vm6, %v8319_v28, 0.0  ;;  %v8220_v16 = vadd.f32 %v8180_v62, %v7994_v41  ;;  %v7738_v23 = vpop.f32.mrf.mxu0  ;;  %v8441_v28 = vld [vmem:[%s13355_s9 + $0x48] sm:$0xff]  ;;  %v8396_v63 = vmul.f32 256.0, %v9044_v20  ;;  %vm8400_vm8 = vweird.f32 %v9044_v20 }
 0x8b1   : > { %v8378_v18 = vadd.f32 %v8377_v9, %v8376_v15  ;;  %v7772_v7 = vadd.f32 %v7738_v23, %v7546_v35  ;;  %v8443_v15 = vld [vmem:[%s13355_s9 + $0x58] sm:$0xff]  ;;  %v8440_v9 = vld [vmem:[%s13355_s9 + $0x40] sm:$0xff] }
 0x8b2   : > { %v8256_v39 = vadd.f32 %v13147_v52, %v8220_v16  ;;  %8453 = vmatpush.msra.mxu3 %v8443_v15 }
 0x8b3   : > { %v7998_v45 = vadd.f32 %v7964_v40, %v7772_v7 }
 0x8b4   : > { %v8288_v48 = vmul.f32 0.2, %v8256_v39  ;;  %8454 = vmatpush.msra.mxu3 %v8442_v12 }
 0x8b6   : > { %v8320_v4 = vmax.f32 %v8256_v39, %v8288_v48  ;;  %8455 = vmatpush.msra.mxu3 %v8441_v28 }
 0x8b7   : > { %v8183_v53 = vpop.f32.mrf.mxu2 }
 0x8b8   : > { %v8379_v58 = vsel %vm8325_vm6, %v8320_v4, 0.0  ;;  %v8221_v42 = vadd.f32 %v8183_v53, %v7995_v54  ;;  %8456 = vmatpush.msra.mxu3 %v8440_v9 }
 0x8b9   : > { %v8380_v1 = vadd.f32 %v8379_v58, %v8378_v18  ;;  %v8397_v18 = vsub.f32 1.0, %v8396_v63 }
 0x8ba   : > { %v8257_v3 = vadd.f32 %v13147_v52, %v8221_v42  ;;  %8457 = vmatpush.msra.mxu3 %v8439_v44 }
 0x8bb   : > { %v8398_v54 = vmul.f32 %v9044_v20, %v8397_v18 }
 0x8bc   : > { %v8289_v6 = vmul.f32 0.2, %v8257_v3  ;;  %8458 = vmatpush.msra.mxu3 %v8438_v8 }
 0x8bd   : > { %v8399_v58 = vadd.f32 %v9044_v20, %v8398_v54 }
 0x8be   : > { %v8321_v43 = vmax.f32 %v8257_v3, %v8289_v6  ;;  %8459 = vmatpush.msra.mxu3 %v8437_v47  ;;  %v8434_v6 = vld [vmem:[%s13355_s9 + $0x10] sm:$0xff] }
 0x8bf   : > { %v8185_v33 = vpop.f32.mrf.mxu2  ;;  %v8401_v3 = vsel %vm8400_vm8, %v9044_v20, %v8399_v58 }
 0x8c0   : > { %v8381_v60 = vsel %vm8325_vm6, %v8321_v43, 0.0  ;;  %v8222_v24 = vadd.f32 %v8185_v33, %v7996_v57  ;;  %8460 = vmatpush.msra.mxu3 %v8436_v49  ;;  %v8433_v57 = vld [vmem:[%s13355_s9 + $0x8] sm:$0xff]  ;;  %v8432_v43 = vld [vmem:[%s13355_s9] sm:$0xff] }
 0x8c1   : > { %v8382_v11 = vadd.f32 %v8381_v60, %v8380_v1 }
 0x8c2   : > { %v8258_v22 = vadd.f32 %v13147_v52, %v8222_v24  ;;  %8461 = vmatpush.msra.mxu3 %v8435_v37  ;;  %v8448_v24 = vld [vmem:[%s13356_s10] sm:$0x1] }
 0x8c4   : > { %v8290_v26 = vmul.f32 0.2, %v8258_v22  ;;  %8462 = vmatpush.msra.mxu3 %v8434_v6 }
 0x8c6   : > { %v8322_v32 = vmax.f32 %v8258_v22, %v8290_v26  ;;  %8463 = vmatpush.msra.mxu3 %v8433_v57 }
 0x8c7   : > { %v8188_v51 = vpop.f32.mrf.mxu2 }
 0x8c8   : > { %v8383_v46 = vsel %vm8325_vm6, %v8322_v32, 0.0  ;;  %v8223_v36 = vadd.f32 %v8188_v51, %v7997_v2  ;;  %8464 = vmatpush.msra.mxu3 %v8432_v43 }
 0x8c9   : > { %v8384_v59 = vadd.f32 %v8383_v46, %v8382_v11 }
 0x8ca   : > { %v8259_v14 = vadd.f32 %v13147_v52, %v8223_v36 }
 0x8cc   : > { %v8291_v13 = vmul.f32 0.2, %v8259_v14 }
 0x8ce   : > { %v8323_v19 = vmax.f32 %v8259_v14, %v8291_v13 }
 0x8cf   : > { %v8190_v25 = vpop.f32.mrf.mxu2 }
 0x8d0   : > { %v8385_v21 = vsel %vm8325_vm6, %v8323_v19, 0.0  ;;  %v8224_v0 = vadd.f32 %v8190_v25, %v7998_v45 }
 0x8d1   : > { %v8386_v55 = vadd.f32 %v8385_v21, %v8384_v59 }
 0x8d2   : > { %v8260_v41 = vadd.f32 %v13147_v52, %v8224_v0 }
 0x8d4   : > { %v8292_v62 = vmul.f32 0.2, %v8260_v41 }
 0x8d6   : > { %v8324_v16 = vmax.f32 %v8260_v41, %v8292_v62 }
 0x8d8   : > { %v8387_v52 = vsel %vm8325_vm6, %v8324_v16, 0.0 }
 0x8d9   : > { %v8388_v39 = vadd.f32 %v8387_v52, %v8386_v55 }
 0x8db   : > { %v8389_v48 = vrot.slane %v8388_v39, 4 }
 0x8dd   : > { %v8390_v4 = vadd.f32 %v8389_v48, %v8388_v39 }
 0x8df   : > { %v8391_v53 = vrot.slane %v8390_v4, 2 }
 0x8e1   : > { %v8392_v42 = vadd.f32 %v8391_v53, %v8390_v4 }
 0x8e3   : > { %v8393_v1 = vrot.slane %v8392_v42, 1 }
 0x8e5   : > { %v8394_v38 = vadd.f32 %v8393_v1, %v8392_v42 }
 0x8e7   : > { %v8402_v34 = vmul.f32 %v8401_v3, %v8394_v38 }
 0x8e9   : > { %9014 = vmatmul.msk.f32.vlgmr.msrb.gmra.mxu3 %vm8325_vm6, %v8402_v34 }
 0x96c   : > { %v8428_v33 = vpop.f32.mrf.mxu3 }
 0x96d   : > { %v8429_v29 = vadd.f32 %v8428_v33, %v8407_v17 }
 0x96f   : > { %v8431_v60 = vmax.f32 %v8429_v29, 0.0 }
 0x971   : > { %8465 = vmatmul.f32.vlgmr.msra.gmra.mxu3 %v8431_v60 }
 0x9f4   : > { %v8466_v56 = vpop.f32.mrf.mxu3 }
 0x9f5   : > { %v8467_v11 = vadd.f32 %v8466_v56, %v8448_v24 }
 0x9f7   : > { %v8469_v22 = vperm.slane %v8467_v11, 0 }
 0x9f9   : > { %8470 = vst [vmem:[%s384_s13] sm:$0xff] %v8469_v22 }
 0x9fa PF: > { %s21_s17 = sadd.s32 1, %s9055_s17  }
 0x9fb   : > { %p18_p4 = scmp.ge.s32.totalorder %s21_s17, 4  }
 0x9fd   :  { %20 = sbr.rel (!%p18_p4) target bundleno = 1 (0x1), region = 118 }

</bundles_post_ra>
